<compile_context>
chip_gen: v6e
topology: v6e:2x2x1
jax: 0.10.0
libtpu: 0.0.40
codegen_flags: <defaults>
</compile_context>

<pallas_src>
import jax
import jax.numpy as jnp
import numpy as np
from jax.experimental import pallas as pl
from jax.experimental.pallas import tpu as pltpu

_BLUR_1D = (1.0, 3.0, 3.0, 1.0)   # antialiased_cnns.BlurPool default filt_size=4
_BLUR_NORM = 64.0                 # sum(outer([1,3,3,1],[1,3,3,1]))
_BN_EPS = 1e-5


# ------------------------------ kernel helpers ------------------------------

def _write_reflect_pad(pref, z, Lh, Lw):
    """Write ReflectionPad2d((left=1,right=2,top=1,bottom=2)) of z into the
    zero-initialised VMEM scratch `pref`.  The scratch may be one row/col
    larger than Lh+3 / Lw+3 (odd-size branch); the extra cells only feed
    stride-1 blur outputs that the decimation discards."""
    pref[...] = jnp.zeros_like(pref)
    # interior
    pref[:, 1:1 + Lh, 1:1 + Lw, :] = z
    # reflect along H: top row <- z[1], bottom rows <- z[Lh-2], z[Lh-3]
    pref[:, 0:1, 1:1 + Lw, :] = z[:, 1:2]
    pref[:, 1 + Lh:2 + Lh, 1:1 + Lw, :] = z[:, Lh - 2:Lh - 1]
    pref[:, 2 + Lh:3 + Lh, 1:1 + Lw, :] = z[:, Lh - 3:Lh - 2]
    # reflect along W: copy full padded columns so the corners come out right
    pref[:, :, 0:1, :] = pref[:, :, 2:3, :]
    pref[:, :, 1 + Lw:2 + Lw, :] = pref[:, :, Lw - 1:Lw, :]
    pref[:, :, 2 + Lw:3 + Lw, :] = pref[:, :, Lw - 2:Lw - 1, :]


def _blur_decimate(p, Ho, Wo):
    """Separable 4-tap blur (weights [1,3,3,1]/8 per axis) on the reflect-padded
    tensor with the stride-2 decimation folded in (even output phase), i.e.
    exactly BlurPool(filt_size=4, stride=2)."""
    B = p.shape[0]
    C = p.shape[3]
    Wp = p.shape[2]
    Hs, Ws = 2 * Ho, 2 * Wo

    # vertical (H) pass at stride 1, then keep even rows (phase 0)
    t = (_BLUR_1D[0] / _BLUR_NORM) * p[:, 0:Hs]
    for u in range(1, 4):
        t = t + (_BLUR_1D[u] / _BLUR_NORM) * p[:, u:u + Hs]
    t = t.reshape(B, Ho, 2, Wp, C)[:, :, 0:1].reshape(B, Ho, Wp, C)

    # horizontal (W) pass at stride 1, then keep even cols (phase 0)
    s = _BLUR_1D[0] * t[:, :, 0:Ws, :]
    for v in range(1, 4):
        s = s + _BLUR_1D[v] * t[:, :, v:v + Ws, :]
    s = s.reshape(B, Ho, Wo, 2, C)[:, :, :, 0:1, :].reshape(B, Ho, Wo, C)
    return s


# ------------------------------ fused kernel --------------------------------

def _down_block_kernel(xp_ref, wdw_ref, wpwt_ref, gamma_ref, beta_ref,
                       w1t_ref, w2t_ref, bfuse_ref, out_ref, p1_ref, p2_ref):
    B, Hp, Wp, C = xp_ref.shape          # xp is the zero-padded (pad=1) input
    H, W = Hp - 2, Wp - 2
    Ho, Wo = H // 2, W // 2

    xp = xp_ref[...]
    x = xp[:, 1:1 + H, 1:1 + W, :]       # un-padded input

    # --- branch 1: depthwise 3x3 (pad=1) -> 1x1 -> BN(batch stats) -> ReLU6 --
    wdw = wdw_ref[...]                   # (3, 3, C)
    acc = xp[:, 0:H, 0:W, :] * wdw[0, 0]          # init from first tap
    for u in range(3):
        for v in range(3):
            if u == 0 and v == 0:
                continue
            acc = acc + xp[:, u:u + H, v:v + W, :] * wdw[u, v]

    y = jnp.dot(acc.reshape(B * H * W, C), wpwt_ref[...],
                preferred_element_type=jnp.float32)        # (B*H*W, C)

    # one-pass batch statistics (biased variance), BN folded to scale/shift
    n = float(B * H * W)
    s1 = jnp.sum(y, axis=0, keepdims=True)
    s2 = jnp.sum(y * y, axis=0, keepdims=True)
    mean = s1 / n
    var = s2 / n - mean * mean
    scale = gamma_ref[...] * jax.lax.rsqrt(var + _BN_EPS)
    shift = beta_ref[...] - mean * scale
    out1 = jnp.clip(y * scale + shift, 0.0, 6.0).reshape(B, H, W, C)

    # --- branch 2: MaxPool2d(kernel_size=2, stride=1) ------------------------
    mp = jnp.maximum(
        jnp.maximum(x[:, :H - 1, :W - 1, :], x[:, 1:, :W - 1, :]),
        jnp.maximum(x[:, :H - 1, 1:, :], x[:, 1:, 1:, :]))   # (B, H-1, W-1, C)

    # --- BlurPool(stride=2) on both branches (reflect pad in VMEM scratch) ---
    _write_reflect_pad(p1_ref, out1, H, W)
    _write_reflect_pad(p2_ref, mp, H - 1, W - 1)
    b1 = _blur_decimate(p1_ref[...], Ho, Wo)                 # (B, Ho, Wo, C)
    b2 = _blur_decimate(p2_ref[...], Ho, Wo)

    # --- fuse: 1x1 conv over channel concat, concat folded into two dots -----
    C2 = out_ref.shape[-1]
    yf = (jnp.dot(b1.reshape(B * Ho * Wo, C), w1t_ref[...],
                  preferred_element_type=jnp.float32)
          + jnp.dot(b2.reshape(B * Ho * Wo, C), w2t_ref[...],
                    preferred_element_type=jnp.float32)
          + bfuse_ref[...])
    out_ref[...] = yf.reshape(B, Ho, Wo, C2)


# ------------------------------ wrapper --------------------------------------

def _fixed_spec(shape):
    zeros = (0,) * len(shape)
    return pl.BlockSpec(shape, lambda i: zeros)


def down_block_forward(x_nchw, params):
    x = jnp.transpose(x_nchw, (0, 2, 3, 1)).astype(jnp.float32)   # NCHW -> NHWC
    B, H, W, C = x.shape
    assert H % 2 == 0 and W % 2 == 0, "DownBlock needs even spatial dims"
    Ho, Wo = H // 2, W // 2
    C2 = 2 * C

    # zero pad for the depthwise 3x3 (padding=1); everything else is in-kernel
    xp = jnp.pad(x, ((0, 0), (1, 1), (1, 1), (0, 0)))

    w1t = params["w_fuse_t"][:C]     # (C, 2C)  -- rows = branch-1 channels
    w2t = params["w_fuse_t"][C:]     # (C, 2C)  -- rows = branch-2 channels

    out = pl.pallas_call(
        _down_block_kernel,
        out_shape=jax.ShapeDtypeStruct((B, Ho, Wo, C2), jnp.float32),
        grid=(1,),
        in_specs=[
            _fixed_spec(xp.shape),
            _fixed_spec(params["wdw"].shape),
            _fixed_spec(params["wpwt"].shape),
            _fixed_spec(params["gamma"].shape),
            _fixed_spec(params["beta"].shape),
            _fixed_spec(w1t.shape),
            _fixed_spec(w2t.shape),
            _fixed_spec(params["b_fuse"].shape),
        ],
        out_specs=_fixed_spec((B, Ho, Wo, C2)),
        scratch_shapes=[
            pltpu.VMEM((B, H + 3, W + 3, C), jnp.float32),   # reflect-padded branch 1
            pltpu.VMEM((B, H + 3, W + 3, C), jnp.float32),   # reflect-padded branch 2
        ],
    )(xp, params["wdw"], params["wpwt"], params["gamma"], params["beta"],
      w1t, w2t, params["b_fuse"])

    return jnp.transpose(out, (0, 3, 1, 2))                       # back to NCHW


# ------------------------------- parameters ----------------------------------

def init_params(key, C):
    k1, k2, k3, k4, k5, k6 = jax.random.split(key, 6)
    wdw = 0.3 * jax.random.normal(k1, (3, 3, C), jnp.float32)      # torch (C,1,3,3)
    wpw = 0.3 * jax.random.normal(k2, (C, C), jnp.float32)         # torch (C,C,1,1) -> (out,in)
    gamma = 1.0 + 0.1 * jax.random.normal(k3, (1, C), jnp.float32)
    beta = 0.1 * jax.random.normal(k4, (1, C), jnp.float32)
    w_fuse = 0.3 * jax.random.normal(k5, (2 * C, 2 * C), jnp.float32)  # torch (2C,2C,1,1)
    b_fuse = 0.1 * jax.random.normal(k6, (1, 2 * C), jnp.float32)
    return {"wdw": wdw, "wpwt": wpw.T, "gamma": gamma, "beta": beta,
            "w_fuse_t": w_fuse.T, "b_fuse": b_fuse}


# ----------------------- pure-JAX reference (self-check) ---------------------

def reference_forward(x_nchw, params):
    x = jnp.transpose(x_nchw, (0, 2, 3, 1)).astype(jnp.float32)
    B, H, W, C = x.shape
    prec = jax.lax.Precision.HIGHEST

    dw_filt = params["wdw"][:, :, None, :]              # HWIO, groups=C
    dn = jax.lax.conv_dimension_numbers(x.shape, dw_filt.shape,
                                        ("NHWC", "HWIO", "NHWC"))
    dw = jax.lax.conv_general_dilated(x, dw_filt, (1, 1), ((1, 1), (1, 1)),
                                      dimension_numbers=dn,
                                      feature_group_count=C, precision=prec)
    pw_filt = params["wpwt"][None, None, :, :]
    dn1 = jax.lax.conv_dimension_numbers(dw.shape, pw_filt.shape,
                                         ("NHWC", "HWIO", "NHWC"))
    pw = jax.lax.conv_general_dilated(dw, pw_filt, (1, 1), ((0, 0), (0, 0)),
                                      dimension_numbers=dn1, precision=prec)
    mean = jnp.mean(pw, axis=(0, 1, 2), keepdims=True)
    var = jnp.mean((pw - mean) ** 2, axis=(0, 1, 2), keepdims=True)
    out1 = jnp.clip((pw - mean) / jnp.sqrt(var + _BN_EPS) * params["gamma"]
                    + params["beta"], 0.0, 6.0)
    out2 = jax.lax.reduce_window(x, -jnp.inf, jax.lax.max,
                                 (1, 2, 2, 1), (1, 1, 1, 1), "VALID")

    a = jnp.array(_BLUR_1D, jnp.float32)
    blur_filt = jnp.tile((jnp.outer(a, a) / _BLUR_NORM)[:, :, None, None],
                         (1, 1, 1, C))

    def blur(z):
        zp = jnp.pad(z, ((0, 0), (1, 2), (1, 2), (0, 0)), mode="reflect")
        dnb = jax.lax.conv_dimension_numbers(zp.shape, blur_filt.shape,
                                             ("NHWC", "HWIO", "NHWC"))
        return jax.lax.conv_general_dilated(zp, blur_filt, (2, 2),
                                            ((0, 0), (0, 0)),
                                            dimension_numbers=dnb,
                                            feature_group_count=C,
                                            precision=prec)

    cat = jnp.concatenate([blur(out1), blur(out2)], axis=-1)
    fuse = jnp.einsum("bhwc,cd->bhwd", cat, params["w_fuse_t"],
                      precision=prec) + params["b_fuse"]
    return jnp.transpose(fuse, (0, 3, 1, 2))


# ----------------------------------- main ------------------------------------

if __name__ == "__main__":
    key = jax.random.PRNGKey(0)
    kx, kp = jax.random.split(key)
    B, C, H, W = 2, 4, 16, 16
    x = jax.random.normal(kx, (B, C, H, W), jnp.float32)   # NCHW, as in PyTorch
    params = init_params(kp, C)

    out = jax.jit(down_block_forward)(x, params)
    out = jax.block_until_ready(out)

    ref = jax.block_until_ready(reference_forward(x, params))
    assert out.shape == (B, 2 * C, H // 2, W // 2), out.shape
    np.testing.assert_allclose(np.asarray(out), np.asarray(ref),
                               rtol=1e-3, atol=1e-3)
    print("KERNEL_OK")
</pallas_src>

<mosaic_0001>
module attributes {stable_mosaic.version = 11 : i64} {
  func.func @_down_block_kernel(%arg0: i32, %arg1: memref<2x18x18x4xf32, #tpu.memory_space<vmem>>, %arg2: memref<3x3x4xf32, #tpu.memory_space<vmem>>, %arg3: memref<4x4xf32, #tpu.memory_space<vmem>>, %arg4: memref<1x4xf32, #tpu.memory_space<vmem>>, %arg5: memref<1x4xf32, #tpu.memory_space<vmem>>, %arg6: memref<4x8xf32, #tpu.memory_space<vmem>>, %arg7: memref<4x8xf32, #tpu.memory_space<vmem>>, %arg8: memref<1x8xf32, #tpu.memory_space<vmem>>, %arg9: memref<2x8x8x8xf32, #tpu.memory_space<vmem>>, %arg10: memref<2x19x19x4xf32, #tpu.memory_space<vmem>>, %arg11: memref<2x19x19x4xf32, #tpu.memory_space<vmem>>) attributes {dimension_semantics = [#tpu.dimension_semantics<arbitrary>], iteration_bounds = array<i64: 1>, scalar_prefetch = 0 : i64, scratch_operands = 2 : i64, tpu.core_type = #tpu.core_type<tc>, window_params = [{pipeline_mode = #tpu.pipeline_mode<synchronous>, transform_indices = @transform_0, window_bounds = array<i64: 2, 18, 18, 4>}, {pipeline_mode = #tpu.pipeline_mode<synchronous>, transform_indices = @transform_1, window_bounds = array<i64: 3, 3, 4>}, {pipeline_mode = #tpu.pipeline_mode<synchronous>, transform_indices = @transform_2, window_bounds = array<i64: 4, 4>}, {pipeline_mode = #tpu.pipeline_mode<synchronous>, transform_indices = @transform_3, window_bounds = array<i64: 1, 4>}, {pipeline_mode = #tpu.pipeline_mode<synchronous>, transform_indices = @transform_4, window_bounds = array<i64: 1, 4>}, {pipeline_mode = #tpu.pipeline_mode<synchronous>, transform_indices = @transform_5, window_bounds = array<i64: 4, 8>}, {pipeline_mode = #tpu.pipeline_mode<synchronous>, transform_indices = @transform_6, window_bounds = array<i64: 4, 8>}, {pipeline_mode = #tpu.pipeline_mode<synchronous>, transform_indices = @transform_7, window_bounds = array<i64: 1, 8>}, {pipeline_mode = #tpu.pipeline_mode<synchronous>, transform_indices = @transform_8, window_bounds = array<i64: 2, 8, 8, 8>}]} {
    %c0 = arith.constant 0 : index
    %c0_0 = arith.constant 0 : index
    %c0_1 = arith.constant 0 : index
    %c0_2 = arith.constant 0 : index
    %0 = vector.load %arg1[%c0, %c0_0, %c0_1, %c0_2] : memref<2x18x18x4xf32, #tpu.memory_space<vmem>>, vector<2x18x18x4xf32>
    %1 = vector.extract_strided_slice %0 {offsets = [0, 1, 1, 0], sizes = [2, 16, 16, 4], strides = [1, 1, 1, 1]} : vector<2x18x18x4xf32> to vector<2x16x16x4xf32>
    %c0_3 = arith.constant 0 : index
    %c0_4 = arith.constant 0 : index
    %c0_5 = arith.constant 0 : index
    %2 = vector.load %arg2[%c0_3, %c0_4, %c0_5] : memref<3x3x4xf32, #tpu.memory_space<vmem>>, vector<3x3x4xf32>
    %3 = vector.extract_strided_slice %0 {offsets = [0, 0, 0, 0], sizes = [2, 16, 16, 4], strides = [1, 1, 1, 1]} : vector<2x18x18x4xf32> to vector<2x16x16x4xf32>
    %4 = vector.extract_strided_slice %2 {offsets = [0, 0, 0], sizes = [1, 1, 4], strides = [1, 1, 1]} : vector<3x3x4xf32> to vector<1x1x4xf32>
    %5 = vector.shape_cast %4 : vector<1x1x4xf32> to vector<4xf32>
    %6 = vector.shape_cast %5 : vector<4xf32> to vector<1x1x1x4xf32>
    %7 = vector.broadcast %6 : vector<1x1x1x4xf32> to vector<2x16x16x4xf32>
    %8 = arith.mulf %3, %7 : vector<2x16x16x4xf32>
    %9 = vector.extract_strided_slice %0 {offsets = [0, 0, 1, 0], sizes = [2, 16, 16, 4], strides = [1, 1, 1, 1]} : vector<2x18x18x4xf32> to vector<2x16x16x4xf32>
    %10 = vector.extract_strided_slice %2 {offsets = [0, 1, 0], sizes = [1, 1, 4], strides = [1, 1, 1]} : vector<3x3x4xf32> to vector<1x1x4xf32>
    %11 = vector.shape_cast %10 : vector<1x1x4xf32> to vector<4xf32>
    %12 = vector.shape_cast %11 : vector<4xf32> to vector<1x1x1x4xf32>
    %13 = vector.broadcast %12 : vector<1x1x1x4xf32> to vector<2x16x16x4xf32>
    %14 = arith.mulf %9, %13 : vector<2x16x16x4xf32>
    %15 = arith.addf %8, %14 : vector<2x16x16x4xf32>
    %16 = vector.extract_strided_slice %0 {offsets = [0, 0, 2, 0], sizes = [2, 16, 16, 4], strides = [1, 1, 1, 1]} : vector<2x18x18x4xf32> to vector<2x16x16x4xf32>
    %17 = vector.extract_strided_slice %2 {offsets = [0, 2, 0], sizes = [1, 1, 4], strides = [1, 1, 1]} : vector<3x3x4xf32> to vector<1x1x4xf32>
    %18 = vector.shape_cast %17 : vector<1x1x4xf32> to vector<4xf32>
    %19 = vector.shape_cast %18 : vector<4xf32> to vector<1x1x1x4xf32>
    %20 = vector.broadcast %19 : vector<1x1x1x4xf32> to vector<2x16x16x4xf32>
    %21 = arith.mulf %16, %20 : vector<2x16x16x4xf32>
    %22 = arith.addf %15, %21 : vector<2x16x16x4xf32>
    %23 = vector.extract_strided_slice %0 {offsets = [0, 1, 0, 0], sizes = [2, 16, 16, 4], strides = [1, 1, 1, 1]} : vector<2x18x18x4xf32> to vector<2x16x16x4xf32>
    %24 = vector.extract_strided_slice %2 {offsets = [1, 0, 0], sizes = [1, 1, 4], strides = [1, 1, 1]} : vector<3x3x4xf32> to vector<1x1x4xf32>
    %25 = vector.shape_cast %24 : vector<1x1x4xf32> to vector<4xf32>
    %26 = vector.shape_cast %25 : vector<4xf32> to vector<1x1x1x4xf32>
    %27 = vector.broadcast %26 : vector<1x1x1x4xf32> to vector<2x16x16x4xf32>
    %28 = arith.mulf %23, %27 : vector<2x16x16x4xf32>
    %29 = arith.addf %22, %28 : vector<2x16x16x4xf32>
    %30 = vector.extract_strided_slice %0 {offsets = [0, 1, 1, 0], sizes = [2, 16, 16, 4], strides = [1, 1, 1, 1]} : vector<2x18x18x4xf32> to vector<2x16x16x4xf32>
    %31 = vector.extract_strided_slice %2 {offsets = [1, 1, 0], sizes = [1, 1, 4], strides = [1, 1, 1]} : vector<3x3x4xf32> to vector<1x1x4xf32>
    %32 = vector.shape_cast %31 : vector<1x1x4xf32> to vector<4xf32>
    %33 = vector.shape_cast %32 : vector<4xf32> to vector<1x1x1x4xf32>
    %34 = vector.broadcast %33 : vector<1x1x1x4xf32> to vector<2x16x16x4xf32>
    %35 = arith.mulf %30, %34 : vector<2x16x16x4xf32>
    %36 = arith.addf %29, %35 : vector<2x16x16x4xf32>
    %37 = vector.extract_strided_slice %0 {offsets = [0, 1, 2, 0], sizes = [2, 16, 16, 4], strides = [1, 1, 1, 1]} : vector<2x18x18x4xf32> to vector<2x16x16x4xf32>
    %38 = vector.extract_strided_slice %2 {offsets = [1, 2, 0], sizes = [1, 1, 4], strides = [1, 1, 1]} : vector<3x3x4xf32> to vector<1x1x4xf32>
    %39 = vector.shape_cast %38 : vector<1x1x4xf32> to vector<4xf32>
    %40 = vector.shape_cast %39 : vector<4xf32> to vector<1x1x1x4xf32>
    %41 = vector.broadcast %40 : vector<1x1x1x4xf32> to vector<2x16x16x4xf32>
    %42 = arith.mulf %37, %41 : vector<2x16x16x4xf32>
    %43 = arith.addf %36, %42 : vector<2x16x16x4xf32>
    %44 = vector.extract_strided_slice %0 {offsets = [0, 2, 0, 0], sizes = [2, 16, 16, 4], strides = [1, 1, 1, 1]} : vector<2x18x18x4xf32> to vector<2x16x16x4xf32>
    %45 = vector.extract_strided_slice %2 {offsets = [2, 0, 0], sizes = [1, 1, 4], strides = [1, 1, 1]} : vector<3x3x4xf32> to vector<1x1x4xf32>
    %46 = vector.shape_cast %45 : vector<1x1x4xf32> to vector<4xf32>
    %47 = vector.shape_cast %46 : vector<4xf32> to vector<1x1x1x4xf32>
    %48 = vector.broadcast %47 : vector<1x1x1x4xf32> to vector<2x16x16x4xf32>
    %49 = arith.mulf %44, %48 : vector<2x16x16x4xf32>
    %50 = arith.addf %43, %49 : vector<2x16x16x4xf32>
    %51 = vector.extract_strided_slice %0 {offsets = [0, 2, 1, 0], sizes = [2, 16, 16, 4], strides = [1, 1, 1, 1]} : vector<2x18x18x4xf32> to vector<2x16x16x4xf32>
    %52 = vector.extract_strided_slice %2 {offsets = [2, 1, 0], sizes = [1, 1, 4], strides = [1, 1, 1]} : vector<3x3x4xf32> to vector<1x1x4xf32>
    %53 = vector.shape_cast %52 : vector<1x1x4xf32> to vector<4xf32>
    %54 = vector.shape_cast %53 : vector<4xf32> to vector<1x1x1x4xf32>
    %55 = vector.broadcast %54 : vector<1x1x1x4xf32> to vector<2x16x16x4xf32>
    %56 = arith.mulf %51, %55 : vector<2x16x16x4xf32>
    %57 = arith.addf %50, %56 : vector<2x16x16x4xf32>
    %58 = vector.extract_strided_slice %0 {offsets = [0, 2, 2, 0], sizes = [2, 16, 16, 4], strides = [1, 1, 1, 1]} : vector<2x18x18x4xf32> to vector<2x16x16x4xf32>
    %59 = vector.extract_strided_slice %2 {offsets = [2, 2, 0], sizes = [1, 1, 4], strides = [1, 1, 1]} : vector<3x3x4xf32> to vector<1x1x4xf32>
    %60 = vector.shape_cast %59 : vector<1x1x4xf32> to vector<4xf32>
    %61 = vector.shape_cast %60 : vector<4xf32> to vector<1x1x1x4xf32>
    %62 = vector.broadcast %61 : vector<1x1x1x4xf32> to vector<2x16x16x4xf32>
    %63 = arith.mulf %58, %62 : vector<2x16x16x4xf32>
    %64 = arith.addf %57, %63 : vector<2x16x16x4xf32>
    %65 = vector.shape_cast %64 : vector<2x16x16x4xf32> to vector<512x4xf32>
    %c0_6 = arith.constant 0 : index
    %c0_7 = arith.constant 0 : index
    %66 = vector.load %arg3[%c0_6, %c0_7] : memref<4x4xf32, #tpu.memory_space<vmem>>, vector<4x4xf32>
    %cst = arith.constant dense<0.000000e+00> : vector<512x4xf32>
    %67 = tpu.matmul %65, %66, %cst {dimension_numbers = #tpu.dot_dimension_numbers<[1], [0], [0], [1], [0, 0, 1, 1], [], []>} : vector<512x4xf32>, vector<4x4xf32>, vector<512x4xf32> -> vector<512x4xf32>
    %cst_8 = arith.constant dense<0.000000e+00> : vector<4xf32>
    %68 = vector.multi_reduction <add>, %67, %cst_8 [0] : vector<512x4xf32> to vector<4xf32>
    %69 = vector.shape_cast %68 : vector<4xf32> to vector<1x4xf32>
    %70 = arith.mulf %67, %67 : vector<512x4xf32>
    %cst_9 = arith.constant dense<0.000000e+00> : vector<4xf32>
    %71 = vector.multi_reduction <add>, %70, %cst_9 [0] : vector<512x4xf32> to vector<4xf32>
    %72 = vector.shape_cast %71 : vector<4xf32> to vector<1x4xf32>
    %cst_10 = arith.constant 5.120000e+02 : f32
    %73 = vector.broadcast %cst_10 : f32 to vector<1x4xf32>
    %74 = arith.divf %69, %73 : vector<1x4xf32>
    %cst_11 = arith.constant 5.120000e+02 : f32
    %75 = vector.broadcast %cst_11 : f32 to vector<1x4xf32>
    %76 = arith.divf %72, %75 : vector<1x4xf32>
    %77 = arith.mulf %74, %74 : vector<1x4xf32>
    %78 = arith.subf %76, %77 : vector<1x4xf32>
    %c0_12 = arith.constant 0 : index
    %c0_13 = arith.constant 0 : index
    %79 = vector.load %arg4[%c0_12, %c0_13] : memref<1x4xf32, #tpu.memory_space<vmem>>, vector<1x4xf32>
    %cst_14 = arith.constant 9.99999974E-6 : f32
    %80 = vector.broadcast %cst_14 : f32 to vector<1x4xf32>
    %81 = arith.addf %78, %80 : vector<1x4xf32>
    %82 = math.rsqrt %81 : vector<1x4xf32>
    %83 = arith.mulf %79, %82 : vector<1x4xf32>
    %c0_15 = arith.constant 0 : index
    %c0_16 = arith.constant 0 : index
    %84 = vector.load %arg5[%c0_15, %c0_16] : memref<1x4xf32, #tpu.memory_space<vmem>>, vector<1x4xf32>
    %85 = arith.mulf %74, %83 : vector<1x4xf32>
    %86 = arith.subf %84, %85 : vector<1x4xf32>
    %87 = vector.broadcast %83 : vector<1x4xf32> to vector<512x4xf32>
    %88 = arith.mulf %67, %87 : vector<512x4xf32>
    %89 = vector.broadcast %86 : vector<1x4xf32> to vector<512x4xf32>
    %90 = arith.addf %88, %89 : vector<512x4xf32>
    %cst_17 = arith.constant 0.000000e+00 : f32
    %cst_18 = arith.constant 6.000000e+00 : f32
    %91 = vector.broadcast %cst_17 : f32 to vector<512x4xf32>
    %92 = arith.maximumf %91, %90 : vector<512x4xf32>
    %93 = vector.broadcast %cst_18 : f32 to vector<512x4xf32>
    %94 = arith.minimumf %93, %92 : vector<512x4xf32>
    %95 = vector.shape_cast %94 : vector<512x4xf32> to vector<2x16x16x4xf32>
    %96 = vector.extract_strided_slice %1 {offsets = [0, 0, 0, 0], sizes = [2, 15, 15, 4], strides = [1, 1, 1, 1]} : vector<2x16x16x4xf32> to vector<2x15x15x4xf32>
    %97 = vector.extract_strided_slice %1 {offsets = [0, 1, 0, 0], sizes = [2, 15, 15, 4], strides = [1, 1, 1, 1]} : vector<2x16x16x4xf32> to vector<2x15x15x4xf32>
    %98 = arith.maximumf %96, %97 : vector<2x15x15x4xf32>
    %99 = vector.extract_strided_slice %1 {offsets = [0, 0, 1, 0], sizes = [2, 15, 15, 4], strides = [1, 1, 1, 1]} : vector<2x16x16x4xf32> to vector<2x15x15x4xf32>
    %100 = vector.extract_strided_slice %1 {offsets = [0, 1, 1, 0], sizes = [2, 15, 15, 4], strides = [1, 1, 1, 1]} : vector<2x16x16x4xf32> to vector<2x15x15x4xf32>
    %101 = arith.maximumf %99, %100 : vector<2x15x15x4xf32>
    %102 = arith.maximumf %98, %101 : vector<2x15x15x4xf32>
    %cst_19 = arith.constant 0.000000e+00 : f32
    %103 = vector.broadcast %cst_19 : f32 to vector<2x19x19x4xf32>
    %c0_20 = arith.constant 0 : index
    %c0_21 = arith.constant 0 : index
    %c0_22 = arith.constant 0 : index
    %c0_23 = arith.constant 0 : index
    %104 = vector.load %arg10[%c0_20, %c0_21, %c0_22, %c0_23] : memref<2x19x19x4xf32, #tpu.memory_space<vmem>>, vector<2x19x19x4xf32>
    tpu.vector_store %arg10[%c0_20, %c0_21, %c0_22, %c0_23], %103 {strides = array<i32>} : memref<2x19x19x4xf32, #tpu.memory_space<vmem>>, vector<2x19x19x4xf32>,
    %c0_24 = arith.constant 0 : index
    %c1 = arith.constant 1 : index
    %c1_25 = arith.constant 1 : index
    %c0_26 = arith.constant 0 : index
    %105 = vector.load %arg10[%c0_24, %c1, %c1_25, %c0_26] : memref<2x19x19x4xf32, #tpu.memory_space<vmem>>, vector<2x16x16x4xf32>
    tpu.vector_store %arg10[%c0_24, %c1, %c1_25, %c0_26], %95 {strides = array<i32>} : memref<2x19x19x4xf32, #tpu.memory_space<vmem>>, vector<2x16x16x4xf32>,
    %106 = vector.extract_strided_slice %95 {offsets = [0, 1, 0, 0], sizes = [2, 1, 16, 4], strides = [1, 1, 1, 1]} : vector<2x16x16x4xf32> to vector<2x1x16x4xf32>
    %c0_27 = arith.constant 0 : index
    %c0_28 = arith.constant 0 : index
    %c1_29 = arith.constant 1 : index
    %c0_30 = arith.constant 0 : index
    %107 = vector.load %arg10[%c0_27, %c0_28, %c1_29, %c0_30] : memref<2x19x19x4xf32, #tpu.memory_space<vmem>>, vector<2x1x16x4xf32>
    tpu.vector_store %arg10[%c0_27, %c0_28, %c1_29, %c0_30], %106 {strides = array<i32>} : memref<2x19x19x4xf32, #tpu.memory_space<vmem>>, vector<2x1x16x4xf32>,
    %108 = vector.extract_strided_slice %95 {offsets = [0, 14, 0, 0], sizes = [2, 1, 16, 4], strides = [1, 1, 1, 1]} : vector<2x16x16x4xf32> to vector<2x1x16x4xf32>
    %c0_31 = arith.constant 0 : index
    %c17 = arith.constant 17 : index
    %c1_32 = arith.constant 1 : index
    %c0_33 = arith.constant 0 : index
    %109 = vector.load %arg10[%c0_31, %c17, %c1_32, %c0_33] : memref<2x19x19x4xf32, #tpu.memory_space<vmem>>, vector<2x1x16x4xf32>
    tpu.vector_store %arg10[%c0_31, %c17, %c1_32, %c0_33], %108 {strides = array<i32>} : memref<2x19x19x4xf32, #tpu.memory_space<vmem>>, vector<2x1x16x4xf32>,
    %110 = vector.extract_strided_slice %95 {offsets = [0, 13, 0, 0], sizes = [2, 1, 16, 4], strides = [1, 1, 1, 1]} : vector<2x16x16x4xf32> to vector<2x1x16x4xf32>
    %c0_34 = arith.constant 0 : index
    %c18 = arith.constant 18 : index
    %c1_35 = arith.constant 1 : index
    %c0_36 = arith.constant 0 : index
    %111 = vector.load %arg10[%c0_34, %c18, %c1_35, %c0_36] : memref<2x19x19x4xf32, #tpu.memory_space<vmem>>, vector<2x1x16x4xf32>
    tpu.vector_store %arg10[%c0_34, %c18, %c1_35, %c0_36], %110 {strides = array<i32>} : memref<2x19x19x4xf32, #tpu.memory_space<vmem>>, vector<2x1x16x4xf32>,
    %c0_37 = arith.constant 0 : index
    %c0_38 = arith.constant 0 : index
    %c2 = arith.constant 2 : index
    %c0_39 = arith.constant 0 : index
    %112 = vector.load %arg10[%c0_37, %c0_38, %c2, %c0_39] : memref<2x19x19x4xf32, #tpu.memory_space<vmem>>, vector<2x19x1x4xf32>
    %c0_40 = arith.constant 0 : index
    %c0_41 = arith.constant 0 : index
    %c0_42 = arith.constant 0 : index
    %c0_43 = arith.constant 0 : index
    %113 = vector.load %arg10[%c0_40, %c0_41, %c0_42, %c0_43] : memref<2x19x19x4xf32, #tpu.memory_space<vmem>>, vector<2x19x1x4xf32>
    tpu.vector_store %arg10[%c0_40, %c0_41, %c0_42, %c0_43], %112 {strides = array<i32>} : memref<2x19x19x4xf32, #tpu.memory_space<vmem>>, vector<2x19x1x4xf32>,
    %c0_44 = arith.constant 0 : index
    %c0_45 = arith.constant 0 : index
    %c15 = arith.constant 15 : index
    %c0_46 = arith.constant 0 : index
    %114 = vector.load %arg10[%c0_44, %c0_45, %c15, %c0_46] : memref<2x19x19x4xf32, #tpu.memory_space<vmem>>, vector<2x19x1x4xf32>
    %c0_47 = arith.constant 0 : index
    %c0_48 = arith.constant 0 : index
    %c17_49 = arith.constant 17 : index
    %c0_50 = arith.constant 0 : index
    %115 = vector.load %arg10[%c0_47, %c0_48, %c17_49, %c0_50] : memref<2x19x19x4xf32, #tpu.memory_space<vmem>>, vector<2x19x1x4xf32>
    tpu.vector_store %arg10[%c0_47, %c0_48, %c17_49, %c0_50], %114 {strides = array<i32>} : memref<2x19x19x4xf32, #tpu.memory_space<vmem>>, vector<2x19x1x4xf32>,
    %c0_51 = arith.constant 0 : index
    %c0_52 = arith.constant 0 : index
    %c14 = arith.constant 14 : index
    %c0_53 = arith.constant 0 : index
    %116 = vector.load %arg10[%c0_51, %c0_52, %c14, %c0_53] : memref<2x19x19x4xf32, #tpu.memory_space<vmem>>, vector<2x19x1x4xf32>
    %c0_54 = arith.constant 0 : index
    %c0_55 = arith.constant 0 : index
    %c18_56 = arith.constant 18 : index
    %c0_57 = arith.constant 0 : index
    %117 = vector.load %arg10[%c0_54, %c0_55, %c18_56, %c0_57] : memref<2x19x19x4xf32, #tpu.memory_space<vmem>>, vector<2x19x1x4xf32>
    tpu.vector_store %arg10[%c0_54, %c0_55, %c18_56, %c0_57], %116 {strides = array<i32>} : memref<2x19x19x4xf32, #tpu.memory_space<vmem>>, vector<2x19x1x4xf32>,
    %cst_58 = arith.constant 0.000000e+00 : f32
    %118 = vector.broadcast %cst_58 : f32 to vector<2x19x19x4xf32>
    %c0_59 = arith.constant 0 : index
    %c0_60 = arith.constant 0 : index
    %c0_61 = arith.constant 0 : index
    %c0_62 = arith.constant 0 : index
    %119 = vector.load %arg11[%c0_59, %c0_60, %c0_61, %c0_62] : memref<2x19x19x4xf32, #tpu.memory_space<vmem>>, vector<2x19x19x4xf32>
    tpu.vector_store %arg11[%c0_59, %c0_60, %c0_61, %c0_62], %118 {strides = array<i32>} : memref<2x19x19x4xf32, #tpu.memory_space<vmem>>, vector<2x19x19x4xf32>,
    %c0_63 = arith.constant 0 : index
    %c1_64 = arith.constant 1 : index
    %c1_65 = arith.constant 1 : index
    %c0_66 = arith.constant 0 : index
    %120 = vector.load %arg11[%c0_63, %c1_64, %c1_65, %c0_66] : memref<2x19x19x4xf32, #tpu.memory_space<vmem>>, vector<2x15x15x4xf32>
    tpu.vector_store %arg11[%c0_63, %c1_64, %c1_65, %c0_66], %102 {strides = array<i32>} : memref<2x19x19x4xf32, #tpu.memory_space<vmem>>, vector<2x15x15x4xf32>,
    %121 = vector.extract_strided_slice %102 {offsets = [0, 1, 0, 0], sizes = [2, 1, 15, 4], strides = [1, 1, 1, 1]} : vector<2x15x15x4xf32> to vector<2x1x15x4xf32>
    %c0_67 = arith.constant 0 : index
    %c0_68 = arith.constant 0 : index
    %c1_69 = arith.constant 1 : index
    %c0_70 = arith.constant 0 : index
    %122 = vector.load %arg11[%c0_67, %c0_68, %c1_69, %c0_70] : memref<2x19x19x4xf32, #tpu.memory_space<vmem>>, vector<2x1x15x4xf32>
    tpu.vector_store %arg11[%c0_67, %c0_68, %c1_69, %c0_70], %121 {strides = array<i32>} : memref<2x19x19x4xf32, #tpu.memory_space<vmem>>, vector<2x1x15x4xf32>,
    %123 = vector.extract_strided_slice %102 {offsets = [0, 13, 0, 0], sizes = [2, 1, 15, 4], strides = [1, 1, 1, 1]} : vector<2x15x15x4xf32> to vector<2x1x15x4xf32>
    %c0_71 = arith.constant 0 : index
    %c16 = arith.constant 16 : index
    %c1_72 = arith.constant 1 : index
    %c0_73 = arith.constant 0 : index
    %124 = vector.load %arg11[%c0_71, %c16, %c1_72, %c0_73] : memref<2x19x19x4xf32, #tpu.memory_space<vmem>>, vector<2x1x15x4xf32>
    tpu.vector_store %arg11[%c0_71, %c16, %c1_72, %c0_73], %123 {strides = array<i32>} : memref<2x19x19x4xf32, #tpu.memory_space<vmem>>, vector<2x1x15x4xf32>,
    %125 = vector.extract_strided_slice %102 {offsets = [0, 12, 0, 0], sizes = [2, 1, 15, 4], strides = [1, 1, 1, 1]} : vector<2x15x15x4xf32> to vector<2x1x15x4xf32>
    %c0_74 = arith.constant 0 : index
    %c17_75 = arith.constant 17 : index
    %c1_76 = arith.constant 1 : index
    %c0_77 = arith.constant 0 : index
    %126 = vector.load %arg11[%c0_74, %c17_75, %c1_76, %c0_77] : memref<2x19x19x4xf32, #tpu.memory_space<vmem>>, vector<2x1x15x4xf32>
    tpu.vector_store %arg11[%c0_74, %c17_75, %c1_76, %c0_77], %125 {strides = array<i32>} : memref<2x19x19x4xf32, #tpu.memory_space<vmem>>, vector<2x1x15x4xf32>,
    %c0_78 = arith.constant 0 : index
    %c0_79 = arith.constant 0 : index
    %c2_80 = arith.constant 2 : index
    %c0_81 = arith.constant 0 : index
    %127 = vector.load %arg11[%c0_78, %c0_79, %c2_80, %c0_81] : memref<2x19x19x4xf32, #tpu.memory_space<vmem>>, vector<2x19x1x4xf32>
    %c0_82 = arith.constant 0 : index
    %c0_83 = arith.constant 0 : index
    %c0_84 = arith.constant 0 : index
    %c0_85 = arith.constant 0 : index
    %128 = vector.load %arg11[%c0_82, %c0_83, %c0_84, %c0_85] : memref<2x19x19x4xf32, #tpu.memory_space<vmem>>, vector<2x19x1x4xf32>
    tpu.vector_store %arg11[%c0_82, %c0_83, %c0_84, %c0_85], %127 {strides = array<i32>} : memref<2x19x19x4xf32, #tpu.memory_space<vmem>>, vector<2x19x1x4xf32>,
    %c0_86 = arith.constant 0 : index
    %c0_87 = arith.constant 0 : index
    %c14_88 = arith.constant 14 : index
    %c0_89 = arith.constant 0 : index
    %129 = vector.load %arg11[%c0_86, %c0_87, %c14_88, %c0_89] : memref<2x19x19x4xf32, #tpu.memory_space<vmem>>, vector<2x19x1x4xf32>
    %c0_90 = arith.constant 0 : index
    %c0_91 = arith.constant 0 : index
    %c16_92 = arith.constant 16 : index
    %c0_93 = arith.constant 0 : index
    %130 = vector.load %arg11[%c0_90, %c0_91, %c16_92, %c0_93] : memref<2x19x19x4xf32, #tpu.memory_space<vmem>>, vector<2x19x1x4xf32>
    tpu.vector_store %arg11[%c0_90, %c0_91, %c16_92, %c0_93], %129 {strides = array<i32>} : memref<2x19x19x4xf32, #tpu.memory_space<vmem>>, vector<2x19x1x4xf32>,
    %c0_94 = arith.constant 0 : index
    %c0_95 = arith.constant 0 : index
    %c13 = arith.constant 13 : index
    %c0_96 = arith.constant 0 : index
    %131 = vector.load %arg11[%c0_94, %c0_95, %c13, %c0_96] : memref<2x19x19x4xf32, #tpu.memory_space<vmem>>, vector<2x19x1x4xf32>
    %c0_97 = arith.constant 0 : index
    %c0_98 = arith.constant 0 : index
    %c17_99 = arith.constant 17 : index
    %c0_100 = arith.constant 0 : index
    %132 = vector.load %arg11[%c0_97, %c0_98, %c17_99, %c0_100] : memref<2x19x19x4xf32, #tpu.memory_space<vmem>>, vector<2x19x1x4xf32>
    tpu.vector_store %arg11[%c0_97, %c0_98, %c17_99, %c0_100], %131 {strides = array<i32>} : memref<2x19x19x4xf32, #tpu.memory_space<vmem>>, vector<2x19x1x4xf32>,
    %c0_101 = arith.constant 0 : index
    %c0_102 = arith.constant 0 : index
    %c0_103 = arith.constant 0 : index
    %c0_104 = arith.constant 0 : index
    %133 = vector.load %arg10[%c0_101, %c0_102, %c0_103, %c0_104] : memref<2x19x19x4xf32, #tpu.memory_space<vmem>>, vector<2x19x19x4xf32>
    %134 = vector.extract_strided_slice %133 {offsets = [0, 0, 0, 0], sizes = [2, 16, 19, 4], strides = [1, 1, 1, 1]} : vector<2x19x19x4xf32> to vector<2x16x19x4xf32>
    %cst_105 = arith.constant 1.562500e-02 : f32
    %135 = vector.broadcast %cst_105 : f32 to vector<2x16x19x4xf32>
    %136 = arith.mulf %135, %134 : vector<2x16x19x4xf32>
    %137 = vector.extract_strided_slice %133 {offsets = [0, 1, 0, 0], sizes = [2, 16, 19, 4], strides = [1, 1, 1, 1]} : vector<2x19x19x4xf32> to vector<2x16x19x4xf32>
    %cst_106 = arith.constant 4.687500e-02 : f32
    %138 = vector.broadcast %cst_106 : f32 to vector<2x16x19x4xf32>
    %139 = arith.mulf %138, %137 : vector<2x16x19x4xf32>
    %140 = arith.addf %136, %139 : vector<2x16x19x4xf32>
    %141 = vector.extract_strided_slice %133 {offsets = [0, 2, 0, 0], sizes = [2, 16, 19, 4], strides = [1, 1, 1, 1]} : vector<2x19x19x4xf32> to vector<2x16x19x4xf32>
    %cst_107 = arith.constant 4.687500e-02 : f32
    %142 = vector.broadcast %cst_107 : f32 to vector<2x16x19x4xf32>
    %143 = arith.mulf %142, %141 : vector<2x16x19x4xf32>
    %144 = arith.addf %140, %143 : vector<2x16x19x4xf32>
    %145 = vector.extract_strided_slice %133 {offsets = [0, 3, 0, 0], sizes = [2, 16, 19, 4], strides = [1, 1, 1, 1]} : vector<2x19x19x4xf32> to vector<2x16x19x4xf32>
    %cst_108 = arith.constant 1.562500e-02 : f32
    %146 = vector.broadcast %cst_108 : f32 to vector<2x16x19x4xf32>
    %147 = arith.mulf %146, %145 : vector<2x16x19x4xf32>
    %148 = arith.addf %144, %147 : vector<2x16x19x4xf32>
    %149 = vector.shape_cast %148 : vector<2x16x19x4xf32> to vector<2x8x2x19x4xf32>
    %150 = vector.extract_strided_slice %149 {offsets = [0, 0, 0, 0, 0], sizes = [2, 8, 1, 19, 4], strides = [1, 1, 1, 1, 1]} : vector<2x8x2x19x4xf32> to vector<2x8x1x19x4xf32>
    %151 = vector.shape_cast %150 : vector<2x8x1x19x4xf32> to vector<2x8x19x4xf32>
    %152 = vector.extract_strided_slice %151 {offsets = [0, 0, 0, 0], sizes = [2, 8, 16, 4], strides = [1, 1, 1, 1]} : vector<2x8x19x4xf32> to vector<2x8x16x4xf32>
    %cst_109 = arith.constant 1.000000e+00 : f32
    %153 = vector.broadcast %cst_109 : f32 to vector<2x8x16x4xf32>
    %154 = arith.mulf %153, %152 : vector<2x8x16x4xf32>
    %155 = vector.extract_strided_slice %151 {offsets = [0, 0, 1, 0], sizes = [2, 8, 16, 4], strides = [1, 1, 1, 1]} : vector<2x8x19x4xf32> to vector<2x8x16x4xf32>
    %cst_110 = arith.constant 3.000000e+00 : f32
    %156 = vector.broadcast %cst_110 : f32 to vector<2x8x16x4xf32>
    %157 = arith.mulf %156, %155 : vector<2x8x16x4xf32>
    %158 = arith.addf %154, %157 : vector<2x8x16x4xf32>
    %159 = vector.extract_strided_slice %151 {offsets = [0, 0, 2, 0], sizes = [2, 8, 16, 4], strides = [1, 1, 1, 1]} : vector<2x8x19x4xf32> to vector<2x8x16x4xf32>
    %cst_111 = arith.constant 3.000000e+00 : f32
    %160 = vector.broadcast %cst_111 : f32 to vector<2x8x16x4xf32>
    %161 = arith.mulf %160, %159 : vector<2x8x16x4xf32>
    %162 = arith.addf %158, %161 : vector<2x8x16x4xf32>
    %163 = vector.extract_strided_slice %151 {offsets = [0, 0, 3, 0], sizes = [2, 8, 16, 4], strides = [1, 1, 1, 1]} : vector<2x8x19x4xf32> to vector<2x8x16x4xf32>
    %cst_112 = arith.constant 1.000000e+00 : f32
    %164 = vector.broadcast %cst_112 : f32 to vector<2x8x16x4xf32>
    %165 = arith.mulf %164, %163 : vector<2x8x16x4xf32>
    %166 = arith.addf %162, %165 : vector<2x8x16x4xf32>
    %167 = vector.shape_cast %166 : vector<2x8x16x4xf32> to vector<2x8x8x2x4xf32>
    %168 = vector.extract_strided_slice %167 {offsets = [0, 0, 0, 0, 0], sizes = [2, 8, 8, 1, 4], strides = [1, 1, 1, 1, 1]} : vector<2x8x8x2x4xf32> to vector<2x8x8x1x4xf32>
    %169 = vector.shape_cast %168 : vector<2x8x8x1x4xf32> to vector<2x8x8x4xf32>
    %c0_113 = arith.constant 0 : index
    %c0_114 = arith.constant 0 : index
    %c0_115 = arith.constant 0 : index
    %c0_116 = arith.constant 0 : index
    %170 = vector.load %arg11[%c0_113, %c0_114, %c0_115, %c0_116] : memref<2x19x19x4xf32, #tpu.memory_space<vmem>>, vector<2x19x19x4xf32>
    %171 = vector.extract_strided_slice %170 {offsets = [0, 0, 0, 0], sizes = [2, 16, 19, 4], strides = [1, 1, 1, 1]} : vector<2x19x19x4xf32> to vector<2x16x19x4xf32>
    %cst_117 = arith.constant 1.562500e-02 : f32
    %172 = vector.broadcast %cst_117 : f32 to vector<2x16x19x4xf32>
    %173 = arith.mulf %172, %171 : vector<2x16x19x4xf32>
    %174 = vector.extract_strided_slice %170 {offsets = [0, 1, 0, 0], sizes = [2, 16, 19, 4], strides = [1, 1, 1, 1]} : vector<2x19x19x4xf32> to vector<2x16x19x4xf32>
    %cst_118 = arith.constant 4.687500e-02 : f32
    %175 = vector.broadcast %cst_118 : f32 to vector<2x16x19x4xf32>
    %176 = arith.mulf %175, %174 : vector<2x16x19x4xf32>
    %177 = arith.addf %173, %176 : vector<2x16x19x4xf32>
    %178 = vector.extract_strided_slice %170 {offsets = [0, 2, 0, 0], sizes = [2, 16, 19, 4], strides = [1, 1, 1, 1]} : vector<2x19x19x4xf32> to vector<2x16x19x4xf32>
    %cst_119 = arith.constant 4.687500e-02 : f32
    %179 = vector.broadcast %cst_119 : f32 to vector<2x16x19x4xf32>
    %180 = arith.mulf %179, %178 : vector<2x16x19x4xf32>
    %181 = arith.addf %177, %180 : vector<2x16x19x4xf32>
    %182 = vector.extract_strided_slice %170 {offsets = [0, 3, 0, 0], sizes = [2, 16, 19, 4], strides = [1, 1, 1, 1]} : vector<2x19x19x4xf32> to vector<2x16x19x4xf32>
    %cst_120 = arith.constant 1.562500e-02 : f32
    %183 = vector.broadcast %cst_120 : f32 to vector<2x16x19x4xf32>
    %184 = arith.mulf %183, %182 : vector<2x16x19x4xf32>
    %185 = arith.addf %181, %184 : vector<2x16x19x4xf32>
    %186 = vector.shape_cast %185 : vector<2x16x19x4xf32> to vector<2x8x2x19x4xf32>
    %187 = vector.extract_strided_slice %186 {offsets = [0, 0, 0, 0, 0], sizes = [2, 8, 1, 19, 4], strides = [1, 1, 1, 1, 1]} : vector<2x8x2x19x4xf32> to vector<2x8x1x19x4xf32>
    %188 = vector.shape_cast %187 : vector<2x8x1x19x4xf32> to vector<2x8x19x4xf32>
    %189 = vector.extract_strided_slice %188 {offsets = [0, 0, 0, 0], sizes = [2, 8, 16, 4], strides = [1, 1, 1, 1]} : vector<2x8x19x4xf32> to vector<2x8x16x4xf32>
    %cst_121 = arith.constant 1.000000e+00 : f32
    %190 = vector.broadcast %cst_121 : f32 to vector<2x8x16x4xf32>
    %191 = arith.mulf %190, %189 : vector<2x8x16x4xf32>
    %192 = vector.extract_strided_slice %188 {offsets = [0, 0, 1, 0], sizes = [2, 8, 16, 4], strides = [1, 1, 1, 1]} : vector<2x8x19x4xf32> to vector<2x8x16x4xf32>
    %cst_122 = arith.constant 3.000000e+00 : f32
    %193 = vector.broadcast %cst_122 : f32 to vector<2x8x16x4xf32>
    %194 = arith.mulf %193, %192 : vector<2x8x16x4xf32>
    %195 = arith.addf %191, %194 : vector<2x8x16x4xf32>
    %196 = vector.extract_strided_slice %188 {offsets = [0, 0, 2, 0], sizes = [2, 8, 16, 4], strides = [1, 1, 1, 1]} : vector<2x8x19x4xf32> to vector<2x8x16x4xf32>
    %cst_123 = arith.constant 3.000000e+00 : f32
    %197 = vector.broadcast %cst_123 : f32 to vector<2x8x16x4xf32>
    %198 = arith.mulf %197, %196 : vector<2x8x16x4xf32>
    %199 = arith.addf %195, %198 : vector<2x8x16x4xf32>
    %200 = vector.extract_strided_slice %188 {offsets = [0, 0, 3, 0], sizes = [2, 8, 16, 4], strides = [1, 1, 1, 1]} : vector<2x8x19x4xf32> to vector<2x8x16x4xf32>
    %cst_124 = arith.constant 1.000000e+00 : f32
    %201 = vector.broadcast %cst_124 : f32 to vector<2x8x16x4xf32>
    %202 = arith.mulf %201, %200 : vector<2x8x16x4xf32>
    %203 = arith.addf %199, %202 : vector<2x8x16x4xf32>
    %204 = vector.shape_cast %203 : vector<2x8x16x4xf32> to vector<2x8x8x2x4xf32>
    %205 = vector.extract_strided_slice %204 {offsets = [0, 0, 0, 0, 0], sizes = [2, 8, 8, 1, 4], strides = [1, 1, 1, 1, 1]} : vector<2x8x8x2x4xf32> to vector<2x8x8x1x4xf32>
    %206 = vector.shape_cast %205 : vector<2x8x8x1x4xf32> to vector<2x8x8x4xf32>
    %207 = vector.shape_cast %169 : vector<2x8x8x4xf32> to vector<128x4xf32>
    %c0_125 = arith.constant 0 : index
    %c0_126 = arith.constant 0 : index
    %208 = vector.load %arg6[%c0_125, %c0_126] : memref<4x8xf32, #tpu.memory_space<vmem>>, vector<4x8xf32>
    %cst_127 = arith.constant dense<0.000000e+00> : vector<128x8xf32>
    %209 = tpu.matmul %207, %208, %cst_127 {dimension_numbers = #tpu.dot_dimension_numbers<[1], [0], [0], [1], [0, 0, 1, 1], [], []>} : vector<128x4xf32>, vector<4x8xf32>, vector<128x8xf32> -> vector<128x8xf32>
    %210 = vector.shape_cast %206 : vector<2x8x8x4xf32> to vector<128x4xf32>
    %c0_128 = arith.constant 0 : index
    %c0_129 = arith.constant 0 : index
    %211 = vector.load %arg7[%c0_128, %c0_129] : memref<4x8xf32, #tpu.memory_space<vmem>>, vector<4x8xf32>
    %cst_130 = arith.constant dense<0.000000e+00> : vector<128x8xf32>
    %212 = tpu.matmul %210, %211, %cst_130 {dimension_numbers = #tpu.dot_dimension_numbers<[1], [0], [0], [1], [0, 0, 1, 1], [], []>} : vector<128x4xf32>, vector<4x8xf32>, vector<128x8xf32> -> vector<128x8xf32>
    %213 = arith.addf %209, %212 : vector<128x8xf32>
    %c0_131 = arith.constant 0 : index
    %c0_132 = arith.constant 0 : index
    %214 = vector.load %arg8[%c0_131, %c0_132] : memref<1x8xf32, #tpu.memory_space<vmem>>, vector<1x8xf32>
    %215 = vector.broadcast %214 : vector<1x8xf32> to vector<128x8xf32>
    %216 = arith.addf %213, %215 : vector<128x8xf32>
    %217 = vector.shape_cast %216 : vector<128x8xf32> to vector<2x8x8x8xf32>
    %c0_133 = arith.constant 0 : index
    %c0_134 = arith.constant 0 : index
    %c0_135 = arith.constant 0 : index
    %c0_136 = arith.constant 0 : index
    %218 = vector.load %arg9[%c0_133, %c0_134, %c0_135, %c0_136] : memref<2x8x8x8xf32, #tpu.memory_space<vmem>>, vector<2x8x8x8xf32>
    tpu.vector_store %arg9[%c0_133, %c0_134, %c0_135, %c0_136], %217 {strides = array<i32>} : memref<2x8x8x8xf32, #tpu.memory_space<vmem>>, vector<2x8x8x8xf32>,
    return
  }
  func.func @transform_0(%arg0: i32) -> (i32, i32, i32, i32) {
    %c0_i32 = arith.constant 0 : i32
    %c0_i32_0 = arith.constant 0 : i32
    %c0_i32_1 = arith.constant 0 : i32
    %c0_i32_2 = arith.constant 0 : i32
    %c0_i32_3 = arith.constant 0 : i32
    return %c0_i32, %c0_i32_0, %c0_i32_1, %c0_i32_2 : i32, i32, i32, i32
  }
  func.func @transform_1(%arg0: i32) -> (i32, i32, i32) {
    %c0_i32 = arith.constant 0 : i32
    %c0_i32_0 = arith.constant 0 : i32
    %c0_i32_1 = arith.constant 0 : i32
    %c0_i32_2 = arith.constant 0 : i32
    return %c0_i32, %c0_i32_0, %c0_i32_1 : i32, i32, i32
  }
  func.func @transform_2(%arg0: i32) -> (i32, i32) {
    %c0_i32 = arith.constant 0 : i32
    %c0_i32_0 = arith.constant 0 : i32
    %c0_i32_1 = arith.constant 0 : i32
    return %c0_i32, %c0_i32_0 : i32, i32
  }
  func.func @transform_3(%arg0: i32) -> (i32, i32) {
    %c0_i32 = arith.constant 0 : i32
    %c0_i32_0 = arith.constant 0 : i32
    %c0_i32_1 = arith.constant 0 : i32
    return %c0_i32, %c0_i32_0 : i32, i32
  }
  func.func @transform_4(%arg0: i32) -> (i32, i32) {
    %c0_i32 = arith.constant 0 : i32
    %c0_i32_0 = arith.constant 0 : i32
    %c0_i32_1 = arith.constant 0 : i32
    return %c0_i32, %c0_i32_0 : i32, i32
  }
  func.func @transform_5(%arg0: i32) -> (i32, i32) {
    %c0_i32 = arith.constant 0 : i32
    %c0_i32_0 = arith.constant 0 : i32
    %c0_i32_1 = arith.constant 0 : i32
    return %c0_i32, %c0_i32_0 : i32, i32
  }
  func.func @transform_6(%arg0: i32) -> (i32, i32) {
    %c0_i32 = arith.constant 0 : i32
    %c0_i32_0 = arith.constant 0 : i32
    %c0_i32_1 = arith.constant 0 : i32
    return %c0_i32, %c0_i32_0 : i32, i32
  }
  func.func @transform_7(%arg0: i32) -> (i32, i32) {
    %c0_i32 = arith.constant 0 : i32
    %c0_i32_0 = arith.constant 0 : i32
    %c0_i32_1 = arith.constant 0 : i32
    return %c0_i32, %c0_i32_0 : i32, i32
  }
  func.func @transform_8(%arg0: i32) -> (i32, i32, i32, i32) {
    %c0_i32 = arith.constant 0 : i32
    %c0_i32_0 = arith.constant 0 : i32
    %c0_i32_1 = arith.constant 0 : i32
    %c0_i32_2 = arith.constant 0 : i32
    %c0_i32_3 = arith.constant 0 : i32
    return %c0_i32, %c0_i32_0, %c0_i32_1, %c0_i32_2 : i32, i32, i32, i32
  }
}

</mosaic_0001>

<bundles_post_ra>
// kernel: down_block_forward.1
= control target key start
LH: loop header
LB: loop body
LE: loop exit
PB: predicated region body
PF: predicated region fallthrough
CT: control target
= control target key end

     0   :  { %vm3572_vm0 = vcmask 1043456   ;;  %v140_v0 = vlaneseq  ;;  %vm3379_vm1 = vcmask 31744   ;;  %v11072_v3 = vmov 0.0   ;;  %s17809_s2 = inlined_call_operand.vmem [shape: f32[4,4], index: 2, kind: input, shape index: {}]   ;;  %s17810_s0 = inlined_call_operand.vmem [shape: f32[2,18,18,4], index: 0, kind: input, shape index: {}]   ;;  %s17811_s1 = inlined_call_operand.vmem [shape: f32[3,3,4], index: 1, kind: input, shape index: {}]   ;;  %s17812_s6 = inlined_call_operand.vmem [shape: f32[4,8], index: 6, kind: input, shape index: {}]   ;;  %s17813_s5 = inlined_call_operand.vmem [shape: f32[4,8], index: 5, kind: input, shape index: {}]   ;;  %s17814_s3 = inlined_call_operand.vmem [shape: f32[1,4], index: 3, kind: input, shape index: {}]   ;;  %s17815_s4 = inlined_call_operand.vmem [shape: f32[1,4], index: 4, kind: input, shape index: {}]   ;;  %s17816_s7 = inlined_call_operand.vmem [shape: f32[1,8], index: 7, kind: input, shape index: {}]   ;;  %s17817_s8 = inlined_call_operand.vmem [shape: f32[2,8,8,8], index: 8, kind: output, shape index: {}]  }
   0x1   :  { %v11122_v1 = vld [vmem:[%s17809_s2] sm:$0xf]  ;;  %5447 = vst.msk [vmem:[#allocation3 + $0x18] sm:$0xff] %vm3379_vm1, %v11072_v3  ;;  %5021 = vst.msk [vmem:[#allocation2] sm:$0xff] %vm3379_vm1, %v11072_v3  ;;  %v11447_v6 = vld [vmem:[%s17810_s0 + $0x8] sm:$0xff]  ;;  %vm404_vm2 = vcmask 1046528  }
   0x2   :  { %10915 = vmatprep.subr.msk.mxu0 %vm3572_vm0, %v11122_v1  ;;  %v11126_v2 = vshrl.u32 %v140_v0, 7  ;;  %5022 = vst.msk [vmem:[#allocation2 + $0x8] sm:$0xff] %vm3379_vm1, %v11072_v3  ;;  %5025 = vst.msk [vmem:[#allocation2 + $0x18] sm:$0xff] %vm3379_vm1, %v11072_v3  ;;  %11065 = vmatprep.subr.msk.mxu1 %vm3572_vm0, %v11122_v1  ;;  %v29_v4 = vld [vmem:[%s17810_s0] sm:$0xff]  ;;  %v11460_v11 = vld [vmem:[%s17810_s0 + $0x18] sm:$0xff]  ;;  %vm889_vm3 = vcmask 1045504  }
   0x3   :  { %5026 = vst.msk [vmem:[#allocation2 + $0x20] sm:$0xff] %vm3379_vm1, %v11072_v3  ;;  %5028 = vst.msk [vmem:[#allocation2 + $0x30] sm:$0xff] %vm3379_vm1, %v11072_v3  ;;  %10916 = vmatpush3.msk.msra.mxu0 %vm3572_vm0, %v11122_v1  ;;  %v137_v5 = vld [vmem:[%s17811_s1] sm:$0x7]  ;;  %11066 = vmatpush3.msk.msra.mxu1 %vm3572_vm0, %v11122_v1  ;;  %v138_v7 = vld [vmem:[%s17811_s1 + $0x4] sm:$0x7] }
   0x4   :  { %5029 = vst.msk [vmem:[#allocation2 + $0x38] sm:$0xff] %vm3379_vm1, %v11072_v3  ;;  %5031 = vst.msk [vmem:[#allocation2 + $0x48] sm:$0xff] %vm3379_vm1, %v11072_v3  ;;  %v11453_v8 = vsub.s32 0, %v11126_v2  ;;  %v210_v9 = vsub.s32 1, %v11126_v2  ;;  %v695_v10 = vsub.s32 2, %v11126_v2  ;;  %v11465_v12 = vld [vmem:[%s17810_s0 + $0x30] sm:$0xff] }
   0x5   :  { %5032 = vst.msk [vmem:[#allocation2 + $0x50] sm:$0xff] %vm3379_vm1, %v11072_v3  ;;  %5034 = vst.msk [vmem:[#allocation2 + $0x60] sm:$0xff] %vm3379_vm1, %v11072_v3  ;;  %v139_v13 = vld [vmem:[%s17811_s1 + $0x8] sm:$0x7]  ;;  %v11473_v14 = vld [vmem:[%s17810_s0 + $0x20] sm:$0xff]  ;;  %v4571_v19 = vmax.f32 %v11460_v11, %v11465_v12  ;;  %vm5559_vm4 = vcmask 31745  }
   0x6   :  { %5035 = vst.msk [vmem:[#allocation2 + $0x68] sm:$0xff] %vm3379_vm1, %v11072_v3  ;;  %5037 = vst.msk [vmem:[#allocation2 + $0x78] sm:$0xff] %vm3379_vm1, %v11072_v3  ;;  %v11478_v15 = vld [vmem:[%s17810_s0 + $0x38] sm:$0xff]  ;;  %v11481_v16 = vrot.slane %v137_v5, %v11453_v8  ;;  %v11483_v17 = vrot.slane %v137_v5, %v210_v9  ;;  %v11485_v18 = vrot.slane %v137_v5, %v695_v10  ;;  %v11529_v48 = vld [vmem:[%s17810_s0 + $0x48] sm:$0xff]  ;;  %vm5253_vm5 = vcmask 24576  }
   0x7   :  { %5038 = vst.msk [vmem:[#allocation2 + $0x80] sm:$0xff] %vm3379_vm1, %v11072_v3  ;;  %5040 = vst.msk [vmem:[#allocation2 + $0x90] sm:$0xff] %vm3379_vm1, %v11072_v3  ;;  %v11490_v20 = vrot.slane %v138_v7, %v11453_v8  ;;  %v11492_v21 = vrot.slane %v138_v7, %v210_v9  ;;  %v11494_v22 = vrot.slane %v138_v7, %v695_v10  ;;  %v4751_v43 = vrot.slane %v4571_v19, 1  ;;  %v31_v52 = vld [vmem:[%s17810_s0 + $0x10] sm:$0x3] }
   0x8   :  { %5041 = vst.msk [vmem:[#allocation2 + $0x98] sm:$0xff] %vm3379_vm1, %v11072_v3  ;;  %5043 = vst.msk [vmem:[#allocation2 + $0xa8] sm:$0xff] %vm3379_vm1, %v11072_v3  ;;  %v11498_v23 = vmax.f32 %v11473_v14, %v11478_v15  ;;  %v212_v24 = vmul.f32 %v11483_v17, %v29_v4  ;;  %v213_v25 = vmul.f32 %v11483_v17, %v11447_v6  ;;  %vm5023_vm6 = vcmask 26624  }
   0x9   :  { %5044 = vst.msk [vmem:[#allocation2 + $0xb0] sm:$0xff] %vm3379_vm1, %v11072_v3  ;;  %5046 = vst.msk [vmem:[#allocation2 + $0xc0] sm:$0xff] %vm3379_vm1, %v11072_v3  ;;  %v697_v26 = vmul.f32 %v11485_v18, %v29_v4  ;;  %v11504_v27 = vrot.slane %v139_v13, %v210_v9  ;;  %v144_v28 = vmul.f32 %v11481_v16, %v29_v4  ;;  %vm6738_vm7 = vcmask 1044480  }
   0xa   :  { %5047 = vst.msk [vmem:[#allocation2 + $0xc8] sm:$0xff] %vm3379_vm1, %v11072_v3  ;;  %5049 = vst.msk [vmem:[#allocation2 + $0xd8] sm:$0xff] %vm3379_vm1, %v11072_v3  ;;  %v698_v29 = vmul.f32 %v11485_v18, %v11447_v6  ;;  %v1314_v30 = vmul.f32 %v11492_v21, %v11460_v11  ;;  %v11513_v31 = vmul.f32 %v11492_v21, %v11473_v14  ;;  %v405_v32 = vrot.slane %v212_v24, 1 }
   0xb   :  { %5050 = vst.msk [vmem:[#allocation2 + $0xe0] sm:$0xff] %vm3379_vm1, %v11072_v3  ;;  %5052 = vst.msk [vmem:[#allocation2 + $0xf0] sm:$0xff] %vm3379_vm1, %v11072_v3  ;;  %v406_v33 = vrot.slane %v213_v25, 1  ;;  %v890_v34 = vrot.slane %v697_v26, 2  ;;  %v1798_v35 = vmul.f32 %v11494_v22, %v11460_v11  ;;  %v1799_v39 = vmul.f32 %v11494_v22, %v11473_v14 }
   0xc   :  { %5053 = vst.msk [vmem:[#allocation2 + $0xf8] sm:$0xff] %vm3379_vm1, %v11072_v3  ;;  %5055 = vst.msk [vmem:[#allocation2 + $0x108] sm:$0xff] %vm3379_vm1, %v11072_v3  ;;  %v891_v36 = vrot.slane %v698_v29, 2  ;;  %v1506_v37 = vrot.slane %v1314_v30, 1  ;;  %v1507_v38 = vrot.slane %v11513_v31, 1  ;;  %v1182_v41 = vmul.f32 %v11490_v20, %v11460_v11 }
   0xd   :  { %5056 = vst.msk [vmem:[#allocation2 + $0x110] sm:$0xff] %vm3379_vm1, %v11072_v3  ;;  %5058 = vst.msk [vmem:[#allocation2 + $0x120] sm:$0xff] %vm3379_vm1, %v11072_v3  ;;  %v407_v40 = vsel %vm404_vm2, %v405_v32, %v406_v33  ;;  %v2414_v42 = vmul.f32 %v11504_v27, %v11465_v12  ;;  %v1990_v46 = vrot.slane %v1798_v35, 2  ;;  %v1991_v47 = vrot.slane %v1799_v39, 2 }
   0xe   :  { %5059 = vst.msk [vmem:[#allocation2 + $0x128] sm:$0xff] %vm3379_vm1, %v11072_v3  ;;  %5061 = vst.msk [vmem:[#allocation2 + $0x138] sm:$0xff] %vm3379_vm1, %v11072_v3  ;;  %v629_v44 = vadd.f32 %v407_v40, %v144_v28  ;;  %v892_v45 = vsel %vm889_vm3, %v890_v34, %v891_v36  ;;  %v2415_v49 = vmul.f32 %v11504_v27, %v11478_v15  ;;  %v4752_v51 = vrot.slane %v11498_v23, 1 }
   0xf   :  { %5062 = vst.msk [vmem:[#allocation2 + $0x140] sm:$0xff] %vm3379_vm1, %v11072_v3  ;;  %5064 = vst.msk [vmem:[#allocation2 + $0x150] sm:$0xff] %vm3379_vm1, %v11072_v3  ;;  %v11533_v50 = vrot.slane %v139_v13, %v695_v10  ;;  %v11541_v53 = vmax.f32 %v11465_v12, %v11529_v48  ;;  %v1508_v55 = vsel %vm404_vm2, %v1506_v37, %v1507_v38  ;;  %v2606_v57 = vrot.slane %v2414_v42, 1 }
  0x10   :  { %5065 = vst.msk [vmem:[#allocation2 + $0x158] sm:$0xff] %vm3379_vm1, %v11072_v3  ;;  %5067 = vst.msk [vmem:[#allocation2 + $0x168] sm:$0xff] %vm3379_vm1, %v11072_v3  ;;  %v1114_v54 = vadd.f32 %v892_v45, %v629_v44  ;;  %v11545_v56 = vrot.slane %v139_v13, %v11453_v8  ;;  %v2607_v58 = vrot.slane %v2415_v49, 1  ;;  %v4753_v61 = vsel %vm404_vm2, %v4751_v43, %v4752_v51 }
  0x11   :  { %5068 = vst.msk [vmem:[#allocation2 + $0x170] sm:$0xff] %vm3379_vm1, %v11072_v3  ;;  %5070 = vst.msk [vmem:[#allocation2 + $0x180] sm:$0xff] %vm3379_vm1, %v11072_v3  ;;  %v2898_v59 = vmul.f32 %v11533_v50, %v11465_v12  ;;  %v11551_v60 = vmul.f32 %v11533_v50, %v11478_v15  ;;  %v1992_v63 = vsel %vm889_vm3, %v1990_v46, %v1991_v47  ;;  %vm9569_vm8 = vcmask 1041409  }
  0x12   :  { %5071 = vst.msk [vmem:[#allocation2 + $0x188] sm:$0xff] %vm3379_vm1, %v11072_v3  ;;  %5073 = vst.msk [vmem:[#allocation2 + $0x198] sm:$0xff] %vm3379_vm1, %v11072_v3  ;;  %v1246_v62 = vadd.f32 %v1182_v41, %v1114_v54  ;;  %v4961_v0 = vmax.f32 %v4571_v19, %v4753_v61  ;;  %v214_v1 = vmul.f32 %v11483_v17, %v31_v52  ;;  %v11567_v19 = vld [vmem:[%s17810_s0 + $0x28] sm:$0x3]  ;;  %vm9571_vm9 = vcmask 1042434  }
  0x13   :  { %5074 = vst.msk [vmem:[#allocation2 + $0x1a0] sm:$0xff] %vm3379_vm1, %v11072_v3  ;;  %5076 = vst.msk [vmem:[#allocation2 + $0x1b0] sm:$0xff] %vm3379_vm1, %v11072_v3  ;;  %v3090_v4 = vrot.slane %v2898_v59, 2  ;;  %v3091_v5 = vrot.slane %v11551_v60, 2  ;;  %v145_v7 = vmul.f32 %v11481_v16, %v11447_v6  ;;  %v699_v9 = vmul.f32 %v11485_v18, %v31_v52  ;;  %v11572_v6 = vld [vmem:[%s17810_s0 + $0x40] sm:$0x3] }
  0x14   :  { %5077 = vst.msk [vmem:[#allocation2 + $0x1b8] sm:$0xff] %vm3379_vm1, %v11072_v3  ;;  %5079 = vst.msk [vmem:[#allocation2 + $0x1c8] sm:$0xff] %vm3379_vm1, %v11072_v3  ;;  %v1730_v10 = vadd.f32 %v1508_v55, %v1246_v62  ;;  %v2282_v13 = vmul.f32 %v11545_v56, %v11465_v12  ;;  %v2608_v24 = vsel %vm404_vm2, %v2606_v57, %v2607_v58  ;;  %v408_v25 = vrot.slane %v214_v1, 1 }
  0x15   :  { %5080 = vst.msk [vmem:[#allocation2 + $0x1d0] sm:$0xff] %vm3379_vm1, %v11072_v3  ;;  %5082 = vst.msk [vmem:[#allocation2 + $0x1e0] sm:$0xff] %vm3379_vm1, %v11072_v3  ;;  %v893_v26 = vrot.slane %v699_v9, 2  ;;  %v1183_v28 = vmul.f32 %v11490_v20, %v11473_v14  ;;  %v1316_v29 = vmul.f32 %v11492_v21, %v11567_v19  ;;  %v1800_v30 = vmul.f32 %v11494_v22, %v11567_v19 }
  0x16   :  { %5083 = vst.msk [vmem:[#allocation2 + $0x1e8] sm:$0xff] %vm3379_vm1, %v11072_v3  ;;  %5085 = vst.msk [vmem:[#allocation2 + $0x1f8] sm:$0xff] %vm3379_vm1, %v11072_v3  ;;  %v2214_v31 = vadd.f32 %v1992_v63, %v1730_v10  ;;  %v3092_v32 = vsel %vm889_vm3, %v3090_v4, %v3091_v5  ;;  %v409_v34 = vsel %vm404_vm2, %v406_v33, %v408_v25  ;;  %vm9573_vm10 = vcmask 1043459  }
  0x17   :  { %5086 = vst.msk [vmem:[#allocation2 + $0x200] sm:$0xff] %vm3379_vm1, %v11072_v3  ;;  %5088 = vst.msk [vmem:[#allocation2 + $0x210] sm:$0xff] %vm3379_vm1, %v11072_v3  ;;  %v2416_v35 = vmul.f32 %v11504_v27, %v11572_v6  ;;  %v630_v37 = vadd.f32 %v409_v34, %v145_v7  ;;  %v894_v39 = vsel %vm889_vm3, %v891_v36, %v893_v26  ;;  %v1509_v40 = vrot.slane %v1316_v29, 1 }
  0x18   :  { %5089 = vst.msk [vmem:[#allocation2 + $0x218] sm:$0xff] %vm3379_vm1, %v11072_v3  ;;  %5091 = vst.msk [vmem:[#allocation2 + $0x228] sm:$0xff] %vm3379_vm1, %v11072_v3  ;;  %v1993_v41 = vrot.slane %v1800_v30, 2  ;;  %v2346_v42 = vadd.f32 %v2282_v13, %v2214_v31  ;;  %v2900_v44 = vmul.f32 %v11533_v50, %v11572_v6  ;;  %v4631_v45 = vmax.f32 %v11567_v19, %v11572_v6 }
  0x19   :  { %5092 = vst.msk [vmem:[#allocation2 + $0x230] sm:$0xff] %vm3379_vm1, %v11072_v3  ;;  %5094 = vst.msk [vmem:[#allocation2 + $0x240] sm:$0xff] %vm3379_vm1, %v11072_v3  ;;  %v2609_v43 = vrot.slane %v2416_v35, 1  ;;  %v1115_v46 = vadd.f32 %v894_v39, %v630_v37  ;;  %v1510_v49 = vsel %vm404_vm2, %v1507_v38, %v1509_v40  ;;  %v2283_v52 = vmul.f32 %v11545_v56, %v11478_v15  ;;  %v11632_v37 = vld [vmem:[%s17810_s0 + $0x50] sm:$0xff] }
  0x1a   :  { %5095 = vst.msk [vmem:[#allocation2 + $0x248] sm:$0xff] %vm3379_vm1, %v11072_v3  ;;  %5097 = vst.msk [vmem:[#allocation2 + $0x258] sm:$0xff] %vm3379_vm1, %v11072_v3  ;;  %v1994_v33 = vsel %vm889_vm3, %v1991_v47, %v1993_v41  ;;  %v2830_v54 = vadd.f32 %v2608_v24, %v2346_v42  ;;  %v4754_v55 = vrot.slane %v4631_v45, 1  ;;  %v146_v57 = vmul.f32 %v11481_v16, %v11460_v11 }
  0x1b   :  { %5098 = vst.msk [vmem:[#allocation2 + $0x260] sm:$0xff] %vm3379_vm1, %v11072_v3  ;;  %5100 = vst.msk [vmem:[#allocation2 + $0x270] sm:$0xff] %vm3379_vm1, %v11072_v3  ;;  %v2610_v36 = vsel %vm404_vm2, %v2607_v58, %v2609_v43  ;;  %v1247_v61 = vadd.f32 %v1183_v28, %v1115_v46  ;;  %v215_v62 = vmul.f32 %v11483_v17, %v11460_v11  ;;  %v3093_v58 = vrot.slane %v2900_v44, 2 }
  0x1c   :  { %5101 = vst.msk [vmem:[#allocation2 + $0x278] sm:$0xff] %vm3379_vm1, %v11072_v3  ;;  %5103 = vst.msk [vmem:[#allocation2 + $0x288] sm:$0xff] %vm3379_vm1, %v11072_v3  ;;  %v11602_v38 = vmul.f32 %v11483_v17, %v11473_v14  ;;  %v700_v47 = vmul.f32 %v11485_v18, %v11460_v11  ;;  %v3314_v63 = vadd.f32 %v3092_v32, %v2830_v54  ;;  %vm9575_vm11 = vcmask 1044484  }
  0x1d   :  { %5104 = vst.msk [vmem:[#allocation2 + $0x290] sm:$0xff] %vm3379_vm1, %v11072_v3  ;;  %5106 = vst.msk [vmem:[#allocation2 + $0x2a0] sm:$0xff] %vm3379_vm1, %v11072_v3  ;;  %v701_v1 = vmul.f32 %v11485_v18, %v11473_v14  ;;  %v1731_v4 = vadd.f32 %v1510_v49, %v1247_v61  ;;  %v410_v9 = vrot.slane %v215_v62, 1  ;;  %v1184_v11 = vmul.f32 %v11490_v20, %v11465_v12 }
  0x1e   :  { %5107 = vst.msk [vmem:[#allocation2 + $0x2a8] sm:$0xff] %vm3379_vm1, %v11072_v3  ;;  %5109 = vst.msk [vmem:[#allocation2 + $0x2b8] sm:$0xff] %vm3379_vm1, %v11072_v3  ;;  %v411_v10 = vrot.slane %v11602_v38, 1  ;;  %10917 = vmatprep.mubr.msk.f32.mxu0 %vm3379_vm1, %v3314_v63  ;;  %v895_v13 = vrot.slane %v700_v47, 2  ;;  %v1317_v25 = vmul.f32 %v11492_v21, %v11465_v12  ;;  %v1801_v28 = vmul.f32 %v11494_v22, %v11465_v12 }
  0x1f   :  { %5110 = vst.msk [vmem:[#allocation2 + $0x2c0] sm:$0xff] %vm3379_vm1, %v11072_v3  ;;  %5112 = vst.msk [vmem:[#allocation2 + $0x2d0] sm:$0xff] %vm3379_vm1, %v11072_v3  ;;  %v896_v24 = vrot.slane %v701_v1, 2  ;;  %v1802_v32 = vmul.f32 %v11494_v22, %v11478_v15  ;;  %v3094_v35 = vsel %vm889_vm3, %v3091_v5, %v3093_v58  ;;  %v2417_v43 = vmul.f32 %v11504_v27, %v11529_v48 }
  0x20   :  { %5113 = vst.msk [vmem:[#allocation2 + $0x2d8] sm:$0xff] %vm3379_vm1, %v11072_v3  ;;  %5115 = vst.msk [vmem:[#allocation2 + $0x2e8] sm:$0xff] %vm3379_vm1, %v11072_v3  ;;  %v412_v26 = vsel %vm404_vm2, %v410_v9, %v411_v10  ;;  %v1511_v31 = vrot.slane %v1317_v25, 1  ;;  %v1995_v40 = vrot.slane %v1801_v28, 2  ;;  %v2418_v44 = vmul.f32 %v11504_v27, %v11632_v37 }
  0x21   :  { %5116 = vst.msk [vmem:[#allocation2 + $0x2f0] sm:$0xff] %vm3379_vm1, %v11072_v3  ;;  %5118 = vst.msk [vmem:[#allocation2 + $0x300] sm:$0xff] %vm3379_vm1, %v11072_v3  ;;  %v631_v29 = vadd.f32 %v412_v26, %v146_v57  ;;  %v897_v30 = vsel %vm889_vm3, %v895_v13, %v896_v24  ;;  %v1996_v42 = vrot.slane %v1802_v32, 2  ;;  %v2901_v5 = vmul.f32 %v11533_v50, %v11529_v48 }
  0x22   :  { %5119 = vst.msk [vmem:[#allocation2 + $0x308] sm:$0xff] %vm3379_vm1, %v11072_v3  ;;  %5121 = vst.msk [vmem:[#allocation2 + $0x318] sm:$0xff] %vm3379_vm1, %v11072_v3  ;;  %v11643_v46 = vmul.f32 %v11533_v50, %v11632_v37  ;;  %v2612_v54 = vrot.slane %v2418_v44, 1  ;;  %v147_v62 = vmul.f32 %v11481_v16, %v11473_v14  ;;  %v217_v38 = vmul.f32 %v11483_v17, %v11567_v19 }
  0x23   :  { %5122 = vst.msk [vmem:[#allocation2 + $0x320] sm:$0xff] %vm3379_vm1, %v11072_v3  ;;  %5124 = vst.msk [vmem:[#allocation2 + $0x330] sm:$0xff] %vm3379_vm1, %v11072_v3  ;;  %v1116_v41 = vadd.f32 %v897_v30, %v631_v29  ;;  %v1997_v57 = vsel %vm889_vm3, %v1995_v40, %v1996_v42  ;;  %v702_v47 = vmul.f32 %v11485_v18, %v11567_v19  ;;  %vm9577_vm12 = vcmask 1045509  }
  0x24   :  { %5125 = vst.msk [vmem:[#allocation2 + $0x338] sm:$0xff] %vm3379_vm1, %v11072_v3  ;;  %5127 = vst.msk [vmem:[#allocation2 + $0x348] sm:$0xff] %vm3379_vm1, %v11072_v3  ;;  %v1803_v14 = vmul.f32 %v11494_v22, %v11572_v6  ;;  %v413_v19 = vrot.slane %v217_v38, 1  ;;  %v1185_v9 = vmul.f32 %v11490_v20, %v11478_v15  ;;  %v4574_v29 = vmax.f32 %v11478_v15, %v11632_v37 }
  0x25   :  { %5128 = vst.msk [vmem:[#allocation2 + $0x350] sm:$0xff] %vm3379_vm1, %v11072_v3  ;;  %5130 = vst.msk [vmem:[#allocation2 + $0x360] sm:$0xff] %vm3379_vm1, %v11072_v3  ;;  %v1248_v49 = vadd.f32 %v1184_v11, %v1116_v41  ;;  %v2285_v32 = vmul.f32 %v11545_v56, %v11632_v37  ;;  %vm9579_vm13 = vcmask 1046534   ;;  %vm9581_vm14 = vcmask 1047559  }
  0x26   :  { %5131 = vst.msk [vmem:[#allocation2 + $0x368] sm:$0xff] %vm3379_vm1, %v11072_v3  ;;  %5133 = vst.msk [vmem:[#allocation2 + $0x378] sm:$0xff] %vm3379_vm1, %v11072_v3  ;;  %v1998_v11 = vrot.slane %v1803_v14, 2  ;;  %vm10695_vm15 = vcmask 64512  }
  0x27   :  { %5134 = vst.msk [vmem:[#allocation2 + $0x380] sm:$0xff] %vm3379_vm1, %v11072_v3  ;;  %5444 = vst.msk [vmem:[#allocation3] sm:$0xff] %vm3379_vm1, %v11072_v3 }
  0x28   :  { %5445 = vst.msk [vmem:[#allocation3 + $0x8] sm:$0xff] %vm3379_vm1, %v11072_v3  ;;  %5448 = vst.msk [vmem:[#allocation3 + $0x20] sm:$0xff] %vm3379_vm1, %v11072_v3  ;;  %v1999_v40 = vsel %vm889_vm3, %v1996_v42, %v1998_v11 }
  0x29   :  { %5450 = vst.msk [vmem:[#allocation3 + $0x30] sm:$0xff] %vm3379_vm1, %v11072_v3  ;;  %5451 = vst.msk [vmem:[#allocation3 + $0x38] sm:$0xff] %vm3379_vm1, %v11072_v3 }
  0x2a   :  { %5453 = vst.msk [vmem:[#allocation3 + $0x48] sm:$0xff] %vm3379_vm1, %v11072_v3  ;;  %5454 = vst.msk [vmem:[#allocation3 + $0x50] sm:$0xff] %vm3379_vm1, %v11072_v3 }
  0x2b   :  { %5456 = vst.msk [vmem:[#allocation3 + $0x60] sm:$0xff] %vm3379_vm1, %v11072_v3  ;;  %5457 = vst.msk [vmem:[#allocation3 + $0x68] sm:$0xff] %vm3379_vm1, %v11072_v3 }
  0x2c   :  { %5459 = vst.msk [vmem:[#allocation3 + $0x78] sm:$0xff] %vm3379_vm1, %v11072_v3  ;;  %5460 = vst.msk [vmem:[#allocation3 + $0x80] sm:$0xff] %vm3379_vm1, %v11072_v3 }
  0x2d   :  { %5462 = vst.msk [vmem:[#allocation3 + $0x90] sm:$0xff] %vm3379_vm1, %v11072_v3  ;;  %5463 = vst.msk [vmem:[#allocation3 + $0x98] sm:$0xff] %vm3379_vm1, %v11072_v3 }
  0x2e   :  { %5465 = vst.msk [vmem:[#allocation3 + $0xa8] sm:$0xff] %vm3379_vm1, %v11072_v3  ;;  %5466 = vst.msk [vmem:[#allocation3 + $0xb0] sm:$0xff] %vm3379_vm1, %v11072_v3 }
  0x2f   :  { %5468 = vst.msk [vmem:[#allocation3 + $0xc0] sm:$0xff] %vm3379_vm1, %v11072_v3  ;;  %5469 = vst.msk [vmem:[#allocation3 + $0xc8] sm:$0xff] %vm3379_vm1, %v11072_v3 }
  0x30   :  { %5471 = vst.msk [vmem:[#allocation3 + $0xd8] sm:$0xff] %vm3379_vm1, %v11072_v3  ;;  %5472 = vst.msk [vmem:[#allocation3 + $0xe0] sm:$0xff] %vm3379_vm1, %v11072_v3 }
  0x31   :  { %5474 = vst.msk [vmem:[#allocation3 + $0xf0] sm:$0xff] %vm3379_vm1, %v11072_v3  ;;  %5475 = vst.msk [vmem:[#allocation3 + $0xf8] sm:$0xff] %vm3379_vm1, %v11072_v3 }
  0x32   :  { %5477 = vst.msk [vmem:[#allocation3 + $0x108] sm:$0xff] %vm3379_vm1, %v11072_v3  ;;  %5478 = vst.msk [vmem:[#allocation3 + $0x110] sm:$0xff] %vm3379_vm1, %v11072_v3 }
  0x33   :  { %5480 = vst.msk [vmem:[#allocation3 + $0x120] sm:$0xff] %vm3379_vm1, %v11072_v3  ;;  %5481 = vst.msk [vmem:[#allocation3 + $0x128] sm:$0xff] %vm3379_vm1, %v11072_v3 }
  0x34   :  { %5483 = vst.msk [vmem:[#allocation3 + $0x138] sm:$0xff] %vm3379_vm1, %v11072_v3  ;;  %5484 = vst.msk [vmem:[#allocation3 + $0x140] sm:$0xff] %vm3379_vm1, %v11072_v3 }
  0x35   :  { %5486 = vst.msk [vmem:[#allocation3 + $0x150] sm:$0xff] %vm3379_vm1, %v11072_v3  ;;  %5487 = vst.msk [vmem:[#allocation3 + $0x158] sm:$0xff] %vm3379_vm1, %v11072_v3 }
  0x36   :  { %5489 = vst.msk [vmem:[#allocation3 + $0x168] sm:$0xff] %vm3379_vm1, %v11072_v3  ;;  %5490 = vst.msk [vmem:[#allocation3 + $0x170] sm:$0xff] %vm3379_vm1, %v11072_v3 }
  0x37   :  { %5492 = vst.msk [vmem:[#allocation3 + $0x180] sm:$0xff] %vm3379_vm1, %v11072_v3  ;;  %5493 = vst.msk [vmem:[#allocation3 + $0x188] sm:$0xff] %vm3379_vm1, %v11072_v3 }
  0x38   :  { %5495 = vst.msk [vmem:[#allocation3 + $0x198] sm:$0xff] %vm3379_vm1, %v11072_v3  ;;  %5496 = vst.msk [vmem:[#allocation3 + $0x1a0] sm:$0xff] %vm3379_vm1, %v11072_v3 }
  0x39   :  { %5498 = vst.msk [vmem:[#allocation3 + $0x1b0] sm:$0xff] %vm3379_vm1, %v11072_v3  ;;  %5499 = vst.msk [vmem:[#allocation3 + $0x1b8] sm:$0xff] %vm3379_vm1, %v11072_v3 }
  0x3a   :  { %5501 = vst.msk [vmem:[#allocation3 + $0x1c8] sm:$0xff] %vm3379_vm1, %v11072_v3  ;;  %5502 = vst.msk [vmem:[#allocation3 + $0x1d0] sm:$0xff] %vm3379_vm1, %v11072_v3 }
  0x3b   :  { %5504 = vst.msk [vmem:[#allocation3 + $0x1e0] sm:$0xff] %vm3379_vm1, %v11072_v3  ;;  %5505 = vst.msk [vmem:[#allocation3 + $0x1e8] sm:$0xff] %vm3379_vm1, %v11072_v3 }
  0x3c   :  { %5507 = vst.msk [vmem:[#allocation3 + $0x1f8] sm:$0xff] %vm3379_vm1, %v11072_v3  ;;  %5508 = vst.msk [vmem:[#allocation3 + $0x200] sm:$0xff] %vm3379_vm1, %v11072_v3 }
  0x3d   :  { %5510 = vst.msk [vmem:[#allocation3 + $0x210] sm:$0xff] %vm3379_vm1, %v11072_v3  ;;  %5511 = vst.msk [vmem:[#allocation3 + $0x218] sm:$0xff] %vm3379_vm1, %v11072_v3 }
  0x3e   :  { %5513 = vst.msk [vmem:[#allocation3 + $0x228] sm:$0xff] %vm3379_vm1, %v11072_v3  ;;  %5514 = vst.msk [vmem:[#allocation3 + $0x230] sm:$0xff] %vm3379_vm1, %v11072_v3 }
  0x3f   :  { %5516 = vst.msk [vmem:[#allocation3 + $0x240] sm:$0xff] %vm3379_vm1, %v11072_v3  ;;  %5517 = vst.msk [vmem:[#allocation3 + $0x248] sm:$0xff] %vm3379_vm1, %v11072_v3 }
  0x40   :  { %5519 = vst.msk [vmem:[#allocation3 + $0x258] sm:$0xff] %vm3379_vm1, %v11072_v3  ;;  %5520 = vst.msk [vmem:[#allocation3 + $0x260] sm:$0xff] %vm3379_vm1, %v11072_v3 }
  0x41   :  { %5522 = vst.msk [vmem:[#allocation3 + $0x270] sm:$0xff] %vm3379_vm1, %v11072_v3  ;;  %5523 = vst.msk [vmem:[#allocation3 + $0x278] sm:$0xff] %vm3379_vm1, %v11072_v3 }
  0x42   :  { %5525 = vst.msk [vmem:[#allocation3 + $0x288] sm:$0xff] %vm3379_vm1, %v11072_v3  ;;  %5526 = vst.msk [vmem:[#allocation3 + $0x290] sm:$0xff] %vm3379_vm1, %v11072_v3 }
  0x43   :  { %5528 = vst.msk [vmem:[#allocation3 + $0x2a0] sm:$0xff] %vm3379_vm1, %v11072_v3  ;;  %5529 = vst.msk [vmem:[#allocation3 + $0x2a8] sm:$0xff] %vm3379_vm1, %v11072_v3 }
  0x44   :  { %5531 = vst.msk [vmem:[#allocation3 + $0x2b8] sm:$0xff] %vm3379_vm1, %v11072_v3  ;;  %5532 = vst.msk [vmem:[#allocation3 + $0x2c0] sm:$0xff] %vm3379_vm1, %v11072_v3 }
  0x45   :  { %5534 = vst.msk [vmem:[#allocation3 + $0x2d0] sm:$0xff] %vm3379_vm1, %v11072_v3  ;;  %5535 = vst.msk [vmem:[#allocation3 + $0x2d8] sm:$0xff] %vm3379_vm1, %v11072_v3 }
  0x46   :  { %5537 = vst.msk [vmem:[#allocation3 + $0x2e8] sm:$0xff] %vm3379_vm1, %v11072_v3  ;;  %5538 = vst.msk [vmem:[#allocation3 + $0x2f0] sm:$0xff] %vm3379_vm1, %v11072_v3 }
  0x47   :  { %5540 = vst.msk [vmem:[#allocation3 + $0x300] sm:$0xff] %vm3379_vm1, %v11072_v3  ;;  %5541 = vst.msk [vmem:[#allocation3 + $0x308] sm:$0xff] %vm3379_vm1, %v11072_v3 }
  0x48   :  { %5543 = vst.msk [vmem:[#allocation3 + $0x318] sm:$0xff] %vm3379_vm1, %v11072_v3  ;;  %5544 = vst.msk [vmem:[#allocation3 + $0x320] sm:$0xff] %vm3379_vm1, %v11072_v3 }
  0x49   :  { %5546 = vst.msk [vmem:[#allocation3 + $0x330] sm:$0xff] %vm3379_vm1, %v11072_v3  ;;  %5547 = vst.msk [vmem:[#allocation3 + $0x338] sm:$0xff] %vm3379_vm1, %v11072_v3 }
  0x4a   :  { %5549 = vst.msk [vmem:[#allocation3 + $0x348] sm:$0xff] %vm3379_vm1, %v11072_v3  ;;  %5550 = vst.msk [vmem:[#allocation3 + $0x350] sm:$0xff] %vm3379_vm1, %v11072_v3 }
  0x4b   :  { %5552 = vst.msk [vmem:[#allocation3 + $0x360] sm:$0xff] %vm3379_vm1, %v11072_v3  ;;  %5553 = vst.msk [vmem:[#allocation3 + $0x368] sm:$0xff] %vm3379_vm1, %v11072_v3 }
  0x4c   :  { %5555 = vst.msk [vmem:[#allocation3 + $0x378] sm:$0xff] %vm3379_vm1, %v11072_v3  ;;  %5556 = vst.msk [vmem:[#allocation3 + $0x380] sm:$0xff] %vm3379_vm1, %v11072_v3 }
  0x4d   :  { %17888 = vst [vmem:[#allocation4_spill] sm:$0xff] %v11453_v8  ;;  %5560 = vst.msk [vmem:[#allocation3 + $0x18] sm:$0xfe] %vm5559_vm4, %v4961_v0  ;;  %v4755_v0 = vsel %vm404_vm2, %v4752_v51, %v4754_v55  ;;  %v2215_v51 = vadd.f32 %v1994_v33, %v1731_v4  ;;  %v2284_v33 = vmul.f32 %v11545_v56, %v11529_v48  ;;  %v11667_v4 = vld [vmem:[%s17810_s0 + $0x58] sm:$0x3] }
  0x4e   :  { %v4962_v7 = vmax.f32 %v11498_v23, %v4755_v0  ;;  %v1318_v23 = vmul.f32 %v11492_v21, %v11478_v15  ;;  %v1319_v0 = vmul.f32 %v11492_v21, %v11572_v6  ;;  %v2419_v25 = vmul.f32 %v11504_v27, %v11667_v4  ;;  %5027 = vst.msk [vmem:[#allocation2 + $0x28] sm:$0x7] %vm5023_vm6, %v11072_v3 }
  0x4f   :  { %v2347_v34 = vadd.f32 %v2283_v52, %v2215_v51  ;;  %v2611_v52 = vrot.slane %v2417_v43, 1  ;;  %v2903_v51 = vmul.f32 %v11533_v50, %v11667_v4  ;;  %v4632_v41 = vmax.f32 %v11572_v6, %v11667_v4  ;;  %5024 = vst.msk [vmem:[#allocation2 + $0x10] sm:$0x7] %vm5023_vm6, %v11072_v3  ;;  %5030 = vst.msk [vmem:[#allocation2 + $0x40] sm:$0x7] %vm5023_vm6, %v11072_v3 }
  0x50   :  { %5561 = vst.msk [vmem:[#allocation3 + $0x20] sm:$0xff] %vm3379_vm1, %v4962_v7  ;;  %v1512_v39 = vrot.slane %v1318_v23, 1  ;;  %v898_v7 = vrot.slane %v702_v47, 2  ;;  %v1514_v13 = vrot.slane %v1319_v0, 1  ;;  %v414_v23 = vsel %vm404_vm2, %v411_v10, %v413_v19 }
  0x51   :  { %v2831_v45 = vadd.f32 %v2610_v36, %v2347_v34  ;;  %v3096_v36 = vrot.slane %v11643_v46, 2  ;;  %v2613_v63 = vsel %vm404_vm2, %v2611_v52, %v2612_v54  ;;  %v632_v30 = vadd.f32 %v414_v23, %v147_v62  ;;  %v11729_v23 = vld [vmem:[%s17810_s0 + $0x60] sm:$0xff]  ;;  %5033 = vst.msk [vmem:[#allocation2 + $0x58] sm:$0x7] %vm5023_vm6, %v11072_v3  ;;  %5036 = vst.msk [vmem:[#allocation2 + $0x70] sm:$0x7] %vm5023_vm6, %v11072_v3 }
  0x52   :  { %v1513_v60 = vsel %vm404_vm2, %v1511_v31, %v1512_v39  ;;  %v899_v28 = vsel %vm889_vm3, %v896_v24, %v898_v7  ;;  %v1515_v31 = vsel %vm404_vm2, %v1512_v39, %v1514_v13  ;;  %v2614_v34 = vrot.slane %v2419_v25, 1  ;;  %5039 = vst.msk [vmem:[#allocation2 + $0x88] sm:$0x7] %vm5023_vm6, %v11072_v3  ;;  %5042 = vst.msk [vmem:[#allocation2 + $0xa0] sm:$0x7] %vm5023_vm6, %v11072_v3 }
  0x53   :  { %v3315_v55 = vadd.f32 %v3094_v35, %v2831_v45  ;;  %v1732_v61 = vadd.f32 %v1513_v60, %v1248_v49  ;;  %v4756_v10 = vrot.slane %v11541_v53, 1  ;;  %v1117_v43 = vadd.f32 %v899_v28, %v632_v30  ;;  %v11734_v28 = vld [vmem:[%s17810_s0 + $0x68] sm:$0xff]  ;;  %5045 = vst.msk [vmem:[#allocation2 + $0xb8] sm:$0x7] %vm5023_vm6, %v11072_v3  ;;  %5048 = vst.msk [vmem:[#allocation2 + $0xd0] sm:$0x7] %vm5023_vm6, %v11072_v3 }
  0x54   :  { %v5635_v59 = vld [vmem:[#allocation3 + $0x1a] sm:$0x1]  ;;  %v2615_v24 = vsel %vm404_vm2, %v2612_v54, %v2614_v34  ;;  %v3098_v44 = vrot.slane %v2903_v51, 2  ;;  %v4757_v45 = vrot.slane %v4574_v29, 1  ;;  %v148_v39 = vmul.f32 %v11481_v16, %v11465_v12  ;;  %5051 = vst.msk [vmem:[#allocation2 + $0xe8] sm:$0x7] %vm5023_vm6, %v11072_v3 }
  0x55   :  { %5673 = vst.msk [vmem:[#allocation3 + $0x18] sm:$0x1] %vm5253_vm5, %v5635_v59  ;;  %v3095_v59 = vrot.slane %v2901_v5, 2  ;;  %10918 = vmatmul.mubr.msk.f32.vlgmr.msra.gmra.mxu0 %vm3379_vm1, %v3315_v55  ;;  %v2216_v1 = vadd.f32 %v1997_v57, %v1732_v61  ;;  %v4759_v5 = vrot.slane %v4632_v41, 1  ;;  %v218_v49 = vmul.f32 %v11483_v17, %v11465_v12 }
  0x56   :  { %v4758_v42 = vsel %vm404_vm2, %v4756_v10, %v4757_v45  ;;  %v11694_v52 = vmul.f32 %v11483_v17, %v11478_v15  ;;  %v703_v54 = vmul.f32 %v11485_v18, %v11465_v12  ;;  %v11703_v61 = vmul.f32 %v11485_v18, %v11478_v15  ;;  %5054 = vst.msk [vmem:[#allocation2 + $0x100] sm:$0x7] %vm5023_vm6, %v11072_v3 }
  0x57   :  { %v3097_v58 = vsel %vm889_vm3, %v3095_v59, %v3096_v36  ;;  %v2348_v26 = vadd.f32 %v2284_v33, %v2216_v1  ;;  %v1249_v33 = vadd.f32 %v1185_v9, %v1117_v43  ;;  %v4760_v55 = vsel %vm404_vm2, %v4757_v45, %v4759_v5  ;;  %5057 = vst.msk [vmem:[#allocation2 + $0x118] sm:$0x7] %vm5023_vm6, %v11072_v3 }
  0x58   :  { %v4963_v57 = vmax.f32 %v11541_v53, %v4758_v42  ;;  %v415_v59 = vrot.slane %v218_v49, 1  ;;  %v4964_v38 = vmax.f32 %v4574_v29, %v4760_v55  ;;  %v416_v47 = vrot.slane %v11694_v52, 1  ;;  %5060 = vst.msk [vmem:[#allocation2 + $0x130] sm:$0x7] %vm5023_vm6, %v11072_v3  ;;  %5063 = vst.msk [vmem:[#allocation2 + $0x148] sm:$0x7] %vm5023_vm6, %v11072_v3 }
  0x59   :  { %v2832_v35 = vadd.f32 %v2613_v63, %v2348_v26  ;;  %v1733_v62 = vadd.f32 %v1515_v31, %v1249_v33  ;;  %v900_v63 = vrot.slane %v703_v54, 2  ;;  %v901_v12 = vrot.slane %v11703_v61, 2  ;;  %5066 = vst.msk [vmem:[#allocation2 + $0x160] sm:$0x7] %vm5023_vm6, %v11072_v3  ;;  %5069 = vst.msk [vmem:[#allocation2 + $0x178] sm:$0x7] %vm5023_vm6, %v11072_v3 }
  0x5a   :  { %5562 = vst.msk [vmem:[#allocation3 + $0x30] sm:$0xfe] %vm5559_vm4, %v4963_v57  ;;  %5620 = vst.msk [vmem:[#allocation3] sm:$0xfe] %vm5559_vm4, %v4963_v57  ;;  %v1320_v53 = vmul.f32 %v11492_v21, %v11529_v48  ;;  %v1321_v0 = vmul.f32 %v11492_v21, %v11632_v37  ;;  %v417_v1 = vsel %vm404_vm2, %v415_v59, %v416_v47  ;;  %v11764_v57 = vld [vmem:[%s17810_s0 + $0x70] sm:$0x3] }
  0x5b   :  { %v3316_v60 = vadd.f32 %v3097_v58, %v2832_v35  ;;  %v1186_v58 = vmul.f32 %v11490_v20, %v11529_v48  ;;  %v2217_v14 = vadd.f32 %v1999_v40, %v1733_v62  ;;  %5563 = vst.msk [vmem:[#allocation3 + $0x38] sm:$0xff] %vm3379_vm1, %v4964_v38  ;;  %5621 = vst.msk [vmem:[#allocation3 + $0x8] sm:$0xff] %vm3379_vm1, %v4964_v38 }
  0x5c   :  { %v1804_v19 = vmul.f32 %v11494_v22, %v11529_v48  ;;  %v1805_v7 = vmul.f32 %v11494_v22, %v11632_v37  ;;  %v633_v9 = vadd.f32 %v417_v1, %v148_v39  ;;  %v902_v13 = vsel %vm889_vm3, %v900_v63, %v901_v12  ;;  %5072 = vst.msk [vmem:[#allocation2 + $0x190] sm:$0x7] %vm5023_vm6, %v11072_v3 }
  0x5d   :  { %10920 = vmatprep.mubr.msk.f32.mxu0 %vm3379_vm1, %v3316_v60  ;;  %v1516_v11 = vrot.slane %v1320_v53, 1  ;;  %v1517_v25 = vrot.slane %v1321_v0, 1  ;;  %v2349_v51 = vadd.f32 %v2285_v32, %v2217_v14  ;;  %v3099_v26 = vsel %vm889_vm3, %v3096_v36, %v3098_v44  ;;  %5075 = vst.msk [vmem:[#allocation2 + $0x1a8] sm:$0x7] %vm5023_vm6, %v11072_v3  ;;  %5081 = vst.msk [vmem:[#allocation2 + $0x1d8] sm:$0x7] %vm5023_vm6, %v11072_v3 }
  0x5e   :  { %v2000_v29 = vrot.slane %v1804_v19, 2  ;;  %v2001_v30 = vrot.slane %v1805_v7, 2  ;;  %v1118_v31 = vadd.f32 %v902_v13, %v633_v9  ;;  %v2286_v32 = vmul.f32 %v11545_v56, %v11729_v23  ;;  %5084 = vst.msk [vmem:[#allocation2 + $0x1f0] sm:$0x7] %vm5023_vm6, %v11072_v3  ;;  %5087 = vst.msk [vmem:[#allocation2 + $0x208] sm:$0x7] %vm5023_vm6, %v11072_v3 }
  0x5f   :  { %v2420_v46 = vmul.f32 %v11504_v27, %v11729_v23  ;;  %v2421_v36 = vmul.f32 %v11504_v27, %v11734_v28  ;;  %v2833_v34 = vadd.f32 %v2615_v24, %v2349_v51  ;;  %v1518_v35 = vsel %vm404_vm2, %v1516_v11, %v1517_v25  ;;  %5090 = vst.msk [vmem:[#allocation2 + $0x220] sm:$0x7] %vm5023_vm6, %v11072_v3 }
  0x60   :  { %v2904_v40 = vmul.f32 %v11533_v50, %v11729_v23  ;;  %v11747_v41 = vmul.f32 %v11533_v50, %v11734_v28  ;;  %v1250_v10 = vadd.f32 %v1186_v58, %v1118_v31  ;;  %v2002_v43 = vsel %vm889_vm3, %v2000_v29, %v2001_v30  ;;  %5093 = vst.msk [vmem:[#allocation2 + $0x238] sm:$0x7] %vm5023_vm6, %v11072_v3 }
  0x61   :  { %v2616_v44 = vrot.slane %v2420_v46, 1  ;;  %v2617_v45 = vrot.slane %v2421_v36, 1  ;;  %v3317_v60 = vadd.f32 %v3099_v26, %v2833_v34  ;;  %v5634_v5 = vld [vmem:[#allocation3 + $0x2] sm:$0x1]  ;;  %v5636_v39 = vld [vmem:[#allocation3 + $0x32] sm:$0x1]  ;;  %v220_v33 = vmul.f32 %v11483_v17, %v11572_v6 }
  0x62   :  { %v3100_v49 = vrot.slane %v2904_v40, 2  ;;  %v3101_v24 = vrot.slane %v11747_v41, 2  ;;  %5672 = vst.msk [vmem:[#allocation3] sm:$0x1] %vm5253_vm5, %v5634_v5  ;;  %5674 = vst.msk [vmem:[#allocation3 + $0x30] sm:$0x1] %vm5253_vm5, %v5636_v39  ;;  %v1734_v42 = vadd.f32 %v1518_v35, %v1250_v10  ;;  %v149_v54 = vmul.f32 %v11481_v16, %v11478_v15 }
  0x63   :  { %v2618_v52 = vsel %vm404_vm2, %v2616_v44, %v2617_v45  ;;  %v705_v55 = vmul.f32 %v11485_v18, %v11572_v6  ;;  %10921 = vmatmul.mubr.msk.f32.gmra.mxu0 %vm3379_vm1, %v3317_v60  ;;  %v418_v59 = vrot.slane %v220_v33, 1  ;;  %v1187_v61 = vmul.f32 %v11490_v20, %v11632_v37  ;;  %5096 = vst.msk [vmem:[#allocation2 + $0x250] sm:$0x7] %vm5023_vm6, %v11072_v3 }
  0x64   :  { %v1322_v62 = vmul.f32 %v11492_v21, %v11667_v4  ;;  %v1806_v15 = vmul.f32 %v11494_v22, %v11667_v4  ;;  %v2218_v38 = vadd.f32 %v2002_v43, %v1734_v42  ;;  %v3102_v6 = vsel %vm889_vm3, %v3100_v49, %v3101_v24  ;;  %5099 = vst.msk [vmem:[#allocation2 + $0x268] sm:$0x7] %vm5023_vm6, %v11072_v3 }
  0x65   :  { %v903_v63 = vrot.slane %v705_v55, 2  ;;  %v2422_v58 = vmul.f32 %v11504_v27, %v11764_v57  ;;  %v419_v53 = vsel %vm404_vm2, %v416_v47, %v418_v59  ;;  %v2906_v1 = vmul.f32 %v11533_v50, %v11764_v57  ;;  %5102 = vst.msk [vmem:[#allocation2 + $0x280] sm:$0x7] %vm5023_vm6, %v11072_v3  ;;  %5105 = vst.msk [vmem:[#allocation2 + $0x298] sm:$0x7] %vm5023_vm6, %v11072_v3 }
  0x66   :  { %v1519_v0 = vrot.slane %v1322_v62, 1  ;;  %v2003_v14 = vrot.slane %v1806_v15, 2  ;;  %v2350_v19 = vadd.f32 %v2286_v32, %v2218_v38  ;;  %v634_v7 = vadd.f32 %v419_v53, %v149_v54  ;;  %5108 = vst.msk [vmem:[#allocation2 + $0x2b0] sm:$0x7] %vm5023_vm6, %v11072_v3  ;;  %5111 = vst.msk [vmem:[#allocation2 + $0x2c8] sm:$0x7] %vm5023_vm6, %v11072_v3 }
  0x67   :  { %v904_v9 = vsel %vm889_vm3, %v901_v12, %v903_v63  ;;  %v2619_v13 = vrot.slane %v2422_v58, 1  ;;  %v2287_v26 = vmul.f32 %v11545_v56, %v11734_v28  ;;  %v4575_v47 = vmax.f32 %v11529_v48, %v11729_v23  ;;  %5114 = vst.msk [vmem:[#allocation2 + $0x2e0] sm:$0x7] %vm5023_vm6, %v11072_v3  ;;  %5117 = vst.msk [vmem:[#allocation2 + $0x2f8] sm:$0x7] %vm5023_vm6, %v11072_v3 }
  0x68   :  { %v1520_v11 = vsel %vm404_vm2, %v1517_v25, %v1519_v0  ;;  %v2004_v51 = vsel %vm889_vm3, %v2001_v30, %v2003_v14  ;;  %v2834_v29 = vadd.f32 %v2618_v52, %v2350_v19  ;;  %v1119_v31 = vadd.f32 %v904_v9, %v634_v7  ;;  %v11831_v19 = vld [vmem:[%s17810_s0 + $0x78] sm:$0xff]  ;;  %v11836_v7 = vld [vmem:[%s17810_s0 + $0x80] sm:$0xff]  ;;  %5120 = vst.msk [vmem:[#allocation2 + $0x310] sm:$0x7] %vm5023_vm6, %v11072_v3 }
  0x69   :  { %v3103_v46 = vrot.slane %v2906_v1, 2  ;;  %v4576_v32 = vmax.f32 %v11632_v37, %v11734_v28  ;;  %v2620_v36 = vsel %vm404_vm2, %v2617_v45, %v2619_v13  ;;  %v4633_v12 = vmax.f32 %v11667_v4, %v11764_v57  ;;  %5123 = vst.msk [vmem:[#allocation2 + $0x328] sm:$0x7] %vm5023_vm6, %v11072_v3  ;;  %5126 = vst.msk [vmem:[#allocation2 + $0x340] sm:$0x7] %vm5023_vm6, %v11072_v3 }
  0x6a   :  { %v4761_v25 = vrot.slane %v4575_v47, 1  ;;  %v150_v30 = vmul.f32 %v11481_v16, %v11529_v48  ;;  %v3318_v34 = vadd.f32 %v3102_v6, %v2834_v29  ;;  %v1251_v35 = vadd.f32 %v1187_v61, %v1119_v31  ;;  %5129 = vst.msk [vmem:[#allocation2 + $0x358] sm:$0x7] %vm5023_vm6, %v11072_v3  ;;  %5132 = vst.msk [vmem:[#allocation2 + $0x370] sm:$0x7] %vm5023_vm6, %v11072_v3 }
  0x6b   :  { %v4762_v40 = vrot.slane %v4576_v32, 1  ;;  %v221_v10 = vmul.f32 %v11483_v17, %v11529_v48  ;;  %v4764_v43 = vrot.slane %v4633_v12, 1  ;;  %v11798_v44 = vmul.f32 %v11483_v17, %v11632_v37  ;;  %5446 = vst.msk [vmem:[#allocation3 + $0x10] sm:$0x7] %vm5023_vm6, %v11072_v3  ;;  %5449 = vst.msk [vmem:[#allocation3 + $0x28] sm:$0x7] %vm5023_vm6, %v11072_v3 }
  0x6c   :  { %v706_v45 = vmul.f32 %v11485_v18, %v11529_v48  ;;  %v11804_v60 = vmul.f32 %v11485_v18, %v11632_v37  ;;  %10923 = vmatprep.mubr.msk.f32.mxu0 %vm3379_vm1, %v3318_v34  ;;  %v1735_v5 = vadd.f32 %v1520_v11, %v1251_v35  ;;  %v1188_v33 = vmul.f32 %v11490_v20, %v11729_v23 }
  0x6d   :  { %v4763_v39 = vsel %vm404_vm2, %v4761_v25, %v4762_v40  ;;  %v420_v49 = vrot.slane %v221_v10, 1  ;;  %v4765_v42 = vsel %vm404_vm2, %v4762_v40, %v4764_v43  ;;  %v421_v54 = vrot.slane %v11798_v44, 1  ;;  %5452 = vst.msk [vmem:[#allocation3 + $0x40] sm:$0x7] %vm5023_vm6, %v11072_v3  ;;  %5455 = vst.msk [vmem:[#allocation3 + $0x58] sm:$0x7] %vm5023_vm6, %v11072_v3 }
  0x6e   :  { %v4965_v52 = vmax.f32 %v4575_v47, %v4763_v39  ;;  %v905_v55 = vrot.slane %v706_v45, 2  ;;  %v2219_v48 = vadd.f32 %v2004_v51, %v1735_v5  ;;  %v4966_v59 = vmax.f32 %v4576_v32, %v4765_v42  ;;  %5458 = vst.msk [vmem:[#allocation3 + $0x70] sm:$0x7] %vm5023_vm6, %v11072_v3  ;;  %5461 = vst.msk [vmem:[#allocation3 + $0x88] sm:$0x7] %vm5023_vm6, %v11072_v3 }
  0x6f   :  { %v906_v61 = vrot.slane %v11804_v60, 2  ;;  %v1323_v62 = vmul.f32 %v11492_v21, %v11729_v23  ;;  %v422_v15 = vsel %vm404_vm2, %v420_v49, %v421_v54  ;;  %v1324_v38 = vmul.f32 %v11492_v21, %v11734_v28  ;;  %v11864_v60 = vld [vmem:[%s17810_s0 + $0x88] sm:$0x3]  ;;  %5464 = vst.msk [vmem:[#allocation3 + $0xa0] sm:$0x7] %vm5023_vm6, %v11072_v3 }
  0x70   :  { %5564 = vst.msk [vmem:[#allocation3 + $0x48] sm:$0xfe] %vm5559_vm4, %v4965_v52  ;;  %v1807_v6 = vmul.f32 %v11494_v22, %v11729_v23  ;;  %v1808_v63 = vmul.f32 %v11494_v22, %v11734_v28  ;;  %v2351_v58 = vadd.f32 %v2287_v26, %v2219_v48  ;;  %v635_v53 = vadd.f32 %v422_v15, %v150_v30 }
  0x71   :  { %5565 = vst.msk [vmem:[#allocation3 + $0x50] sm:$0xff] %vm3379_vm1, %v4966_v59  ;;  %v907_v0 = vsel %vm889_vm3, %v905_v55, %v906_v61  ;;  %v1521_v14 = vrot.slane %v1323_v62, 1  ;;  %v3104_v1 = vsel %vm889_vm3, %v3101_v24, %v3103_v46  ;;  %v1522_v9 = vrot.slane %v1324_v38, 1 }
  0x72   :  { %v2005_v13 = vrot.slane %v1807_v6, 2  ;;  %v2006_v11 = vrot.slane %v1808_v63, 2  ;;  %v2835_v51 = vadd.f32 %v2620_v36, %v2351_v58  ;;  %v1120_v26 = vadd.f32 %v907_v0, %v635_v53  ;;  %5467 = vst.msk [vmem:[#allocation3 + $0xb8] sm:$0x7] %vm5023_vm6, %v11072_v3  ;;  %5470 = vst.msk [vmem:[#allocation3 + $0xd0] sm:$0x7] %vm5023_vm6, %v11072_v3 }
  0x73   :  { %v2423_v41 = vmul.f32 %v11504_v27, %v11831_v19  ;;  %v2424_v24 = vmul.f32 %v11504_v27, %v11836_v7  ;;  %v1523_v47 = vsel %vm404_vm2, %v1521_v14, %v1522_v9  ;;  %v2288_v29 = vmul.f32 %v11545_v56, %v11831_v19  ;;  %5473 = vst.msk [vmem:[#allocation3 + $0xe8] sm:$0x7] %vm5023_vm6, %v11072_v3 }
  0x74   :  { %v2907_v31 = vmul.f32 %v11533_v50, %v11831_v19  ;;  %v11849_v46 = vmul.f32 %v11533_v50, %v11836_v7  ;;  %v3319_v32 = vadd.f32 %v3104_v1, %v2835_v51  ;;  %v1252_v36 = vadd.f32 %v1188_v33, %v1120_v26  ;;  %5476 = vst.msk [vmem:[#allocation3 + $0x100] sm:$0x7] %vm5023_vm6, %v11072_v3 }
  0x75   :  { %v2621_v12 = vrot.slane %v2423_v41, 1  ;;  %v2622_v25 = vrot.slane %v2424_v24, 1  ;;  %v2007_v30 = vsel %vm889_vm3, %v2005_v13, %v2006_v11  ;;  %v223_v40 = vmul.f32 %v11483_v17, %v11667_v4  ;;  %5479 = vst.msk [vmem:[#allocation3 + $0x118] sm:$0x7] %vm5023_vm6, %v11072_v3  ;;  %5482 = vst.msk [vmem:[#allocation3 + $0x130] sm:$0x7] %vm5023_vm6, %v11072_v3 }
  0x76   :  { %v3105_v34 = vrot.slane %v2907_v31, 2  ;;  %v3106_v35 = vrot.slane %v11849_v46, 2  ;;  %10924 = vmatmul.mubr.msk.f32.gmra.mxu0 %vm3379_vm1, %v3319_v32  ;;  %v1736_v10 = vadd.f32 %v1523_v47, %v1252_v36  ;;  %v151_v44 = vmul.f32 %v11481_v16, %v11632_v37  ;;  %5485 = vst.msk [vmem:[#allocation3 + $0x148] sm:$0x7] %vm5023_vm6, %v11072_v3  ;;  %5488 = vst.msk [vmem:[#allocation3 + $0x160] sm:$0x7] %vm5023_vm6, %v11072_v3 }
  0x77   :  { %v2623_v43 = vsel %vm404_vm2, %v2621_v12, %v2622_v25  ;;  %v708_v45 = vmul.f32 %v11485_v18, %v11667_v4  ;;  %v423_v5 = vrot.slane %v223_v40, 1  ;;  %v1189_v39 = vmul.f32 %v11490_v20, %v11734_v28  ;;  %5491 = vst.msk [vmem:[#allocation3 + $0x178] sm:$0x7] %vm5023_vm6, %v11072_v3  ;;  %5494 = vst.msk [vmem:[#allocation3 + $0x190] sm:$0x7] %vm5023_vm6, %v11072_v3 }
  0x78   :  { %v1325_v49 = vmul.f32 %v11492_v21, %v11764_v57  ;;  %v1809_v33 = vmul.f32 %v11494_v22, %v11764_v57  ;;  %v2220_v42 = vadd.f32 %v2007_v30, %v1736_v10  ;;  %v3107_v37 = vsel %vm889_vm3, %v3105_v34, %v3106_v35  ;;  %5497 = vst.msk [vmem:[#allocation3 + $0x1a8] sm:$0x7] %vm5023_vm6, %v11072_v3 }
  0x79   :  { %v908_v4 = vrot.slane %v708_v45, 2  ;;  %v2425_v52 = vmul.f32 %v11504_v27, %v11864_v60  ;;  %v424_v55 = vsel %vm404_vm2, %v421_v54, %v423_v5  ;;  %v2909_v62 = vmul.f32 %v11533_v50, %v11864_v60  ;;  %5503 = vst.msk [vmem:[#allocation3 + $0x1d8] sm:$0x7] %vm5023_vm6, %v11072_v3  ;;  %5506 = vst.msk [vmem:[#allocation3 + $0x1f0] sm:$0x7] %vm5023_vm6, %v11072_v3 }
  0x7a   :  { %v1524_v48 = vrot.slane %v1325_v49, 1  ;;  %v2008_v59 = vrot.slane %v1809_v33, 2  ;;  %v2352_v15 = vadd.f32 %v2288_v29, %v2220_v42  ;;  %v636_v38 = vadd.f32 %v424_v55, %v151_v44  ;;  %5509 = vst.msk [vmem:[#allocation3 + $0x208] sm:$0x7] %vm5023_vm6, %v11072_v3  ;;  %5512 = vst.msk [vmem:[#allocation3 + $0x220] sm:$0x7] %vm5023_vm6, %v11072_v3 }
  0x7b   :  { %v909_v6 = vsel %vm889_vm3, %v906_v61, %v908_v4  ;;  %v2624_v63 = vrot.slane %v2425_v52, 1  ;;  %v2289_v0 = vmul.f32 %v11545_v56, %v11836_v7  ;;  %v4577_v54 = vmax.f32 %v11729_v23, %v11831_v19  ;;  %5515 = vst.msk [vmem:[#allocation3 + $0x238] sm:$0x7] %vm5023_vm6, %v11072_v3  ;;  %5518 = vst.msk [vmem:[#allocation3 + $0x250] sm:$0x7] %vm5023_vm6, %v11072_v3 }
  0x7c   :  { %v1525_v58 = vsel %vm404_vm2, %v1522_v9, %v1524_v48  ;;  %v2009_v53 = vsel %vm889_vm3, %v2006_v11, %v2008_v59  ;;  %v2836_v14 = vadd.f32 %v2623_v43, %v2352_v15  ;;  %v1121_v1 = vadd.f32 %v909_v6, %v636_v38  ;;  %v11931_v15 = vld [vmem:[%s17810_s0 + $0x90] sm:$0xff]  ;;  %v11936_v38 = vld [vmem:[%s17810_s0 + $0x98] sm:$0xff]  ;;  %5521 = vst.msk [vmem:[#allocation3 + $0x268] sm:$0x7] %vm5023_vm6, %v11072_v3 }
  0x7d   :  { %v3108_v13 = vrot.slane %v2909_v62, 2  ;;  %v4578_v51 = vmax.f32 %v11734_v28, %v11836_v7  ;;  %v2625_v26 = vsel %vm404_vm2, %v2622_v25, %v2624_v63  ;;  %v4634_v61 = vmax.f32 %v11764_v57, %v11864_v60  ;;  %5524 = vst.msk [vmem:[#allocation3 + $0x280] sm:$0x7] %vm5023_vm6, %v11072_v3  ;;  %5527 = vst.msk [vmem:[#allocation3 + $0x298] sm:$0x7] %vm5023_vm6, %v11072_v3 }
  0x7e   :  { %v4766_v9 = vrot.slane %v4577_v54, 1  ;;  %v152_v11 = vmul.f32 %v11481_v16, %v11729_v23  ;;  %v3320_v41 = vadd.f32 %v3107_v37, %v2836_v14  ;;  %v1253_v24 = vadd.f32 %v1189_v39, %v1121_v1  ;;  %5530 = vst.msk [vmem:[#allocation3 + $0x2b0] sm:$0x7] %vm5023_vm6, %v11072_v3  ;;  %5533 = vst.msk [vmem:[#allocation3 + $0x2c8] sm:$0x7] %vm5023_vm6, %v11072_v3 }
  0x7f   :  { %v4767_v47 = vrot.slane %v4578_v51, 1  ;;  %v224_v29 = vmul.f32 %v11483_v17, %v11729_v23  ;;  %v4769_v31 = vrot.slane %v4634_v61, 1  ;;  %v11898_v32 = vmul.f32 %v11483_v17, %v11734_v28  ;;  %5536 = vst.msk [vmem:[#allocation3 + $0x2e0] sm:$0x7] %vm5023_vm6, %v11072_v3  ;;  %5539 = vst.msk [vmem:[#allocation3 + $0x2f8] sm:$0x7] %vm5023_vm6, %v11072_v3 }
  0x80   :  { %v709_v36 = vmul.f32 %v11485_v18, %v11729_v23  ;;  %v11904_v12 = vmul.f32 %v11485_v18, %v11734_v28  ;;  %10926 = vmatprep.mubr.msk.f32.mxu0 %vm3379_vm1, %v3320_v41  ;;  %v1737_v25 = vadd.f32 %v1525_v58, %v1253_v24  ;;  %v1190_v40 = vmul.f32 %v11490_v20, %v11831_v19 }
  0x81   :  { %v4768_v30 = vsel %vm404_vm2, %v4766_v9, %v4767_v47  ;;  %v425_v34 = vrot.slane %v224_v29, 1  ;;  %v4770_v10 = vsel %vm404_vm2, %v4767_v47, %v4769_v31  ;;  %v426_v44 = vrot.slane %v11898_v32, 1  ;;  %5542 = vst.msk [vmem:[#allocation3 + $0x310] sm:$0x7] %vm5023_vm6, %v11072_v3  ;;  %5545 = vst.msk [vmem:[#allocation3 + $0x328] sm:$0x7] %vm5023_vm6, %v11072_v3 }
  0x82   :  { %v4967_v43 = vmax.f32 %v4577_v54, %v4768_v30  ;;  %v910_v45 = vrot.slane %v709_v36, 2  ;;  %v2221_v23 = vadd.f32 %v2009_v53, %v1737_v25  ;;  %v4968_v5 = vmax.f32 %v4578_v51, %v4770_v10  ;;  %v11965_v25 = vld [vmem:[%s17810_s0 + $0xa0] sm:$0x3]  ;;  %5548 = vst.msk [vmem:[#allocation3 + $0x340] sm:$0x7] %vm5023_vm6, %v11072_v3 }
  0x83   :  { %v911_v39 = vrot.slane %v11904_v12, 2  ;;  %v1326_v49 = vmul.f32 %v11492_v21, %v11831_v19  ;;  %v427_v33 = vsel %vm404_vm2, %v425_v34, %v426_v44  ;;  %v1327_v42 = vmul.f32 %v11492_v21, %v11836_v7  ;;  %5551 = vst.msk [vmem:[#allocation3 + $0x358] sm:$0x7] %vm5023_vm6, %v11072_v3  ;;  %5554 = vst.msk [vmem:[#allocation3 + $0x370] sm:$0x7] %vm5023_vm6, %v11072_v3 }
  0x84   :  { %5566 = vst.msk [vmem:[#allocation3 + $0x60] sm:$0xfe] %vm5559_vm4, %v4967_v43  ;;  %v1810_v37 = vmul.f32 %v11494_v22, %v11831_v19  ;;  %v1811_v4 = vmul.f32 %v11494_v22, %v11836_v7  ;;  %v2353_v52 = vadd.f32 %v2289_v0, %v2221_v23  ;;  %v637_v55 = vadd.f32 %v427_v33, %v152_v11 }
  0x85   :  { %5567 = vst.msk [vmem:[#allocation3 + $0x68] sm:$0xff] %vm3379_vm1, %v4968_v5  ;;  %v912_v48 = vsel %vm889_vm3, %v910_v45, %v911_v39  ;;  %v1526_v59 = vrot.slane %v1326_v49, 1  ;;  %v3109_v62 = vsel %vm889_vm3, %v3106_v35, %v3108_v13  ;;  %v1527_v6 = vrot.slane %v1327_v42, 1 }
  0x86   :  { %v2010_v63 = vrot.slane %v1810_v37, 2  ;;  %v2011_v58 = vrot.slane %v1811_v4, 2  ;;  %v2837_v53 = vadd.f32 %v2625_v26, %v2353_v52  ;;  %v1122_v0 = vadd.f32 %v912_v48, %v637_v55 }
  0x87   :  { %v2426_v46 = vmul.f32 %v11504_v27, %v11931_v15  ;;  %v2427_v35 = vmul.f32 %v11504_v27, %v11936_v38  ;;  %v1528_v54 = vsel %vm404_vm2, %v1526_v59, %v1527_v6  ;;  %v2290_v14 = vmul.f32 %v11545_v56, %v11931_v15 }
  0x88   :  { %v2910_v1 = vmul.f32 %v11533_v50, %v11931_v15  ;;  %v11949_v13 = vmul.f32 %v11533_v50, %v11936_v38  ;;  %v3321_v51 = vadd.f32 %v3109_v62, %v2837_v53  ;;  %v1254_v26 = vadd.f32 %v1190_v40, %v1122_v0 }
  0x89   :  { %v2626_v61 = vrot.slane %v2426_v46, 1  ;;  %v2627_v9 = vrot.slane %v2427_v35, 1  ;;  %v2012_v11 = vsel %vm889_vm3, %v2010_v63, %v2011_v58  ;;  %v226_v47 = vmul.f32 %v11483_v17, %v11764_v57 }
  0x8a   :  { %v3110_v41 = vrot.slane %v2910_v1, 2  ;;  %v3111_v24 = vrot.slane %v11949_v13, 2  ;;  %10927 = vmatmul.mubr.msk.f32.gmra.mxu0 %vm3379_vm1, %v3321_v51  ;;  %v1738_v31 = vadd.f32 %v1528_v54, %v1254_v26  ;;  %v153_v36 = vmul.f32 %v11481_v16, %v11734_v28 }
  0x8b   :  { %v5638_v29 = vld [vmem:[#allocation3 + $0x62] sm:$0x1]  ;;  %v2628_v32 = vsel %vm404_vm2, %v2626_v61, %v2627_v9  ;;  %v711_v12 = vmul.f32 %v11485_v18, %v11764_v57  ;;  %v428_v30 = vrot.slane %v226_v47, 1  ;;  %v1191_v34 = vmul.f32 %v11490_v20, %v11836_v7 }
  0x8c   :  { %5676 = vst.msk [vmem:[#allocation3 + $0x60] sm:$0x1] %vm5253_vm5, %v5638_v29  ;;  %v1328_v40 = vmul.f32 %v11492_v21, %v11864_v60  ;;  %v1812_v28 = vmul.f32 %v11494_v22, %v11864_v60  ;;  %v2222_v10 = vadd.f32 %v2012_v11, %v1738_v31  ;;  %v3112_v57 = vsel %vm889_vm3, %v3110_v41, %v3111_v24 }
  0x8d   :  { %v913_v43 = vrot.slane %v711_v12, 2  ;;  %v2428_v45 = vmul.f32 %v11504_v27, %v11965_v25  ;;  %v429_v23 = vsel %vm404_vm2, %v426_v44, %v428_v30  ;;  %v2912_v33 = vmul.f32 %v11533_v50, %v11965_v25 }
  0x8e   :  { %v1529_v5 = vrot.slane %v1328_v40, 1  ;;  %v2013_v49 = vrot.slane %v1812_v28, 2  ;;  %v2354_v42 = vadd.f32 %v2290_v14, %v2222_v10  ;;  %v638_v37 = vadd.f32 %v429_v23, %v153_v36 }
  0x8f   :  { %v914_v4 = vsel %vm889_vm3, %v911_v39, %v913_v43  ;;  %v2629_v52 = vrot.slane %v2428_v45, 1  ;;  %v2291_v59 = vmul.f32 %v11545_v56, %v11936_v38  ;;  %v4579_v44 = vmax.f32 %v11831_v19, %v11931_v15 }
  0x90   :  { %v1530_v55 = vsel %vm404_vm2, %v1527_v6, %v1529_v5  ;;  %v2014_v48 = vsel %vm889_vm3, %v2011_v58, %v2013_v49  ;;  %v2838_v62 = vadd.f32 %v2628_v32, %v2354_v42  ;;  %v1123_v63 = vadd.f32 %v914_v4, %v638_v37  ;;  %v12032_v42 = vld [vmem:[%s17810_s0 + $0xa8] sm:$0xff]  ;;  %v12037_v37 = vld [vmem:[%s17810_s0 + $0xb0] sm:$0xff] }
  0x91   :  { %v3113_v53 = vrot.slane %v2912_v33, 2  ;;  %v4580_v0 = vmax.f32 %v11836_v7, %v11936_v38  ;;  %v2630_v46 = vsel %vm404_vm2, %v2627_v9, %v2629_v52  ;;  %v4635_v39 = vmax.f32 %v11864_v60, %v11965_v25 }
  0x92   :  { %v4771_v6 = vrot.slane %v4579_v44, 1  ;;  %v154_v58 = vmul.f32 %v11481_v16, %v11831_v19  ;;  %v3322_v35 = vadd.f32 %v3112_v57, %v2838_v62  ;;  %v1255_v54 = vadd.f32 %v1191_v34, %v1123_v63 }
  0x93   :  { %v4772_v14 = vrot.slane %v4580_v0, 1  ;;  %v227_v1 = vmul.f32 %v11483_v17, %v11831_v19  ;;  %v4774_v51 = vrot.slane %v4635_v39, 1  ;;  %v11999_v26 = vmul.f32 %v11483_v17, %v11836_v7 }
  0x94   :  { %v712_v61 = vmul.f32 %v11485_v18, %v11831_v19  ;;  %v12005_v9 = vmul.f32 %v11485_v18, %v11836_v7  ;;  %10929 = vmatprep.mubr.msk.f32.mxu0 %vm3379_vm1, %v3322_v35  ;;  %v1739_v11 = vadd.f32 %v1530_v55, %v1255_v54  ;;  %v1192_v29 = vmul.f32 %v11490_v20, %v11931_v15 }
  0x95   :  { %v4773_v41 = vsel %vm404_vm2, %v4771_v6, %v4772_v14  ;;  %v430_v47 = vrot.slane %v227_v1, 1  ;;  %v4775_v31 = vsel %vm404_vm2, %v4772_v14, %v4774_v51  ;;  %v431_v36 = vrot.slane %v11999_v26, 1 }
  0x96   :  { %v4969_v32 = vmax.f32 %v4579_v44, %v4773_v41  ;;  %v915_v12 = vrot.slane %v712_v61, 2  ;;  %v2223_v19 = vadd.f32 %v2014_v48, %v1739_v11  ;;  %v4970_v30 = vmax.f32 %v4580_v0, %v4775_v31  ;;  %v12066_v11 = vld [vmem:[%s17810_s0 + $0xb8] sm:$0x3] }
  0x97   :  { %v916_v34 = vrot.slane %v12005_v9, 2  ;;  %v1329_v40 = vmul.f32 %v11492_v21, %v11931_v15  ;;  %v432_v28 = vsel %vm404_vm2, %v430_v47, %v431_v36  ;;  %v1330_v10 = vmul.f32 %v11492_v21, %v11936_v38 }
  0x98   :  { %5568 = vst.msk [vmem:[#allocation3 + $0x78] sm:$0xfe] %vm5559_vm4, %v4969_v32  ;;  %v1813_v57 = vmul.f32 %v11494_v22, %v11931_v15  ;;  %v1814_v43 = vmul.f32 %v11494_v22, %v11936_v38  ;;  %v2355_v45 = vadd.f32 %v2291_v59, %v2223_v19  ;;  %v639_v23 = vadd.f32 %v432_v28, %v154_v58 }
  0x99   :  { %5569 = vst.msk [vmem:[#allocation3 + $0x80] sm:$0xff] %vm3379_vm1, %v4970_v30  ;;  %v917_v5 = vsel %vm889_vm3, %v915_v12, %v916_v34  ;;  %v1531_v49 = vrot.slane %v1329_v40, 1  ;;  %v3114_v33 = vsel %vm889_vm3, %v3111_v24, %v3113_v53  ;;  %v1532_v4 = vrot.slane %v1330_v10, 1 }
  0x9a   :  { %v2015_v52 = vrot.slane %v1813_v57, 2  ;;  %v2016_v55 = vrot.slane %v1814_v43, 2  ;;  %v2839_v48 = vadd.f32 %v2630_v46, %v2355_v45  ;;  %v1124_v59 = vadd.f32 %v917_v5, %v639_v23 }
  0x9b   :  { %v2429_v13 = vmul.f32 %v11504_v27, %v12032_v42  ;;  %v2430_v24 = vmul.f32 %v11504_v27, %v12037_v37  ;;  %v1533_v44 = vsel %vm404_vm2, %v1531_v49, %v1532_v4  ;;  %v2292_v62 = vmul.f32 %v11545_v56, %v12032_v42 }
  0x9c   :  { %v2913_v63 = vmul.f32 %v11533_v50, %v12032_v42  ;;  %v12050_v53 = vmul.f32 %v11533_v50, %v12037_v37  ;;  %v3323_v0 = vadd.f32 %v3114_v33, %v2839_v48  ;;  %v1256_v46 = vadd.f32 %v1192_v29, %v1124_v59 }
  0x9d   :  { %v2631_v39 = vrot.slane %v2429_v13, 1  ;;  %v2632_v6 = vrot.slane %v2430_v24, 1  ;;  %v2017_v58 = vsel %vm889_vm3, %v2015_v52, %v2016_v55  ;;  %v229_v14 = vmul.f32 %v11483_v17, %v11864_v60 }
  0x9e   :  { %v3115_v35 = vrot.slane %v2913_v63, 2  ;;  %v3116_v54 = vrot.slane %v12050_v53, 2  ;;  %10930 = vmatmul.mubr.msk.f32.gmra.mxu0 %vm3379_vm1, %v3323_v0  ;;  %v1740_v51 = vadd.f32 %v1533_v44, %v1256_v46  ;;  %v155_v61 = vmul.f32 %v11481_v16, %v11836_v7 }
  0x9f   :  { %v5639_v1 = vld [vmem:[#allocation3 + $0x7a] sm:$0x1]  ;;  %v2633_v26 = vsel %vm404_vm2, %v2631_v39, %v2632_v6  ;;  %v714_v9 = vmul.f32 %v11485_v18, %v11864_v60  ;;  %v433_v41 = vrot.slane %v229_v14, 1  ;;  %v1193_v47 = vmul.f32 %v11490_v20, %v11936_v38 }
  0xa0   :  { %5677 = vst.msk [vmem:[#allocation3 + $0x78] sm:$0x1] %vm5253_vm5, %v5639_v1  ;;  %v1331_v29 = vmul.f32 %v11492_v21, %v11965_v25  ;;  %v1815_v7 = vmul.f32 %v11494_v22, %v11965_v25  ;;  %v2224_v31 = vadd.f32 %v2017_v58, %v1740_v51  ;;  %v3117_v60 = vsel %vm889_vm3, %v3115_v35, %v3116_v54 }
  0xa1   :  { %v918_v32 = vrot.slane %v714_v9, 2  ;;  %v2431_v12 = vmul.f32 %v11504_v27, %v12066_v11  ;;  %v434_v19 = vsel %vm404_vm2, %v431_v36, %v433_v41  ;;  %v2915_v28 = vmul.f32 %v11533_v50, %v12066_v11 }
  0xa2   :  { %v1534_v30 = vrot.slane %v1331_v29, 1  ;;  %v2018_v40 = vrot.slane %v1815_v7, 2  ;;  %v2356_v10 = vadd.f32 %v2292_v62, %v2224_v31  ;;  %v640_v57 = vadd.f32 %v434_v19, %v155_v61 }
  0xa3   :  { %v919_v43 = vsel %vm889_vm3, %v916_v34, %v918_v32  ;;  %v2634_v45 = vrot.slane %v2431_v12, 1  ;;  %v2293_v49 = vmul.f32 %v11545_v56, %v12037_v37  ;;  %v4581_v36 = vmax.f32 %v11931_v15, %v12032_v42 }
  0xa4   :  { %v1535_v23 = vsel %vm404_vm2, %v1532_v4, %v1534_v30  ;;  %v2019_v5 = vsel %vm889_vm3, %v2016_v55, %v2018_v40  ;;  %v2840_v33 = vadd.f32 %v2633_v26, %v2356_v10  ;;  %v1125_v52 = vadd.f32 %v919_v43, %v640_v57  ;;  %v12133_v10 = vld [vmem:[%s17810_s0 + $0xc0] sm:$0xff]  ;;  %v12138_v57 = vld [vmem:[%s17810_s0 + $0xc8] sm:$0xff] }
  0xa5   :  { %v3118_v48 = vrot.slane %v2915_v28, 2  ;;  %v4582_v59 = vmax.f32 %v11936_v38, %v12037_v37  ;;  %v2635_v13 = vsel %vm404_vm2, %v2632_v6, %v2634_v45  ;;  %v4636_v34 = vmax.f32 %v11965_v25, %v12066_v11 }
  0xa6   :  { %v4776_v4 = vrot.slane %v4581_v36, 1  ;;  %v156_v55 = vmul.f32 %v11481_v16, %v11931_v15  ;;  %v3324_v24 = vadd.f32 %v3117_v60, %v2840_v33  ;;  %v1257_v44 = vadd.f32 %v1193_v47, %v1125_v52 }
  0xa7   :  { %v4777_v62 = vrot.slane %v4582_v59, 1  ;;  %v230_v63 = vmul.f32 %v11483_v17, %v11931_v15  ;;  %v4779_v0 = vrot.slane %v4636_v34, 1  ;;  %v12100_v46 = vmul.f32 %v11483_v17, %v11936_v38 }
  0xa8   :  { %v715_v39 = vmul.f32 %v11485_v18, %v11931_v15  ;;  %v12106_v6 = vmul.f32 %v11485_v18, %v11936_v38  ;;  %10932 = vmatprep.mubr.msk.f32.mxu0 %vm3379_vm1, %v3324_v24  ;;  %v1741_v58 = vadd.f32 %v1535_v23, %v1257_v44  ;;  %v1194_v1 = vmul.f32 %v11490_v20, %v12032_v42 }
  0xa9   :  { %v4778_v35 = vsel %vm404_vm2, %v4776_v4, %v4777_v62  ;;  %v435_v14 = vrot.slane %v230_v63, 1  ;;  %v4780_v51 = vsel %vm404_vm2, %v4777_v62, %v4779_v0  ;;  %v436_v61 = vrot.slane %v12100_v46, 1 }
  0xaa   :  { %v4971_v26 = vmax.f32 %v4581_v36, %v4778_v35  ;;  %v920_v9 = vrot.slane %v715_v39, 2  ;;  %v2225_v15 = vadd.f32 %v2019_v5, %v1741_v58  ;;  %v4972_v41 = vmax.f32 %v4582_v59, %v4780_v51  ;;  %v12167_v58 = vld [vmem:[%s17810_s0 + $0xd0] sm:$0x3] }
  0xab   :  { %v921_v47 = vrot.slane %v12106_v6, 2  ;;  %v1332_v29 = vmul.f32 %v11492_v21, %v12032_v42  ;;  %v437_v7 = vsel %vm404_vm2, %v435_v14, %v436_v61  ;;  %v1333_v31 = vmul.f32 %v11492_v21, %v12037_v37 }
  0xac   :  { %5570 = vst.msk [vmem:[#allocation3 + $0x90] sm:$0xfe] %vm5559_vm4, %v4971_v26  ;;  %v1816_v60 = vmul.f32 %v11494_v22, %v12032_v42  ;;  %v1817_v32 = vmul.f32 %v11494_v22, %v12037_v37  ;;  %v2357_v12 = vadd.f32 %v2293_v49, %v2225_v15  ;;  %v641_v19 = vadd.f32 %v437_v7, %v156_v55 }
  0xad   :  { %5571 = vst.msk [vmem:[#allocation3 + $0x98] sm:$0xff] %vm3379_vm1, %v4972_v41  ;;  %v922_v30 = vsel %vm889_vm3, %v920_v9, %v921_v47  ;;  %v1536_v40 = vrot.slane %v1332_v29, 1  ;;  %v3119_v28 = vsel %vm889_vm3, %v3116_v54, %v3118_v48  ;;  %v1537_v43 = vrot.slane %v1333_v31, 1 }
  0xae   :  { %v2020_v45 = vrot.slane %v1816_v60, 2  ;;  %v2021_v23 = vrot.slane %v1817_v32, 2  ;;  %v2841_v5 = vadd.f32 %v2635_v13, %v2357_v12  ;;  %v1126_v49 = vadd.f32 %v922_v30, %v641_v19 }
  0xaf   :  { %v2432_v53 = vmul.f32 %v11504_v27, %v12133_v10  ;;  %v2433_v54 = vmul.f32 %v11504_v27, %v12138_v57  ;;  %v1538_v36 = vsel %vm404_vm2, %v1536_v40, %v1537_v43  ;;  %v2294_v33 = vmul.f32 %v11545_v56, %v12133_v10 }
  0xb0   :  { %v2916_v52 = vmul.f32 %v11533_v50, %v12133_v10  ;;  %v12151_v48 = vmul.f32 %v11533_v50, %v12138_v57  ;;  %v3325_v59 = vadd.f32 %v3119_v28, %v2841_v5  ;;  %v1258_v13 = vadd.f32 %v1194_v1, %v1126_v49 }
  0xb1   :  { %v2636_v34 = vrot.slane %v2432_v53, 1  ;;  %v2637_v4 = vrot.slane %v2433_v54, 1  ;;  %v2022_v55 = vsel %vm889_vm3, %v2020_v45, %v2021_v23  ;;  %v232_v62 = vmul.f32 %v11483_v17, %v11965_v25 }
  0xb2   :  { %v3120_v24 = vrot.slane %v2916_v52, 2  ;;  %v3121_v44 = vrot.slane %v12151_v48, 2  ;;  %10933 = vmatmul.mubr.msk.f32.gmra.mxu0 %vm3379_vm1, %v3325_v59  ;;  %v1742_v0 = vadd.f32 %v1538_v36, %v1258_v13  ;;  %v157_v39 = vmul.f32 %v11481_v16, %v11936_v38 }
  0xb3   :  { %v5640_v63 = vld [vmem:[#allocation3 + $0x92] sm:$0x1]  ;;  %v2638_v46 = vsel %vm404_vm2, %v2636_v34, %v2637_v4  ;;  %v717_v6 = vmul.f32 %v11485_v18, %v11965_v25  ;;  %v438_v35 = vrot.slane %v232_v62, 1  ;;  %v1195_v14 = vmul.f32 %v11490_v20, %v12037_v37 }
  0xb4   :  { %5678 = vst.msk [vmem:[#allocation3 + $0x90] sm:$0x1] %vm5253_vm5, %v5640_v63  ;;  %v1334_v1 = vmul.f32 %v11492_v21, %v12066_v11  ;;  %v1818_v38 = vmul.f32 %v11494_v22, %v12066_v11  ;;  %v2226_v51 = vadd.f32 %v2022_v55, %v1742_v0  ;;  %v3122_v25 = vsel %vm889_vm3, %v3120_v24, %v3121_v44 }
  0xb5   :  { %v923_v26 = vrot.slane %v717_v6, 2  ;;  %v2434_v9 = vmul.f32 %v11504_v27, %v12167_v58  ;;  %v439_v15 = vsel %vm404_vm2, %v436_v61, %v438_v35  ;;  %v2918_v7 = vmul.f32 %v11533_v50, %v12167_v58 }
  0xb6   :  { %v1539_v41 = vrot.slane %v1334_v1, 1  ;;  %v2023_v29 = vrot.slane %v1818_v38, 2  ;;  %v2358_v31 = vadd.f32 %v2294_v33, %v2226_v51  ;;  %v642_v60 = vadd.f32 %v439_v15, %v157_v39 }
  0xb7   :  { %v924_v32 = vsel %vm889_vm3, %v921_v47, %v923_v26  ;;  %v2639_v12 = vrot.slane %v2434_v9, 1  ;;  %v2295_v40 = vmul.f32 %v11545_v56, %v12138_v57  ;;  %v4583_v61 = vmax.f32 %v12032_v42, %v12133_v10 }
  0xb8   :  { %v1540_v19 = vsel %vm404_vm2, %v1537_v43, %v1539_v41  ;;  %v2024_v30 = vsel %vm889_vm3, %v2021_v23, %v2023_v29  ;;  %v2842_v28 = vadd.f32 %v2638_v46, %v2358_v31  ;;  %v1127_v45 = vadd.f32 %v924_v32, %v642_v60  ;;  %v12234_v31 = vld [vmem:[%s17810_s0 + $0xd8] sm:$0xff]  ;;  %v12239_v60 = vld [vmem:[%s17810_s0 + $0xe0] sm:$0xff] }
  0xb9   :  { %v3123_v5 = vrot.slane %v2918_v7, 2  ;;  %v4584_v49 = vmax.f32 %v12037_v37, %v12138_v57  ;;  %v2640_v53 = vsel %vm404_vm2, %v2637_v4, %v2639_v12  ;;  %v4637_v47 = vmax.f32 %v12066_v11, %v12167_v58 }
  0xba   :  { %v4781_v43 = vrot.slane %v4583_v61, 1  ;;  %v158_v23 = vmul.f32 %v11481_v16, %v12032_v42  ;;  %v3326_v54 = vadd.f32 %v3122_v25, %v2842_v28  ;;  %v1259_v36 = vadd.f32 %v1195_v14, %v1127_v45 }
  0xbb   :  { %v4782_v33 = vrot.slane %v4584_v49, 1  ;;  %v233_v52 = vmul.f32 %v11483_v17, %v12032_v42  ;;  %v4784_v59 = vrot.slane %v4637_v47, 1  ;;  %v12201_v13 = vmul.f32 %v11483_v17, %v12037_v37 }
  0xbc   :  { %v718_v34 = vmul.f32 %v11485_v18, %v12032_v42  ;;  %v12207_v4 = vmul.f32 %v11485_v18, %v12037_v37  ;;  %10935 = vmatprep.mubr.msk.f32.mxu0 %vm3379_vm1, %v3326_v54  ;;  %v1743_v55 = vadd.f32 %v1540_v19, %v1259_v36  ;;  %v1196_v63 = vmul.f32 %v11490_v20, %v12133_v10 }
  0xbd   :  { %v4783_v24 = vsel %vm404_vm2, %v4781_v43, %v4782_v33  ;;  %v440_v62 = vrot.slane %v233_v52, 1  ;;  %v4785_v0 = vsel %vm404_vm2, %v4782_v33, %v4784_v59  ;;  %v441_v39 = vrot.slane %v12201_v13, 1 }
  0xbe   :  { %v4973_v46 = vmax.f32 %v4583_v61, %v4783_v24  ;;  %v925_v6 = vrot.slane %v718_v34, 2  ;;  %v2227_v42 = vadd.f32 %v2024_v30, %v1743_v55  ;;  %v4974_v35 = vmax.f32 %v4584_v49, %v4785_v0 }
  0xbf   :  { %v926_v14 = vrot.slane %v12207_v4, 2  ;;  %v1335_v1 = vmul.f32 %v11492_v21, %v12133_v10  ;;  %v442_v38 = vsel %vm404_vm2, %v440_v62, %v441_v39  ;;  %v1336_v51 = vmul.f32 %v11492_v21, %v12138_v57  ;;  %v12267_v4 = vld [vmem:[%s17810_s0 + $0xe8] sm:$0x3] }
  0xc0   :  { %5572 = vst.msk [vmem:[#allocation3 + $0xa8] sm:$0xfe] %vm5559_vm4, %v4973_v46  ;;  %v1819_v25 = vmul.f32 %v11494_v22, %v12133_v10  ;;  %v1820_v26 = vmul.f32 %v11494_v22, %v12138_v57  ;;  %v2359_v9 = vadd.f32 %v2295_v40, %v2227_v42  ;;  %v643_v15 = vadd.f32 %v442_v38, %v158_v23 }
  0xc1   :  { %5573 = vst.msk [vmem:[#allocation3 + $0xb0] sm:$0xff] %vm3379_vm1, %v4974_v35  ;;  %v927_v41 = vsel %vm889_vm3, %v925_v6, %v926_v14  ;;  %v1541_v29 = vrot.slane %v1335_v1, 1  ;;  %v3124_v7 = vsel %vm889_vm3, %v3121_v44, %v3123_v5  ;;  %v1542_v32 = vrot.slane %v1336_v51, 1 }
  0xc2   :  { %v2025_v12 = vrot.slane %v1819_v25, 2  ;;  %v2026_v19 = vrot.slane %v1820_v26, 2  ;;  %v2843_v30 = vadd.f32 %v2640_v53, %v2359_v9  ;;  %v1128_v40 = vadd.f32 %v927_v41, %v643_v15 }
  0xc3   :  { %v2435_v48 = vmul.f32 %v11504_v27, %v12234_v31  ;;  %v2436_v44 = vmul.f32 %v11504_v27, %v12239_v60  ;;  %v1543_v61 = vsel %vm404_vm2, %v1541_v29, %v1542_v32  ;;  %v2296_v28 = vmul.f32 %v11545_v56, %v12234_v31 }
  0xc4   :  { %v2919_v45 = vmul.f32 %v11533_v50, %v12234_v31  ;;  %v12252_v5 = vmul.f32 %v11533_v50, %v12239_v60  ;;  %v3327_v49 = vadd.f32 %v3124_v7, %v2843_v30  ;;  %v1260_v53 = vadd.f32 %v1196_v63, %v1128_v40 }
  0xc5   :  { %v2641_v47 = vrot.slane %v2435_v48, 1  ;;  %v2642_v43 = vrot.slane %v2436_v44, 1  ;;  %v2027_v23 = vsel %vm889_vm3, %v2025_v12, %v2026_v19  ;;  %v235_v33 = vmul.f32 %v11483_v17, %v12066_v11 }
  0xc6   :  { %v3125_v54 = vrot.slane %v2919_v45, 2  ;;  %v3126_v36 = vrot.slane %v12252_v5, 2  ;;  %10936 = vmatmul.mubr.msk.f32.gmra.mxu0 %vm3379_vm1, %v3327_v49  ;;  %v1744_v52 = vadd.f32 %v1543_v61, %v1260_v53  ;;  %v159_v13 = vmul.f32 %v11481_v16, %v12037_v37 }
  0xc7   :  { %v2643_v59 = vsel %vm404_vm2, %v2641_v47, %v2642_v43  ;;  %v720_v34 = vmul.f32 %v11485_v18, %v12066_v11  ;;  %v443_v55 = vrot.slane %v235_v33, 1  ;;  %v1197_v24 = vmul.f32 %v11490_v20, %v12138_v57 }
  0xc8   :  { %v1337_v62 = vmul.f32 %v11492_v21, %v12167_v58  ;;  %v1821_v63 = vmul.f32 %v11494_v22, %v12167_v58  ;;  %v2228_v0 = vadd.f32 %v2027_v23, %v1744_v52  ;;  %v3127_v37 = vsel %vm889_vm3, %v3125_v54, %v3126_v36 }
  0xc9   :  { %v928_v11 = vrot.slane %v720_v34, 2  ;;  %v2437_v46 = vmul.f32 %v11504_v27, %v12267_v4  ;;  %v444_v6 = vsel %vm404_vm2, %v441_v39, %v443_v55  ;;  %v2921_v1 = vmul.f32 %v11533_v50, %v12267_v4 }
  0xca   :  { %v1544_v42 = vrot.slane %v1337_v62, 1  ;;  %v2028_v35 = vrot.slane %v1821_v63, 2  ;;  %v2360_v38 = vadd.f32 %v2296_v28, %v2228_v0  ;;  %v644_v51 = vadd.f32 %v444_v6, %v159_v13 }
  0xcb   :  { %v929_v25 = vsel %vm889_vm3, %v926_v14, %v928_v11  ;;  %v2644_v26 = vrot.slane %v2437_v46, 1  ;;  %v2297_v41 = vmul.f32 %v11545_v56, %v12239_v60  ;;  %v4585_v39 = vmax.f32 %v12133_v10, %v12234_v31 }
  0xcc   :  { %v1545_v9 = vsel %vm404_vm2, %v1542_v32, %v1544_v42  ;;  %v2029_v15 = vsel %vm889_vm3, %v2026_v19, %v2028_v35  ;;  %v2844_v29 = vadd.f32 %v2643_v59, %v2360_v38  ;;  %v1129_v7 = vadd.f32 %v929_v25, %v644_v51  ;;  %v12334_v38 = vld [vmem:[%s17810_s0 + $0xf0] sm:$0xff]  ;;  %v12339_v51 = vld [vmem:[%s17810_s0 + $0xf8] sm:$0xff] }
  0xcd   :  { %v3128_v12 = vrot.slane %v2921_v1, 2  ;;  %v4586_v30 = vmax.f32 %v12138_v57, %v12239_v60  ;;  %v2645_v40 = vsel %vm404_vm2, %v2642_v43, %v2644_v26  ;;  %v4638_v14 = vmax.f32 %v12167_v58, %v12267_v4 }
  0xce   :  { %v4786_v32 = vrot.slane %v4585_v39, 1  ;;  %v160_v19 = vmul.f32 %v11481_v16, %v12133_v10  ;;  %v3328_v48 = vadd.f32 %v3127_v37, %v2844_v29  ;;  %v1261_v44 = vadd.f32 %v1197_v24, %v1129_v7 }
  0xcf   :  { %v4787_v61 = vrot.slane %v4586_v30, 1  ;;  %v236_v28 = vmul.f32 %v11483_v17, %v12133_v10  ;;  %v4789_v45 = vrot.slane %v4638_v14, 1  ;;  %v12301_v49 = vmul.f32 %v11483_v17, %v12138_v57 }
  0xd0   :  { %v721_v53 = vmul.f32 %v11485_v18, %v12133_v10  ;;  %v12307_v47 = vmul.f32 %v11485_v18, %v12138_v57  ;;  %10938 = vmatprep.mubr.msk.f32.mxu0 %vm3379_vm1, %v3328_v48  ;;  %v1745_v43 = vadd.f32 %v1545_v9, %v1261_v44  ;;  %v1198_v33 = vmul.f32 %v11490_v20, %v12234_v31 }
  0xd1   :  { %v4788_v23 = vsel %vm404_vm2, %v4786_v32, %v4787_v61  ;;  %v445_v54 = vrot.slane %v236_v28, 1  ;;  %v4790_v52 = vsel %vm404_vm2, %v4787_v61, %v4789_v45  ;;  %v446_v13 = vrot.slane %v12301_v49, 1 }
  0xd2   :  { %v4975_v59 = vmax.f32 %v4585_v39, %v4788_v23  ;;  %v930_v34 = vrot.slane %v721_v53, 2  ;;  %v2229_v10 = vadd.f32 %v2029_v15, %v1745_v43  ;;  %v4976_v55 = vmax.f32 %v4586_v30, %v4790_v52  ;;  %v12368_v43 = vld [vmem:[%s17810_s0 + $0x100] sm:$0x3] }
  0xd3   :  { %v931_v24 = vrot.slane %v12307_v47, 2  ;;  %v1338_v62 = vmul.f32 %v11492_v21, %v12234_v31  ;;  %v447_v63 = vsel %vm404_vm2, %v445_v54, %v446_v13  ;;  %v1339_v0 = vmul.f32 %v11492_v21, %v12239_v60 }
  0xd4   :  { %5574 = vst.msk [vmem:[#allocation3 + $0xc0] sm:$0xfe] %vm5559_vm4, %v4975_v59  ;;  %v1822_v37 = vmul.f32 %v11494_v22, %v12234_v31  ;;  %v1823_v11 = vmul.f32 %v11494_v22, %v12239_v60  ;;  %v2361_v46 = vadd.f32 %v2297_v41, %v2229_v10  ;;  %v645_v6 = vadd.f32 %v447_v63, %v160_v19 }
  0xd5   :  { %5575 = vst.msk [vmem:[#allocation3 + $0xc8] sm:$0xff] %vm3379_vm1, %v4976_v55  ;;  %v932_v42 = vsel %vm889_vm3, %v930_v34, %v931_v24  ;;  %v1546_v35 = vrot.slane %v1338_v62, 1  ;;  %v3129_v1 = vsel %vm889_vm3, %v3126_v36, %v3128_v12  ;;  %v1547_v25 = vrot.slane %v1339_v0, 1 }
  0xd6   :  { %v2030_v26 = vrot.slane %v1822_v37, 2  ;;  %v2031_v9 = vrot.slane %v1823_v11, 2  ;;  %v2845_v15 = vadd.f32 %v2645_v40, %v2361_v46  ;;  %v1130_v41 = vadd.f32 %v932_v42, %v645_v6 }
  0xd7   :  { %v2438_v5 = vmul.f32 %v11504_v27, %v12334_v38  ;;  %v2439_v36 = vmul.f32 %v11504_v27, %v12339_v51  ;;  %v1548_v39 = vsel %vm404_vm2, %v1546_v35, %v1547_v25  ;;  %v2298_v29 = vmul.f32 %v11545_v56, %v12334_v38 }
  0xd8   :  { %v2922_v7 = vmul.f32 %v11533_v50, %v12334_v38  ;;  %v12352_v12 = vmul.f32 %v11533_v50, %v12339_v51  ;;  %v3329_v30 = vadd.f32 %v3129_v1, %v2845_v15  ;;  %v1262_v40 = vadd.f32 %v1198_v33, %v1130_v41 }
  0xd9   :  { %v2646_v14 = vrot.slane %v2438_v5, 1  ;;  %v2647_v32 = vrot.slane %v2439_v36, 1  ;;  %v2032_v19 = vsel %vm889_vm3, %v2030_v26, %v2031_v9  ;;  %v238_v61 = vmul.f32 %v11483_v17, %v12167_v58 }
  0xda   :  { %v3130_v48 = vrot.slane %v2922_v7, 2  ;;  %v3131_v44 = vrot.slane %v12352_v12, 2  ;;  %10939 = vmatmul.mubr.msk.f32.gmra.mxu0 %vm3379_vm1, %v3329_v30  ;;  %v1746_v45 = vadd.f32 %v1548_v39, %v1262_v40  ;;  %v161_v53 = vmul.f32 %v11481_v16, %v12138_v57 }
  0xdb   :  { %v5642_v28 = vld [vmem:[#allocation3 + $0xc2] sm:$0x1]  ;;  %v2648_v49 = vsel %vm404_vm2, %v2646_v14, %v2647_v32  ;;  %v723_v47 = vmul.f32 %v11485_v18, %v12167_v58  ;;  %v448_v23 = vrot.slane %v238_v61, 1  ;;  %v1199_v54 = vmul.f32 %v11490_v20, %v12239_v60 }
  0xdc   :  { %5680 = vst.msk [vmem:[#allocation3 + $0xc0] sm:$0x1] %vm5253_vm5, %v5642_v28  ;;  %v1340_v33 = vmul.f32 %v11492_v21, %v12267_v4  ;;  %v1824_v57 = vmul.f32 %v11494_v22, %v12267_v4  ;;  %v2230_v52 = vadd.f32 %v2032_v19, %v1746_v45  ;;  %v3132_v58 = vsel %vm889_vm3, %v3130_v48, %v3131_v44 }
  0xdd   :  { %v933_v59 = vrot.slane %v723_v47, 2  ;;  %v2440_v34 = vmul.f32 %v11504_v27, %v12368_v43  ;;  %v449_v10 = vsel %vm404_vm2, %v446_v13, %v448_v23  ;;  %v2924_v63 = vmul.f32 %v11533_v50, %v12368_v43 }
  0xde   :  { %v1549_v55 = vrot.slane %v1340_v33, 1  ;;  %v2033_v62 = vrot.slane %v1824_v57, 2  ;;  %v2362_v0 = vadd.f32 %v2298_v29, %v2230_v52  ;;  %v646_v37 = vadd.f32 %v449_v10, %v161_v53 }
  0xdf   :  { %v934_v11 = vsel %vm889_vm3, %v931_v24, %v933_v59  ;;  %v2649_v46 = vrot.slane %v2440_v34, 1  ;;  %v2299_v35 = vmul.f32 %v11545_v56, %v12339_v51  ;;  %v4587_v13 = vmax.f32 %v12234_v31, %v12334_v38 }
  0xe0   :  { %v1550_v6 = vsel %vm404_vm2, %v1547_v25, %v1549_v55  ;;  %v2034_v42 = vsel %vm889_vm3, %v2031_v9, %v2033_v62  ;;  %v2846_v1 = vadd.f32 %v2648_v49, %v2362_v0  ;;  %v1131_v26 = vadd.f32 %v934_v11, %v646_v37  ;;  %v12435_v0 = vld [vmem:[%s17810_s0 + $0x108] sm:$0xff]  ;;  %v12440_v37 = vld [vmem:[%s17810_s0 + $0x110] sm:$0xff] }
  0xe1   :  { %v3133_v15 = vrot.slane %v2924_v63, 2  ;;  %v4588_v41 = vmax.f32 %v12239_v60, %v12339_v51  ;;  %v2650_v5 = vsel %vm404_vm2, %v2647_v32, %v2649_v46  ;;  %v4639_v24 = vmax.f32 %v12267_v4, %v12368_v43 }
  0xe2   :  { %v4791_v25 = vrot.slane %v4587_v13, 1  ;;  %v162_v9 = vmul.f32 %v11481_v16, %v12234_v31  ;;  %v3330_v36 = vadd.f32 %v3132_v58, %v2846_v1  ;;  %v1263_v39 = vadd.f32 %v1199_v54, %v1131_v26 }
  0xe3   :  { %v4792_v29 = vrot.slane %v4588_v41, 1  ;;  %v239_v7 = vmul.f32 %v11483_v17, %v12234_v31  ;;  %v4794_v30 = vrot.slane %v4639_v24, 1  ;;  %v12402_v40 = vmul.f32 %v11483_v17, %v12239_v60 }
  0xe4   :  { %v724_v14 = vmul.f32 %v11485_v18, %v12234_v31  ;;  %v12408_v32 = vmul.f32 %v11485_v18, %v12239_v60  ;;  %10941 = vmatprep.mubr.msk.f32.mxu0 %vm3379_vm1, %v3330_v36  ;;  %v1747_v19 = vadd.f32 %v1550_v6, %v1263_v39  ;;  %v1200_v28 = vmul.f32 %v11490_v20, %v12334_v38 }
  0xe5   :  { %v4793_v48 = vsel %vm404_vm2, %v4791_v25, %v4792_v29  ;;  %v450_v61 = vrot.slane %v239_v7, 1  ;;  %v4795_v45 = vsel %vm404_vm2, %v4792_v29, %v4794_v30  ;;  %v451_v53 = vrot.slane %v12402_v40, 1 }
  0xe6   :  { %v4977_v49 = vmax.f32 %v4587_v13, %v4793_v48  ;;  %v935_v47 = vrot.slane %v724_v14, 2  ;;  %v2231_v31 = vadd.f32 %v2034_v42, %v1747_v19  ;;  %v4978_v23 = vmax.f32 %v4588_v41, %v4795_v45 }
  0xe7   :  { %v936_v54 = vrot.slane %v12408_v32, 2  ;;  %v1341_v33 = vmul.f32 %v11492_v21, %v12334_v38  ;;  %v452_v57 = vsel %vm404_vm2, %v450_v61, %v451_v53  ;;  %v1342_v52 = vmul.f32 %v11492_v21, %v12339_v51  ;;  %v12468_v32 = vld [vmem:[%s17810_s0 + $0x118] sm:$0x3] }
  0xe8   :  { %5576 = vst.msk [vmem:[#allocation3 + $0xd8] sm:$0xfe] %vm5559_vm4, %v4977_v49  ;;  %v1825_v58 = vmul.f32 %v11494_v22, %v12334_v38  ;;  %v1826_v59 = vmul.f32 %v11494_v22, %v12339_v51  ;;  %v2363_v34 = vadd.f32 %v2299_v35, %v2231_v31  ;;  %v647_v10 = vadd.f32 %v452_v57, %v162_v9 }
  0xe9   :  { %5577 = vst.msk [vmem:[#allocation3 + $0xe0] sm:$0xff] %vm3379_vm1, %v4978_v23  ;;  %v937_v55 = vsel %vm889_vm3, %v935_v47, %v936_v54  ;;  %v1551_v62 = vrot.slane %v1341_v33, 1  ;;  %v3134_v63 = vsel %vm889_vm3, %v3131_v44, %v3133_v15  ;;  %v1552_v11 = vrot.slane %v1342_v52, 1 }
  0xea   :  { %v2035_v46 = vrot.slane %v1825_v58, 2  ;;  %v2036_v6 = vrot.slane %v1826_v59, 2  ;;  %v2847_v42 = vadd.f32 %v2650_v5, %v2363_v34  ;;  %v1132_v35 = vadd.f32 %v937_v55, %v647_v10 }
  0xeb   :  { %v2441_v12 = vmul.f32 %v11504_v27, %v12435_v0  ;;  %v2442_v44 = vmul.f32 %v11504_v27, %v12440_v37  ;;  %v1553_v13 = vsel %vm404_vm2, %v1551_v62, %v1552_v11  ;;  %v2300_v1 = vmul.f32 %v11545_v56, %v12435_v0 }
  0xec   :  { %v2925_v26 = vmul.f32 %v11533_v50, %v12435_v0  ;;  %v12453_v15 = vmul.f32 %v11533_v50, %v12440_v37  ;;  %v3331_v41 = vadd.f32 %v3134_v63, %v2847_v42  ;;  %v1264_v5 = vadd.f32 %v1200_v28, %v1132_v35 }
  0xed   :  { %v2651_v24 = vrot.slane %v2441_v12, 1  ;;  %v2652_v25 = vrot.slane %v2442_v44, 1  ;;  %v2037_v9 = vsel %vm889_vm3, %v2035_v46, %v2036_v6  ;;  %v241_v29 = vmul.f32 %v11483_v17, %v12267_v4 }
  0xee   :  { %v3135_v36 = vrot.slane %v2925_v26, 2  ;;  %v3136_v39 = vrot.slane %v12453_v15, 2  ;;  %10942 = vmatmul.mubr.msk.f32.gmra.mxu0 %vm3379_vm1, %v3331_v41  ;;  %v1748_v7 = vadd.f32 %v1553_v13, %v1264_v5  ;;  %v163_v40 = vmul.f32 %v11481_v16, %v12239_v60 }
  0xef   :  { %v2653_v30 = vsel %vm404_vm2, %v2651_v24, %v2652_v25  ;;  %v726_v14 = vmul.f32 %v11485_v18, %v12267_v4  ;;  %v453_v19 = vrot.slane %v241_v29, 1  ;;  %v1201_v48 = vmul.f32 %v11490_v20, %v12339_v51 }
  0xf0   :  { %v1343_v61 = vmul.f32 %v11492_v21, %v12368_v43  ;;  %v1827_v28 = vmul.f32 %v11494_v22, %v12368_v43  ;;  %v2232_v45 = vadd.f32 %v2037_v9, %v1748_v7  ;;  %v3137_v60 = vsel %vm889_vm3, %v3135_v36, %v3136_v39 }
  0xf1   :  { %v938_v4 = vrot.slane %v726_v14, 2  ;;  %v2443_v49 = vmul.f32 %v11504_v27, %v12468_v32  ;;  %v454_v47 = vsel %vm404_vm2, %v451_v53, %v453_v19  ;;  %v2927_v33 = vmul.f32 %v11533_v50, %v12468_v32 }
  0xf2   :  { %v1554_v31 = vrot.slane %v1343_v61, 1  ;;  %v2038_v23 = vrot.slane %v1827_v28, 2  ;;  %v2364_v57 = vadd.f32 %v2300_v1, %v2232_v45  ;;  %v648_v52 = vadd.f32 %v454_v47, %v163_v40 }
  0xf3   :  { %v939_v58 = vsel %vm889_vm3, %v936_v54, %v938_v4  ;;  %v2654_v59 = vrot.slane %v2443_v49, 1  ;;  %v2301_v55 = vmul.f32 %v11545_v56, %v12440_v37  ;;  %v4589_v53 = vmax.f32 %v12334_v38, %v12435_v0 }
  0xf4   :  { %v1555_v34 = vsel %vm404_vm2, %v1552_v11, %v1554_v31  ;;  %v2039_v10 = vsel %vm889_vm3, %v2036_v6, %v2038_v23  ;;  %v2848_v62 = vadd.f32 %v2653_v30, %v2364_v57  ;;  %v1133_v63 = vadd.f32 %v939_v58, %v648_v52  ;;  %v12535_v57 = vld [vmem:[%s17810_s0 + $0x120] sm:$0xff]  ;;  %v12540_v52 = vld [vmem:[%s17810_s0 + $0x128] sm:$0xff] }
  0xf5   :  { %v3138_v46 = vrot.slane %v2927_v33, 2  ;;  %v4590_v42 = vmax.f32 %v12339_v51, %v12440_v37  ;;  %v2655_v35 = vsel %vm404_vm2, %v2652_v25, %v2654_v59  ;;  %v4640_v54 = vmax.f32 %v12368_v43, %v12468_v32 }
  0xf6   :  { %v4796_v11 = vrot.slane %v4589_v53, 1  ;;  %v164_v6 = vmul.f32 %v11481_v16, %v12334_v38  ;;  %v3332_v12 = vadd.f32 %v3137_v60, %v2848_v62  ;;  %v1265_v44 = vadd.f32 %v1201_v48, %v1133_v63 }
  0xf7   :  { %v4797_v13 = vrot.slane %v4590_v42, 1  ;;  %v242_v1 = vmul.f32 %v11483_v17, %v12334_v38  ;;  %v4799_v26 = vrot.slane %v4640_v54, 1  ;;  %v12502_v41 = vmul.f32 %v11483_v17, %v12339_v51 }
  0xf8   :  { %v727_v5 = vmul.f32 %v11485_v18, %v12334_v38  ;;  %v12508_v24 = vmul.f32 %v11485_v18, %v12339_v51  ;;  %10944 = vmatprep.mubr.msk.f32.mxu0 %vm3379_vm1, %v3332_v12  ;;  %v1749_v25 = vadd.f32 %v1555_v34, %v1265_v44  ;;  %v1202_v29 = vmul.f32 %v11490_v20, %v12435_v0 }
  0xf9   :  { %v4798_v9 = vsel %vm404_vm2, %v4796_v11, %v4797_v13  ;;  %v455_v36 = vrot.slane %v242_v1, 1  ;;  %v4800_v7 = vsel %vm404_vm2, %v4797_v13, %v4799_v26  ;;  %v456_v40 = vrot.slane %v12502_v41, 1 }
  0xfa   :  { %v4979_v30 = vmax.f32 %v4589_v53, %v4798_v9  ;;  %v940_v14 = vrot.slane %v727_v5, 2  ;;  %v2233_v38 = vadd.f32 %v2039_v10, %v1749_v25  ;;  %v4980_v19 = vmax.f32 %v4590_v42, %v4800_v7  ;;  %v12569_v25 = vld [vmem:[%s17810_s0 + $0x130] sm:$0x3] }
  0xfb   :  { %v941_v48 = vrot.slane %v12508_v24, 2  ;;  %v1344_v61 = vmul.f32 %v11492_v21, %v12435_v0  ;;  %v457_v28 = vsel %vm404_vm2, %v455_v36, %v456_v40  ;;  %v1345_v45 = vmul.f32 %v11492_v21, %v12440_v37 }
  0xfc   :  { %5578 = vst.msk [vmem:[#allocation3 + $0xf0] sm:$0xfe] %vm5559_vm4, %v4979_v30  ;;  %v1828_v60 = vmul.f32 %v11494_v22, %v12435_v0  ;;  %v1829_v4 = vmul.f32 %v11494_v22, %v12440_v37  ;;  %v2365_v49 = vadd.f32 %v2301_v55, %v2233_v38  ;;  %v649_v47 = vadd.f32 %v457_v28, %v164_v6 }
  0xfd   :  { %5579 = vst.msk [vmem:[#allocation3 + $0xf8] sm:$0xff] %vm3379_vm1, %v4980_v19  ;;  %v942_v31 = vsel %vm889_vm3, %v940_v14, %v941_v48  ;;  %v1556_v23 = vrot.slane %v1344_v61, 1  ;;  %v3139_v33 = vsel %vm889_vm3, %v3136_v39, %v3138_v46  ;;  %v1557_v58 = vrot.slane %v1345_v45, 1 }
  0xfe   :  { %v2040_v59 = vrot.slane %v1828_v60, 2  ;;  %v2041_v34 = vrot.slane %v1829_v4, 2  ;;  %v2849_v10 = vadd.f32 %v2655_v35, %v2365_v49  ;;  %v1134_v55 = vadd.f32 %v942_v31, %v649_v47 }
  0xff   :  { %v2444_v15 = vmul.f32 %v11504_v27, %v12535_v57  ;;  %v2445_v39 = vmul.f32 %v11504_v27, %v12540_v52  ;;  %v1558_v53 = vsel %vm404_vm2, %v1556_v23, %v1557_v58  ;;  %v2302_v62 = vmul.f32 %v11545_v56, %v12535_v57 }
 0x100   :  { %v2928_v63 = vmul.f32 %v11533_v50, %v12535_v57  ;;  %v12553_v46 = vmul.f32 %v11533_v50, %v12540_v52  ;;  %v3333_v42 = vadd.f32 %v3139_v33, %v2849_v10  ;;  %v1266_v35 = vadd.f32 %v1202_v29, %v1134_v55 }
 0x101   :  { %v2656_v54 = vrot.slane %v2444_v15, 1  ;;  %v2657_v11 = vrot.slane %v2445_v39, 1  ;;  %v2042_v6 = vsel %vm889_vm3, %v2040_v59, %v2041_v34  ;;  %v244_v13 = vmul.f32 %v11483_v17, %v12368_v43 }
 0x102   :  { %v3140_v12 = vrot.slane %v2928_v63, 2  ;;  %v3141_v44 = vrot.slane %v12553_v46, 2  ;;  %10945 = vmatmul.mubr.msk.f32.gmra.mxu0 %vm3379_vm1, %v3333_v42  ;;  %v1750_v26 = vadd.f32 %v1558_v53, %v1266_v35  ;;  %v165_v5 = vmul.f32 %v11481_v16, %v12339_v51 }
 0x103   :  { %v5644_v1 = vld [vmem:[#allocation3 + $0xf2] sm:$0x1]  ;;  %v2658_v41 = vsel %vm404_vm2, %v2656_v54, %v2657_v11  ;;  %v729_v24 = vmul.f32 %v11485_v18, %v12368_v43  ;;  %v458_v9 = vrot.slane %v244_v13, 1  ;;  %v1203_v36 = vmul.f32 %v11490_v20, %v12440_v37 }
 0x104   :  { %5682 = vst.msk [vmem:[#allocation3 + $0xf0] sm:$0x1] %vm5253_vm5, %v5644_v1  ;;  %v1346_v29 = vmul.f32 %v11492_v21, %v12468_v32  ;;  %v1830_v51 = vmul.f32 %v11494_v22, %v12468_v32  ;;  %v2234_v7 = vadd.f32 %v2042_v6, %v1750_v26  ;;  %v3142_v43 = vsel %vm889_vm3, %v3140_v12, %v3141_v44 }
 0x105   :  { %v943_v30 = vrot.slane %v729_v24, 2  ;;  %v2446_v14 = vmul.f32 %v11504_v27, %v12569_v25  ;;  %v459_v38 = vsel %vm404_vm2, %v456_v40, %v458_v9  ;;  %v2930_v28 = vmul.f32 %v11533_v50, %v12569_v25 }
 0x106   :  { %v1559_v19 = vrot.slane %v1346_v29, 1  ;;  %v2043_v61 = vrot.slane %v1830_v51, 2  ;;  %v2366_v45 = vadd.f32 %v2302_v62, %v2234_v7  ;;  %v650_v60 = vadd.f32 %v459_v38, %v165_v5 }
 0x107   :  { %v944_v4 = vsel %vm889_vm3, %v941_v48, %v943_v30  ;;  %v2659_v49 = vrot.slane %v2446_v14, 1  ;;  %v2303_v23 = vmul.f32 %v11545_v56, %v12540_v52  ;;  %v4591_v40 = vmax.f32 %v12435_v0, %v12535_v57 }
 0x108   :  { %v1560_v47 = vsel %vm404_vm2, %v1557_v58, %v1559_v19  ;;  %v2044_v31 = vsel %vm889_vm3, %v2041_v34, %v2043_v61  ;;  %v2850_v33 = vadd.f32 %v2658_v41, %v2366_v45  ;;  %v1135_v59 = vadd.f32 %v944_v4, %v650_v60  ;;  %v12636_v45 = vld [vmem:[%s17810_s0 + $0x138] sm:$0xff]  ;;  %v12641_v60 = vld [vmem:[%s17810_s0 + $0x140] sm:$0xff] }
 0x109   :  { %v3143_v10 = vrot.slane %v2930_v28, 2  ;;  %v4592_v55 = vmax.f32 %v12440_v37, %v12540_v52  ;;  %v2660_v15 = vsel %vm404_vm2, %v2657_v11, %v2659_v49  ;;  %v4641_v48 = vmax.f32 %v12468_v32, %v12569_v25 }
 0x10a   :  { %v4801_v58 = vrot.slane %v4591_v40, 1  ;;  %v166_v34 = vmul.f32 %v11481_v16, %v12435_v0  ;;  %v3334_v39 = vadd.f32 %v3142_v43, %v2850_v33  ;;  %v1267_v53 = vadd.f32 %v1203_v36, %v1135_v59 }
 0x10b   :  { %v4802_v62 = vrot.slane %v4592_v55, 1  ;;  %v245_v63 = vmul.f32 %v11483_v17, %v12435_v0  ;;  %v4804_v42 = vrot.slane %v4641_v48, 1  ;;  %v12603_v35 = vmul.f32 %v11483_v17, %v12440_v37 }
 0x10c   :  { %v730_v54 = vmul.f32 %v11485_v18, %v12435_v0  ;;  %v12609_v11 = vmul.f32 %v11485_v18, %v12440_v37  ;;  %10947 = vmatprep.mubr.msk.f32.mxu0 %vm3379_vm1, %v3334_v39  ;;  %v1751_v6 = vadd.f32 %v1560_v47, %v1267_v53  ;;  %v1204_v1 = vmul.f32 %v11490_v20, %v12535_v57 }
 0x10d   :  { %v4803_v12 = vsel %vm404_vm2, %v4801_v58, %v4802_v62  ;;  %v460_v13 = vrot.slane %v245_v63, 1  ;;  %v4805_v26 = vsel %vm404_vm2, %v4802_v62, %v4804_v42  ;;  %v461_v5 = vrot.slane %v12603_v35, 1 }
 0x10e   :  { %v4981_v41 = vmax.f32 %v4591_v40, %v4803_v12  ;;  %v945_v24 = vrot.slane %v730_v54, 2  ;;  %v2235_v0 = vadd.f32 %v2044_v31, %v1751_v6  ;;  %v4982_v9 = vmax.f32 %v4592_v55, %v4805_v26 }
 0x10f   :  { %v946_v36 = vrot.slane %v12609_v11, 2  ;;  %v1347_v29 = vmul.f32 %v11492_v21, %v12535_v57  ;;  %v462_v51 = vsel %vm404_vm2, %v460_v13, %v461_v5  ;;  %v1348_v7 = vmul.f32 %v11492_v21, %v12540_v52  ;;  %v12669_v11 = vld [vmem:[%s17810_s0 + $0x148] sm:$0x3] }
 0x110   :  { %5580 = vst.msk [vmem:[#allocation3 + $0x108] sm:$0xfe] %vm5559_vm4, %v4981_v41  ;;  %v1831_v43 = vmul.f32 %v11494_v22, %v12535_v57  ;;  %v1832_v30 = vmul.f32 %v11494_v22, %v12540_v52  ;;  %v2367_v14 = vadd.f32 %v2303_v23, %v2235_v0  ;;  %v651_v38 = vadd.f32 %v462_v51, %v166_v34 }
 0x111   :  { %5581 = vst.msk [vmem:[#allocation3 + $0x110] sm:$0xff] %vm3379_vm1, %v4982_v9  ;;  %v947_v19 = vsel %vm889_vm3, %v945_v24, %v946_v36  ;;  %v1561_v61 = vrot.slane %v1347_v29, 1  ;;  %v3144_v28 = vsel %vm889_vm3, %v3141_v44, %v3143_v10  ;;  %v1562_v4 = vrot.slane %v1348_v7, 1 }
 0x112   :  { %v2045_v49 = vrot.slane %v1831_v43, 2  ;;  %v2046_v47 = vrot.slane %v1832_v30, 2  ;;  %v2851_v31 = vadd.f32 %v2660_v15, %v2367_v14  ;;  %v1136_v23 = vadd.f32 %v947_v19, %v651_v38 }
 0x113   :  { %v2447_v46 = vmul.f32 %v11504_v27, %v12636_v45  ;;  %v2448_v44 = vmul.f32 %v11504_v27, %v12641_v60  ;;  %v1563_v40 = vsel %vm404_vm2, %v1561_v61, %v1562_v4  ;;  %v2304_v33 = vmul.f32 %v11545_v56, %v12636_v45 }
 0x114   :  { %v2931_v59 = vmul.f32 %v11533_v50, %v12636_v45  ;;  %v12654_v10 = vmul.f32 %v11533_v50, %v12641_v60  ;;  %v3335_v55 = vadd.f32 %v3144_v28, %v2851_v31  ;;  %v1268_v15 = vadd.f32 %v1204_v1, %v1136_v23 }
 0x115   :  { %v2661_v48 = vrot.slane %v2447_v46, 1  ;;  %v2662_v58 = vrot.slane %v2448_v44, 1  ;;  %v2047_v34 = vsel %vm889_vm3, %v2045_v49, %v2046_v47  ;;  %v247_v62 = vmul.f32 %v11483_v17, %v12468_v32 }
 0x116   :  { %v3145_v39 = vrot.slane %v2931_v59, 2  ;;  %v3146_v53 = vrot.slane %v12654_v10, 2  ;;  %10948 = vmatmul.mubr.msk.f32.gmra.mxu0 %vm3379_vm1, %v3335_v55  ;;  %v1752_v63 = vadd.f32 %v1563_v40, %v1268_v15  ;;  %v167_v35 = vmul.f32 %v11481_v16, %v12440_v37 }
 0x117   :  { %v2663_v42 = vsel %vm404_vm2, %v2661_v48, %v2662_v58  ;;  %v732_v54 = vmul.f32 %v11485_v18, %v12468_v32  ;;  %v463_v6 = vrot.slane %v247_v62, 1  ;;  %v1205_v12 = vmul.f32 %v11490_v20, %v12540_v52 }
 0x118   :  { %v1349_v13 = vmul.f32 %v11492_v21, %v12569_v25  ;;  %v1833_v1 = vmul.f32 %v11494_v22, %v12569_v25  ;;  %v2236_v26 = vadd.f32 %v2047_v34, %v1752_v63  ;;  %v3147_v37 = vsel %vm889_vm3, %v3145_v39, %v3146_v53 }
 0x119   :  { %v948_v32 = vrot.slane %v732_v54, 2  ;;  %v2449_v41 = vmul.f32 %v11504_v27, %v12669_v11  ;;  %v464_v24 = vsel %vm404_vm2, %v461_v5, %v463_v6  ;;  %v2933_v29 = vmul.f32 %v11533_v50, %v12669_v11 }
 0x11a   :  { %v1564_v0 = vrot.slane %v1349_v13, 1  ;;  %v2048_v9 = vrot.slane %v1833_v1, 2  ;;  %v2368_v51 = vadd.f32 %v2304_v33, %v2236_v26  ;;  %v652_v7 = vadd.f32 %v464_v24, %v167_v35 }
 0x11b   :  { %v949_v43 = vsel %vm889_vm3, %v946_v36, %v948_v32  ;;  %v2664_v30 = vrot.slane %v2449_v41, 1  ;;  %v2305_v19 = vmul.f32 %v11545_v56, %v12641_v60  ;;  %v4593_v5 = vmax.f32 %v12535_v57, %v12636_v45 }
 0x11c   :  { %v1565_v14 = vsel %vm404_vm2, %v1562_v4, %v1564_v0  ;;  %v2049_v38 = vsel %vm889_vm3, %v2046_v47, %v2048_v9  ;;  %v2852_v61 = vadd.f32 %v2663_v42, %v2368_v51  ;;  %v1137_v28 = vadd.f32 %v949_v43, %v652_v7  ;;  %v12736_v51 = vld [vmem:[%s17810_s0 + $0x150] sm:$0xff]  ;;  %v12741_v7 = vld [vmem:[%s17810_s0 + $0x158] sm:$0xff] }
 0x11d   :  { %v3148_v49 = vrot.slane %v2933_v29, 2  ;;  %v4594_v31 = vmax.f32 %v12540_v52, %v12641_v60  ;;  %v2665_v23 = vsel %vm404_vm2, %v2662_v58, %v2664_v30  ;;  %v4642_v36 = vmax.f32 %v12569_v25, %v12669_v11 }
 0x11e   :  { %v4806_v4 = vrot.slane %v4593_v5, 1  ;;  %v168_v47 = vmul.f32 %v11481_v16, %v12535_v57  ;;  %v3336_v46 = vadd.f32 %v3147_v37, %v2852_v61  ;;  %v1269_v44 = vadd.f32 %v1205_v12, %v1137_v28 }
 0x11f   :  { %v4807_v40 = vrot.slane %v4594_v31, 1  ;;  %v248_v33 = vmul.f32 %v11483_v17, %v12535_v57  ;;  %v4809_v59 = vrot.slane %v4642_v36, 1  ;;  %v12703_v55 = vmul.f32 %v11483_v17, %v12540_v52 }
 0x120   :  { %v733_v15 = vmul.f32 %v11485_v18, %v12535_v57  ;;  %v12709_v48 = vmul.f32 %v11485_v18, %v12540_v52  ;;  %10950 = vmatprep.mubr.msk.f32.mxu0 %vm3379_vm1, %v3336_v46  ;;  %v1753_v58 = vadd.f32 %v1565_v14, %v1269_v44  ;;  %v1206_v62 = vmul.f32 %v11490_v20, %v12636_v45 }
 0x121   :  { %v4808_v34 = vsel %vm404_vm2, %v4806_v4, %v4807_v40  ;;  %v465_v39 = vrot.slane %v248_v33, 1  ;;  %v4810_v63 = vsel %vm404_vm2, %v4807_v40, %v4809_v59  ;;  %v466_v35 = vrot.slane %v12703_v55, 1 }
 0x122   :  { %v4983_v42 = vmax.f32 %v4593_v5, %v4808_v34  ;;  %v950_v54 = vrot.slane %v733_v15, 2  ;;  %v2237_v57 = vadd.f32 %v2049_v38, %v1753_v58  ;;  %v4984_v6 = vmax.f32 %v4594_v31, %v4810_v63  ;;  %v12770_v58 = vld [vmem:[%s17810_s0 + $0x160] sm:$0x3] }
 0x123   :  { %v951_v12 = vrot.slane %v12709_v48, 2  ;;  %v1350_v13 = vmul.f32 %v11492_v21, %v12636_v45  ;;  %v467_v1 = vsel %vm404_vm2, %v465_v39, %v466_v35  ;;  %v1351_v26 = vmul.f32 %v11492_v21, %v12641_v60 }
 0x124   :  { %5582 = vst.msk [vmem:[#allocation3 + $0x120] sm:$0xfe] %vm5559_vm4, %v4983_v42  ;;  %v1834_v37 = vmul.f32 %v11494_v22, %v12636_v45  ;;  %v1835_v32 = vmul.f32 %v11494_v22, %v12641_v60  ;;  %v2369_v41 = vadd.f32 %v2305_v19, %v2237_v57  ;;  %v653_v24 = vadd.f32 %v467_v1, %v168_v47 }
 0x125   :  { %5583 = vst.msk [vmem:[#allocation3 + $0x128] sm:$0xff] %vm3379_vm1, %v4984_v6  ;;  %v952_v0 = vsel %vm889_vm3, %v950_v54, %v951_v12  ;;  %v1566_v9 = vrot.slane %v1350_v13, 1  ;;  %v3149_v29 = vsel %vm889_vm3, %v3146_v53, %v3148_v49  ;;  %v1567_v43 = vrot.slane %v1351_v26, 1 }
 0x126   :  { %v2050_v30 = vrot.slane %v1834_v37, 2  ;;  %v2051_v14 = vrot.slane %v1835_v32, 2  ;;  %v2853_v38 = vadd.f32 %v2665_v23, %v2369_v41  ;;  %v1138_v19 = vadd.f32 %v952_v0, %v653_v24 }
 0x127   :  { %v2450_v10 = vmul.f32 %v11504_v27, %v12736_v51  ;;  %v2451_v53 = vmul.f32 %v11504_v27, %v12741_v7  ;;  %v1568_v5 = vsel %vm404_vm2, %v1566_v9, %v1567_v43  ;;  %v2306_v61 = vmul.f32 %v11545_v56, %v12736_v51 }
 0x128   :  { %v2934_v28 = vmul.f32 %v11533_v50, %v12736_v51  ;;  %v12754_v49 = vmul.f32 %v11533_v50, %v12741_v7  ;;  %v3337_v31 = vadd.f32 %v3149_v29, %v2853_v38  ;;  %v1270_v23 = vadd.f32 %v1206_v62, %v1138_v19 }
 0x129   :  { %v2666_v36 = vrot.slane %v2450_v10, 1  ;;  %v2667_v4 = vrot.slane %v2451_v53, 1  ;;  %v2052_v47 = vsel %vm889_vm3, %v2050_v30, %v2051_v14  ;;  %v250_v40 = vmul.f32 %v11483_v17, %v12569_v25 }
 0x12a   :  { %v3150_v46 = vrot.slane %v2934_v28, 2  ;;  %v3151_v44 = vrot.slane %v12754_v49, 2  ;;  %10951 = vmatmul.mubr.msk.f32.gmra.mxu0 %vm3379_vm1, %v3337_v31  ;;  %v1754_v59 = vadd.f32 %v1568_v5, %v1270_v23  ;;  %v169_v15 = vmul.f32 %v11481_v16, %v12540_v52 }
 0x12b   :  { %v5646_v33 = vld [vmem:[#allocation3 + $0x122] sm:$0x1]  ;;  %v2668_v55 = vsel %vm404_vm2, %v2666_v36, %v2667_v4  ;;  %v735_v48 = vmul.f32 %v11485_v18, %v12569_v25  ;;  %v468_v34 = vrot.slane %v250_v40, 1  ;;  %v1207_v39 = vmul.f32 %v11490_v20, %v12641_v60 }
 0x12c   :  { %5684 = vst.msk [vmem:[#allocation3 + $0x120] sm:$0x1] %vm5253_vm5, %v5646_v33  ;;  %v1352_v62 = vmul.f32 %v11492_v21, %v12669_v11  ;;  %v1836_v52 = vmul.f32 %v11494_v22, %v12669_v11  ;;  %v2238_v63 = vadd.f32 %v2052_v47, %v1754_v59  ;;  %v3152_v25 = vsel %vm889_vm3, %v3150_v46, %v3151_v44 }
 0x12d   :  { %v953_v42 = vrot.slane %v735_v48, 2  ;;  %v2452_v54 = vmul.f32 %v11504_v27, %v12770_v58  ;;  %v469_v57 = vsel %vm404_vm2, %v466_v35, %v468_v34  ;;  %v2936_v1 = vmul.f32 %v11533_v50, %v12770_v58 }
 0x12e   :  { %v1569_v6 = vrot.slane %v1352_v62, 1  ;;  %v2053_v13 = vrot.slane %v1836_v52, 2  ;;  %v2370_v26 = vadd.f32 %v2306_v61, %v2238_v63  ;;  %v654_v37 = vadd.f32 %v469_v57, %v169_v15 }
 0x12f   :  { %v954_v32 = vsel %vm889_vm3, %v951_v12, %v953_v42  ;;  %v2669_v41 = vrot.slane %v2452_v54, 1  ;;  %v2307_v9 = vmul.f32 %v11545_v56, %v12741_v7  ;;  %v4595_v35 = vmax.f32 %v12636_v45, %v12736_v51 }
 0x130   :  { %v1570_v24 = vsel %vm404_vm2, %v1567_v43, %v1569_v6  ;;  %v2054_v0 = vsel %vm889_vm3, %v2051_v14, %v2053_v13  ;;  %v2854_v29 = vadd.f32 %v2668_v55, %v2370_v26  ;;  %v1139_v30 = vadd.f32 %v954_v32, %v654_v37  ;;  %v12839_v26 = vld [vmem:[%s17810_s0 + $0x168] sm:$0xff]  ;;  %v12844_v37 = vld [vmem:[%s17810_s0 + $0x170] sm:$0xff] }
 0x131   :  { %v3153_v38 = vrot.slane %v2936_v1, 2  ;;  %v4596_v19 = vmax.f32 %v12641_v60, %v12741_v7  ;;  %v2670_v10 = vsel %vm404_vm2, %v2667_v4, %v2669_v41  ;;  %v4643_v12 = vmax.f32 %v12669_v11, %v12770_v58 }
 0x132   :  { %v4811_v43 = vrot.slane %v4595_v35, 1  ;;  %v170_v14 = vmul.f32 %v11481_v16, %v12636_v45  ;;  %v3338_v53 = vadd.f32 %v3152_v25, %v2854_v29  ;;  %v1271_v5 = vadd.f32 %v1207_v39, %v1139_v30 }
 0x133   :  { %v4812_v61 = vrot.slane %v4596_v19, 1  ;;  %v251_v28 = vmul.f32 %v11483_v17, %v12636_v45  ;;  %v4814_v31 = vrot.slane %v4643_v12, 1  ;;  %v12804_v23 = vmul.f32 %v11483_v17, %v12641_v60 }
 0x134   :  { %v736_v36 = vmul.f32 %v11485_v18, %v12636_v45  ;;  %v12810_v4 = vmul.f32 %v11485_v18, %v12641_v60  ;;  %10953 = vmatprep.mubr.msk.f32.mxu0 %vm3379_vm1, %v3338_v53  ;;  %v1755_v47 = vadd.f32 %v1570_v24, %v1271_v5  ;;  %v1208_v33 = vmul.f32 %v11490_v20, %v12736_v51 }
 0x135   :  { %v4813_v46 = vsel %vm404_vm2, %v4811_v43, %v4812_v61  ;;  %v470_v40 = vrot.slane %v251_v28, 1  ;;  %v4815_v59 = vsel %vm404_vm2, %v4812_v61, %v4814_v31  ;;  %v471_v15 = vrot.slane %v12804_v23, 1 }
 0x136   :  { %v4985_v55 = vmax.f32 %v4595_v35, %v4813_v46  ;;  %v955_v48 = vrot.slane %v736_v36, 2  ;;  %v2239_v45 = vadd.f32 %v2054_v0, %v1755_v47  ;;  %v4986_v34 = vmax.f32 %v4596_v19, %v4815_v59 }
 0x137   :  { %v956_v39 = vrot.slane %v12810_v4, 2  ;;  %v1353_v62 = vmul.f32 %v11492_v21, %v12736_v51  ;;  %v472_v52 = vsel %vm404_vm2, %v470_v40, %v471_v15  ;;  %v1354_v63 = vmul.f32 %v11492_v21, %v12741_v7  ;;  %v12872_v4 = vld [vmem:[%s17810_s0 + $0x178] sm:$0x3] }
 0x138   :  { %5584 = vst.msk [vmem:[#allocation3 + $0x138] sm:$0xfe] %vm5559_vm4, %v4985_v55  ;;  %5630 = vst.msk [vmem:[#allocation3 + $0x198] sm:$0xfe] %vm5559_vm4, %v4985_v55  ;;  %v1837_v25 = vmul.f32 %v11494_v22, %v12736_v51  ;;  %v1838_v42 = vmul.f32 %v11494_v22, %v12741_v7  ;;  %v2371_v54 = vadd.f32 %v2307_v9, %v2239_v45 }
 0x139   :  { %5585 = vst.msk [vmem:[#allocation3 + $0x140] sm:$0xff] %vm3379_vm1, %v4986_v34  ;;  %5631 = vst.msk [vmem:[#allocation3 + $0x1a0] sm:$0xff] %vm3379_vm1, %v4986_v34  ;;  %v655_v57 = vadd.f32 %v472_v52, %v170_v14  ;;  %v957_v6 = vsel %vm889_vm3, %v955_v48, %v956_v39  ;;  %v1571_v13 = vrot.slane %v1353_v62, 1  ;;  %v3154_v1 = vsel %vm889_vm3, %v3151_v44, %v3153_v38 }
 0x13a   :  { %v1572_v32 = vrot.slane %v1354_v63, 1  ;;  %v2055_v41 = vrot.slane %v1837_v25, 2  ;;  %v2056_v24 = vrot.slane %v1838_v42, 2  ;;  %v2855_v0 = vadd.f32 %v2670_v10, %v2371_v54 }
 0x13b   :  { %v1140_v9 = vadd.f32 %v957_v6, %v655_v57  ;;  %v2453_v49 = vmul.f32 %v11504_v27, %v12839_v26  ;;  %v2454_v44 = vmul.f32 %v11504_v27, %v12844_v37  ;;  %v2308_v29 = vmul.f32 %v11545_v56, %v12839_v26 }
 0x13c   :  { %v1573_v35 = vsel %vm404_vm2, %v1571_v13, %v1572_v32  ;;  %v2937_v30 = vmul.f32 %v11533_v50, %v12839_v26  ;;  %v12857_v38 = vmul.f32 %v11533_v50, %v12844_v37  ;;  %v3339_v19 = vadd.f32 %v3154_v1, %v2855_v0 }
 0x13d   :  { %v1272_v10 = vadd.f32 %v1208_v33, %v1140_v9  ;;  %v2671_v12 = vrot.slane %v2453_v49, 1  ;;  %v2672_v43 = vrot.slane %v2454_v44, 1  ;;  %v2057_v14 = vsel %vm889_vm3, %v2055_v41, %v2056_v24 }
 0x13e   :  { %v3155_v53 = vrot.slane %v2937_v30, 2  ;;  %v3156_v5 = vrot.slane %v12857_v38, 2  ;;  %v253_v61 = vmul.f32 %v11483_v17, %v12669_v11  ;;  %10954 = vmatmul.mubr.msk.f32.gmra.mxu0 %vm3379_vm1, %v3339_v19  ;;  %v171_v23 = vmul.f32 %v11481_v16, %v12641_v60 }
 0x13f   :  { %v1756_v28 = vadd.f32 %v1573_v35, %v1272_v10  ;;  %v2673_v31 = vsel %vm404_vm2, %v2671_v12, %v2672_v43  ;;  %v738_v36 = vmul.f32 %v11485_v18, %v12669_v11  ;;  %v1209_v46 = vmul.f32 %v11490_v20, %v12741_v7 }
 0x140   :  { %v473_v47 = vrot.slane %v253_v61, 1  ;;  %v1355_v40 = vmul.f32 %v11492_v21, %v12770_v58  ;;  %v1839_v33 = vmul.f32 %v11494_v22, %v12770_v58  ;;  %v3157_v60 = vsel %vm889_vm3, %v3155_v53, %v3156_v5 }
 0x141   :  { %v2240_v59 = vadd.f32 %v2057_v14, %v1756_v28  ;;  %v958_v11 = vrot.slane %v738_v36, 2  ;;  %v2455_v55 = vmul.f32 %v11504_v27, %v12872_v4  ;;  %v2939_v62 = vmul.f32 %v11533_v50, %v12872_v4 }
 0x142   :  { %v474_v48 = vsel %vm404_vm2, %v471_v15, %v473_v47  ;;  %v1574_v45 = vrot.slane %v1355_v40, 1  ;;  %v2058_v34 = vrot.slane %v1839_v33, 2  ;;  %v2309_v6 = vmul.f32 %v11545_v56, %v12844_v37 }
 0x143   :  { %v2372_v52 = vadd.f32 %v2308_v29, %v2240_v59  ;;  %v656_v63 = vadd.f32 %v474_v48, %v171_v23  ;;  %v959_v25 = vsel %vm889_vm3, %v956_v39, %v958_v11  ;;  %v2674_v42 = vrot.slane %v2455_v55, 1 }
 0x144   :  { %v1575_v54 = vsel %vm404_vm2, %v1572_v32, %v1574_v45  ;;  %v2059_v57 = vsel %vm889_vm3, %v2056_v24, %v2058_v34  ;;  %v4597_v15 = vmax.f32 %v12736_v51, %v12839_v26  ;;  %v3158_v41 = vrot.slane %v2939_v62, 2 }
 0x145   :  { %v2856_v13 = vadd.f32 %v2673_v31, %v2372_v52  ;;  %v1141_v1 = vadd.f32 %v959_v25, %v656_v63  ;;  %v4598_v0 = vmax.f32 %v12741_v7, %v12844_v37  ;;  %v2675_v9 = vsel %vm404_vm2, %v2672_v43, %v2674_v42  ;;  %v12945_v52 = vld [vmem:[%s17810_s0 + $0x180] sm:$0xff]  ;;  %v12950_v63 = vld [vmem:[%s17810_s0 + $0x188] sm:$0xff] }
 0x146   :  { %v4644_v39 = vmax.f32 %v12770_v58, %v12872_v4  ;;  %v4816_v32 = vrot.slane %v4597_v15, 1  ;;  %v172_v24 = vmul.f32 %v11481_v16, %v12736_v51  ;;  %v254_v29 = vmul.f32 %v11483_v17, %v12736_v51 }
 0x147   :  { %v3340_v49 = vadd.f32 %v3157_v60, %v2856_v13  ;;  %v1273_v44 = vadd.f32 %v1209_v46, %v1141_v1  ;;  %v4817_v35 = vrot.slane %v4598_v0, 1  ;;  %v12906_v19 = vmul.f32 %v11483_v17, %v12741_v7 }
 0x148   :  { %v4819_v30 = vrot.slane %v4644_v39, 1  ;;  %v739_v10 = vmul.f32 %v11485_v18, %v12736_v51  ;;  %v12912_v12 = vmul.f32 %v11485_v18, %v12741_v7  ;;  %v475_v53 = vrot.slane %v254_v29, 1 }
 0x149   :  { %10956 = vmatprep.mubr.msk.f32.mxu0 %vm3379_vm1, %v3340_v49  ;;  %v1757_v43 = vadd.f32 %v1575_v54, %v1273_v44  ;;  %v4818_v14 = vsel %vm404_vm2, %v4816_v32, %v4817_v35  ;;  %v1210_v61 = vmul.f32 %v11490_v20, %v12839_v26  ;;  %v476_v23 = vrot.slane %v12906_v19, 1 }
 0x14a   :  { %v4820_v28 = vsel %vm404_vm2, %v4817_v35, %v4819_v30  ;;  %v4987_v31 = vmax.f32 %v4597_v15, %v4818_v14  ;;  %v960_v36 = vrot.slane %v739_v10, 2  ;;  %v961_v46 = vrot.slane %v12912_v12, 2 }
 0x14b   :  { %v2241_v51 = vadd.f32 %v2059_v57, %v1757_v43  ;;  %v4988_v47 = vmax.f32 %v4598_v0, %v4820_v28  ;;  %v1356_v40 = vmul.f32 %v11492_v21, %v12839_v26  ;;  %v477_v33 = vsel %vm404_vm2, %v475_v53, %v476_v23 }
 0x14c   :  { %5586 = vst.msk [vmem:[#allocation3 + $0x150] sm:$0xfe] %vm5559_vm4, %v4987_v31  ;;  %5625 = vst.msk [vmem:[#allocation3 + $0x180] sm:$0xfe] %vm5559_vm4, %v4987_v31  ;;  %v1357_v59 = vmul.f32 %v11492_v21, %v12844_v37  ;;  %v1840_v60 = vmul.f32 %v11494_v22, %v12839_v26  ;;  %v12934_v11 = vmul.f32 %v11494_v22, %v12844_v37 }
 0x14d   :  { %v2373_v55 = vadd.f32 %v2309_v6, %v2241_v51  ;;  %5587 = vst.msk [vmem:[#allocation3 + $0x158] sm:$0xff] %vm3379_vm1, %v4988_v47  ;;  %5626 = vst.msk [vmem:[#allocation3 + $0x188] sm:$0xff] %vm3379_vm1, %v4988_v47  ;;  %v657_v48 = vadd.f32 %v477_v33, %v172_v24  ;;  %v962_v45 = vsel %vm889_vm3, %v960_v36, %v961_v46  ;;  %v1576_v34 = vrot.slane %v1356_v40, 1  ;;  %v12988_v36 = vld [vmem:[%s17810_s0 + $0x190] sm:$0x3] }
 0x14e   :  { %v3159_v62 = vsel %vm889_vm3, %v3156_v5, %v3158_v41  ;;  %v1577_v25 = vrot.slane %v1357_v59, 1  ;;  %v2060_v42 = vrot.slane %v1840_v60, 2  ;;  %v2061_v54 = vrot.slane %v12934_v11, 2 }
 0x14f   :  { %v2857_v57 = vadd.f32 %v2675_v9, %v2373_v55  ;;  %v1142_v6 = vadd.f32 %v962_v45, %v657_v48  ;;  %v2456_v38 = vmul.f32 %v11504_v27, %v12945_v52  ;;  %v2457_v5 = vmul.f32 %v11504_v27, %v12950_v63 }
 0x150   :  { %v1578_v15 = vsel %vm404_vm2, %v1576_v34, %v1577_v25  ;;  %v2310_v13 = vmul.f32 %v11545_v56, %v12945_v52  ;;  %v2940_v1 = vmul.f32 %v11533_v50, %v12945_v52  ;;  %v12964_v41 = vmul.f32 %v11533_v50, %v12950_v63 }
 0x151   :  { %v3341_v0 = vadd.f32 %v3159_v62, %v2857_v57  ;;  %v1274_v9 = vadd.f32 %v1210_v61, %v1142_v6  ;;  %v2676_v39 = vrot.slane %v2456_v38, 1  ;;  %v2677_v32 = vrot.slane %v2457_v5, 1 }
 0x152   :  { %v2062_v24 = vsel %vm889_vm3, %v2060_v42, %v2061_v54  ;;  %v3160_v49 = vrot.slane %v2940_v1, 2  ;;  %v3161_v44 = vrot.slane %v12964_v41, 2  ;;  %v4599_v35 = vmax.f32 %v12839_v26, %v12945_v52 }
 0x153   :  { %10957 = vmatmul.mubr.msk.f32.gmra.mxu0 %vm3379_vm1, %v3341_v0  ;;  %v5648_v29 = vld [vmem:[#allocation3 + $0x152] sm:$0x1]  ;;  %v5650_v30 = vld [vmem:[#allocation3 + $0x182] sm:$0x1]  ;;  %v1758_v10 = vadd.f32 %v1578_v15, %v1274_v9  ;;  %v173_v12 = vmul.f32 %v11481_v16, %v12741_v7  ;;  %v256_v43 = vmul.f32 %v11483_v17, %v12770_v58  ;;  %v741_v14 = vmul.f32 %v11485_v18, %v12770_v58 }
 0x154   :  { %5686 = vst.msk [vmem:[#allocation3 + $0x150] sm:$0x1] %vm5253_vm5, %v5648_v29  ;;  %5688 = vst.msk [vmem:[#allocation3 + $0x180] sm:$0x1] %vm5253_vm5, %v5650_v30  ;;  %v2678_v53 = vsel %vm404_vm2, %v2676_v39, %v2677_v32  ;;  %v3162_v61 = vsel %vm889_vm3, %v3160_v49, %v3161_v44  ;;  %v4821_v28 = vrot.slane %v4599_v35, 1  ;;  %v1358_v7 = vmul.f32 %v11492_v21, %v12872_v4 }
 0x155   :  { %v2242_v31 = vadd.f32 %v2062_v24, %v1758_v10  ;;  %v478_v58 = vrot.slane %v256_v43, 1  ;;  %v963_v51 = vrot.slane %v741_v14, 2  ;;  %v1842_v47 = vmul.f32 %v11494_v22, %v12872_v4 }
 0x156   :  { %v1211_v40 = vmul.f32 %v11490_v20, %v12844_v37  ;;  %v1579_v33 = vrot.slane %v1358_v7, 1  ;;  %v2458_v59 = vmul.f32 %v11504_v27, %v12988_v36  ;;  %v2942_v60 = vmul.f32 %v11533_v50, %v12988_v36 }
 0x157   :  { %v2374_v11 = vadd.f32 %v2310_v13, %v2242_v31  ;;  %v479_v55 = vsel %vm404_vm2, %v476_v23, %v478_v58  ;;  %v964_v48 = vsel %vm889_vm3, %v961_v46, %v963_v51  ;;  %v2063_v45 = vrot.slane %v1842_v47, 2  ;;  %v81_v58 = vld [vmem:[%s17810_s0 + $0x1a0] sm:$0xff] }
 0x158   :  { %v658_v34 = vadd.f32 %v479_v55, %v173_v12  ;;  %v1580_v62 = vsel %vm404_vm2, %v1577_v25, %v1579_v33  ;;  %v2311_v42 = vmul.f32 %v11545_v56, %v12950_v63  ;;  %v2679_v57 = vrot.slane %v2458_v59, 1 }
 0x159   :  { %v2858_v6 = vadd.f32 %v2678_v53, %v2374_v11  ;;  %v3163_v38 = vrot.slane %v2942_v60, 2  ;;  %v4600_v5 = vmax.f32 %v12844_v37, %v12950_v63  ;;  %v4645_v19 = vmax.f32 %v12872_v4, %v12988_v36 }
 0x15a   :  { %v1143_v15 = vadd.f32 %v964_v48, %v658_v34  ;;  %v2064_v23 = vsel %vm889_vm3, %v2061_v54, %v2063_v45  ;;  %v2680_v46 = vsel %vm404_vm2, %v2677_v32, %v2679_v57  ;;  %v174_v25 = vmul.f32 %v11481_v16, %v12839_v26 }
 0x15b   :  { %v3342_v13 = vadd.f32 %v3162_v61, %v2858_v6  ;;  %v4822_v1 = vrot.slane %v4600_v5, 1  ;;  %v4824_v0 = vrot.slane %v4645_v19, 1  ;;  %v257_v9 = vmul.f32 %v11483_v17, %v12839_v26 }
 0x15c   :  { %v1275_v39 = vadd.f32 %v1211_v40, %v1143_v15  ;;  %v13017_v24 = vmul.f32 %v11483_v17, %v12844_v37  ;;  %v742_v49 = vmul.f32 %v11485_v18, %v12839_v26  ;;  %v13023_v54 = vmul.f32 %v11485_v18, %v12844_v37 }
 0x15d   :  { %10959 = vmatprep.mubr.msk.f32.mxu0 %vm3379_vm1, %v3342_v13  ;;  %v4823_v32 = vsel %vm404_vm2, %v4821_v28, %v4822_v1  ;;  %v4825_v29 = vsel %vm404_vm2, %v4822_v1, %v4824_v0  ;;  %v480_v30 = vrot.slane %v257_v9, 1  ;;  %v1212_v10 = vmul.f32 %v11490_v20, %v12945_v52  ;;  %v82_v0 = vld [vmem:[%s17810_s0 + $0x1a8] sm:$0x3] }
 0x15e   :  { %v1759_v12 = vadd.f32 %v1580_v62, %v1275_v39  ;;  %v4989_v43 = vmax.f32 %v4599_v35, %v4823_v32  ;;  %v4990_v14 = vmax.f32 %v4600_v5, %v4825_v29  ;;  %v481_v53 = vrot.slane %v13017_v24, 1  ;;  %v80_v35 = vld [vmem:[%s17810_s0 + $0x198] sm:$0xff] }
 0x15f   :  { %v965_v26 = vrot.slane %v742_v49, 2  ;;  %v966_v61 = vrot.slane %v13023_v54, 2  ;;  %v1359_v7 = vmul.f32 %v11492_v21, %v12945_v52  ;;  %v1360_v28 = vmul.f32 %v11492_v21, %v12950_v63 }
 0x160   :  { %v2243_v31 = vadd.f32 %v2064_v23, %v1759_v12  ;;  %5588 = vst.msk [vmem:[#allocation3 + $0x168] sm:$0xfe] %vm5559_vm4, %v4989_v43  ;;  %v482_v51 = vsel %vm404_vm2, %v480_v30, %v481_v53  ;;  %v1843_v47 = vmul.f32 %v11494_v22, %v12945_v52  ;;  %v1844_v40 = vmul.f32 %v11494_v22, %v12950_v63 }
 0x161   :  { %5589 = vst.msk [vmem:[#allocation3 + $0x170] sm:$0xff] %vm3379_vm1, %v4990_v14  ;;  %v659_v33 = vadd.f32 %v482_v51, %v174_v25  ;;  %v967_v59 = vsel %vm889_vm3, %v965_v26, %v966_v61  ;;  %v1581_v60 = vrot.slane %v1359_v7, 1  ;;  %v1582_v11 = vrot.slane %v1360_v28, 1 }
 0x162   :  { %v2375_v55 = vadd.f32 %v2311_v42, %v2243_v31  ;;  %v3164_v48 = vsel %vm889_vm3, %v3161_v44, %v3163_v38  ;;  %v2065_v45 = vrot.slane %v1843_v47, 2  ;;  %v2066_v34 = vrot.slane %v1844_v40, 2  ;;  %v13089_v47 = vld [vmem:[%s17810_s0 + $0x1b8] sm:$0xff] }
 0x163   :  { %v1144_v62 = vadd.f32 %v967_v59, %v659_v33  ;;  %v2312_v57 = vmul.f32 %v11545_v56, %v80_v35  ;;  %v2459_v52 = vmul.f32 %v11504_v27, %v80_v35  ;;  %v2460_v6 = vmul.f32 %v11504_v27, %v81_v58 }
 0x164   :  { %v2859_v5 = vadd.f32 %v2680_v46, %v2375_v55  ;;  %v1583_v19 = vsel %vm404_vm2, %v1581_v60, %v1582_v11  ;;  %v2943_v15 = vmul.f32 %v11533_v50, %v80_v35  ;;  %v2944_v42 = vmul.f32 %v11533_v50, %v81_v58 }
 0x165   :  { %v1276_v23 = vadd.f32 %v1212_v10, %v1144_v62  ;;  %v2067_v41 = vsel %vm889_vm3, %v2065_v45, %v2066_v34  ;;  %v2681_v44 = vrot.slane %v2459_v52, 1  ;;  %v2682_v38 = vrot.slane %v2460_v6, 1  ;;  %v13110_v6 = vld [vmem:[%s17810_s0 + $0x1c8] sm:$0xff] }
 0x166   :  { %v3343_v25 = vadd.f32 %v3164_v48, %v2859_v5  ;;  %v3165_v13 = vrot.slane %v2943_v15, 2  ;;  %v3166_v1 = vrot.slane %v2944_v42, 2  ;;  %v259_v46 = vmul.f32 %v11483_v17, %v12872_v4 }
 0x167   :  { %v5649_v9 = vld [vmem:[#allocation3 + $0x16a] sm:$0x1]  ;;  %v1760_v39 = vadd.f32 %v1583_v19, %v1276_v23  ;;  %v2683_v24 = vsel %vm404_vm2, %v2681_v44, %v2682_v38  ;;  %v175_v49 = vmul.f32 %v11481_v16, %v12844_v37  ;;  %v744_v54 = vmul.f32 %v11485_v18, %v12872_v4  ;;  %v13115_v19 = vld [vmem:[%s17810_s0 + $0x1d0] sm:$0xff] }
 0x168   :  { %10960 = vmatmul.mubr.msk.f32.gmra.mxu0 %vm3379_vm1, %v3343_v25  ;;  %5687 = vst.msk [vmem:[#allocation3 + $0x168] sm:$0x1] %vm5253_vm5, %v5649_v9  ;;  %v483_v32 = vrot.slane %v259_v46, 1  ;;  %v1213_v29 = vmul.f32 %v11490_v20, %v12950_v63  ;;  %v1361_v30 = vmul.f32 %v11492_v21, %v12988_v36  ;;  %v1845_v10 = vmul.f32 %v11494_v22, %v12988_v36  ;;  %v83_v63 = vld [vmem:[%s17810_s0 + $0x1b0] sm:$0xff] }
 0x169   :  { %v2244_v12 = vadd.f32 %v2067_v41, %v1760_v39  ;;  %v3167_v37 = vsel %vm889_vm3, %v3165_v13, %v3166_v1  ;;  %v968_v43 = vrot.slane %v744_v54, 2  ;;  %v2461_v4 = vmul.f32 %v11504_v27, %v82_v0 }
 0x16a   :  { %v484_v14 = vsel %vm404_vm2, %v481_v53, %v483_v32  ;;  %v1584_v26 = vrot.slane %v1361_v30, 1  ;;  %v2068_v7 = vrot.slane %v1845_v10, 2  ;;  %v2945_v28 = vmul.f32 %v11533_v50, %v82_v0 }
 0x16b   :  { %v2376_v31 = vadd.f32 %v2312_v57, %v2244_v12  ;;  %v660_v35 = vadd.f32 %v484_v14, %v175_v49  ;;  %v969_v36 = vsel %vm889_vm3, %v966_v61, %v968_v43  ;;  %v2684_v51 = vrot.slane %v2461_v4, 1  ;;  %v13142_v49 = vld [vmem:[%s17810_s0 + $0x1e8] sm:$0xff] }
 0x16c   :  { %v1585_v53 = vsel %vm404_vm2, %v1582_v11, %v1584_v26  ;;  %v2069_v40 = vsel %vm889_vm3, %v2066_v34, %v2068_v7  ;;  %v2313_v33 = vmul.f32 %v11545_v56, %v81_v58  ;;  %v3168_v59 = vrot.slane %v2945_v28, 2  ;;  %v85_v7 = vld [vmem:[%s17810_s0 + $0x1c0] sm:$0x3] }
 0x16d   :  { %v2860_v60 = vadd.f32 %v2683_v24, %v2376_v31  ;;  %v1145_v55 = vadd.f32 %v969_v36, %v660_v35  ;;  %v176_v48 = vmul.f32 %v11481_v16, %v83_v63  ;;  %v260_v45 = vmul.f32 %v11483_v17, %v83_v63  ;;  %v13137_v24 = vld [vmem:[%s17810_s0 + $0x1e0] sm:$0xff] }
 0x16e   :  { %v2685_v61 = vsel %vm404_vm2, %v2682_v38, %v2684_v51  ;;  %v13099_v62 = vmul.f32 %v11483_v17, %v13089_v47  ;;  %v745_v57 = vmul.f32 %v11485_v18, %v83_v63  ;;  %v13104_v11 = vmul.f32 %v11485_v18, %v13089_v47 }
 0x16f   :  { %v3344_v58 = vadd.f32 %v3167_v37, %v2860_v60  ;;  %v1277_v34 = vadd.f32 %v1213_v29, %v1145_v55  ;;  %v3169_v52 = vsel %vm889_vm3, %v3166_v1, %v3168_v59  ;;  %v485_v5 = vrot.slane %v260_v45, 1 }
 0x170   :  { %v486_v15 = vrot.slane %v13099_v62, 1  ;;  %v970_v42 = vrot.slane %v745_v57, 2  ;;  %v971_v23 = vrot.slane %v13104_v11, 2  ;;  %v1362_v41 = vmul.f32 %v11492_v21, %v13110_v6 }
 0x171   :  { %10962 = vmatprep.mubr.msk.f32.mxu0 %vm3379_vm1, %v3344_v58  ;;  %v1761_v44 = vadd.f32 %v1585_v53, %v1277_v34  ;;  %v1363_v38 = vmul.f32 %v11492_v21, %v13115_v19  ;;  %v1846_v25 = vmul.f32 %v11494_v22, %v13110_v6  ;;  %v13128_v13 = vmul.f32 %v11494_v22, %v13115_v19  ;;  %v13179_v58 = vld [vmem:[%s17810_s0 + $0x1f0] sm:$0x3] }
 0x172   :  { %v487_v1 = vsel %vm404_vm2, %v485_v5, %v486_v15  ;;  %v972_v0 = vsel %vm889_vm3, %v970_v42, %v971_v23  ;;  %v1214_v46 = vmul.f32 %v11490_v20, %v13110_v6  ;;  %v1586_v9 = vrot.slane %v1362_v41, 1 }
 0x173   :  { %v2245_v39 = vadd.f32 %v2069_v40, %v1761_v44  ;;  %v661_v54 = vadd.f32 %v487_v1, %v176_v48  ;;  %v1587_v32 = vrot.slane %v1363_v38, 1  ;;  %v2070_v29 = vrot.slane %v1846_v25, 2 }
 0x174   :  { %v2071_v30 = vrot.slane %v13128_v13, 2  ;;  %v2462_v10 = vmul.f32 %v11504_v27, %v13137_v24  ;;  %v2463_v12 = vmul.f32 %v11504_v27, %v13142_v49  ;;  %v2946_v37 = vmul.f32 %v11533_v50, %v13137_v24 }
 0x175   :  { %v2377_v43 = vadd.f32 %v2313_v33, %v2245_v39  ;;  %v1146_v4 = vadd.f32 %v972_v0, %v661_v54  ;;  %v2314_v14 = vmul.f32 %v11545_v56, %v13137_v24  ;;  %v13155_v26 = vmul.f32 %v11533_v50, %v13142_v49 }
 0x176   :  { %v1588_v28 = vsel %vm404_vm2, %v1586_v9, %v1587_v32  ;;  %v2686_v63 = vrot.slane %v2462_v10, 1  ;;  %v2687_v31 = vrot.slane %v2463_v12, 1  ;;  %v3170_v35 = vrot.slane %v2946_v37, 2 }
 0x177   :  { %v2861_v36 = vadd.f32 %v2685_v61, %v2377_v43  ;;  %v1278_v51 = vadd.f32 %v1214_v46, %v1146_v4  ;;  %v3171_v53 = vrot.slane %v13155_v26, 2  ;;  %v4601_v40 = vmax.f32 %v13110_v6, %v13137_v24  ;;  %v13172_v61 = vld [vmem:[%s17810_s0 + $0x1d8] sm:$0x3] }
 0x178   :  { %v2072_v33 = vsel %vm889_vm3, %v2070_v29, %v2071_v30  ;;  %v2688_v59 = vsel %vm404_vm2, %v2686_v63, %v2687_v31  ;;  %v262_v60 = vmul.f32 %v11483_v17, %v85_v7  ;;  %v747_v55 = vmul.f32 %v11485_v18, %v85_v7 }
 0x179   :  { %v3345_v48 = vadd.f32 %v3169_v52, %v2861_v36  ;;  %v1762_v45 = vadd.f32 %v1588_v28, %v1278_v51  ;;  %v3172_v62 = vsel %vm889_vm3, %v3170_v35, %v3171_v53  ;;  %v177_v57 = vmul.f32 %v11481_v16, %v13089_v47 }
 0x17a   :  { %v4826_v11 = vrot.slane %v4601_v40, 1  ;;  %v488_v34 = vrot.slane %v262_v60, 1  ;;  %v973_v5 = vrot.slane %v747_v55, 2  ;;  %v1364_v52 = vmul.f32 %v11492_v21, %v13172_v61 }
 0x17b   :  { %10963 = vmatmul.mubr.msk.f32.gmra.mxu0 %vm3379_vm1, %v3345_v48  ;;  %v2246_v42 = vadd.f32 %v2072_v33, %v1762_v45  ;;  %v1215_v41 = vmul.f32 %v11490_v20, %v13115_v19  ;;  %v1848_v47 = vmul.f32 %v11494_v22, %v13172_v61  ;;  %v2464_v44 = vmul.f32 %v11504_v27, %v13179_v58 }
 0x17c   :  { %v489_v38 = vsel %vm404_vm2, %v486_v15, %v488_v34  ;;  %v974_v25 = vsel %vm889_vm3, %v971_v23, %v973_v5  ;;  %v1589_v13 = vrot.slane %v1364_v52, 1  ;;  %v2948_v1 = vmul.f32 %v11533_v50, %v13179_v58 }
 0x17d   :  { %v2378_v0 = vadd.f32 %v2314_v14, %v2246_v42  ;;  %v662_v46 = vadd.f32 %v489_v38, %v177_v57  ;;  %v2073_v9 = vrot.slane %v1848_v47, 2  ;;  %v2689_v39 = vrot.slane %v2464_v44, 1  ;;  %v13240_v47 = vld [vmem:[%s17810_s0 + $0x1f8] sm:$0xff]  ;;  %v13245_v44 = vld [vmem:[%s17810_s0 + $0x200] sm:$0xff] }
 0x17e   :  { %v1590_v54 = vsel %vm404_vm2, %v1587_v32, %v1589_v13  ;;  %v2315_v29 = vmul.f32 %v11545_v56, %v13142_v49  ;;  %v4602_v10 = vmax.f32 %v13115_v19, %v13142_v49  ;;  %v4646_v15 = vmax.f32 %v13172_v61, %v13179_v58 }
 0x17f   :  { %v2862_v23 = vadd.f32 %v2688_v59, %v2378_v0  ;;  %v1147_v12 = vadd.f32 %v974_v25, %v662_v46  ;;  %v2074_v37 = vsel %vm889_vm3, %v2071_v30, %v2073_v9  ;;  %v3173_v43 = vrot.slane %v2948_v1, 2 }
 0x180   :  { %v2690_v4 = vsel %vm404_vm2, %v2687_v31, %v2689_v39  ;;  %v4827_v14 = vrot.slane %v4602_v10, 1  ;;  %v4829_v26 = vrot.slane %v4646_v15, 1  ;;  %v178_v32 = vmul.f32 %v11481_v16, %v13110_v6 }
 0x181   :  { %v3346_v7 = vadd.f32 %v3172_v62, %v2862_v23  ;;  %v1279_v28 = vadd.f32 %v1215_v41, %v1147_v12  ;;  %v263_v63 = vmul.f32 %v11483_v17, %v13110_v6  ;;  %v13209_v35 = vmul.f32 %v11483_v17, %v13115_v19 }
 0x182   :  { %v4828_v36 = vsel %vm404_vm2, %v4826_v11, %v4827_v14  ;;  %v4830_v30 = vsel %vm404_vm2, %v4827_v14, %v4829_v26  ;;  %v748_v31 = vmul.f32 %v11485_v18, %v13110_v6  ;;  %v13217_v51 = vmul.f32 %v11485_v18, %v13115_v19 }
 0x183   :  { %10965 = vmatprep.mubr.msk.f32.mxu0 %vm3379_vm1, %v3346_v7  ;;  %v1763_v33 = vadd.f32 %v1590_v54, %v1279_v28  ;;  %v4991_v59 = vmax.f32 %v4601_v40, %v4828_v36  ;;  %v4992_v60 = vmax.f32 %v4602_v10, %v4830_v30  ;;  %v490_v55 = vrot.slane %v263_v63, 1 }
 0x184   :  { %v3174_v48 = vsel %vm889_vm3, %v3171_v53, %v3173_v43  ;;  %v491_v45 = vrot.slane %v13209_v35, 1  ;;  %v975_v62 = vrot.slane %v748_v31, 2  ;;  %v976_v57 = vrot.slane %v13217_v51, 2 }
 0x185   :  { %v2247_v11 = vadd.f32 %v2074_v37, %v1763_v33  ;;  %5590 = vst.msk [vmem:[#allocation3 + $0x1e0] sm:$0xfe] %vm5559_vm4, %v4991_v59  ;;  %v1365_v6 = vmul.f32 %v11492_v21, %v13137_v24  ;;  %v1366_v40 = vmul.f32 %v11492_v21, %v13142_v49  ;;  %v1849_v34 = vmul.f32 %v11494_v22, %v13137_v24  ;;  %v13276_v33 = vld [vmem:[%s17810_s0 + $0x208] sm:$0x3] }
 0x186   :  { %5591 = vst.msk [vmem:[#allocation3 + $0x1e8] sm:$0xff] %vm3379_vm1, %v4992_v60  ;;  %v492_v53 = vsel %vm404_vm2, %v490_v55, %v491_v45  ;;  %v977_v5 = vsel %vm889_vm3, %v975_v62, %v976_v57  ;;  %v1216_v52 = vmul.f32 %v11490_v20, %v13137_v24  ;;  %v1850_v42 = vmul.f32 %v11494_v22, %v13142_v49 }
 0x187   :  { %v2379_v41 = vadd.f32 %v2315_v29, %v2247_v11  ;;  %v663_v38 = vadd.f32 %v492_v53, %v178_v32  ;;  %v1591_v25 = vrot.slane %v1365_v6, 1  ;;  %v1592_v13 = vrot.slane %v1366_v40, 1 }
 0x188   :  { %v2075_v1 = vrot.slane %v1849_v34, 2  ;;  %v2076_v0 = vrot.slane %v1850_v42, 2  ;;  %v2465_v46 = vmul.f32 %v11504_v27, %v13240_v47  ;;  %v2466_v9 = vmul.f32 %v11504_v27, %v13245_v44 }
 0x189   :  { %v2863_v39 = vadd.f32 %v2690_v4, %v2379_v41  ;;  %v1148_v54 = vadd.f32 %v977_v5, %v663_v38  ;;  %v2316_v29 = vmul.f32 %v11545_v56, %v13240_v47  ;;  %v2949_v10 = vmul.f32 %v11533_v50, %v13240_v47 }
 0x18a   :  { %v1593_v15 = vsel %vm404_vm2, %v1591_v25, %v1592_v13  ;;  %v2691_v23 = vrot.slane %v2465_v46, 1  ;;  %v2692_v12 = vrot.slane %v2466_v9, 1  ;;  %v2950_v37 = vmul.f32 %v11533_v50, %v13245_v44 }
 0x18b   :  { %v3347_v43 = vadd.f32 %v3174_v48, %v2863_v39  ;;  %v1280_v14 = vadd.f32 %v1216_v52, %v1148_v54  ;;  %v2077_v26 = vsel %vm889_vm3, %v2075_v1, %v2076_v0  ;;  %v3175_v32 = vrot.slane %v2949_v10, 2 }
 0x18c   :  { %v5654_v4 = vld [vmem:[#allocation3 + $0x1e2] sm:$0x1]  ;;  %v3176_v7 = vrot.slane %v2950_v37, 2  ;;  %v179_v28 = vmul.f32 %v11481_v16, %v13115_v19  ;;  %v265_v63 = vmul.f32 %v11483_v17, %v13172_v61  ;;  %v750_v35 = vmul.f32 %v11485_v18, %v13172_v61 }
 0x18d   :  { %10966 = vmatmul.mubr.msk.f32.gmra.mxu0 %vm3379_vm1, %v3347_v43  ;;  %5692 = vst.msk [vmem:[#allocation3 + $0x1e0] sm:$0x1] %vm5253_vm5, %v5654_v4  ;;  %v1764_v36 = vadd.f32 %v1593_v15, %v1280_v14  ;;  %v2693_v30 = vsel %vm404_vm2, %v2691_v23, %v2692_v12  ;;  %v1367_v31 = vmul.f32 %v11492_v21, %v13179_v58 }
 0x18e   :  { %v1851_v51 = vmul.f32 %v11494_v22, %v13179_v58  ;;  %v3177_v19 = vsel %vm889_vm3, %v3175_v32, %v3176_v7  ;;  %v493_v61 = vrot.slane %v265_v63, 1  ;;  %v978_v59 = vrot.slane %v750_v35, 2 }
 0x18f   :  { %v1217_v60 = vmul.f32 %v11490_v20, %v13142_v49  ;;  %v2248_v55 = vadd.f32 %v2077_v26, %v1764_v36  ;;  %v1594_v48 = vrot.slane %v1367_v31, 1  ;;  %v2467_v11 = vmul.f32 %v11504_v27, %v13276_v33 }
 0x190   :  { %v2078_v62 = vrot.slane %v1851_v51, 2  ;;  %v494_v6 = vsel %vm404_vm2, %v491_v45, %v493_v61  ;;  %v979_v40 = vsel %vm889_vm3, %v976_v57, %v978_v59  ;;  %v2951_v34 = vmul.f32 %v11533_v50, %v13276_v33 }
 0x191   :  { %v4603_v53 = vmax.f32 %v13137_v24, %v13240_v47  ;;  %v2380_v5 = vadd.f32 %v2316_v29, %v2248_v55  ;;  %v664_v52 = vadd.f32 %v494_v6, %v179_v28  ;;  %v1595_v42 = vsel %vm404_vm2, %v1592_v13, %v1594_v48 }
 0x192   :  { %v2317_v41 = vmul.f32 %v11545_v56, %v13245_v44  ;;  %v2079_v38 = vsel %vm889_vm3, %v2076_v0, %v2078_v62  ;;  %v2694_v25 = vrot.slane %v2467_v11, 1  ;;  %v4604_v45 = vmax.f32 %v13142_v49, %v13245_v44  ;;  %v13336_v62 = vld [vmem:[%s17810_s0 + $0x210] sm:$0xff]  ;;  %v13341_v11 = vld [vmem:[%s17810_s0 + $0x218] sm:$0xff] }
 0x193   :  { %v4647_v57 = vmax.f32 %v13179_v58, %v13276_v33  ;;  %v2864_v1 = vadd.f32 %v2693_v30, %v2380_v5  ;;  %v1149_v46 = vadd.f32 %v979_v40, %v664_v52  ;;  %v3178_v9 = vrot.slane %v2951_v34, 2 }
 0x194   :  { %v4831_v39 = vrot.slane %v4603_v53, 1  ;;  %v2695_v54 = vsel %vm404_vm2, %v2692_v12, %v2694_v25  ;;  %v4832_v29 = vrot.slane %v4604_v45, 1  ;;  %v180_v10 = vmul.f32 %v11481_v16, %v13137_v24 }
 0x195   :  { %v4834_v13 = vrot.slane %v4647_v57, 1  ;;  %v3348_v15 = vadd.f32 %v3177_v19, %v2864_v1  ;;  %v1281_v0 = vadd.f32 %v1217_v60, %v1149_v46  ;;  %v266_v23 = vmul.f32 %v11483_v17, %v13137_v24 }
 0x196   :  { %v13303_v37 = vmul.f32 %v11483_v17, %v13142_v49  ;;  %v4833_v43 = vsel %vm404_vm2, %v4831_v39, %v4832_v29  ;;  %v751_v12 = vmul.f32 %v11485_v18, %v13137_v24  ;;  %v13311_v26 = vmul.f32 %v11485_v18, %v13142_v49 }
 0x197   :  { %v4835_v14 = vsel %vm404_vm2, %v4832_v29, %v4834_v13  ;;  %10968 = vmatprep.mubr.msk.f32.mxu0 %vm3379_vm1, %v3348_v15  ;;  %v1765_v32 = vadd.f32 %v1595_v42, %v1281_v0  ;;  %v4993_v4 = vmax.f32 %v4603_v53, %v4833_v43  ;;  %v495_v63 = vrot.slane %v266_v23, 1 }
 0x198   :  { %v4994_v28 = vmax.f32 %v4604_v45, %v4835_v14  ;;  %v3179_v35 = vsel %vm889_vm3, %v3176_v7, %v3178_v9  ;;  %v496_v36 = vrot.slane %v13303_v37, 1  ;;  %v980_v30 = vrot.slane %v751_v12, 2 }
 0x199   :  { %v981_v31 = vrot.slane %v13311_v26, 2  ;;  %v2249_v51 = vadd.f32 %v2079_v38, %v1765_v32  ;;  %5592 = vst.msk [vmem:[#allocation3 + $0x1f8] sm:$0xfe] %vm5559_vm4, %v4993_v4  ;;  %5622 = vst.msk [vmem:[#allocation3 + $0x1c8] sm:$0xfe] %vm5559_vm4, %v4993_v4  ;;  %v1368_v24 = vmul.f32 %v11492_v21, %v13240_v47  ;;  %v1369_v7 = vmul.f32 %v11492_v21, %v13245_v44 }
 0x19a   :  { %5593 = vst.msk [vmem:[#allocation3 + $0x200] sm:$0xff] %vm3379_vm1, %v4994_v28  ;;  %5623 = vst.msk [vmem:[#allocation3 + $0x1d0] sm:$0xff] %vm3379_vm1, %v4994_v28  ;;  %v1852_v19 = vmul.f32 %v11494_v22, %v13240_v47  ;;  %v497_v61 = vsel %vm404_vm2, %v495_v63, %v496_v36  ;;  %v1218_v60 = vmul.f32 %v11490_v20, %v13240_v47 }
 0x19b   :  { %v982_v59 = vsel %vm889_vm3, %v980_v30, %v981_v31  ;;  %v1853_v55 = vmul.f32 %v11494_v22, %v13245_v44  ;;  %v2381_v48 = vadd.f32 %v2317_v41, %v2249_v51  ;;  %v665_v6 = vadd.f32 %v497_v61, %v180_v10 }
 0x19c   :  { %v1596_v40 = vrot.slane %v1368_v24, 1  ;;  %v1597_v34 = vrot.slane %v1369_v7, 1  ;;  %v2080_v53 = vrot.slane %v1852_v19, 2  ;;  %v2468_v52 = vmul.f32 %v11504_v27, %v13336_v62 }
 0x19d   :  { %v2081_v5 = vrot.slane %v1853_v55, 2  ;;  %v2469_v42 = vmul.f32 %v11504_v27, %v13341_v11  ;;  %v2865_v41 = vadd.f32 %v2695_v54, %v2381_v48  ;;  %v1150_v38 = vadd.f32 %v982_v59, %v665_v6 }
 0x19e   :  { %v2318_v25 = vmul.f32 %v11545_v56, %v13336_v62  ;;  %v2952_v45 = vmul.f32 %v11533_v50, %v13336_v62  ;;  %v1598_v57 = vsel %vm404_vm2, %v1596_v40, %v1597_v34  ;;  %v2696_v1 = vrot.slane %v2468_v52, 1 }
 0x19f   :  { %v2697_v46 = vrot.slane %v2469_v42, 1  ;;  %v2953_v9 = vmul.f32 %v11533_v50, %v13341_v11  ;;  %v3349_v39 = vadd.f32 %v3179_v35, %v2865_v41  ;;  %v1282_v29 = vadd.f32 %v1218_v60, %v1150_v38 }
 0x1a0   :  { %v2082_v13 = vsel %vm889_vm3, %v2080_v53, %v2081_v5  ;;  %v3180_v10 = vrot.slane %v2952_v45, 2  ;;  %v5653_v54 = vld [vmem:[#allocation3 + $0x1ca] sm:$0x1]  ;;  %v5655_v15 = vld [vmem:[#allocation3 + $0x1fa] sm:$0x1]  ;;  %v181_v23 = vmul.f32 %v11481_v16, %v13142_v49  ;;  %v268_v37 = vmul.f32 %v11483_v17, %v13179_v58 }
 0x1a1   :  { %v3181_v0 = vrot.slane %v2953_v9, 2  ;;  %v753_v43 = vmul.f32 %v11485_v18, %v13179_v58  ;;  %10969 = vmatmul.mubr.msk.f32.gmra.mxu0 %vm3379_vm1, %v3349_v39  ;;  %5691 = vst.msk [vmem:[#allocation3 + $0x1c8] sm:$0x1] %vm5253_vm5, %v5653_v54  ;;  %5693 = vst.msk [vmem:[#allocation3 + $0x1f8] sm:$0x1] %vm5253_vm5, %v5655_v15  ;;  %v1766_v14 = vadd.f32 %v1598_v57, %v1282_v29 }
 0x1a2   :  { %v2698_v12 = vsel %vm404_vm2, %v2696_v1, %v2697_v46  ;;  %v1370_v26 = vmul.f32 %v11492_v21, %v13276_v33  ;;  %v1854_v49 = vmul.f32 %v11494_v22, %v13276_v33  ;;  %v13373_v58 = vld [vmem:[%s17810_s0 + $0x220] sm:$0x3]  ;;  %v498_v4 = vrot.slane %v268_v37, 1 }
 0x1a3   :  { %v3182_v32 = vsel %vm889_vm3, %v3180_v10, %v3181_v0  ;;  %v983_v28 = vrot.slane %v753_v43, 2  ;;  %v1219_v63 = vmul.f32 %v11490_v20, %v13245_v44  ;;  %v2250_v35 = vadd.f32 %v2082_v13, %v1766_v14 }
 0x1a4   :  { %v1599_v30 = vrot.slane %v1370_v26, 1  ;;  %v2083_v51 = vrot.slane %v1854_v49, 2  ;;  %v2470_v24 = vmul.f32 %v11504_v27, %v13373_v58  ;;  %v499_v7 = vsel %vm404_vm2, %v496_v36, %v498_v4 }
 0x1a5   :  { %v984_v19 = vsel %vm889_vm3, %v981_v31, %v983_v28  ;;  %v2954_v61 = vmul.f32 %v11533_v50, %v13373_v58  ;;  %v4605_v59 = vmax.f32 %v13240_v47, %v13336_v62  ;;  %v2382_v60 = vadd.f32 %v2318_v25, %v2250_v35 }
 0x1a6   :  { %v666_v55 = vadd.f32 %v499_v7, %v181_v23  ;;  %v1600_v48 = vsel %vm404_vm2, %v1597_v34, %v1599_v30  ;;  %v2319_v6 = vmul.f32 %v11545_v56, %v13341_v11  ;;  %v2084_v40 = vsel %vm889_vm3, %v2081_v5, %v2083_v51  ;;  %v13431_v51 = vld [vmem:[%s17810_s0 + $0x228] sm:$0xff] }
 0x1a7   :  { %v2699_v53 = vrot.slane %v2470_v24, 1  ;;  %v4606_v36 = vmax.f32 %v13245_v44, %v13341_v11  ;;  %v4648_v31 = vmax.f32 %v13276_v33, %v13373_v58  ;;  %v2866_v52 = vadd.f32 %v2698_v12, %v2382_v60  ;;  %v13436_v24 = vld [vmem:[%s17810_s0 + $0x230] sm:$0xff] }
 0x1a8   :  { %v1151_v42 = vadd.f32 %v984_v19, %v666_v55  ;;  %v3183_v41 = vrot.slane %v2954_v61, 2  ;;  %v4836_v38 = vrot.slane %v4605_v59, 1  ;;  %v182_v57 = vmul.f32 %v11481_v16, %v13240_v47 }
 0x1a9   :  { %v2700_v25 = vsel %vm404_vm2, %v2697_v46, %v2699_v53  ;;  %v4837_v45 = vrot.slane %v4606_v36, 1  ;;  %v4839_v34 = vrot.slane %v4648_v31, 1  ;;  %v3350_v1 = vadd.f32 %v3182_v32, %v2866_v52 }
 0x1aa   :  { %v1283_v5 = vadd.f32 %v1219_v63, %v1151_v42  ;;  %v269_v9 = vmul.f32 %v11483_v17, %v13240_v47  ;;  %v13400_v39 = vmul.f32 %v11483_v17, %v13245_v44  ;;  %v754_v46 = vmul.f32 %v11485_v18, %v13240_v47 }
 0x1ab   :  { %v4838_v29 = vsel %vm404_vm2, %v4836_v38, %v4837_v45  ;;  %v4840_v13 = vsel %vm404_vm2, %v4837_v45, %v4839_v34  ;;  %v13408_v10 = vmul.f32 %v11485_v18, %v13245_v44  ;;  %10971 = vmatprep.mubr.msk.f32.mxu0 %vm3379_vm1, %v3350_v1  ;;  %v3184_v43 = vsel %vm889_vm3, %v3181_v0, %v3183_v41 }
 0x1ac   :  { %v1767_v54 = vadd.f32 %v1600_v48, %v1283_v5  ;;  %v4995_v15 = vmax.f32 %v4605_v59, %v4838_v29  ;;  %v4996_v23 = vmax.f32 %v4606_v36, %v4840_v13  ;;  %v500_v37 = vrot.slane %v269_v9, 1 }
 0x1ad   :  { %v501_v14 = vrot.slane %v13400_v39, 1  ;;  %v985_v12 = vrot.slane %v754_v46, 2  ;;  %v986_v26 = vrot.slane %v13408_v10, 2  ;;  %v1371_v47 = vmul.f32 %v11492_v21, %v13336_v62 }
 0x1ae   :  { %v2251_v49 = vadd.f32 %v2084_v40, %v1767_v54  ;;  %5594 = vst.msk [vmem:[#allocation3 + $0x210] sm:$0xfe] %vm5559_vm4, %v4995_v15  ;;  %v1372_v32 = vmul.f32 %v11492_v21, %v13341_v11  ;;  %v1855_v4 = vmul.f32 %v11494_v22, %v13336_v62  ;;  %v1220_v63 = vmul.f32 %v11490_v20, %v13336_v62 }
 0x1af   :  { %5595 = vst.msk [vmem:[#allocation3 + $0x218] sm:$0xff] %vm3379_vm1, %v4996_v23  ;;  %v502_v0 = vsel %vm404_vm2, %v500_v37, %v501_v14  ;;  %v987_v28 = vsel %vm889_vm3, %v985_v12, %v986_v26  ;;  %v1856_v35 = vmul.f32 %v11494_v22, %v13341_v11  ;;  %v1601_v19 = vrot.slane %v1371_v47, 1 }
 0x1b0   :  { %v2383_v30 = vadd.f32 %v2319_v6, %v2251_v49  ;;  %v667_v7 = vadd.f32 %v502_v0, %v182_v57  ;;  %v1602_v61 = vrot.slane %v1372_v32, 1  ;;  %v2085_v59 = vrot.slane %v1855_v4, 2 }
 0x1b1   :  { %v2086_v60 = vrot.slane %v1856_v35, 2  ;;  %v2471_v55 = vmul.f32 %v11504_v27, %v13431_v51  ;;  %v2472_v48 = vmul.f32 %v11504_v27, %v13436_v24  ;;  %v2320_v53 = vmul.f32 %v11545_v56, %v13431_v51 }
 0x1b2   :  { %v2867_v6 = vadd.f32 %v2700_v25, %v2383_v30  ;;  %v1152_v40 = vadd.f32 %v987_v28, %v667_v7  ;;  %v2955_v36 = vmul.f32 %v11533_v50, %v13431_v51  ;;  %v1603_v31 = vsel %vm404_vm2, %v1601_v19, %v1602_v61 }
 0x1b3   :  { %v2701_v52 = vrot.slane %v2471_v55, 1  ;;  %v2702_v42 = vrot.slane %v2472_v48, 1  ;;  %v2956_v41 = vmul.f32 %v11533_v50, %v13436_v24  ;;  %v2087_v34 = vsel %vm889_vm3, %v2085_v59, %v2086_v60 }
 0x1b4   :  { %v3351_v38 = vadd.f32 %v3184_v43, %v2867_v6  ;;  %v1284_v45 = vadd.f32 %v1220_v63, %v1152_v40  ;;  %v3185_v57 = vrot.slane %v2955_v36, 2  ;;  %v183_v1 = vmul.f32 %v11481_v16, %v13245_v44  ;;  %v13466_v44 = vld [vmem:[%s17810_s0 + $0x238] sm:$0x3] }
 0x1b5   :  { %v3186_v25 = vrot.slane %v2956_v41, 2  ;;  %v271_v5 = vmul.f32 %v11483_v17, %v13276_v33  ;;  %v756_v9 = vmul.f32 %v11485_v18, %v13276_v33  ;;  %v2703_v29 = vsel %vm404_vm2, %v2701_v52, %v2702_v42 }
 0x1b6   :  { %10972 = vmatmul.mubr.msk.f32.gmra.mxu0 %vm3379_vm1, %v3351_v38  ;;  %v1768_v39 = vadd.f32 %v1603_v31, %v1284_v45  ;;  %v1373_v13 = vmul.f32 %v11492_v21, %v13373_v58  ;;  %v1857_v46 = vmul.f32 %v11494_v22, %v13373_v58  ;;  %v1221_v15 = vmul.f32 %v11490_v20, %v13341_v11 }
 0x1b7   :  { %v3187_v10 = vsel %vm889_vm3, %v3185_v57, %v3186_v25  ;;  %v503_v54 = vrot.slane %v271_v5, 1  ;;  %v988_v33 = vrot.slane %v756_v9, 2  ;;  %v2473_v12 = vmul.f32 %v11504_v27, %v13466_v44 }
 0x1b8   :  { %v2252_v23 = vadd.f32 %v2087_v34, %v1768_v39  ;;  %v1604_v37 = vrot.slane %v1373_v13, 1  ;;  %v2088_v43 = vrot.slane %v1857_v46, 2  ;;  %v2957_v32 = vmul.f32 %v11533_v50, %v13466_v44 }
 0x1b9   :  { %v504_v49 = vsel %vm404_vm2, %v501_v14, %v503_v54  ;;  %v989_v47 = vsel %vm889_vm3, %v986_v26, %v988_v33  ;;  %v4607_v4 = vmax.f32 %v13336_v62, %v13431_v51  ;;  %v2321_v35 = vmul.f32 %v11545_v56, %v13436_v24 }
 0x1ba   :  { %v2384_v0 = vadd.f32 %v2320_v53, %v2252_v23  ;;  %v668_v28 = vadd.f32 %v504_v49, %v183_v1  ;;  %v1605_v63 = vsel %vm404_vm2, %v1602_v61, %v1604_v37  ;;  %v2089_v30 = vsel %vm889_vm3, %v2086_v60, %v2088_v43  ;;  %v13524_v43 = vld [vmem:[%s17810_s0 + $0x240] sm:$0xff] }
 0x1bb   :  { %v2704_v7 = vrot.slane %v2473_v12, 1  ;;  %v4608_v14 = vmax.f32 %v13341_v11, %v13436_v24  ;;  %v4649_v26 = vmax.f32 %v13373_v58, %v13466_v44  ;;  %v3188_v55 = vrot.slane %v2957_v32, 2  ;;  %v13529_v12 = vld [vmem:[%s17810_s0 + $0x248] sm:$0xff] }
 0x1bc   :  { %v2868_v19 = vadd.f32 %v2703_v29, %v2384_v0  ;;  %v1153_v59 = vadd.f32 %v989_v47, %v668_v28  ;;  %v4841_v48 = vrot.slane %v4607_v4, 1  ;;  %v184_v53 = vmul.f32 %v11481_v16, %v13336_v62 }
 0x1bd   :  { %v2705_v6 = vsel %vm404_vm2, %v2702_v42, %v2704_v7  ;;  %v4842_v40 = vrot.slane %v4608_v14, 1  ;;  %v4844_v61 = vrot.slane %v4649_v26, 1  ;;  %v272_v31 = vmul.f32 %v11483_v17, %v13336_v62 }
 0x1be   :  { %v3352_v36 = vadd.f32 %v3187_v10, %v2868_v19  ;;  %v1285_v60 = vadd.f32 %v1221_v15, %v1153_v59  ;;  %v13493_v52 = vmul.f32 %v11483_v17, %v13341_v11  ;;  %v757_v42 = vmul.f32 %v11485_v18, %v13336_v62 }
 0x1bf   :  { %v4843_v41 = vsel %vm404_vm2, %v4841_v48, %v4842_v40  ;;  %v4845_v38 = vsel %vm404_vm2, %v4842_v40, %v4844_v61  ;;  %v13501_v45 = vmul.f32 %v11485_v18, %v13341_v11  ;;  %v505_v5 = vrot.slane %v272_v31, 1 }
 0x1c0   :  { %10974 = vmatprep.mubr.msk.f32.mxu0 %vm3379_vm1, %v3352_v36  ;;  %v1769_v34 = vadd.f32 %v1605_v63, %v1285_v60  ;;  %v4997_v57 = vmax.f32 %v4607_v4, %v4843_v41  ;;  %v4998_v1 = vmax.f32 %v4608_v14, %v4845_v38  ;;  %v3189_v9 = vsel %vm889_vm3, %v3186_v25, %v3188_v55 }
 0x1c1   :  { %v506_v39 = vrot.slane %v13493_v52, 1  ;;  %v990_v29 = vrot.slane %v757_v42, 2  ;;  %v991_v13 = vrot.slane %v13501_v45, 2  ;;  %v1374_v62 = vmul.f32 %v11492_v21, %v13431_v51 }
 0x1c2   :  { %v2253_v46 = vadd.f32 %v2089_v30, %v1769_v34  ;;  %5596 = vst.msk [vmem:[#allocation3 + $0x228] sm:$0xfe] %vm5559_vm4, %v4997_v57  ;;  %v1375_v10 = vmul.f32 %v11492_v21, %v13436_v24  ;;  %v1858_v54 = vmul.f32 %v11494_v22, %v13431_v51  ;;  %v1222_v15 = vmul.f32 %v11490_v20, %v13431_v51  ;;  %v13560_v34 = vld [vmem:[%s17810_s0 + $0x250] sm:$0x3] }
 0x1c3   :  { %5597 = vst.msk [vmem:[#allocation3 + $0x230] sm:$0xff] %vm3379_vm1, %v4998_v1  ;;  %v507_v25 = vsel %vm404_vm2, %v505_v5, %v506_v39  ;;  %v992_v33 = vsel %vm889_vm3, %v990_v29, %v991_v13  ;;  %v1859_v23 = vmul.f32 %v11494_v22, %v13436_v24  ;;  %v1606_v47 = vrot.slane %v1374_v62, 1 }
 0x1c4   :  { %v2385_v37 = vadd.f32 %v2321_v35, %v2253_v46  ;;  %v669_v49 = vadd.f32 %v507_v25, %v184_v53  ;;  %v1607_v32 = vrot.slane %v1375_v10, 1  ;;  %v2090_v4 = vrot.slane %v1858_v54, 2 }
 0x1c5   :  { %v2091_v0 = vrot.slane %v1859_v23, 2  ;;  %v2474_v28 = vmul.f32 %v11504_v27, %v13524_v43  ;;  %v2475_v63 = vmul.f32 %v11504_v27, %v13529_v12  ;;  %v2322_v7 = vmul.f32 %v11545_v56, %v13524_v43 }
 0x1c6   :  { %v2869_v35 = vadd.f32 %v2705_v6, %v2385_v37  ;;  %v1154_v30 = vadd.f32 %v992_v33, %v669_v49  ;;  %v2958_v14 = vmul.f32 %v11533_v50, %v13524_v43  ;;  %v1608_v26 = vsel %vm404_vm2, %v1606_v47, %v1607_v32 }
 0x1c7   :  { %v2706_v19 = vrot.slane %v2474_v28, 1  ;;  %v2707_v59 = vrot.slane %v2475_v63, 1  ;;  %v2959_v55 = vmul.f32 %v11533_v50, %v13529_v12  ;;  %v2092_v61 = vsel %vm889_vm3, %v2090_v4, %v2091_v0 }
 0x1c8   :  { %v3353_v48 = vadd.f32 %v3189_v9, %v2869_v35  ;;  %v1286_v40 = vadd.f32 %v1222_v15, %v1154_v30  ;;  %v3190_v53 = vrot.slane %v2958_v14, 2  ;;  %v185_v60 = vmul.f32 %v11481_v16, %v13341_v11 }
 0x1c9   :  { %v5657_v6 = vld [vmem:[#allocation3 + $0x22a] sm:$0x1]  ;;  %v3191_v36 = vrot.slane %v2959_v55, 2  ;;  %v274_v31 = vmul.f32 %v11483_v17, %v13373_v58  ;;  %v759_v52 = vmul.f32 %v11485_v18, %v13373_v58  ;;  %v2708_v38 = vsel %vm404_vm2, %v2706_v19, %v2707_v59 }
 0x1ca   :  { %10975 = vmatmul.mubr.msk.f32.gmra.mxu0 %vm3379_vm1, %v3353_v48  ;;  %5695 = vst.msk [vmem:[#allocation3 + $0x228] sm:$0x1] %vm5253_vm5, %v5657_v6  ;;  %v1770_v41 = vadd.f32 %v1608_v26, %v1286_v40  ;;  %v1376_v42 = vmul.f32 %v11492_v21, %v13466_v44  ;;  %v1860_v45 = vmul.f32 %v11494_v22, %v13466_v44 }
 0x1cb   :  { %v3192_v11 = vsel %vm889_vm3, %v3190_v53, %v3191_v36  ;;  %v508_v58 = vrot.slane %v274_v31, 1  ;;  %v993_v57 = vrot.slane %v759_v52, 2  ;;  %v1223_v1 = vmul.f32 %v11490_v20, %v13436_v24 }
 0x1cc   :  { %v2254_v5 = vadd.f32 %v2092_v61, %v1770_v41  ;;  %v1609_v9 = vrot.slane %v1376_v42, 1  ;;  %v2093_v29 = vrot.slane %v1860_v45, 2  ;;  %v2476_v46 = vmul.f32 %v11504_v27, %v13560_v34 }
 0x1cd   :  { %v509_v62 = vsel %vm404_vm2, %v506_v39, %v508_v58  ;;  %v994_v10 = vsel %vm889_vm3, %v991_v13, %v993_v57  ;;  %v2960_v54 = vmul.f32 %v11533_v50, %v13560_v34  ;;  %v4609_v25 = vmax.f32 %v13431_v51, %v13524_v43 }
 0x1ce   :  { %v2386_v33 = vadd.f32 %v2322_v7, %v2254_v5  ;;  %v670_v15 = vadd.f32 %v509_v62, %v185_v60  ;;  %v1610_v23 = vsel %vm404_vm2, %v1607_v32, %v1609_v9  ;;  %v2323_v37 = vmul.f32 %v11545_v56, %v13529_v12 }
 0x1cf   :  { %v2094_v49 = vsel %vm889_vm3, %v2091_v0, %v2093_v29  ;;  %v2709_v47 = vrot.slane %v2476_v46, 1  ;;  %v4610_v39 = vmax.f32 %v13436_v24, %v13529_v12  ;;  %v4650_v13 = vmax.f32 %v13466_v44, %v13560_v34  ;;  %v13618_v29 = vld [vmem:[%s17810_s0 + $0x258] sm:$0xff]  ;;  %v13623_v46 = vld [vmem:[%s17810_s0 + $0x260] sm:$0xff] }
 0x1d0   :  { %v2870_v4 = vadd.f32 %v2708_v38, %v2386_v33  ;;  %v1155_v28 = vadd.f32 %v994_v10, %v670_v15  ;;  %v3193_v63 = vrot.slane %v2960_v54, 2  ;;  %v4846_v35 = vrot.slane %v4609_v25, 1 }
 0x1d1   :  { %v2710_v30 = vsel %vm404_vm2, %v2707_v59, %v2709_v47  ;;  %v4847_v7 = vrot.slane %v4610_v39, 1  ;;  %v4849_v32 = vrot.slane %v4650_v13, 1  ;;  %v186_v14 = vmul.f32 %v11481_v16, %v13431_v51 }
 0x1d2   :  { %v3354_v26 = vadd.f32 %v3192_v11, %v2870_v4  ;;  %v1287_v0 = vadd.f32 %v1223_v1, %v1155_v28  ;;  %v275_v19 = vmul.f32 %v11483_v17, %v13431_v51  ;;  %v13587_v55 = vmul.f32 %v11483_v17, %v13436_v24 }
 0x1d3   :  { %v4848_v48 = vsel %vm404_vm2, %v4846_v35, %v4847_v7  ;;  %v4850_v40 = vsel %vm404_vm2, %v4847_v7, %v4849_v32  ;;  %v760_v59 = vmul.f32 %v11485_v18, %v13431_v51  ;;  %v13595_v61 = vmul.f32 %v11485_v18, %v13436_v24 }
 0x1d4   :  { %10977 = vmatprep.mubr.msk.f32.mxu0 %vm3379_vm1, %v3354_v26  ;;  %v1771_v53 = vadd.f32 %v1610_v23, %v1287_v0  ;;  %v4999_v6 = vmax.f32 %v4609_v25, %v4848_v48  ;;  %v5000_v60 = vmax.f32 %v4610_v39, %v4850_v40  ;;  %v510_v31 = vrot.slane %v275_v19, 1 }
 0x1d5   :  { %v3194_v52 = vsel %vm889_vm3, %v3191_v36, %v3193_v63  ;;  %v511_v41 = vrot.slane %v13587_v55, 1  ;;  %v995_v38 = vrot.slane %v760_v59, 2  ;;  %v996_v42 = vrot.slane %v13595_v61, 2 }
 0x1d6   :  { %v2255_v45 = vadd.f32 %v2094_v49, %v1771_v53  ;;  %5598 = vst.msk [vmem:[#allocation3 + $0x240] sm:$0xfe] %vm5559_vm4, %v4999_v6  ;;  %v1377_v51 = vmul.f32 %v11492_v21, %v13524_v43  ;;  %v1378_v11 = vmul.f32 %v11492_v21, %v13529_v12  ;;  %v1861_v58 = vmul.f32 %v11494_v22, %v13524_v43 }
 0x1d7   :  { %5599 = vst.msk [vmem:[#allocation3 + $0x248] sm:$0xff] %vm3379_vm1, %v5000_v60  ;;  %v512_v36 = vsel %vm404_vm2, %v510_v31, %v511_v41  ;;  %v997_v57 = vsel %vm889_vm3, %v995_v38, %v996_v42  ;;  %v1224_v1 = vmul.f32 %v11490_v20, %v13524_v43  ;;  %v1862_v5 = vmul.f32 %v11494_v22, %v13529_v12 }
 0x1d8   :  { %v2387_v9 = vadd.f32 %v2323_v37, %v2255_v45  ;;  %v671_v62 = vadd.f32 %v512_v36, %v186_v14  ;;  %v1611_v10 = vrot.slane %v1377_v51, 1  ;;  %v1612_v54 = vrot.slane %v1378_v11, 1 }
 0x1d9   :  { %v2095_v25 = vrot.slane %v1861_v58, 2  ;;  %v2096_v33 = vrot.slane %v1862_v5, 2  ;;  %v2477_v15 = vmul.f32 %v11504_v27, %v13618_v29  ;;  %v2478_v23 = vmul.f32 %v11504_v27, %v13623_v46 }
 0x1da   :  { %v2871_v37 = vadd.f32 %v2710_v30, %v2387_v9  ;;  %v1156_v49 = vadd.f32 %v997_v57, %v671_v62  ;;  %v2324_v47 = vmul.f32 %v11545_v56, %v13618_v29  ;;  %v2961_v39 = vmul.f32 %v11533_v50, %v13618_v29 }
 0x1db   :  { %v1613_v13 = vsel %vm404_vm2, %v1611_v10, %v1612_v54  ;;  %v2711_v4 = vrot.slane %v2477_v15, 1  ;;  %v2712_v28 = vrot.slane %v2478_v23, 1  ;;  %v2962_v63 = vmul.f32 %v11533_v50, %v13623_v46 }
 0x1dc   :  { %v3355_v35 = vadd.f32 %v3194_v52, %v2871_v37  ;;  %v1288_v7 = vadd.f32 %v1224_v1, %v1156_v49  ;;  %v2097_v32 = vsel %vm889_vm3, %v2095_v25, %v2096_v33  ;;  %v3195_v14 = vrot.slane %v2961_v39, 2 }
 0x1dd   :  { %v3196_v30 = vrot.slane %v2962_v63, 2  ;;  %v187_v26 = vmul.f32 %v11481_v16, %v13436_v24  ;;  %v277_v0 = vmul.f32 %v11483_v17, %v13466_v44  ;;  %v762_v19 = vmul.f32 %v11485_v18, %v13466_v44  ;;  %v13653_v24 = vld [vmem:[%s17810_s0 + $0x268] sm:$0x3] }
 0x1de   :  { %10978 = vmatmul.mubr.msk.f32.gmra.mxu0 %vm3379_vm1, %v3355_v35  ;;  %v1772_v55 = vadd.f32 %v1613_v13, %v1288_v7  ;;  %v2713_v48 = vsel %vm404_vm2, %v2711_v4, %v2712_v28  ;;  %v1379_v40 = vmul.f32 %v11492_v21, %v13560_v34  ;;  %v1863_v59 = vmul.f32 %v11494_v22, %v13560_v34 }
 0x1df   :  { %v3197_v61 = vsel %vm889_vm3, %v3195_v14, %v3196_v30  ;;  %v513_v53 = vrot.slane %v277_v0, 1  ;;  %v998_v44 = vrot.slane %v762_v19, 2  ;;  %v1225_v6 = vmul.f32 %v11490_v20, %v13529_v12 }
 0x1e0   :  { %v2256_v60 = vadd.f32 %v2097_v32, %v1772_v55  ;;  %v1614_v31 = vrot.slane %v1379_v40, 1  ;;  %v2098_v52 = vrot.slane %v1863_v59, 2  ;;  %v2479_v38 = vmul.f32 %v11504_v27, %v13653_v24 }
 0x1e1   :  { %v514_v45 = vsel %vm404_vm2, %v511_v41, %v513_v53  ;;  %v999_v51 = vsel %vm889_vm3, %v996_v42, %v998_v44  ;;  %v2963_v11 = vmul.f32 %v11533_v50, %v13653_v24  ;;  %v4611_v58 = vmax.f32 %v13524_v43, %v13618_v29 }
 0x1e2   :  { %v2388_v36 = vadd.f32 %v2324_v47, %v2256_v60  ;;  %v672_v57 = vadd.f32 %v514_v45, %v187_v26  ;;  %v1615_v1 = vsel %vm404_vm2, %v1612_v54, %v1614_v31  ;;  %v2325_v5 = vmul.f32 %v11545_v56, %v13623_v46 }
 0x1e3   :  { %v2099_v9 = vsel %vm889_vm3, %v2096_v33, %v2098_v52  ;;  %v2714_v62 = vrot.slane %v2479_v38, 1  ;;  %v4612_v41 = vmax.f32 %v13529_v12, %v13623_v46  ;;  %v4651_v42 = vmax.f32 %v13560_v34, %v13653_v24  ;;  %v13711_v52 = vld [vmem:[%s17810_s0 + $0x270] sm:$0xff]  ;;  %v13716_v38 = vld [vmem:[%s17810_s0 + $0x278] sm:$0xff] }
 0x1e4   :  { %v2872_v10 = vadd.f32 %v2713_v48, %v2388_v36  ;;  %v1157_v25 = vadd.f32 %v999_v51, %v672_v57  ;;  %v3198_v15 = vrot.slane %v2963_v11, 2  ;;  %v4851_v23 = vrot.slane %v4611_v58, 1 }
 0x1e5   :  { %v2715_v37 = vsel %vm404_vm2, %v2712_v28, %v2714_v62  ;;  %v4852_v49 = vrot.slane %v4612_v41, 1  ;;  %v4854_v54 = vrot.slane %v4651_v42, 1  ;;  %v188_v47 = vmul.f32 %v11481_v16, %v13524_v43 }
 0x1e6   :  { %v3356_v39 = vadd.f32 %v3197_v61, %v2872_v10  ;;  %v1289_v33 = vadd.f32 %v1225_v6, %v1157_v25  ;;  %v278_v13 = vmul.f32 %v11483_v17, %v13524_v43  ;;  %v13680_v4 = vmul.f32 %v11483_v17, %v13529_v12 }
 0x1e7   :  { %v4853_v63 = vsel %vm404_vm2, %v4851_v23, %v4852_v49  ;;  %v4855_v35 = vsel %vm404_vm2, %v4852_v49, %v4854_v54  ;;  %v763_v28 = vmul.f32 %v11485_v18, %v13524_v43  ;;  %v13688_v7 = vmul.f32 %v11485_v18, %v13529_v12 }
 0x1e8   :  { %10980 = vmatprep.mubr.msk.f32.mxu0 %vm3379_vm1, %v3356_v39  ;;  %v1773_v32 = vadd.f32 %v1615_v1, %v1289_v33  ;;  %v5001_v14 = vmax.f32 %v4611_v58, %v4853_v63  ;;  %v5002_v26 = vmax.f32 %v4612_v41, %v4855_v35  ;;  %v515_v0 = vrot.slane %v278_v13, 1 }
 0x1e9   :  { %v3199_v19 = vsel %vm889_vm3, %v3196_v30, %v3198_v15  ;;  %v516_v55 = vrot.slane %v13680_v4, 1  ;;  %v1000_v48 = vrot.slane %v763_v28, 2  ;;  %v1001_v40 = vrot.slane %v13688_v7, 2 }
 0x1ea   :  { %v2257_v59 = vadd.f32 %v2099_v9, %v1773_v32  ;;  %5600 = vst.msk [vmem:[#allocation3 + $0x258] sm:$0xfe] %vm5559_vm4, %v5001_v14  ;;  %v1380_v43 = vmul.f32 %v11492_v21, %v13618_v29  ;;  %v1381_v61 = vmul.f32 %v11492_v21, %v13623_v46  ;;  %v1864_v53 = vmul.f32 %v11494_v22, %v13618_v29  ;;  %v13747_v32 = vld [vmem:[%s17810_s0 + $0x280] sm:$0x3] }
 0x1eb   :  { %5601 = vst.msk [vmem:[#allocation3 + $0x260] sm:$0xff] %vm3379_vm1, %v5002_v26  ;;  %v517_v30 = vsel %vm404_vm2, %v515_v0, %v516_v55  ;;  %v1002_v44 = vsel %vm889_vm3, %v1000_v48, %v1001_v40  ;;  %v1226_v6 = vmul.f32 %v11490_v20, %v13618_v29  ;;  %v1865_v60 = vmul.f32 %v11494_v22, %v13623_v46 }
 0x1ec   :  { %v2389_v31 = vadd.f32 %v2325_v5, %v2257_v59  ;;  %v673_v45 = vadd.f32 %v517_v30, %v188_v47  ;;  %v1616_v51 = vrot.slane %v1380_v43, 1  ;;  %v1617_v11 = vrot.slane %v1381_v61, 1 }
 0x1ed   :  { %v2100_v58 = vrot.slane %v1864_v53, 2  ;;  %v2101_v36 = vrot.slane %v1865_v60, 2  ;;  %v2480_v57 = vmul.f32 %v11504_v27, %v13711_v52  ;;  %v2481_v1 = vmul.f32 %v11504_v27, %v13716_v38 }
 0x1ee   :  { %v2873_v5 = vadd.f32 %v2715_v37, %v2389_v31  ;;  %v1158_v9 = vadd.f32 %v1002_v44, %v673_v45  ;;  %v2326_v62 = vmul.f32 %v11545_v56, %v13711_v52  ;;  %v2964_v41 = vmul.f32 %v11533_v50, %v13711_v52 }
 0x1ef   :  { %v1618_v42 = vsel %vm404_vm2, %v1616_v51, %v1617_v11  ;;  %v2716_v10 = vrot.slane %v2480_v57, 1  ;;  %v2717_v25 = vrot.slane %v2481_v1, 1  ;;  %v2965_v15 = vmul.f32 %v11533_v50, %v13716_v38 }
 0x1f0   :  { %v3357_v23 = vadd.f32 %v3199_v19, %v2873_v5  ;;  %v1290_v49 = vadd.f32 %v1226_v6, %v1158_v9  ;;  %v2102_v54 = vsel %vm889_vm3, %v2100_v58, %v2101_v36  ;;  %v3200_v47 = vrot.slane %v2964_v41, 2 }
 0x1f1   :  { %v5659_v37 = vld [vmem:[#allocation3 + $0x25a] sm:$0x1]  ;;  %v3201_v39 = vrot.slane %v2965_v15, 2  ;;  %v189_v33 = vmul.f32 %v11481_v16, %v13529_v12  ;;  %v280_v13 = vmul.f32 %v11483_v17, %v13560_v34  ;;  %v765_v4 = vmul.f32 %v11485_v18, %v13560_v34 }
 0x1f2   :  { %10981 = vmatmul.mubr.msk.f32.gmra.mxu0 %vm3379_vm1, %v3357_v23  ;;  %5697 = vst.msk [vmem:[#allocation3 + $0x258] sm:$0x1] %vm5253_vm5, %v5659_v37  ;;  %v1774_v63 = vadd.f32 %v1618_v42, %v1290_v49  ;;  %v2718_v35 = vsel %vm404_vm2, %v2716_v10, %v2717_v25  ;;  %v1382_v28 = vmul.f32 %v11492_v21, %v13653_v24 }
 0x1f3   :  { %v1866_v7 = vmul.f32 %v11494_v22, %v13653_v24  ;;  %v3202_v12 = vsel %vm889_vm3, %v3200_v47, %v3201_v39  ;;  %v518_v34 = vrot.slane %v280_v13, 1  ;;  %v1003_v14 = vrot.slane %v765_v4, 2 }
 0x1f4   :  { %v1227_v26 = vmul.f32 %v11490_v20, %v13623_v46  ;;  %v2258_v0 = vadd.f32 %v2102_v54, %v1774_v63  ;;  %v1619_v19 = vrot.slane %v1382_v28, 1  ;;  %v2482_v59 = vmul.f32 %v11504_v27, %v13747_v32 }
 0x1f5   :  { %v2103_v48 = vrot.slane %v1866_v7, 2  ;;  %v519_v43 = vsel %vm404_vm2, %v516_v55, %v518_v34  ;;  %v1004_v61 = vsel %vm889_vm3, %v1001_v40, %v1003_v14  ;;  %v2966_v53 = vmul.f32 %v11533_v50, %v13747_v32 }
 0x1f6   :  { %v4613_v30 = vmax.f32 %v13618_v29, %v13711_v52  ;;  %v2390_v44 = vadd.f32 %v2326_v62, %v2258_v0  ;;  %v674_v6 = vadd.f32 %v519_v43, %v189_v33  ;;  %v1620_v60 = vsel %vm404_vm2, %v1617_v11, %v1619_v19 }
 0x1f7   :  { %v2327_v31 = vmul.f32 %v11545_v56, %v13716_v38  ;;  %v2104_v45 = vsel %vm889_vm3, %v2101_v36, %v2103_v48  ;;  %v2719_v51 = vrot.slane %v2482_v59, 1  ;;  %v4614_v55 = vmax.f32 %v13623_v46, %v13716_v38  ;;  %v13805_v48 = vld [vmem:[%s17810_s0 + $0x288] sm:$0xff]  ;;  %v13810_v59 = vld [vmem:[%s17810_s0 + $0x290] sm:$0xff] }
 0x1f8   :  { %v4652_v40 = vmax.f32 %v13653_v24, %v13747_v32  ;;  %v2874_v58 = vadd.f32 %v2718_v35, %v2390_v44  ;;  %v1159_v57 = vadd.f32 %v1004_v61, %v674_v6  ;;  %v3203_v1 = vrot.slane %v2966_v53, 2 }
 0x1f9   :  { %v4856_v5 = vrot.slane %v4613_v30, 1  ;;  %v2720_v9 = vsel %vm404_vm2, %v2717_v25, %v2719_v51  ;;  %v4857_v62 = vrot.slane %v4614_v55, 1  ;;  %v190_v41 = vmul.f32 %v11481_v16, %v13618_v29 }
 0x1fa   :  { %v4859_v11 = vrot.slane %v4652_v40, 1  ;;  %v3358_v42 = vadd.f32 %v3202_v12, %v2874_v58  ;;  %v1291_v36 = vadd.f32 %v1227_v26, %v1159_v57  ;;  %v281_v10 = vmul.f32 %v11483_v17, %v13618_v29 }
 0x1fb   :  { %v13774_v15 = vmul.f32 %v11483_v17, %v13623_v46  ;;  %v4858_v23 = vsel %vm404_vm2, %v4856_v5, %v4857_v62  ;;  %v766_v25 = vmul.f32 %v11485_v18, %v13618_v29  ;;  %v13782_v54 = vmul.f32 %v11485_v18, %v13623_v46 }
 0x1fc   :  { %v4860_v49 = vsel %vm404_vm2, %v4857_v62, %v4859_v11  ;;  %10983 = vmatprep.mubr.msk.f32.mxu0 %vm3379_vm1, %v3358_v42  ;;  %v1775_v47 = vadd.f32 %v1620_v60, %v1291_v36  ;;  %v5003_v37 = vmax.f32 %v4613_v30, %v4858_v23  ;;  %v520_v13 = vrot.slane %v281_v10, 1 }
 0x1fd   :  { %v5004_v33 = vmax.f32 %v4614_v55, %v4860_v49  ;;  %v3204_v4 = vsel %vm889_vm3, %v3201_v39, %v3203_v1  ;;  %v521_v63 = vrot.slane %v13774_v15, 1  ;;  %v1005_v35 = vrot.slane %v766_v25, 2 }
 0x1fe   :  { %v1006_v28 = vrot.slane %v13782_v54, 2  ;;  %v2259_v7 = vadd.f32 %v2104_v45, %v1775_v47  ;;  %5602 = vst.msk [vmem:[#allocation3 + $0x270] sm:$0xfe] %vm5559_vm4, %v5003_v37  ;;  %v1383_v29 = vmul.f32 %v11492_v21, %v13711_v52  ;;  %v1384_v12 = vmul.f32 %v11492_v21, %v13716_v38 }
 0x1ff   :  { %5603 = vst.msk [vmem:[#allocation3 + $0x278] sm:$0xff] %vm3379_vm1, %v5004_v33  ;;  %v1867_v34 = vmul.f32 %v11494_v22, %v13711_v52  ;;  %v522_v39 = vsel %vm404_vm2, %v520_v13, %v521_v63  ;;  %v1228_v26 = vmul.f32 %v11490_v20, %v13711_v52  ;;  %v1868_v0 = vmul.f32 %v11494_v22, %v13716_v38 }
 0x200   :  { %v1007_v14 = vsel %vm889_vm3, %v1005_v35, %v1006_v28  ;;  %v2391_v19 = vadd.f32 %v2327_v31, %v2259_v7  ;;  %v675_v43 = vadd.f32 %v522_v39, %v190_v41  ;;  %v1621_v61 = vrot.slane %v1383_v29, 1 }
 0x201   :  { %v1622_v53 = vrot.slane %v1384_v12, 1  ;;  %v2105_v30 = vrot.slane %v1867_v34, 2  ;;  %v2106_v44 = vrot.slane %v1868_v0, 2  ;;  %v2483_v6 = vmul.f32 %v11504_v27, %v13805_v48 }
 0x202   :  { %v2484_v60 = vmul.f32 %v11504_v27, %v13810_v59  ;;  %v2875_v31 = vadd.f32 %v2720_v9, %v2391_v19  ;;  %v1160_v45 = vadd.f32 %v1007_v14, %v675_v43  ;;  %v2328_v51 = vmul.f32 %v11545_v56, %v13805_v48 }
 0x203   :  { %v2967_v55 = vmul.f32 %v11533_v50, %v13805_v48  ;;  %v1623_v40 = vsel %vm404_vm2, %v1621_v61, %v1622_v53  ;;  %v2721_v58 = vrot.slane %v2483_v6, 1  ;;  %v2968_v1 = vmul.f32 %v11533_v50, %v13810_v59 }
 0x204   :  { %v2722_v57 = vrot.slane %v2484_v60, 1  ;;  %v3359_v5 = vadd.f32 %v3204_v4, %v2875_v31  ;;  %v1292_v62 = vadd.f32 %v1228_v26, %v1160_v45  ;;  %v2107_v11 = vsel %vm889_vm3, %v2105_v30, %v2106_v44 }
 0x205   :  { %v3205_v41 = vrot.slane %v2967_v55, 2  ;;  %v3206_v9 = vrot.slane %v2968_v1, 2  ;;  %v191_v42 = vmul.f32 %v11481_v16, %v13623_v46  ;;  %v283_v36 = vmul.f32 %v11483_v17, %v13653_v24  ;;  %v13840_v46 = vld [vmem:[%s17810_s0 + $0x298] sm:$0x3] }
 0x206   :  { %v768_v10 = vmul.f32 %v11485_v18, %v13653_v24  ;;  %10984 = vmatmul.mubr.msk.f32.gmra.mxu0 %vm3379_vm1, %v3359_v5  ;;  %v1776_v15 = vadd.f32 %v1623_v40, %v1292_v62  ;;  %v2723_v23 = vsel %vm404_vm2, %v2721_v58, %v2722_v57  ;;  %v1385_v49 = vmul.f32 %v11492_v21, %v13747_v32 }
 0x207   :  { %v1869_v25 = vmul.f32 %v11494_v22, %v13747_v32  ;;  %v3207_v54 = vsel %vm889_vm3, %v3205_v41, %v3206_v9  ;;  %v523_v47 = vrot.slane %v283_v36, 1  ;;  %v1229_v37 = vmul.f32 %v11490_v20, %v13716_v38 }
 0x208   :  { %v1008_v24 = vrot.slane %v768_v10, 2  ;;  %v2260_v33 = vadd.f32 %v2107_v11, %v1776_v15  ;;  %v1624_v13 = vrot.slane %v1385_v49, 1  ;;  %v2485_v35 = vmul.f32 %v11504_v27, %v13840_v46 }
 0x209   :  { %v2108_v4 = vrot.slane %v1869_v25, 2  ;;  %v524_v7 = vsel %vm404_vm2, %v521_v63, %v523_v47  ;;  %v2969_v12 = vmul.f32 %v11533_v50, %v13840_v46  ;;  %v4615_v34 = vmax.f32 %v13711_v52, %v13805_v48 }
 0x20a   :  { %v1009_v29 = vsel %vm889_vm3, %v1006_v28, %v1008_v24  ;;  %v2392_v39 = vadd.f32 %v2328_v51, %v2260_v33  ;;  %v676_v14 = vadd.f32 %v524_v7, %v191_v42  ;;  %v1625_v26 = vsel %vm404_vm2, %v1622_v53, %v1624_v13 }
 0x20b   :  { %v2329_v0 = vmul.f32 %v11545_v56, %v13810_v59  ;;  %v2109_v19 = vsel %vm889_vm3, %v2106_v44, %v2108_v4  ;;  %v2724_v43 = vrot.slane %v2485_v35, 1  ;;  %v4616_v63 = vmax.f32 %v13716_v38, %v13810_v59  ;;  %v13898_v4 = vld [vmem:[%s17810_s0 + $0x2a0] sm:$0xff]  ;;  %v13903_v35 = vld [vmem:[%s17810_s0 + $0x2a8] sm:$0xff] }
 0x20c   :  { %v4653_v28 = vmax.f32 %v13747_v32, %v13840_v46  ;;  %v2876_v61 = vadd.f32 %v2723_v23, %v2392_v39  ;;  %v1161_v30 = vadd.f32 %v1009_v29, %v676_v14  ;;  %v3208_v6 = vrot.slane %v2969_v12, 2 }
 0x20d   :  { %v4861_v60 = vrot.slane %v4615_v34, 1  ;;  %v2725_v31 = vsel %vm404_vm2, %v2722_v57, %v2724_v43  ;;  %v4862_v45 = vrot.slane %v4616_v63, 1  ;;  %v192_v51 = vmul.f32 %v11481_v16, %v13711_v52 }
 0x20e   :  { %v4864_v53 = vrot.slane %v4653_v28, 1  ;;  %v3360_v55 = vadd.f32 %v3207_v54, %v2876_v61  ;;  %v1293_v44 = vadd.f32 %v1229_v37, %v1161_v30  ;;  %v284_v40 = vmul.f32 %v11483_v17, %v13711_v52 }
 0x20f   :  { %v13867_v58 = vmul.f32 %v11483_v17, %v13716_v38  ;;  %v4863_v1 = vsel %vm404_vm2, %v4861_v60, %v4862_v45  ;;  %v769_v57 = vmul.f32 %v11485_v18, %v13711_v52  ;;  %v13875_v62 = vmul.f32 %v11485_v18, %v13716_v38 }
 0x210   :  { %v4865_v5 = vsel %vm404_vm2, %v4862_v45, %v4864_v53  ;;  %10986 = vmatprep.mubr.msk.f32.mxu0 %vm3379_vm1, %v3360_v55  ;;  %v1777_v11 = vadd.f32 %v1625_v26, %v1293_v44  ;;  %v5005_v41 = vmax.f32 %v4615_v34, %v4863_v1  ;;  %v525_v36 = vrot.slane %v284_v40, 1 }
 0x211   :  { %v5006_v42 = vmax.f32 %v4616_v63, %v4865_v5  ;;  %v3209_v10 = vsel %vm889_vm3, %v3206_v9, %v3208_v6  ;;  %v526_v15 = vrot.slane %v13867_v58, 1  ;;  %v1010_v23 = vrot.slane %v769_v57, 2 }
 0x212   :  { %v1011_v49 = vrot.slane %v13875_v62, 2  ;;  %v2261_v25 = vadd.f32 %v2109_v19, %v1777_v11  ;;  %5604 = vst.msk [vmem:[#allocation3 + $0x288] sm:$0xfe] %vm5559_vm4, %v5005_v41  ;;  %v1386_v52 = vmul.f32 %v11492_v21, %v13805_v48  ;;  %v1387_v54 = vmul.f32 %v11492_v21, %v13810_v59  ;;  %v13934_v11 = vld [vmem:[%s17810_s0 + $0x2b0] sm:$0x3] }
 0x213   :  { %5605 = vst.msk [vmem:[#allocation3 + $0x290] sm:$0xff] %vm3379_vm1, %v5006_v42  ;;  %v1870_v47 = vmul.f32 %v11494_v22, %v13805_v48  ;;  %v527_v9 = vsel %vm404_vm2, %v525_v36, %v526_v15  ;;  %v1230_v37 = vmul.f32 %v11490_v20, %v13805_v48  ;;  %v1871_v33 = vmul.f32 %v11494_v22, %v13810_v59 }
 0x214   :  { %v1012_v24 = vsel %vm889_vm3, %v1010_v23, %v1011_v49  ;;  %v2393_v13 = vadd.f32 %v2329_v0, %v2261_v25  ;;  %v677_v7 = vadd.f32 %v527_v9, %v192_v51  ;;  %v1626_v29 = vrot.slane %v1386_v52, 1 }
 0x215   :  { %v1627_v12 = vrot.slane %v1387_v54, 1  ;;  %v2110_v34 = vrot.slane %v1870_v47, 2  ;;  %v2111_v39 = vrot.slane %v1871_v33, 2  ;;  %v2486_v14 = vmul.f32 %v11504_v27, %v13898_v4 }
 0x216   :  { %v2487_v26 = vmul.f32 %v11504_v27, %v13903_v35  ;;  %v2877_v0 = vadd.f32 %v2725_v31, %v2393_v13  ;;  %v1162_v19 = vadd.f32 %v1012_v24, %v677_v7  ;;  %v2330_v43 = vmul.f32 %v11545_v56, %v13898_v4 }
 0x217   :  { %v2970_v63 = vmul.f32 %v11533_v50, %v13898_v4  ;;  %v1628_v28 = vsel %vm404_vm2, %v1626_v29, %v1627_v12  ;;  %v2726_v61 = vrot.slane %v2486_v14, 1  ;;  %v2971_v6 = vmul.f32 %v11533_v50, %v13903_v35 }
 0x218   :  { %v2727_v30 = vrot.slane %v2487_v26, 1  ;;  %v3361_v60 = vadd.f32 %v3209_v10, %v2877_v0  ;;  %v1294_v45 = vadd.f32 %v1230_v37, %v1162_v19  ;;  %v2112_v53 = vsel %vm889_vm3, %v2110_v34, %v2111_v39 }
 0x219   :  { %v3210_v51 = vrot.slane %v2970_v63, 2  ;;  %v5661_v31 = vld [vmem:[#allocation3 + $0x28a] sm:$0x1]  ;;  %v3211_v55 = vrot.slane %v2971_v6, 2  ;;  %v193_v44 = vmul.f32 %v11481_v16, %v13716_v38  ;;  %v286_v40 = vmul.f32 %v11483_v17, %v13747_v32 }
 0x21a   :  { %v771_v58 = vmul.f32 %v11485_v18, %v13747_v32  ;;  %10987 = vmatmul.mubr.msk.f32.gmra.mxu0 %vm3379_vm1, %v3361_v60  ;;  %5699 = vst.msk [vmem:[#allocation3 + $0x288] sm:$0x1] %vm5253_vm5, %v5661_v31  ;;  %v1778_v1 = vadd.f32 %v1628_v28, %v1294_v45  ;;  %v2728_v5 = vsel %vm404_vm2, %v2726_v61, %v2727_v30 }
 0x21b   :  { %v1388_v57 = vmul.f32 %v11492_v21, %v13840_v46  ;;  %v1872_v62 = vmul.f32 %v11494_v22, %v13840_v46  ;;  %v3212_v38 = vsel %vm889_vm3, %v3210_v51, %v3211_v55  ;;  %v528_v32 = vrot.slane %v286_v40, 1 }
 0x21c   :  { %v1013_v41 = vrot.slane %v771_v58, 2  ;;  %v1231_v42 = vmul.f32 %v11490_v20, %v13810_v59  ;;  %v2262_v36 = vadd.f32 %v2112_v53, %v1778_v1  ;;  %v2488_v25 = vmul.f32 %v11504_v27, %v13934_v11 }
 0x21d   :  { %v1629_v10 = vrot.slane %v1388_v57, 1  ;;  %v2113_v23 = vrot.slane %v1872_v62, 2  ;;  %v529_v52 = vsel %vm404_vm2, %v526_v15, %v528_v32  ;;  %v2972_v47 = vmul.f32 %v11533_v50, %v13934_v11 }
 0x21e   :  { %v1014_v54 = vsel %vm889_vm3, %v1011_v49, %v1013_v41  ;;  %v4617_v9 = vmax.f32 %v13805_v48, %v13898_v4  ;;  %v2394_v24 = vadd.f32 %v2330_v43, %v2262_v36  ;;  %v678_v37 = vadd.f32 %v529_v52, %v193_v44 }
 0x21f   :  { %v1630_v33 = vsel %vm404_vm2, %v1627_v12, %v1629_v10  ;;  %v2331_v13 = vmul.f32 %v11545_v56, %v13903_v35  ;;  %v2114_v7 = vsel %vm889_vm3, %v2111_v39, %v2113_v23  ;;  %v2729_v29 = vrot.slane %v2488_v25, 1  ;;  %v13992_v23 = vld [vmem:[%s17810_s0 + $0x2b8] sm:$0xff]  ;;  %v13997_v25 = vld [vmem:[%s17810_s0 + $0x2c0] sm:$0xff] }
 0x220   :  { %v4618_v15 = vmax.f32 %v13810_v59, %v13903_v35  ;;  %v4654_v49 = vmax.f32 %v13840_v46, %v13934_v11  ;;  %v2878_v34 = vadd.f32 %v2728_v5, %v2394_v24  ;;  %v1163_v14 = vadd.f32 %v1014_v54, %v678_v37 }
 0x221   :  { %v3213_v26 = vrot.slane %v2972_v47, 2  ;;  %v4866_v0 = vrot.slane %v4617_v9, 1  ;;  %v2730_v19 = vsel %vm404_vm2, %v2727_v30, %v2729_v29  ;;  %v194_v63 = vmul.f32 %v11481_v16, %v13805_v48 }
 0x222   :  { %v4867_v43 = vrot.slane %v4618_v15, 1  ;;  %v4869_v12 = vrot.slane %v4654_v49, 1  ;;  %v3362_v28 = vadd.f32 %v3212_v38, %v2878_v34  ;;  %v1295_v39 = vadd.f32 %v1231_v42, %v1163_v14 }
 0x223   :  { %v287_v61 = vmul.f32 %v11483_v17, %v13805_v48  ;;  %v13961_v6 = vmul.f32 %v11483_v17, %v13810_v59  ;;  %v772_v30 = vmul.f32 %v11485_v18, %v13805_v48  ;;  %v13969_v53 = vmul.f32 %v11485_v18, %v13810_v59 }
 0x224   :  { %v4868_v60 = vsel %vm404_vm2, %v4866_v0, %v4867_v43  ;;  %v4870_v45 = vsel %vm404_vm2, %v4867_v43, %v4869_v12  ;;  %10989 = vmatprep.mubr.msk.f32.mxu1 %vm3379_vm1, %v3362_v28  ;;  %v1779_v51 = vadd.f32 %v1630_v33, %v1295_v39  ;;  %v3214_v58 = vsel %vm889_vm3, %v3211_v55, %v3213_v26 }
 0x225   :  { %v5007_v31 = vmax.f32 %v4617_v9, %v4868_v60  ;;  %v5008_v44 = vmax.f32 %v4618_v15, %v4870_v45  ;;  %v530_v40 = vrot.slane %v287_v61, 1  ;;  %v531_v1 = vrot.slane %v13961_v6, 1 }
 0x226   :  { %v1015_v5 = vrot.slane %v772_v30, 2  ;;  %v1016_v57 = vrot.slane %v13969_v53, 2  ;;  %v2263_v62 = vadd.f32 %v2114_v7, %v1779_v51  ;;  %v1389_v48 = vmul.f32 %v11492_v21, %v13898_v4 }
 0x227   :  { %5606 = vst.msk [vmem:[#allocation3 + $0x2a0] sm:$0xfe] %vm5559_vm4, %v5007_v31  ;;  %v1390_v38 = vmul.f32 %v11492_v21, %v13903_v35  ;;  %v1873_v32 = vmul.f32 %v11494_v22, %v13898_v4  ;;  %v532_v55 = vsel %vm404_vm2, %v530_v40, %v531_v1  ;;  %v1232_v42 = vmul.f32 %v11490_v20, %v13898_v4 }
 0x228   :  { %5607 = vst.msk [vmem:[#allocation3 + $0x2a8] sm:$0xff] %vm3379_vm1, %v5008_v44  ;;  %v1017_v41 = vsel %vm889_vm3, %v1015_v5, %v1016_v57  ;;  %v1874_v36 = vmul.f32 %v11494_v22, %v13903_v35  ;;  %v2395_v10 = vadd.f32 %v2331_v13, %v2263_v62  ;;  %v679_v52 = vadd.f32 %v532_v55, %v194_v63 }
 0x229   :  { %v1631_v54 = vrot.slane %v1389_v48, 1  ;;  %v1632_v47 = vrot.slane %v1390_v38, 1  ;;  %v2115_v9 = vrot.slane %v1873_v32, 2  ;;  %v2489_v37 = vmul.f32 %v11504_v27, %v13992_v23 }
 0x22a   :  { %v2116_v24 = vrot.slane %v1874_v36, 2  ;;  %v2490_v33 = vmul.f32 %v11504_v27, %v13997_v25  ;;  %v2879_v13 = vadd.f32 %v2730_v19, %v2395_v10  ;;  %v1164_v7 = vadd.f32 %v1017_v41, %v679_v52 }
 0x22b   :  { %v2332_v29 = vmul.f32 %v11545_v56, %v13992_v23  ;;  %v2973_v15 = vmul.f32 %v11533_v50, %v13992_v23  ;;  %v1633_v49 = vsel %vm404_vm2, %v1631_v54, %v1632_v47  ;;  %v2731_v34 = vrot.slane %v2489_v37, 1 }
 0x22c   :  { %v2732_v14 = vrot.slane %v2490_v33, 1  ;;  %v2974_v26 = vmul.f32 %v11533_v50, %v13997_v25  ;;  %v3363_v0 = vadd.f32 %v3214_v58, %v2879_v13  ;;  %v1296_v43 = vadd.f32 %v1232_v42, %v1164_v7 }
 0x22d   :  { %v2117_v12 = vsel %vm889_vm3, %v2115_v9, %v2116_v24  ;;  %v3215_v63 = vrot.slane %v2973_v15, 2  ;;  %v195_v28 = vmul.f32 %v11481_v16, %v13810_v59  ;;  %v289_v39 = vmul.f32 %v11483_v17, %v13840_v46  ;;  %v14027_v59 = vld [vmem:[%s17810_s0 + $0x2c8] sm:$0x3] }
 0x22e   :  { %v3216_v19 = vrot.slane %v2974_v26, 2  ;;  %v774_v61 = vmul.f32 %v11485_v18, %v13840_v46  ;;  %10990 = vmatmul.mubr.msk.f32.vlgmr.msra.gmra.mxu1 %vm3379_vm1, %v3363_v0  ;;  %v1780_v6 = vadd.f32 %v1633_v49, %v1296_v43  ;;  %v2733_v60 = vsel %vm404_vm2, %v2731_v34, %v2732_v14 }
 0x22f   :  { %v1391_v45 = vmul.f32 %v11492_v21, %v13934_v11  ;;  %v1875_v30 = vmul.f32 %v11494_v22, %v13934_v11  ;;  %v533_v51 = vrot.slane %v289_v39, 1  ;;  %v1233_v31 = vmul.f32 %v11490_v20, %v13903_v35 }
 0x230   :  { %v3217_v53 = vsel %vm889_vm3, %v3215_v63, %v3216_v19  ;;  %v1018_v46 = vrot.slane %v774_v61, 2  ;;  %v2264_v44 = vadd.f32 %v2117_v12, %v1780_v6  ;;  %v2491_v5 = vmul.f32 %v11504_v27, %v14027_v59 }
 0x231   :  { %v1634_v40 = vrot.slane %v1391_v45, 1  ;;  %v2118_v58 = vrot.slane %v1875_v30, 2  ;;  %v534_v62 = vsel %vm404_vm2, %v531_v1, %v533_v51  ;;  %v2975_v38 = vmul.f32 %v11533_v50, %v14027_v59 }
 0x232   :  { %v1019_v48 = vsel %vm889_vm3, %v1016_v57, %v1018_v46  ;;  %v4619_v32 = vmax.f32 %v13898_v4, %v13992_v23  ;;  %v2396_v55 = vadd.f32 %v2332_v29, %v2264_v44  ;;  %v680_v41 = vadd.f32 %v534_v62, %v195_v28 }
 0x233   :  { %v1635_v42 = vsel %vm404_vm2, %v1632_v47, %v1634_v40  ;;  %v2333_v36 = vmul.f32 %v11545_v56, %v13997_v25  ;;  %v2119_v10 = vsel %vm889_vm3, %v2116_v24, %v2118_v58  ;;  %v2734_v52 = vrot.slane %v2491_v5, 1  ;;  %v14085_v58 = vld [vmem:[%s17810_s0 + $0x2d0] sm:$0xff]  ;;  %v14090_v5 = vld [vmem:[%s17810_s0 + $0x2d8] sm:$0xff] }
 0x234   :  { %v4620_v1 = vmax.f32 %v13903_v35, %v13997_v25  ;;  %v4655_v57 = vmax.f32 %v13934_v11, %v14027_v59  ;;  %v2880_v54 = vadd.f32 %v2733_v60, %v2396_v55  ;;  %v1165_v9 = vadd.f32 %v1019_v48, %v680_v41 }
 0x235   :  { %v3218_v37 = vrot.slane %v2975_v38, 2  ;;  %v4871_v33 = vrot.slane %v4619_v32, 1  ;;  %v2735_v13 = vsel %vm404_vm2, %v2732_v14, %v2734_v52  ;;  %v196_v29 = vmul.f32 %v11481_v16, %v13898_v4 }
 0x236   :  { %v4872_v7 = vrot.slane %v4620_v1, 1  ;;  %v4874_v47 = vrot.slane %v4655_v57, 1  ;;  %v3364_v15 = vadd.f32 %v3217_v53, %v2880_v54  ;;  %v1297_v24 = vadd.f32 %v1233_v31, %v1165_v9 }
 0x237   :  { %v290_v49 = vmul.f32 %v11483_v17, %v13898_v4  ;;  %v14054_v34 = vmul.f32 %v11483_v17, %v13903_v35  ;;  %v775_v14 = vmul.f32 %v11485_v18, %v13898_v4  ;;  %v14062_v43 = vmul.f32 %v11485_v18, %v13903_v35 }
 0x238   :  { %v4873_v26 = vsel %vm404_vm2, %v4871_v33, %v4872_v7  ;;  %v4875_v0 = vsel %vm404_vm2, %v4872_v7, %v4874_v47  ;;  %10992 = vmatprep.mubr.msk.f32.mxu1 %vm3379_vm1, %v3364_v15  ;;  %v1781_v12 = vadd.f32 %v1635_v42, %v1297_v24  ;;  %v3219_v61 = vsel %vm889_vm3, %v3216_v19, %v3218_v37 }
 0x239   :  { %v5009_v63 = vmax.f32 %v4619_v32, %v4873_v26  ;;  %v5010_v28 = vmax.f32 %v4620_v1, %v4875_v0  ;;  %v535_v39 = vrot.slane %v290_v49, 1  ;;  %v536_v6 = vrot.slane %v14054_v34, 1 }
 0x23a   :  { %v1020_v60 = vrot.slane %v775_v14, 2  ;;  %v1021_v45 = vrot.slane %v14062_v43, 2  ;;  %v2265_v30 = vadd.f32 %v2119_v10, %v1781_v12  ;;  %v1392_v4 = vmul.f32 %v11492_v21, %v13992_v23  ;;  %v14121_v12 = vld [vmem:[%s17810_s0 + $0x2e0] sm:$0x3] }
 0x23b   :  { %5608 = vst.msk [vmem:[#allocation3 + $0x2b8] sm:$0xfe] %vm5559_vm4, %v5009_v63  ;;  %v1393_v53 = vmul.f32 %v11492_v21, %v13997_v25  ;;  %v1876_v51 = vmul.f32 %v11494_v22, %v13992_v23  ;;  %v537_v19 = vsel %vm404_vm2, %v535_v39, %v536_v6  ;;  %v1234_v31 = vmul.f32 %v11490_v20, %v13992_v23 }
 0x23c   :  { %5609 = vst.msk [vmem:[#allocation3 + $0x2c0] sm:$0xff] %vm3379_vm1, %v5010_v28  ;;  %v1022_v46 = vsel %vm889_vm3, %v1020_v60, %v1021_v45  ;;  %v1877_v44 = vmul.f32 %v11494_v22, %v13997_v25  ;;  %v2397_v40 = vadd.f32 %v2333_v36, %v2265_v30  ;;  %v681_v62 = vadd.f32 %v537_v19, %v196_v29 }
 0x23d   :  { %v1636_v48 = vrot.slane %v1392_v4, 1  ;;  %v1637_v38 = vrot.slane %v1393_v53, 1  ;;  %v2120_v32 = vrot.slane %v1876_v51, 2  ;;  %v2492_v41 = vmul.f32 %v11504_v27, %v14085_v58 }
 0x23e   :  { %v2121_v55 = vrot.slane %v1877_v44, 2  ;;  %v2493_v42 = vmul.f32 %v11504_v27, %v14090_v5  ;;  %v2881_v36 = vadd.f32 %v2735_v13, %v2397_v40  ;;  %v1166_v10 = vadd.f32 %v1022_v46, %v681_v62 }
 0x23f   :  { %v2334_v52 = vmul.f32 %v11545_v56, %v14085_v58  ;;  %v2976_v1 = vmul.f32 %v11533_v50, %v14085_v58  ;;  %v1638_v57 = vsel %vm404_vm2, %v1636_v48, %v1637_v38  ;;  %v2736_v54 = vrot.slane %v2492_v41, 1 }
 0x240   :  { %v2737_v9 = vrot.slane %v2493_v42, 1  ;;  %v2977_v37 = vmul.f32 %v11533_v50, %v14090_v5  ;;  %v3365_v33 = vadd.f32 %v3219_v61, %v2881_v36  ;;  %v1298_v7 = vadd.f32 %v1234_v31, %v1166_v10 }
 0x241   :  { %v2122_v47 = vsel %vm889_vm3, %v2120_v32, %v2121_v55  ;;  %v3220_v29 = vrot.slane %v2976_v1, 2  ;;  %v197_v24 = vmul.f32 %v11481_v16, %v13903_v35  ;;  %v292_v49 = vmul.f32 %v11483_v17, %v13934_v11 }
 0x242   :  { %v5663_v13 = vld [vmem:[#allocation3 + $0x2ba] sm:$0x1]  ;;  %v3221_v15 = vrot.slane %v2977_v37, 2  ;;  %v777_v34 = vmul.f32 %v11485_v18, %v13934_v11  ;;  %10993 = vmatmul.mubr.msk.f32.gmra.mxu1 %vm3379_vm1, %v3365_v33  ;;  %v1782_v26 = vadd.f32 %v1638_v57, %v1298_v7  ;;  %v2738_v0 = vsel %vm404_vm2, %v2736_v54, %v2737_v9 }
 0x243   :  { %5701 = vst.msk [vmem:[#allocation3 + $0x2b8] sm:$0x1] %vm5253_vm5, %v5663_v13  ;;  %v1394_v14 = vmul.f32 %v11492_v21, %v14027_v59  ;;  %v1878_v43 = vmul.f32 %v11494_v22, %v14027_v59  ;;  %v538_v11 = vrot.slane %v292_v49, 1  ;;  %v1235_v28 = vmul.f32 %v11490_v20, %v13997_v25 }
 0x244   :  { %v3222_v35 = vsel %vm889_vm3, %v3220_v29, %v3221_v15  ;;  %v1023_v63 = vrot.slane %v777_v34, 2  ;;  %v2266_v39 = vadd.f32 %v2122_v47, %v1782_v26  ;;  %v2494_v30 = vmul.f32 %v11504_v27, %v14121_v12 }
 0x245   :  { %v1639_v61 = vrot.slane %v1394_v14, 1  ;;  %v2123_v60 = vrot.slane %v1878_v43, 2  ;;  %v539_v4 = vsel %vm404_vm2, %v536_v6, %v538_v11  ;;  %v2978_v51 = vmul.f32 %v11533_v50, %v14121_v12 }
 0x246   :  { %v1024_v53 = vsel %vm889_vm3, %v1021_v45, %v1023_v63  ;;  %v4621_v19 = vmax.f32 %v13992_v23, %v14085_v58  ;;  %v2398_v46 = vadd.f32 %v2334_v52, %v2266_v39  ;;  %v682_v31 = vadd.f32 %v539_v4, %v197_v24 }
 0x247   :  { %v1640_v44 = vsel %vm404_vm2, %v1637_v38, %v1639_v61  ;;  %v2335_v40 = vmul.f32 %v11545_v56, %v14090_v5  ;;  %v2124_v62 = vsel %vm889_vm3, %v2121_v55, %v2123_v60  ;;  %v2739_v48 = vrot.slane %v2494_v30, 1  ;;  %v14179_v60 = vld [vmem:[%s17810_s0 + $0x2e8] sm:$0xff]  ;;  %v14184_v30 = vld [vmem:[%s17810_s0 + $0x2f0] sm:$0xff] }
 0x248   :  { %v4622_v6 = vmax.f32 %v13997_v25, %v14090_v5  ;;  %v4656_v45 = vmax.f32 %v14027_v59, %v14121_v12  ;;  %v2882_v32 = vadd.f32 %v2738_v0, %v2398_v46  ;;  %v1167_v41 = vadd.f32 %v1024_v53, %v682_v31 }
 0x249   :  { %v3223_v42 = vrot.slane %v2978_v51, 2  ;;  %v4876_v36 = vrot.slane %v4621_v19, 1  ;;  %v2740_v10 = vsel %vm404_vm2, %v2737_v9, %v2739_v48  ;;  %v198_v1 = vmul.f32 %v11481_v16, %v13992_v23 }
 0x24a   :  { %v4877_v52 = vrot.slane %v4622_v6, 1  ;;  %v4879_v38 = vrot.slane %v4656_v45, 1  ;;  %v3366_v57 = vadd.f32 %v3222_v35, %v2882_v32  ;;  %v1299_v55 = vadd.f32 %v1235_v28, %v1167_v41 }
 0x24b   :  { %v293_v54 = vmul.f32 %v11483_v17, %v13992_v23  ;;  %v14148_v37 = vmul.f32 %v11483_v17, %v13997_v25  ;;  %v778_v9 = vmul.f32 %v11485_v18, %v13992_v23  ;;  %v14156_v47 = vmul.f32 %v11485_v18, %v13997_v25 }
 0x24c   :  { %v4878_v33 = vsel %vm404_vm2, %v4876_v36, %v4877_v52  ;;  %v4880_v7 = vsel %vm404_vm2, %v4877_v52, %v4879_v38  ;;  %10995 = vmatprep.mubr.msk.f32.mxu1 %vm3379_vm1, %v3366_v57  ;;  %v1783_v29 = vadd.f32 %v1640_v44, %v1299_v55  ;;  %v3224_v34 = vsel %vm889_vm3, %v3221_v15, %v3223_v42 }
 0x24d   :  { %v5011_v13 = vmax.f32 %v4621_v19, %v4878_v33  ;;  %v5012_v24 = vmax.f32 %v4622_v6, %v4880_v7  ;;  %v540_v49 = vrot.slane %v293_v54, 1  ;;  %v541_v26 = vrot.slane %v14148_v37, 1 }
 0x24e   :  { %v1025_v0 = vrot.slane %v778_v9, 2  ;;  %v1026_v14 = vrot.slane %v14156_v47, 2  ;;  %v2267_v43 = vadd.f32 %v2124_v62, %v1783_v29  ;;  %v1395_v23 = vmul.f32 %v11492_v21, %v14085_v58 }
 0x24f   :  { %5610 = vst.msk [vmem:[#allocation3 + $0x2d0] sm:$0xfe] %vm5559_vm4, %v5011_v13  ;;  %v1396_v35 = vmul.f32 %v11492_v21, %v14090_v5  ;;  %v1879_v11 = vmul.f32 %v11494_v22, %v14085_v58  ;;  %v542_v15 = vsel %vm404_vm2, %v540_v49, %v541_v26  ;;  %v1236_v28 = vmul.f32 %v11490_v20, %v14085_v58 }
 0x250   :  { %5611 = vst.msk [vmem:[#allocation3 + $0x2d8] sm:$0xff] %vm3379_vm1, %v5012_v24  ;;  %v1027_v63 = vsel %vm889_vm3, %v1025_v0, %v1026_v14  ;;  %v1880_v39 = vmul.f32 %v11494_v22, %v14090_v5  ;;  %v2399_v61 = vadd.f32 %v2335_v40, %v2267_v43  ;;  %v683_v4 = vadd.f32 %v542_v15, %v198_v1 }
 0x251   :  { %v1641_v53 = vrot.slane %v1395_v23, 1  ;;  %v1642_v51 = vrot.slane %v1396_v35, 1  ;;  %v2125_v19 = vrot.slane %v1879_v11, 2  ;;  %v2495_v31 = vmul.f32 %v11504_v27, %v14179_v60 }
 0x252   :  { %v2126_v46 = vrot.slane %v1880_v39, 2  ;;  %v2496_v44 = vmul.f32 %v11504_v27, %v14184_v30  ;;  %v2883_v40 = vadd.f32 %v2740_v10, %v2399_v61  ;;  %v1168_v62 = vadd.f32 %v1027_v63, %v683_v4 }
 0x253   :  { %v2336_v48 = vmul.f32 %v11545_v56, %v14179_v60  ;;  %v2979_v6 = vmul.f32 %v11533_v50, %v14179_v60  ;;  %v1643_v45 = vsel %vm404_vm2, %v1641_v53, %v1642_v51  ;;  %v2741_v32 = vrot.slane %v2495_v31, 1 }
 0x254   :  { %v2742_v41 = vrot.slane %v2496_v44, 1  ;;  %v2980_v42 = vmul.f32 %v11533_v50, %v14184_v30  ;;  %v3367_v36 = vadd.f32 %v3224_v34, %v2883_v40  ;;  %v1300_v52 = vadd.f32 %v1236_v28, %v1168_v62 }
 0x255   :  { %v2127_v38 = vsel %vm889_vm3, %v2125_v19, %v2126_v46  ;;  %v3225_v1 = vrot.slane %v2979_v6, 2  ;;  %v199_v57 = vmul.f32 %v11481_v16, %v13997_v25  ;;  %v295_v55 = vmul.f32 %v11483_v17, %v14027_v59  ;;  %v14214_v25 = vld [vmem:[%s17810_s0 + $0x2f8] sm:$0x3] }
 0x256   :  { %v3226_v10 = vrot.slane %v2980_v42, 2  ;;  %v780_v54 = vmul.f32 %v11485_v18, %v14027_v59  ;;  %10996 = vmatmul.mubr.msk.f32.gmra.mxu1 %vm3379_vm1, %v3367_v36  ;;  %v1784_v37 = vadd.f32 %v1643_v45, %v1300_v52  ;;  %v2743_v33 = vsel %vm404_vm2, %v2741_v32, %v2742_v41 }
 0x257   :  { %v1397_v7 = vmul.f32 %v11492_v21, %v14121_v12  ;;  %v1881_v9 = vmul.f32 %v11494_v22, %v14121_v12  ;;  %v543_v29 = vrot.slane %v295_v55, 1  ;;  %v1237_v13 = vmul.f32 %v11490_v20, %v14090_v5 }
 0x258   :  { %v3227_v47 = vsel %vm889_vm3, %v3225_v1, %v3226_v10  ;;  %v1028_v59 = vrot.slane %v780_v54, 2  ;;  %v2268_v24 = vadd.f32 %v2127_v38, %v1784_v37  ;;  %v2497_v0 = vmul.f32 %v11504_v27, %v14214_v25 }
 0x259   :  { %v1644_v49 = vrot.slane %v1397_v7, 1  ;;  %v2128_v34 = vrot.slane %v1881_v9, 2  ;;  %v544_v43 = vsel %vm404_vm2, %v541_v26, %v543_v29  ;;  %v2981_v35 = vmul.f32 %v11533_v50, %v14214_v25 }
 0x25a   :  { %v1029_v23 = vsel %vm889_vm3, %v1026_v14, %v1028_v59  ;;  %v4623_v11 = vmax.f32 %v14085_v58, %v14179_v60  ;;  %v2400_v15 = vadd.f32 %v2336_v48, %v2268_v24  ;;  %v684_v63 = vadd.f32 %v544_v43, %v199_v57 }
 0x25b   :  { %v1645_v28 = vsel %vm404_vm2, %v1642_v51, %v1644_v49  ;;  %v2337_v39 = vmul.f32 %v11545_v56, %v14184_v30  ;;  %v2129_v61 = vsel %vm889_vm3, %v2126_v46, %v2128_v34  ;;  %v2744_v4 = vrot.slane %v2497_v0, 1  ;;  %v14272_v34 = vld [vmem:[%s17810_s0 + $0x300] sm:$0xff]  ;;  %v14277_v0 = vld [vmem:[%s17810_s0 + $0x308] sm:$0xff] }
 0x25c   :  { %v4624_v26 = vmax.f32 %v14090_v5, %v14184_v30  ;;  %v4657_v14 = vmax.f32 %v14121_v12, %v14214_v25  ;;  %v2884_v53 = vadd.f32 %v2743_v33, %v2400_v15  ;;  %v1169_v19 = vadd.f32 %v1029_v23, %v684_v63 }
 0x25d   :  { %v3228_v31 = vrot.slane %v2981_v35, 2  ;;  %v4881_v44 = vrot.slane %v4623_v11, 1  ;;  %v2745_v40 = vsel %vm404_vm2, %v2742_v41, %v2744_v4  ;;  %v200_v48 = vmul.f32 %v11481_v16, %v14085_v58 }
 0x25e   :  { %v4882_v62 = vrot.slane %v4624_v26, 1  ;;  %v4884_v51 = vrot.slane %v4657_v14, 1  ;;  %v3368_v6 = vadd.f32 %v3227_v47, %v2884_v53  ;;  %v1301_v46 = vadd.f32 %v1237_v13, %v1169_v19 }
 0x25f   :  { %v296_v45 = vmul.f32 %v11483_v17, %v14085_v58  ;;  %v14241_v32 = vmul.f32 %v11483_v17, %v14090_v5  ;;  %v781_v41 = vmul.f32 %v11485_v18, %v14085_v58  ;;  %v14249_v52 = vmul.f32 %v11485_v18, %v14090_v5 }
 0x260   :  { %v4883_v42 = vsel %vm404_vm2, %v4881_v44, %v4882_v62  ;;  %v4885_v36 = vsel %vm404_vm2, %v4882_v62, %v4884_v51  ;;  %10998 = vmatprep.mubr.msk.f32.mxu1 %vm3379_vm1, %v3368_v6  ;;  %v1785_v38 = vadd.f32 %v1645_v28, %v1301_v46  ;;  %v3229_v54 = vsel %vm889_vm3, %v3226_v10, %v3228_v31 }
 0x261   :  { %v5013_v1 = vmax.f32 %v4623_v11, %v4883_v42  ;;  %v5014_v57 = vmax.f32 %v4624_v26, %v4885_v36  ;;  %v545_v55 = vrot.slane %v296_v45, 1  ;;  %v546_v37 = vrot.slane %v14241_v32, 1 }
 0x262   :  { %v1030_v33 = vrot.slane %v781_v41, 2  ;;  %v1031_v7 = vrot.slane %v14249_v52, 2  ;;  %v2269_v9 = vadd.f32 %v2129_v61, %v1785_v38  ;;  %v1398_v58 = vmul.f32 %v11492_v21, %v14179_v60  ;;  %v14308_v38 = vld [vmem:[%s17810_s0 + $0x310] sm:$0x3] }
 0x263   :  { %5612 = vst.msk [vmem:[#allocation3 + $0x2e8] sm:$0xfe] %vm5559_vm4, %v5013_v1  ;;  %v1399_v47 = vmul.f32 %v11492_v21, %v14184_v30  ;;  %v1882_v29 = vmul.f32 %v11494_v22, %v14179_v60  ;;  %v547_v10 = vsel %vm404_vm2, %v545_v55, %v546_v37  ;;  %v1238_v13 = vmul.f32 %v11490_v20, %v14179_v60 }
 0x264   :  { %5613 = vst.msk [vmem:[#allocation3 + $0x2f0] sm:$0xff] %vm3379_vm1, %v5014_v57  ;;  %v1032_v59 = vsel %vm889_vm3, %v1030_v33, %v1031_v7  ;;  %v1883_v24 = vmul.f32 %v11494_v22, %v14184_v30  ;;  %v2401_v49 = vadd.f32 %v2337_v39, %v2269_v9  ;;  %v685_v43 = vadd.f32 %v547_v10, %v200_v48 }
 0x265   :  { %v1646_v23 = vrot.slane %v1398_v58, 1  ;;  %v1647_v35 = vrot.slane %v1399_v47, 1  ;;  %v2130_v11 = vrot.slane %v1882_v29, 2  ;;  %v2498_v63 = vmul.f32 %v11504_v27, %v14272_v34 }
 0x266   :  { %v2131_v15 = vrot.slane %v1883_v24, 2  ;;  %v2499_v28 = vmul.f32 %v11504_v27, %v14277_v0  ;;  %v2885_v39 = vadd.f32 %v2745_v40, %v2401_v49  ;;  %v1170_v61 = vadd.f32 %v1032_v59, %v685_v43 }
 0x267   :  { %v2338_v4 = vmul.f32 %v11545_v56, %v14272_v34  ;;  %v2982_v26 = vmul.f32 %v11533_v50, %v14272_v34  ;;  %v1648_v14 = vsel %vm404_vm2, %v1646_v23, %v1647_v35  ;;  %v2746_v53 = vrot.slane %v2498_v63, 1 }
 0x268   :  { %v2747_v19 = vrot.slane %v2499_v28, 1  ;;  %v2983_v31 = vmul.f32 %v11533_v50, %v14277_v0  ;;  %v3369_v44 = vadd.f32 %v3229_v54, %v2885_v39  ;;  %v1302_v62 = vadd.f32 %v1238_v13, %v1170_v61 }
 0x269   :  { %v2132_v51 = vsel %vm889_vm3, %v2130_v11, %v2131_v15  ;;  %v3230_v48 = vrot.slane %v2982_v26, 2  ;;  %v201_v46 = vmul.f32 %v11481_v16, %v14090_v5  ;;  %v298_v45 = vmul.f32 %v11483_v17, %v14121_v12 }
 0x26a   :  { %v5665_v40 = vld [vmem:[#allocation3 + $0x2ea] sm:$0x1]  ;;  %v3231_v6 = vrot.slane %v2983_v31, 2  ;;  %v783_v32 = vmul.f32 %v11485_v18, %v14121_v12  ;;  %10999 = vmatmul.mubr.msk.f32.gmra.mxu1 %vm3379_vm1, %v3369_v44  ;;  %v1786_v42 = vadd.f32 %v1648_v14, %v1302_v62  ;;  %v2748_v36 = vsel %vm404_vm2, %v2746_v53, %v2747_v19 }
 0x26b   :  { %5703 = vst.msk [vmem:[#allocation3 + $0x2e8] sm:$0x1] %vm5253_vm5, %v5665_v40  ;;  %v1400_v41 = vmul.f32 %v11492_v21, %v14214_v25  ;;  %v1884_v52 = vmul.f32 %v11494_v22, %v14214_v25  ;;  %v548_v12 = vrot.slane %v298_v45, 1  ;;  %v1239_v57 = vmul.f32 %v11490_v20, %v14184_v30 }
 0x26c   :  { %v3232_v5 = vsel %vm889_vm3, %v3230_v48, %v3231_v6  ;;  %v1033_v1 = vrot.slane %v783_v32, 2  ;;  %v2270_v55 = vadd.f32 %v2132_v51, %v1786_v42  ;;  %v2500_v9 = vmul.f32 %v11504_v27, %v14308_v38  ;;  %v14346_v32 = vpop.f32.mrf.mxu0 }
 0x26d   :  { %v1649_v54 = vrot.slane %v1400_v41, 1  ;;  %v2133_v33 = vrot.slane %v1884_v52, 2  ;;  %v549_v58 = vsel %vm404_vm2, %v546_v37, %v548_v12  ;;  %v2984_v29 = vmul.f32 %v11533_v50, %v14308_v38 }
 0x26e   :  { %v1034_v47 = vsel %vm889_vm3, %v1031_v7, %v1033_v1  ;;  %v4625_v10 = vmax.f32 %v14179_v60, %v14272_v34  ;;  %v2402_v59 = vadd.f32 %v2338_v4, %v2270_v55  ;;  %v686_v13 = vadd.f32 %v549_v58, %v201_v46  ;;  %v14375_v58 = vld [vmem:[%s17810_s0 + $0x320] sm:$0xff] }
 0x26f   :  { %v1650_v24 = vsel %vm404_vm2, %v1647_v35, %v1649_v54  ;;  %v2339_v49 = vmul.f32 %v11545_v56, %v14277_v0  ;;  %v2134_v43 = vsel %vm889_vm3, %v2131_v15, %v2133_v33  ;;  %v2749_v23 = vrot.slane %v2500_v9, 1  ;;  %v14370_v9 = vld [vmem:[%s17810_s0 + $0x318] sm:$0xff] }
 0x270   :  { %v4626_v37 = vmax.f32 %v14184_v30, %v14277_v0  ;;  %v4658_v7 = vmax.f32 %v14214_v25, %v14308_v38  ;;  %v2886_v11 = vadd.f32 %v2748_v36, %v2402_v59  ;;  %v1171_v63 = vadd.f32 %v1034_v47, %v686_v13  ;;  %v14377_v59 = vpop.f32.mrf.mxu0 }
 0x271   :  { %v3233_v28 = vrot.slane %v2984_v29, 2  ;;  %v4886_v39 = vrot.slane %v4625_v10, 1  ;;  %v2750_v61 = vsel %vm404_vm2, %v2747_v19, %v2749_v23  ;;  %v202_v26 = vmul.f32 %v11481_v16, %v14179_v60 }
 0x272   :  { %v4887_v4 = vrot.slane %v4626_v37, 1  ;;  %v4889_v35 = vrot.slane %v4658_v7, 1  ;;  %v3370_v14 = vadd.f32 %v3232_v5, %v2886_v11  ;;  %v1303_v15 = vadd.f32 %v1239_v57, %v1171_v63 }
 0x273   :  { %v299_v53 = vmul.f32 %v11483_v17, %v14179_v60  ;;  %v14335_v31 = vmul.f32 %v11483_v17, %v14184_v30  ;;  %v784_v19 = vmul.f32 %v11485_v18, %v14179_v60  ;;  %v14343_v51 = vmul.f32 %v11485_v18, %v14184_v30 }
 0x274   :  { %v4888_v44 = vsel %vm404_vm2, %v4886_v39, %v4887_v4  ;;  %v4890_v62 = vsel %vm404_vm2, %v4887_v4, %v4889_v35  ;;  %11001 = vmatprep.mubr.msk.f32.mxu1 %vm3379_vm1, %v3370_v14  ;;  %v1787_v48 = vadd.f32 %v1650_v24, %v1303_v15  ;;  %v3234_v42 = vsel %vm889_vm3, %v3231_v6, %v3233_v28 }
 0x275   :  { %v5015_v40 = vmax.f32 %v4625_v10, %v4888_v44  ;;  %v5016_v46 = vmax.f32 %v4626_v37, %v4890_v62  ;;  %v550_v45 = vrot.slane %v299_v53, 1  ;;  %v551_v36 = vrot.slane %v14335_v31, 1 }
 0x276   :  { %v1035_v41 = vrot.slane %v784_v19, 2  ;;  %v1036_v52 = vrot.slane %v14343_v51, 2  ;;  %v2271_v60 = vadd.f32 %v2134_v43, %v1787_v48  ;;  %v1401_v5 = vmul.f32 %v11492_v21, %v14272_v34 }
 0x277   :  { %5614 = vst.msk [vmem:[#allocation3 + $0x300] sm:$0xfe] %vm5559_vm4, %v5015_v40  ;;  %5632 = vst.msk [vmem:[#allocation3 + $0x360] sm:$0xfe] %vm5559_vm4, %v5015_v40  ;;  %v1402_v6 = vmul.f32 %v11492_v21, %v14277_v0  ;;  %v1885_v12 = vmul.f32 %v11494_v22, %v14272_v34  ;;  %v552_v1 = vsel %vm404_vm2, %v550_v45, %v551_v36 }
 0x278   :  { %5615 = vst.msk [vmem:[#allocation3 + $0x308] sm:$0xff] %vm3379_vm1, %v5016_v46  ;;  %5633 = vst.msk [vmem:[#allocation3 + $0x368] sm:$0xff] %vm3379_vm1, %v5016_v46  ;;  %v1037_v57 = vsel %vm889_vm3, %v1035_v41, %v1036_v52  ;;  %v1240_v55 = vmul.f32 %v11490_v20, %v14272_v34  ;;  %v1886_v54 = vmul.f32 %v11494_v22, %v14277_v0  ;;  %v1651_v29 = vrot.slane %v1401_v5, 1 }
 0x279   :  { %v2403_v33 = vadd.f32 %v2339_v49, %v2271_v60  ;;  %v687_v47 = vadd.f32 %v552_v1, %v202_v26  ;;  %v1652_v10 = vrot.slane %v1402_v6, 1  ;;  %v2135_v13 = vrot.slane %v1885_v12, 2 }
 0x27a   :  { %v2136_v24 = vrot.slane %v1886_v54, 2  ;;  %v2501_v49 = vmul.f32 %v11504_v27, %v14370_v9  ;;  %v2502_v43 = vmul.f32 %v11504_v27, %v14375_v58  ;;  %v2340_v7 = vmul.f32 %v11545_v56, %v14370_v9 }
 0x27b   :  { %v2887_v23 = vadd.f32 %v2750_v61, %v2403_v33  ;;  %v1172_v37 = vadd.f32 %v1037_v57, %v687_v47  ;;  %v2985_v11 = vmul.f32 %v11533_v50, %v14370_v9  ;;  %v1653_v63 = vsel %vm404_vm2, %v1651_v29, %v1652_v10  ;;  %v14391_v61 = vpop.f32.mrf.mxu0 }
 0x27c   :  { %v2751_v28 = vrot.slane %v2501_v49, 1  ;;  %v2752_v39 = vrot.slane %v2502_v43, 1  ;;  %v2986_v4 = vmul.f32 %v11533_v50, %v14375_v58  ;;  %v2137_v14 = vsel %vm889_vm3, %v2135_v13, %v2136_v24 }
 0x27d   :  { %v3371_v35 = vadd.f32 %v3234_v42, %v2887_v23  ;;  %v1304_v26 = vadd.f32 %v1240_v55, %v1172_v37  ;;  %v3235_v15 = vrot.slane %v2985_v11, 2  ;;  %v203_v31 = vmul.f32 %v11481_v16, %v14184_v30  ;;  %v14409_v30 = vld [vmem:[%s17810_s0 + $0x328] sm:$0x3]  ;;  %v14415_v12 = vpop.f32.mrf.mxu0 }
 0x27e   :  { %v3236_v53 = vrot.slane %v2986_v4, 2  ;;  %v301_v44 = vmul.f32 %v11483_v17, %v14214_v25  ;;  %v786_v62 = vmul.f32 %v11485_v18, %v14214_v25  ;;  %v2753_v51 = vsel %vm404_vm2, %v2751_v28, %v2752_v39 }
 0x27f   :  { %11002 = vmatmul.mubr.msk.f32.gmra.mxu1 %vm3379_vm1, %v3371_v35  ;;  %v1788_v19 = vadd.f32 %v1653_v63, %v1304_v26  ;;  %v1403_v48 = vmul.f32 %v11492_v21, %v14308_v38  ;;  %v1887_v40 = vmul.f32 %v11494_v22, %v14308_v38  ;;  %v1241_v42 = vmul.f32 %v11490_v20, %v14277_v0 }
 0x280   :  { %v3237_v46 = vsel %vm889_vm3, %v3235_v15, %v3236_v53  ;;  %v553_v45 = vrot.slane %v301_v44, 1  ;;  %v1038_v25 = vrot.slane %v786_v62, 2  ;;  %v2503_v6 = vmul.f32 %v11504_v27, %v14409_v30 }
 0x281   :  { %v2272_v41 = vadd.f32 %v2137_v14, %v1788_v19  ;;  %v1654_v60 = vrot.slane %v1403_v48, 1  ;;  %v2138_v5 = vrot.slane %v1887_v40, 2  ;;  %v2987_v55 = vmul.f32 %v11533_v50, %v14409_v30 }
 0x282   :  { %v554_v1 = vsel %vm404_vm2, %v551_v36, %v553_v45  ;;  %v1039_v57 = vsel %vm889_vm3, %v1036_v52, %v1038_v25  ;;  %v4627_v54 = vmax.f32 %v14272_v34, %v14370_v9  ;;  %v2341_v13 = vmul.f32 %v11545_v56, %v14375_v58 }
 0x283   :  { %v2404_v33 = vadd.f32 %v2340_v7, %v2272_v41  ;;  %v688_v47 = vadd.f32 %v554_v1, %v203_v31  ;;  %v1655_v29 = vsel %vm404_vm2, %v1652_v10, %v1654_v60  ;;  %v2139_v49 = vsel %vm889_vm3, %v2136_v24, %v2138_v5  ;;  %v14431_v7 = vpop.f32.mrf.mxu0 }
 0x284   :  { %v2754_v43 = vrot.slane %v2503_v6, 1  ;;  %v4628_v36 = vmax.f32 %v14277_v0, %v14375_v58  ;;  %v4659_v52 = vmax.f32 %v14308_v38, %v14409_v30  ;;  %v3238_v11 = vrot.slane %v2987_v55, 2 }
 0x285   :  { %v2888_v23 = vadd.f32 %v2753_v51, %v2404_v33  ;;  %v1173_v37 = vadd.f32 %v1039_v57, %v688_v47  ;;  %v4891_v63 = vrot.slane %v4627_v54, 1  ;;  %v204_v24 = vmul.f32 %v11481_v16, %v14272_v34  ;;  %v14481_v33 = vld [vmem:[%s17810_s0 + $0x330] sm:$0xff]  ;;  %v14486_v47 = vld [vmem:[%s17810_s0 + $0x338] sm:$0xff] }
 0x286   :  { %v2755_v10 = vsel %vm404_vm2, %v2752_v39, %v2754_v43  ;;  %v4892_v28 = vrot.slane %v4628_v36, 1  ;;  %v4894_v4 = vrot.slane %v4659_v52, 1  ;;  %v302_v14 = vmul.f32 %v11483_v17, %v14272_v34 }
 0x287   :  { %v3372_v35 = vadd.f32 %v3237_v46, %v2888_v23  ;;  %v1305_v26 = vadd.f32 %v1241_v42, %v1173_v37  ;;  %v14440_v15 = vmul.f32 %v11483_v17, %v14277_v0  ;;  %v787_v39 = vmul.f32 %v11485_v18, %v14272_v34  ;;  %v14451_v46 = vpop.f32.mrf.mxu0 }
 0x288   :  { %v4893_v31 = vsel %vm404_vm2, %v4891_v63, %v4892_v28  ;;  %v4895_v44 = vsel %vm404_vm2, %v4892_v28, %v4894_v4  ;;  %v14448_v62 = vmul.f32 %v11485_v18, %v14277_v0  ;;  %v555_v40 = vrot.slane %v302_v14, 1 }
 0x289   :  { %11004 = vmatprep.mubr.msk.f32.mxu1 %vm3379_vm1, %v3372_v35  ;;  %v1789_v19 = vadd.f32 %v1655_v29, %v1305_v26  ;;  %v5017_v51 = vmax.f32 %v4627_v54, %v4893_v31  ;;  %v5018_v48 = vmax.f32 %v4628_v36, %v4895_v44  ;;  %v3239_v45 = vsel %vm889_vm3, %v3236_v53, %v3238_v11  ;;  %v14489_v36 = vpop.f32.mrf.mxu0 }
 0x28a   :  { %v556_v25 = vrot.slane %v14440_v15, 1  ;;  %v1040_v42 = vrot.slane %v787_v39, 2  ;;  %v1041_v41 = vrot.slane %v14448_v62, 2  ;;  %v1404_v60 = vmul.f32 %v11492_v21, %v14370_v9 }
 0x28b   :  { %v2273_v34 = vadd.f32 %v2139_v49, %v1789_v19  ;;  %5616 = vst.msk [vmem:[#allocation3 + $0x318] sm:$0xfe] %vm5559_vm4, %v5017_v51  ;;  %5627 = vst.msk [vmem:[#allocation3 + $0x348] sm:$0xfe] %vm5559_vm4, %v5017_v51  ;;  %v14464_v53 = vmul.f32 %v11492_v21, %v14375_v58  ;;  %v1888_v5 = vmul.f32 %v11494_v22, %v14370_v9  ;;  %v14508_v19 = vpop.f32.mrf.mxu0  ;;  %v3964_v3 = vsel %vm3379_vm1, %v14415_v12, 0.0 }
 0x28c   :  { %5617 = vst.msk [vmem:[#allocation3 + $0x320] sm:$0xff] %vm3379_vm1, %v5018_v48  ;;  %5628 = vst.msk [vmem:[#allocation3 + $0x350] sm:$0xff] %vm3379_vm1, %v5018_v48  ;;  %v557_v6 = vsel %vm404_vm2, %v555_v40, %v556_v25  ;;  %v1042_v1 = vsel %vm889_vm3, %v1040_v42, %v1041_v41  ;;  %v1242_v57 = vmul.f32 %v11490_v20, %v14370_v9  ;;  %v1656_v49 = vrot.slane %v1404_v60, 1 }
 0x28d   :  { %v1889_v55 = vmul.f32 %v11494_v22, %v14375_v58  ;;  %v2405_v54 = vadd.f32 %v2341_v13, %v2273_v34  ;;  %v689_v29 = vadd.f32 %v557_v6, %v204_v24  ;;  %v1657_v43 = vrot.slane %v14464_v53, 1 }
 0x28e   :  { %v2140_v52 = vrot.slane %v1888_v5, 2  ;;  %v2504_v13 = vmul.f32 %v11504_v27, %v14481_v33  ;;  %v2505_v37 = vmul.f32 %v11504_v27, %v14486_v47  ;;  %v2342_v28 = vmul.f32 %v11545_v56, %v14481_v33 }
 0x28f   :  { %v2141_v23 = vrot.slane %v1889_v55, 2  ;;  %v2889_v11 = vadd.f32 %v2755_v10, %v2405_v54  ;;  %v1174_v63 = vadd.f32 %v1042_v1, %v689_v29  ;;  %v2988_v4 = vmul.f32 %v11533_v50, %v14481_v33  ;;  %v14526_v1 = vld [vmem:[%s17810_s0 + $0x340] sm:$0x3] }
 0x290   :  { %v1658_v24 = vsel %vm404_vm2, %v1656_v49, %v1657_v43  ;;  %v2756_v35 = vrot.slane %v2504_v13, 1  ;;  %v2757_v26 = vrot.slane %v2505_v37, 1  ;;  %v14502_v14 = vmul.f32 %v11533_v50, %v14486_v47  ;;  %v14539_v13 = vpop.f32.mrf.mxu0 }
 0x291   :  { %v3373_v31 = vadd.f32 %v3239_v45, %v2889_v11  ;;  %v1306_v44 = vadd.f32 %v1242_v57, %v1174_v63  ;;  %v3240_v39 = vrot.slane %v2988_v4, 2  ;;  %v14506_v10 = vmax.f32 %v14370_v9, %v14481_v33 }
 0x292   :  { %v5667_v51 = vld [vmem:[#allocation3 + $0x31a] sm:$0x1]  ;;  %v5669_v48 = vld [vmem:[#allocation3 + $0x34a] sm:$0x1]  ;;  %v2142_v40 = vsel %vm889_vm3, %v2140_v52, %v2141_v23  ;;  %v2758_v42 = vsel %vm404_vm2, %v2756_v35, %v2757_v26  ;;  %v3241_v34 = vrot.slane %v14502_v14, 2  ;;  %v304_v60 = vmul.f32 %v11483_v17, %v14308_v38  ;;  %v14557_v62 = vpop.f32.mrf.mxu0 }
 0x293   :  { %11005 = vmatmul.mubr.msk.f32.gmra.mxu1 %vm3379_vm1, %v3373_v31  ;;  %5705 = vst.msk [vmem:[#allocation3 + $0x318] sm:$0x1] %vm5253_vm5, %v5667_v51  ;;  %5707 = vst.msk [vmem:[#allocation3 + $0x348] sm:$0x1] %vm5253_vm5, %v5669_v48  ;;  %v1790_v45 = vadd.f32 %v1658_v24, %v1306_v44  ;;  %v4896_v53 = vrot.slane %v14506_v10, 1  ;;  %v205_v5 = vmul.f32 %v11481_v16, %v14277_v0 }
 0x294   :  { %v789_v6 = vmul.f32 %v11485_v18, %v14308_v38  ;;  %v558_v57 = vrot.slane %v304_v60, 1  ;;  %v1243_v55 = vmul.f32 %v11490_v20, %v14375_v58  ;;  %v1406_v54 = vmul.f32 %v11492_v21, %v14409_v30 }
 0x295   :  { %v1890_v29 = vmul.f32 %v11494_v22, %v14409_v30  ;;  %v2274_v49 = vadd.f32 %v2142_v40, %v1790_v45  ;;  %v3242_v0 = vsel %vm889_vm3, %v3240_v39, %v3241_v34  ;;  %v2506_v52 = vmul.f32 %v11504_v27, %v14526_v1 }
 0x296   :  { %v1043_v38 = vrot.slane %v789_v6, 2  ;;  %v559_v37 = vsel %vm404_vm2, %v556_v25, %v558_v57  ;;  %v1659_v11 = vrot.slane %v1406_v54, 1  ;;  %v2990_v4 = vmul.f32 %v11533_v50, %v14526_v1 }
 0x297   :  { %v2143_v63 = vrot.slane %v1890_v29, 2  ;;  %v2406_v24 = vadd.f32 %v2342_v28, %v2274_v49  ;;  %v690_v35 = vadd.f32 %v559_v37, %v205_v5  ;;  %v2759_v44 = vrot.slane %v2506_v52, 1  ;;  %v14579_v37 = vpop.f32.mrf.mxu0 }
 0x298   :  { %v1044_v31 = vsel %vm889_vm3, %v1041_v41, %v1043_v38  ;;  %v1660_v39 = vsel %vm404_vm2, %v1657_v43, %v1659_v11  ;;  %v2343_v15 = vmul.f32 %v11545_v56, %v14486_v47  ;;  %v4630_v25 = vmax.f32 %v14375_v58, %v14486_v47 }
 0x299   :  { %v2144_v51 = vsel %vm889_vm3, %v2141_v23, %v2143_v63  ;;  %v2890_v48 = vadd.f32 %v2758_v42, %v2406_v24  ;;  %v1175_v40 = vadd.f32 %v1044_v31, %v690_v35  ;;  %v3243_v60 = vrot.slane %v2990_v4, 2  ;;  %v134_v24 = vld [vmem:[%s17810_s0 + $0x348] sm:$0xff] }
 0x29a   :  { %v4660_v28 = vmax.f32 %v14409_v30, %v14526_v1  ;;  %v2760_v41 = vsel %vm404_vm2, %v2757_v26, %v2759_v44  ;;  %v4897_v45 = vrot.slane %v4630_v25, 1  ;;  %v206_v43 = vmul.f32 %v11481_v16, %v14370_v9  ;;  %v135_v44 = vld [vmem:[%s17810_s0 + $0x350] sm:$0xff] }
 0x29b   :  { %v305_v23 = vmul.f32 %v11483_v17, %v14370_v9  ;;  %v3374_v5 = vadd.f32 %v3242_v0, %v2890_v48  ;;  %v1307_v6 = vadd.f32 %v1243_v55, %v1175_v40  ;;  %v14566_v42 = vmul.f32 %v11483_v17, %v14375_v58 }
 0x29c   :  { %v4899_v57 = vrot.slane %v4660_v28, 1  ;;  %v4898_v54 = vsel %vm404_vm2, %v4896_v53, %v4897_v45  ;;  %v790_v26 = vmul.f32 %v11485_v18, %v14370_v9  ;;  %v14573_v49 = vmul.f32 %v11485_v18, %v14375_v58 }
 0x29d   :  { %v560_v29 = vrot.slane %v305_v23, 1  ;;  %11007 = vmatprep.mubr.msk.f32.mxu1 %vm3379_vm1, %v3374_v5  ;;  %v1791_v38 = vadd.f32 %v1660_v39, %v1307_v6  ;;  %v5019_v0 = vmax.f32 %v14506_v10, %v4898_v54  ;;  %v561_v52 = vrot.slane %v14566_v42, 1  ;;  %v14608_v5 = vpop.f32.mrf.mxu0 }
 0x29e   :  { %v4900_v55 = vsel %vm404_vm2, %v4897_v45, %v4899_v57  ;;  %v1045_v11 = vrot.slane %v790_v26, 2  ;;  %v1046_v63 = vrot.slane %v14573_v49, 2  ;;  %v1244_v9 = vmul.f32 %v11490_v20, %v14481_v33 }
 0x29f   :  { %v5020_v53 = vmax.f32 %v4630_v25, %v4900_v55  ;;  %v2275_v4 = vadd.f32 %v2144_v51, %v1791_v38  ;;  %5618 = vst.msk [vmem:[#allocation3 + $0x330] sm:$0xfe] %vm5559_vm4, %v5019_v0  ;;  %v562_v10 = vsel %vm404_vm2, %v560_v29, %v561_v52  ;;  %v1407_v35 = vmul.f32 %v11492_v21, %v14481_v33 }
 0x2a0   :  { %v14593_v31 = vmul.f32 %v11492_v21, %v14486_v47  ;;  %v691_v39 = vadd.f32 %v562_v10, %v206_v43  ;;  %v1047_v51 = vsel %vm889_vm3, %v1045_v11, %v1046_v63  ;;  %v1891_v25 = vmul.f32 %v11494_v22, %v14481_v33 }
 0x2a1   :  { %5619 = vst.msk [vmem:[#allocation3 + $0x338] sm:$0xff] %vm3379_vm1, %v5020_v53  ;;  %v1892_v48 = vmul.f32 %v11494_v22, %v14486_v47  ;;  %v2407_v40 = vadd.f32 %v2343_v15, %v2275_v4  ;;  %v3244_v28 = vsel %vm889_vm3, %v3241_v34, %v3243_v60  ;;  %v1661_v45 = vrot.slane %v1407_v35, 1 }
 0x2a2   :  { %v1662_v23 = vrot.slane %v14593_v31, 1  ;;  %v1176_v6 = vadd.f32 %v1047_v51, %v691_v39  ;;  %v2145_v43 = vrot.slane %v1891_v25, 2  ;;  %v2507_v42 = vmul.f32 %v11504_v27, %v134_v24 }
 0x2a3   :  { %v2146_v57 = vrot.slane %v1892_v48, 2  ;;  %v2891_v54 = vadd.f32 %v2760_v41, %v2407_v40  ;;  %v14613_v29 = vmul.f32 %v11504_v27, %v135_v44  ;;  %v2991_v14 = vmul.f32 %v11533_v50, %v134_v24  ;;  %v14622_v41 = vpop.f32.mrf.mxu0 }
 0x2a4   :  { %v1663_v33 = vsel %vm404_vm2, %v1661_v45, %v1662_v23  ;;  %v1308_v15 = vadd.f32 %v1244_v9, %v1176_v6  ;;  %v2344_v34 = vmul.f32 %v11545_v56, %v134_v24  ;;  %v14618_v60 = vmul.f32 %v11533_v50, %v135_v44 }
 0x2a5   :  { %v3375_v26 = vadd.f32 %v3244_v28, %v2891_v54  ;;  %v2147_v49 = vsel %vm889_vm3, %v2145_v43, %v2146_v57  ;;  %v2761_v38 = vrot.slane %v2507_v42, 1  ;;  %v2762_v55 = vrot.slane %v14613_v29, 1  ;;  %v14643_v48 = vpop.f32.mrf.mxu0 }
 0x2a6   :  { %v5668_v0 = vld [vmem:[#allocation3 + $0x332] sm:$0x1]  ;;  %v1792_v53 = vadd.f32 %v1663_v33, %v1308_v15  ;;  %v3245_v11 = vrot.slane %v2991_v14, 2  ;;  %v307_v4 = vmul.f32 %v11483_v17, %v14409_v30  ;;  %v792_v9 = vmul.f32 %v11485_v18, %v14409_v30  ;;  %v136_v17 = vld [vmem:[%s17810_s0 + $0x358] sm:$0x3] }
 0x2a7   :  { %11008 = vmatmul.mubr.msk.f32.gmra.mxu1 %vm3379_vm1, %v3375_v26  ;;  %5706 = vst.msk [vmem:[#allocation3 + $0x330] sm:$0x1] %vm5253_vm5, %v5668_v0  ;;  %v3246_v24 = vrot.slane %v14618_v60, 2  ;;  %v207_v10 = vmul.f32 %v11481_v16, %v14375_v58  ;;  %v1409_v35 = vmul.f32 %v11492_v21, %v14526_v1  ;;  %v1893_v31 = vmul.f32 %v11494_v22, %v14526_v1 }
 0x2a8   :  { %v2276_v39 = vadd.f32 %v2147_v49, %v1792_v53  ;;  %v563_v18 = vrot.slane %v307_v4, 1  ;;  %v1048_v30 = vrot.slane %v792_v9, 2  ;;  %v2763_v51 = vsel %vm404_vm2, %v2761_v38, %v2762_v55 }
 0x2a9   :  { %v1664_v25 = vrot.slane %v1409_v35, 1  ;;  %v2148_v22 = vrot.slane %v1893_v31, 2  ;;  %v3247_v1 = vsel %vm889_vm3, %v3245_v11, %v3246_v24  ;;  %v14652_v28 = vmul.f32 %v11490_v20, %v14486_v47 }
 0x2aa   :  { %v2408_v16 = vadd.f32 %v2344_v34, %v2276_v39  ;;  %v564_v21 = vsel %vm404_vm2, %v561_v52, %v563_v18  ;;  %v1049_v58 = vsel %vm889_vm3, %v1046_v63, %v1048_v30  ;;  %v14655_v45 = vmul.f32 %v11504_v27, %v136_v17  ;;  %v14673_v27 = vpop.f32.mrf.mxu0 }
 0x2ab   :  { %v692_v40 = vadd.f32 %v564_v21, %v207_v10  ;;  %v14658_v43 = vmul.f32 %v11545_v56, %v135_v44  ;;  %v14661_v52 = vmul.f32 %v11533_v50, %v136_v17  ;;  %v14667_v42 = vmul.f32 %v14346_v32, %v14346_v32 }
 0x2ac   :  { %v2892_v6 = vadd.f32 %v2763_v51, %v2408_v16  ;;  %v14671_v20 = vsel %vm3379_vm1, %v14377_v59, 0.0  ;;  %v14678_v56 = vsel %vm404_vm2, %v1662_v23, %v1664_v25  ;;  %v14681_v50 = vsel %vm889_vm3, %v2146_v57, %v2148_v22  ;;  %v14851_v53 = vpop.f32.mrf.mxu0 }
 0x2ad   :  { %v14663_v63 = vadd.f32 %v1049_v58, %v692_v40  ;;  %v14685_v44 = vsel %vm3379_vm1, %v14346_v32, 0.0  ;;  %v2764_v57 = vrot.slane %v14655_v45, 1  ;;  %v4094_v33 = vmul.f32 %v14377_v59, %v14377_v59 }
 0x2ae   :  { %v14675_v47 = vadd.f32 %v3247_v1, %v2892_v6  ;;  %v3963_v54 = vadd.f32 %v14685_v44, %v14671_v20  ;;  %v3248_v14 = vrot.slane %v14661_v52, 2  ;;  %v4097_v15 = vmul.f32 %v14391_v61, %v14391_v61  ;;  %v14871_v22 = vpop.f32.mrf.mxu0 }
 0x2af   :  { %v1309_v23 = vadd.f32 %v14652_v28, %v14663_v63  ;;  %v4096_v34 = vmul.f32 %v14415_v12, %v14415_v12  ;;  %v4159_v49 = vsel %vm3379_vm1, %v14667_v42, 0.0  ;;  %v4158_v38 = vsel %vm3379_vm1, %v4094_v33, 0.0 }
 0x2b0   :  { %11010 = vmatprep.mubr.msk.f32.mxu1 %vm3379_vm1, %v14675_v47  ;;  %v3965_v0 = vadd.f32 %v3964_v3, %v3963_v54  ;;  %v4160_v11 = vadd.f32 %v4159_v49, %v4158_v38  ;;  %v3966_v4 = vsel %vm3379_vm1, %v14391_v61, 0.0  ;;  %v3968_v10 = vsel %vm3379_vm1, %v14451_v46, 0.0  ;;  %v14886_v20 = vpop.f32.mrf.mxu0 }
 0x2b1   :  { %v1793_v26 = vadd.f32 %v14678_v56, %v1309_v23  ;;  %v4161_v9 = vsel %vm3379_vm1, %v4096_v34, 0.0  ;;  %v4098_v39 = vmul.f32 %v14451_v46, %v14451_v46  ;;  %v2765_v17 = vsel %vm404_vm2, %v2762_v55, %v2764_v57 }
 0x2b2   :  { %v3967_v31 = vadd.f32 %v3966_v4, %v3965_v0  ;;  %v4163_v18 = vsel %vm3379_vm1, %v4097_v15, 0.0  ;;  %v4162_v30 = vadd.f32 %v4161_v9, %v4160_v11  ;;  %v4099_v51 = vmul.f32 %v14431_v7, %v14431_v7  ;;  %v14899_v3 = vpop.f32.mrf.mxu0 }
 0x2b3   :  { %v2277_v35 = vadd.f32 %v14681_v50, %v1793_v26  ;;  %v4165_v21 = vsel %vm3379_vm1, %v4098_v39, 0.0  ;;  %v4100_v58 = vmul.f32 %v14508_v19, %v14508_v19  ;;  %v3249_v29 = vsel %vm889_vm3, %v3246_v24, %v3248_v14 }
 0x2b4   :  { %v3969_v16 = vadd.f32 %v3968_v10, %v3967_v31  ;;  %v3970_v55 = vsel %vm3379_vm1, %v14431_v7, 0.0  ;;  %v4164_v1 = vadd.f32 %v4163_v18, %v4162_v30  ;;  %v3972_v40 = vsel %vm3379_vm1, %v14508_v19, 0.0  ;;  %v14911_v31 = vpop.f32.mrf.mxu0 }
 0x2b5   :  { %v2409_v25 = vadd.f32 %v14658_v43, %v2277_v35  ;;  %v4167_v6 = vsel %vm3379_vm1, %v4099_v51, 0.0  ;;  %v4101_v52 = vmul.f32 %v14489_v36, %v14489_v36  ;;  %v4169_v60 = vsel %vm3379_vm1, %v4100_v58, 0.0 }
 0x2b6   :  { %v3971_v45 = vadd.f32 %v3970_v55, %v3969_v16  ;;  %v4166_v43 = vadd.f32 %v4165_v21, %v4164_v1  ;;  %v4102_v24 = vmul.f32 %v14557_v62, %v14557_v62  ;;  %v3974_v47 = vsel %vm3379_vm1, %v14489_v36, 0.0  ;;  %v14923_v55 = vpop.f32.mrf.mxu0 }
 0x2b7   :  { %v2893_v28 = vadd.f32 %v2765_v17, %v2409_v25  ;;  %v3976_v50 = vsel %vm3379_vm1, %v14557_v62, 0.0  ;;  %v4171_v23 = vsel %vm3379_vm1, %v4101_v52, 0.0  ;;  %v4103_v54 = vmul.f32 %v14539_v13, %v14539_v13 }
 0x2b8   :  { %v3973_v42 = vadd.f32 %v3972_v40, %v3971_v45  ;;  %v4168_v56 = vadd.f32 %v4167_v6, %v4166_v43  ;;  %v4173_v14 = vsel %vm3379_vm1, %v4102_v24, 0.0  ;;  %v4104_v15 = vmul.f32 %v14608_v5, %v14608_v5  ;;  %v14935_v24 = vpop.f32.mrf.mxu0 }
 0x2b9   :  { %v3377_v63 = vadd.f32 %v3249_v29, %v2893_v28  ;;  %v3978_v34 = vsel %vm3379_vm1, %v14539_v13, 0.0  ;;  %v3980_v49 = vsel %vm3379_vm1, %v14608_v5, 0.0  ;;  %v4105_v11 = vmul.f32 %v14579_v37, %v14579_v37 }
 0x2ba   :  { %v3975_v44 = vadd.f32 %v3974_v47, %v3973_v42  ;;  %v4170_v57 = vadd.f32 %v4169_v60, %v4168_v56  ;;  %v4175_v4 = vsel %vm3379_vm1, %v4103_v54, 0.0  ;;  %v4177_v10 = vsel %vm3379_vm1, %v4104_v15, 0.0 }
 0x2bb   :  { %11011 = vmatmul.mubr.msk.f32.gmra.mxu1 %vm3379_vm1, %v3377_v63  ;;  %v4106_v35 = vmul.f32 %v14643_v48, %v14643_v48  ;;  %v3982_v39 = vsel %vm3379_vm1, %v14579_v37, 0.0  ;;  %v3984_v18 = vsel %vm3379_vm1, %v14643_v48, 0.0  ;;  %v4179_v51 = vsel %vm3379_vm1, %v4105_v11, 0.0 }
 0x2bc   :  { %v3977_v33 = vadd.f32 %v3976_v50, %v3975_v44  ;;  %v4172_v26 = vadd.f32 %v4171_v23, %v4170_v57  ;;  %v4107_v16 = vmul.f32 %v14622_v41, %v14622_v41  ;;  %v4108_v29 = vmul.f32 %v14851_v53, %v14851_v53 }
 0x2bd   :  { %v4181_v58 = vsel %vm3379_vm1, %v4106_v35, 0.0  ;;  %v3986_v1 = vsel %vm3379_vm1, %v14622_v41, 0.0  ;;  %v3988_v28 = vsel %vm3379_vm1, %v14851_v53, 0.0  ;;  %v4109_v43 = vmul.f32 %v14673_v27, %v14673_v27 }
 0x2be   :  { %v3979_v38 = vadd.f32 %v3978_v34, %v3977_v33  ;;  %v4174_v0 = vadd.f32 %v4173_v14, %v4172_v26  ;;  %v4183_v52 = vsel %vm3379_vm1, %v4107_v16, 0.0  ;;  %v4185_v42 = vsel %vm3379_vm1, %v4108_v29, 0.0  ;;  %v14947_v34 = vpop.f32.mrf.mxu0 }
 0x2bf   :  { %v4110_v60 = vmul.f32 %v14886_v20, %v14886_v20  ;;  %v3990_v47 = vsel %vm3379_vm1, %v14673_v27, 0.0  ;;  %v3992_v50 = vsel %vm3379_vm1, %v14886_v20, 0.0  ;;  %v4187_v23 = vsel %vm3379_vm1, %v4109_v43, 0.0 }
 0x2c0   :  { %v3981_v9 = vadd.f32 %v3980_v49, %v3979_v38  ;;  %v4176_v17 = vadd.f32 %v4175_v4, %v4174_v0  ;;  %v4111_v54 = vmul.f32 %v14871_v22, %v14871_v22  ;;  %v4112_v15 = vmul.f32 %v14911_v31, %v14911_v31 }
 0x2c1   :  { %v4189_v14 = vsel %vm3379_vm1, %v4110_v60, 0.0  ;;  %v3994_v26 = vsel %vm3379_vm1, %v14871_v22, 0.0  ;;  %v3996_v38 = vsel %vm3379_vm1, %v14911_v31, 0.0  ;;  %v4113_v4 = vmul.f32 %v14899_v3, %v14899_v3 }
 0x2c2   :  { %v3983_v30 = vadd.f32 %v3982_v39, %v3981_v9  ;;  %v4178_v25 = vadd.f32 %v4177_v10, %v4176_v17  ;;  %v4191_v9 = vsel %vm3379_vm1, %v4111_v54, 0.0  ;;  %v4193_v35 = vsel %vm3379_vm1, %v4112_v15, 0.0  ;;  %v14959_v17 = vpop.f32.mrf.mxu0 }
 0x2c3   :  { %v4114_v39 = vmul.f32 %v14935_v24, %v14935_v24  ;;  %v4195_v16 = vsel %vm3379_vm1, %v4113_v4, 0.0  ;;  %v4006_v54 = vsel %vm3379_vm1, %v14947_v34, 0.0 }
 0x2c4   :  { %v3985_v21 = vadd.f32 %v3984_v18, %v3983_v30  ;;  %v4180_v40 = vadd.f32 %v4179_v51, %v4178_v25  ;;  %v3998_v18 = vsel %vm3379_vm1, %v14899_v3, 0.0  ;;  %v4000_v51 = vsel %vm3379_vm1, %v14935_v24, 0.0 }
 0x2c6   :  { %v3987_v45 = vadd.f32 %v3986_v1, %v3985_v21  ;;  %v4182_v6 = vadd.f32 %v4181_v58, %v4180_v40  ;;  %v4115_v58 = vmul.f32 %v14923_v55, %v14923_v55  ;;  %v4197_v1 = vsel %vm3379_vm1, %v4114_v39, 0.0 }
 0x2c7   :  { %v4116_v40 = vmul.f32 %v14959_v17, %v14959_v17 }
 0x2c8   :  { %v3989_v63 = vadd.f32 %v3988_v28, %v3987_v45  ;;  %v4184_v56 = vadd.f32 %v4183_v52, %v4182_v6  ;;  %v14971_v28 = vpop.f32.mrf.mxu0  ;;  %v4002_v45 = vsel %vm3379_vm1, %v14923_v55, 0.0  ;;  %v4004_v52 = vsel %vm3379_vm1, %v14959_v17, 0.0 }
 0x2c9   :  { %17889 = vst [vmem:[#allocation5_spill] sm:$0xff] %v14971_v28  ;;  %v4201_v60 = vsel %vm3379_vm1, %v4116_v40, 0.0 }
 0x2ca   :  { %v3991_v44 = vadd.f32 %v3990_v47, %v3989_v63  ;;  %v4186_v57 = vadd.f32 %v4185_v42, %v4184_v56  ;;  %v4199_v42 = vsel %vm3379_vm1, %v4115_v58, 0.0  ;;  %v14979_v47 = vpop.f32.mrf.mxu0  ;;  %v4117_v56 = vmul.f32 %v14947_v34, %v14947_v34 }
 0x2cb   :  { %17890 = vst [vmem:[#allocation6_spill] sm:$0xff] %v14979_v47 }
 0x2cc   :  { %v3993_v33 = vadd.f32 %v3992_v50, %v3991_v44  ;;  %v4188_v49 = vadd.f32 %v4187_v23, %v4186_v57  ;;  %v4118_v57 = vmul.f32 %v14979_v47, %v14979_v47 }
 0x2ce   :  { %v3995_v0 = vadd.f32 %v3994_v26, %v3993_v33  ;;  %v4190_v11 = vadd.f32 %v4189_v14, %v4188_v49  ;;  %v14987_v33 = vpop.f32.mrf.mxu0  ;;  %v4203_v14 = vsel %vm3379_vm1, %v4117_v56, 0.0  ;;  %v4008_v26 = vsel %vm3379_vm1, %v14979_v47, 0.0 }
 0x2cf   :  { %17891 = vst [vmem:[#allocation7_spill] sm:$0xff] %v14987_v33  ;;  %v4121_v58 = vmul.f32 %v14987_v33, %v14987_v33 }
 0x2d0   :  { %v3997_v10 = vadd.f32 %v3996_v38, %v3995_v0  ;;  %v4192_v30 = vadd.f32 %v4191_v9, %v4190_v11  ;;  %v4205_v38 = vsel %vm3379_vm1, %v4118_v57, 0.0  ;;  %v14993_v0 = vpop.f32.mrf.mxu0  ;;  %v4119_v11 = vmul.f32 %v14971_v28, %v14971_v28 }
 0x2d1   :  { %17892 = vst [vmem:[#allocation8_spill] sm:$0xff] %v14993_v0 }
 0x2d2   :  { %v3999_v25 = vadd.f32 %v3998_v18, %v3997_v10  ;;  %v4194_v21 = vadd.f32 %v4193_v35, %v4192_v30  ;;  %v4120_v10 = vmul.f32 %v14993_v0, %v14993_v0  ;;  %v4010_v35 = vsel %vm3379_vm1, %v14971_v28, 0.0  ;;  %v15001_v39 = vpop.f32.mrf.mxu0 }
 0x2d3   :  { %17893 = vst [vmem:[#allocation9_spill] sm:$0xff] %v15001_v39  ;;  %v4207_v18 = vsel %vm3379_vm1, %v4119_v11, 0.0 }
 0x2d4   :  { %v4001_v29 = vadd.f32 %v4000_v51, %v3999_v25  ;;  %v4196_v6 = vadd.f32 %v4195_v16, %v4194_v21  ;;  %v4012_v51 = vsel %vm3379_vm1, %v14993_v0, 0.0  ;;  %v4209_v16 = vsel %vm3379_vm1, %v4120_v10, 0.0  ;;  %v15007_v21 = vpop.f32.mrf.mxu0 }
 0x2d5   :  { %17894 = vst [vmem:[#allocation10_spill] sm:$0xff] %v15007_v21  ;;  %v4122_v40 = vmul.f32 %v15007_v21, %v15007_v21 }
 0x2d6   :  { %v4003_v43 = vadd.f32 %v4002_v45, %v4001_v29  ;;  %v4198_v63 = vadd.f32 %v4197_v1, %v4196_v6  ;;  %v4014_v45 = vsel %vm3379_vm1, %v14987_v33, 0.0  ;;  %v15015_v6 = vpop.f32.mrf.mxu0 }
 0x2d7   :  { %17895 = vst [vmem:[#allocation11_spill] sm:$0xff] %v15015_v6 }
 0x2d8   :  { %v4005_v50 = vadd.f32 %v4004_v52, %v4003_v43  ;;  %v4200_v44 = vadd.f32 %v4199_v42, %v4198_v63  ;;  %v4211_v43 = vsel %vm3379_vm1, %v4121_v58, 0.0  ;;  %v4016_v63 = vsel %vm3379_vm1, %v15007_v21, 0.0  ;;  %v15021_v56 = vpop.f32.mrf.mxu0 }
 0x2d9   :  { %17896 = vst [vmem:[#allocation12_spill] sm:$0xff] %v15021_v56  ;;  %v4124_v57 = vmul.f32 %v15021_v56, %v15021_v56 }
 0x2da   :  { %v4202_v23 = vadd.f32 %v4201_v60, %v4200_v44  ;;  %v4007_v15 = vadd.f32 %v4006_v54, %v4005_v50  ;;  %v4213_v60 = vsel %vm3379_vm1, %v4122_v40, 0.0  ;;  %v4123_v50 = vmul.f32 %v15001_v39, %v15001_v39 }
 0x2db   :  { %v4018_v54 = vsel %vm3379_vm1, %v15001_v39, 0.0  ;;  %v4217_v11 = vsel %vm3379_vm1, %v4124_v57, 0.0 }
 0x2dc   :  { %v4204_v49 = vadd.f32 %v4203_v14, %v4202_v23  ;;  %v4009_v4 = vadd.f32 %v4008_v26, %v4007_v15  ;;  %v15029_v14 = vpop.f32.mrf.mxu0  ;;  %v4215_v15 = vsel %vm3379_vm1, %v4123_v50, 0.0 }
 0x2dd   :  { %17897 = vst [vmem:[#allocation13_spill] sm:$0xff] %v15029_v14 }
 0x2de   :  { %v4206_v9 = vadd.f32 %v4205_v38, %v4204_v49  ;;  %v4011_v30 = vadd.f32 %v4010_v35, %v4009_v4  ;;  %v4020_v49 = vsel %vm3379_vm1, %v15021_v56, 0.0  ;;  %v15035_v4 = vpop.f32.mrf.mxu0 }
 0x2df   :  { %17898 = vst [vmem:[#allocation14_spill] sm:$0xff] %v15035_v4  ;;  %v4024_v58 = vsel %vm3379_vm1, %v15035_v4, 0.0 }
 0x2e0   :  { %v4208_v25 = vadd.f32 %v4207_v18, %v4206_v9  ;;  %v4013_v29 = vadd.f32 %v4012_v51, %v4011_v30  ;;  %v4125_v9 = vmul.f32 %v15015_v6, %v15015_v6  ;;  %v4126_v18 = vmul.f32 %v15035_v4, %v15035_v4  ;;  %v15043_v51 = vpop.f32.mrf.mxu0 }
 0x2e1   :  { %v4022_v30 = vsel %vm3379_vm1, %v15015_v6, 0.0  ;;  %17899 = vst [vmem:[#allocation15_spill] sm:$0xff] %v15043_v51 }
 0x2e2   :  { %v4210_v1 = vadd.f32 %v4209_v16, %v4208_v25  ;;  %v4015_v52 = vadd.f32 %v4014_v45, %v4013_v29  ;;  %v4219_v25 = vsel %vm3379_vm1, %v4125_v9, 0.0  ;;  %v15049_v40 = vpop.f32.mrf.mxu0  ;;  %v4127_v45 = vmul.f32 %v15029_v14, %v15029_v14 }
 0x2e3   :  { %17900 = vst [vmem:[#allocation16_spill] sm:$0xff] %v15049_v40  ;;  %v4030_v9 = vsel %vm3379_vm1, %v15043_v51, 0.0 }
 0x2e4   :  { %v4212_v42 = vadd.f32 %v4211_v43, %v4210_v1  ;;  %v4017_v44 = vadd.f32 %v4016_v63, %v4015_v52  ;;  %v4221_v1 = vsel %vm3379_vm1, %v4126_v18, 0.0  ;;  %v4128_v63 = vmul.f32 %v15049_v40, %v15049_v40 }
 0x2e5   :  { %v4223_v50 = vsel %vm3379_vm1, %v4127_v45, 0.0 }
 0x2e6   :  { %v4214_v23 = vadd.f32 %v4213_v60, %v4212_v42  ;;  %v4019_v26 = vadd.f32 %v4018_v54, %v4017_v44  ;;  %v4026_v42 = vsel %vm3379_vm1, %v15029_v14, 0.0  ;;  %v15057_v60 = vpop.f32.mrf.mxu0  ;;  %v4225_v54 = vsel %vm3379_vm1, %v4128_v63, 0.0 }
 0x2e7   :  { %17901 = vst [vmem:[#allocation17_spill] sm:$0xff] %v15057_v60 }
 0x2e8   :  { %v4216_v38 = vadd.f32 %v4215_v15, %v4214_v23  ;;  %v4021_v10 = vadd.f32 %v4020_v49, %v4019_v26  ;;  %v4028_v23 = vsel %vm3379_vm1, %v15049_v40, 0.0  ;;  %v15063_v15 = vpop.f32.mrf.mxu0  ;;  %v4129_v26 = vmul.f32 %v15043_v51, %v15043_v51 }
 0x2e9   :  { %17902 = vst [vmem:[#allocation18_spill] sm:$0xff] %v15063_v15 }
 0x2ea   :  { %v4218_v35 = vadd.f32 %v4217_v11, %v4216_v38  ;;  %v4023_v16 = vadd.f32 %v4022_v30, %v4021_v10  ;;  %v4130_v11 = vmul.f32 %v15063_v15, %v15063_v15  ;;  %v15071_v10 = vpop.f32.mrf.mxu0  ;;  %v4032_v30 = vsel %vm3379_vm1, %v15063_v15, 0.0 }
 0x2eb   :  { %17903 = vst [vmem:[#allocation19_spill] sm:$0xff] %v15071_v10 }
 0x2ec   :  { %v4220_v29 = vadd.f32 %v4219_v25, %v4218_v35  ;;  %v4025_v43 = vadd.f32 %v4024_v58, %v4023_v16  ;;  %v4227_v35 = vsel %vm3379_vm1, %v4129_v26, 0.0  ;;  %v4229_v16 = vsel %vm3379_vm1, %v4130_v11, 0.0  ;;  %v15077_v58 = vpop.f32.mrf.mxu0 }
 0x2ed   :  { %17904 = vst [vmem:[#allocation20_spill] sm:$0xff] %v15077_v58  ;;  %v4133_v26 = vmul.f32 %v15071_v10, %v15071_v10 }
 0x2ee   :  { %v4222_v52 = vadd.f32 %v4221_v1, %v4220_v29  ;;  %v4027_v44 = vadd.f32 %v4026_v42, %v4025_v43  ;;  %v4131_v29 = vmul.f32 %v15057_v60, %v15057_v60  ;;  %v4132_v43 = vmul.f32 %v15077_v58, %v15077_v58  ;;  %v15085_v63 = vpop.f32.mrf.mxu0 }
 0x2ef   :  { %17905 = vst [vmem:[#allocation21_spill] sm:$0xff] %v15085_v63 }
 0x2f0   :  { %v4224_v57 = vadd.f32 %v4223_v50, %v4222_v52  ;;  %v4029_v49 = vadd.f32 %v4028_v23, %v4027_v44  ;;  %v4034_v52 = vsel %vm3379_vm1, %v15057_v60, 0.0  ;;  %v4231_v42 = vsel %vm3379_vm1, %v4131_v29, 0.0 }
 0x2f1   :  { %v4036_v44 = vsel %vm3379_vm1, %v15077_v58, 0.0 }
 0x2f2   :  { %v4226_v38 = vadd.f32 %v4225_v54, %v4224_v57  ;;  %v4031_v18 = vadd.f32 %v4030_v9, %v4029_v49  ;;  %v4233_v57 = vsel %vm3379_vm1, %v4132_v43, 0.0  ;;  %v15091_v54 = vpop.f32.mrf.mxu0  ;;  %v4038_v9 = vsel %vm3379_vm1, %v15071_v10, 0.0 }
 0x2f3   :  { %17906 = vst [vmem:[#allocation22_spill] sm:$0xff] %v15091_v54  ;;  %v4134_v11 = vmul.f32 %v15091_v54, %v15091_v54 }
 0x2f4   :  { %v4228_v25 = vadd.f32 %v4227_v35, %v4226_v38  ;;  %v4033_v1 = vadd.f32 %v4032_v30, %v4031_v18  ;;  %v15099_v35 = vpop.f32.mrf.mxu0  ;;  %v4235_v18 = vsel %vm3379_vm1, %v4133_v26, 0.0 }
 0x2f5   :  { %17907 = vst [vmem:[#allocation23_spill] sm:$0xff] %v15099_v35  ;;  %v4237_v29 = vsel %vm3379_vm1, %v4134_v11, 0.0 }
 0x2f6   :  { %v4230_v45 = vadd.f32 %v4229_v16, %v4228_v25  ;;  %v4035_v50 = vadd.f32 %v4034_v52, %v4033_v1  ;;  %v4040_v25 = vsel %vm3379_vm1, %v15091_v54, 0.0  ;;  %v15105_v1 = vpop.f32.mrf.mxu0 }
 0x2f7   :  { %17908 = vst [vmem:[#allocation24_spill] sm:$0xff] %v15105_v1  ;;  %v4044_v26 = vsel %vm3379_vm1, %v15105_v1, 0.0 }
 0x2f8   :  { %v4232_v23 = vadd.f32 %v4231_v42, %v4230_v45  ;;  %v4037_v49 = vadd.f32 %v4036_v44, %v4035_v50  ;;  %v4135_v45 = vmul.f32 %v15085_v63, %v15085_v63  ;;  %v4136_v42 = vmul.f32 %v15105_v1, %v15105_v1  ;;  %v15113_v44 = vpop.f32.mrf.mxu0 }
 0x2f9   :  { %v4042_v50 = vsel %vm3379_vm1, %v15085_v63, 0.0  ;;  %17909 = vst [vmem:[#allocation25_spill] sm:$0xff] %v15113_v44 }
 0x2fa   :  { %v4234_v38 = vadd.f32 %v4233_v57, %v4232_v23  ;;  %v4039_v30 = vadd.f32 %v4038_v9, %v4037_v49  ;;  %v4239_v23 = vsel %vm3379_vm1, %v4135_v45, 0.0  ;;  %v15119_v11 = vpop.f32.mrf.mxu0  ;;  %v4137_v9 = vmul.f32 %v15099_v35, %v15099_v35 }
 0x2fb   :  { %17910 = vst [vmem:[#allocation26_spill] sm:$0xff] %v15119_v11 }
 0x2fc   :  { %v4236_v16 = vadd.f32 %v4235_v18, %v4234_v38  ;;  %v4041_v43 = vadd.f32 %v4040_v25, %v4039_v30  ;;  %v4241_v38 = vsel %vm3379_vm1, %v4136_v42, 0.0  ;;  %v4138_v25 = vmul.f32 %v15119_v11, %v15119_v11 }
 0x2fd   :  { %v4243_v45 = vsel %vm3379_vm1, %v4137_v9, 0.0  ;;  %v4050_v9 = vsel %vm3379_vm1, %v15113_v44, 0.0 }
 0x2fe   :  { %v4238_v52 = vadd.f32 %v4237_v29, %v4236_v16  ;;  %v4043_v57 = vadd.f32 %v4042_v50, %v4041_v43  ;;  %v4046_v16 = vsel %vm3379_vm1, %v15099_v35, 0.0  ;;  %v15127_v29 = vpop.f32.mrf.mxu0  ;;  %v4245_v50 = vsel %vm3379_vm1, %v4138_v25, 0.0 }
 0x2ff   :  { %17911 = vst [vmem:[#allocation27_spill] sm:$0xff] %v15127_v29 }
 0x300   :  { %v4240_v49 = vadd.f32 %v4239_v23, %v4238_v52  ;;  %v4045_v18 = vadd.f32 %v4044_v26, %v4043_v57  ;;  %v4048_v52 = vsel %vm3379_vm1, %v15119_v11, 0.0  ;;  %v15133_v23 = vpop.f32.mrf.mxu0  ;;  %v4139_v57 = vmul.f32 %v15113_v44, %v15113_v44 }
 0x301   :  { %17912 = vst [vmem:[#allocation28_spill] sm:$0xff] %v15133_v23  ;;  %v4054_v44 = vsel %vm3379_vm1, %v15127_v29, 0.0 }
 0x302   :  { %v4242_v30 = vadd.f32 %v4241_v38, %v4240_v49  ;;  %v4047_v43 = vadd.f32 %v4046_v16, %v4045_v18  ;;  %v4140_v38 = vmul.f32 %v15133_v23, %v15133_v23  ;;  %v4247_v18 = vsel %vm3379_vm1, %v4139_v57, 0.0 }
 0x304   :  { %v4244_v42 = vadd.f32 %v4243_v45, %v4242_v30  ;;  %v4049_v26 = vadd.f32 %v4048_v52, %v4047_v43  ;;  %v4052_v30 = vsel %vm3379_vm1, %v15133_v23, 0.0  ;;  %v15144_v45 = vpop.f32.mrf.mxu1  ;;  %v4249_v11 = vsel %vm3379_vm1, %v4140_v38, 0.0 }
 0x305   :  { %17913 = vst [vmem:[#allocation29_spill] sm:$0xff] %v15144_v45  ;;  %v4141_v43 = vmul.f32 %v15127_v29, %v15127_v29 }
 0x306   :  { %v4246_v49 = vadd.f32 %v4245_v50, %v4244_v42  ;;  %v4051_v16 = vadd.f32 %v4050_v9, %v4049_v26  ;;  %v15149_v50 = vpop.f32.mrf.mxu1 }
 0x307   :  { %17914 = vst [vmem:[#allocation30_spill] sm:$0xff] %v15149_v50  ;;  %v4251_v57 = vsel %vm3379_vm1, %v4141_v43, 0.0  ;;  %v4056_v38 = vsel %vm3379_vm1, %v15149_v50, 0.0 }
 0x308   :  { %v4248_v25 = vadd.f32 %v4247_v18, %v4246_v49  ;;  %v4053_v52 = vadd.f32 %v4052_v30, %v4051_v16  ;;  %v4142_v49 = vmul.f32 %v15149_v50, %v15149_v50  ;;  %v15156_v18 = vpop.f32.mrf.mxu1 }
 0x309   :  { %17915 = vst [vmem:[#allocation31_spill] sm:$0xff] %v15156_v18 }
 0x30a   :  { %v4250_v42 = vadd.f32 %v4249_v11, %v4248_v25  ;;  %v4055_v26 = vadd.f32 %v4054_v44, %v4053_v52  ;;  %v4143_v11 = vmul.f32 %v15144_v45, %v15144_v45  ;;  %v4253_v30 = vsel %vm3379_vm1, %v4142_v49, 0.0  ;;  %v15163_v29 = vpop.f32.mrf.mxu1 }
 0x30b   :  { %17916 = vst [vmem:[#allocation32_spill] sm:$0xff] %v15163_v29  ;;  %v4058_v44 = vsel %vm3379_vm1, %v15144_v45, 0.0  ;;  %v4145_v49 = vmul.f32 %v15156_v18, %v15156_v18 }
 0x30c   :  { %v4252_v9 = vadd.f32 %v4251_v57, %v4250_v42  ;;  %v4057_v16 = vadd.f32 %v4056_v38, %v4055_v26  ;;  %v4255_v43 = vsel %vm3379_vm1, %v4143_v11, 0.0  ;;  %v4144_v42 = vmul.f32 %v15163_v29, %v15163_v29 }
 0x30d   :  { %v4060_v26 = vsel %vm3379_vm1, %v15163_v29, 0.0  ;;  %v4062_v11 = vsel %vm3379_vm1, %v15156_v18, 0.0 }
 0x30e   :  { %v4254_v25 = vadd.f32 %v4253_v30, %v4252_v9  ;;  %v4059_v52 = vadd.f32 %v4058_v44, %v4057_v16  ;;  %v4257_v38 = vsel %vm3379_vm1, %v4144_v42, 0.0  ;;  %v4259_v16 = vsel %vm3379_vm1, %v4145_v49, 0.0 }
 0x310   :  { %v4256_v57 = vadd.f32 %v4255_v43, %v4254_v25  ;;  %v4061_v9 = vadd.f32 %v4060_v26, %v4059_v52 }
 0x312   :  { %v4258_v30 = vadd.f32 %v4257_v38, %v4256_v57  ;;  %v4063_v25 = vadd.f32 %v4062_v11, %v4061_v9 }
 0x314   :  { %v4260_v43 = vadd.f32 %v4259_v16, %v4258_v30 }
 0x316   :  { %v15170_v50 = vpop.f32.mrf.mxu1 }
 0x317   :  { %17917 = vst [vmem:[#allocation33_spill] sm:$0xff] %v15170_v50  ;;  %v4147_v42 = vmul.f32 %v15170_v50, %v15170_v50  ;;  %v4066_v49 = vsel %vm3379_vm1, %v15170_v50, 0.0 }
 0x318   :  { %v15177_v45 = vpop.f32.mrf.mxu1 }
 0x319   :  { %17918 = vst [vmem:[#allocation34_spill] sm:$0xff] %v15177_v45  ;;  %v4146_v44 = vmul.f32 %v15177_v45, %v15177_v45  ;;  %v4064_v52 = vsel %vm3379_vm1, %v15177_v45, 0.0  ;;  %v4263_v9 = vsel %vm3379_vm1, %v4147_v42, 0.0 }
 0x31a   :  { %v4065_v57 = vadd.f32 %v4064_v52, %v4063_v25 }
 0x31b   :  { %v4261_v26 = vsel %vm3379_vm1, %v4146_v44, 0.0 }
 0x31c   :  { %v4262_v38 = vadd.f32 %v4261_v26, %v4260_v43  ;;  %v4067_v30 = vadd.f32 %v4066_v49, %v4065_v57 }
 0x31e   :  { %v4264_v16 = vadd.f32 %v4263_v9, %v4262_v38 }
 0x32a   :  { %v15184_v29 = vpop.f32.mrf.mxu1 }
 0x32b   :  { %17919 = vst [vmem:[#allocation35_spill] sm:$0xff] %v15184_v29  ;;  %v4149_v44 = vmul.f32 %v15184_v29, %v15184_v29  ;;  %v4070_v42 = vsel %vm3379_vm1, %v15184_v29, 0.0 }
 0x32c   :  { %v15191_v18 = vpop.f32.mrf.mxu1 }
 0x32d   :  { %17920 = vst [vmem:[#allocation36_spill] sm:$0xff] %v15191_v18  ;;  %v4148_v11 = vmul.f32 %v15191_v18, %v15191_v18  ;;  %v4068_v25 = vsel %vm3379_vm1, %v15191_v18, 0.0  ;;  %v4267_v57 = vsel %vm3379_vm1, %v4149_v44, 0.0 }
 0x32e   :  { %v4069_v43 = vadd.f32 %v4068_v25, %v4067_v30 }
 0x32f   :  { %v4265_v52 = vsel %vm3379_vm1, %v4148_v11, 0.0 }
 0x330   :  { %v4266_v26 = vadd.f32 %v4265_v52, %v4264_v16  ;;  %v4071_v38 = vadd.f32 %v4070_v42, %v4069_v43 }
 0x332   :  { %v4268_v9 = vadd.f32 %v4267_v57, %v4266_v26 }
 0x33f   :  { %v15198_v45 = vpop.f32.mrf.mxu1 }
 0x340   :  { %17921 = vst [vmem:[#allocation37_spill] sm:$0xff] %v15198_v45  ;;  %v4151_v11 = vmul.f32 %v15198_v45, %v15198_v45  ;;  %v4074_v44 = vsel %vm3379_vm1, %v15198_v45, 0.0 }
 0x341   :  { %v15205_v50 = vpop.f32.mrf.mxu1 }
 0x342   :  { %17922 = vst [vmem:[#allocation38_spill] sm:$0xff] %v15205_v50  ;;  %v4150_v49 = vmul.f32 %v15205_v50, %v15205_v50  ;;  %v4072_v30 = vsel %vm3379_vm1, %v15205_v50, 0.0  ;;  %v4271_v43 = vsel %vm3379_vm1, %v4151_v11, 0.0 }
 0x343   :  { %v4073_v16 = vadd.f32 %v4072_v30, %v4071_v38 }
 0x344   :  { %v4269_v25 = vsel %vm3379_vm1, %v4150_v49, 0.0 }
 0x345   :  { %v4270_v52 = vadd.f32 %v4269_v25, %v4268_v9  ;;  %v4075_v26 = vadd.f32 %v4074_v44, %v4073_v16  ;;  %v11073_v9 = vmov 1983009808   ;;  %v5637_v16 = vld [vmem:[#allocation3 + $0x4a] sm:$0x1] }
 0x346   :  { %v6917_v30 = vunpack.c.l.s4 %v11073_v9  ;;  %5675 = vst.msk [vmem:[#allocation3 + $0x48] sm:$0x1] %vm5253_vm5, %v5637_v16  ;;  %v5710_v9 = vld [vmem:[#allocation3 + $0xe] sm:$0x1]  ;;  %v5787_v16 = vld [vmem:[#allocation3 + $0x25] sm:$0x1] }
 0x347   :  { %v4272_v57 = vadd.f32 %v4271_v43, %v4270_v52  ;;  %5748 = vst.msk [vmem:[#allocation3 + $0x10] sm:$0x1] %vm5253_vm5, %v5710_v9  ;;  %5825 = vst.msk [vmem:[#allocation3 + $0x29] sm:$0x1] %vm5253_vm5, %v5787_v16  ;;  %v7460_v16 = vld [vmem:[#allocation3 + $0x8] sm:$0xff] }
 0x348   :  { %v6918_v43 = vunpack.c.0.s8 %v6917_v30  ;;  %v5789_v30 = vld [vmem:[#allocation3 + $0x55] sm:$0x1] }
 0x349   :  { %5827 = vst.msk [vmem:[#allocation3 + $0x59] sm:$0x1] %vm5253_vm5, %v5789_v30  ;;  %v7463_v30 = vld [vmem:[#allocation3 + $0x20] sm:$0xff] }
 0x34a   :  { %v15253_v9 = vsub.s32 %v6918_v43, %v11126_v2  ;;  %v7568_v2 = vmul.f32 0.015625, %v7460_v16  ;;  %v7616_v10 = vmul.f32 0.046875, %v7463_v30 }
 0x34c   :  { %17927 = vst [vmem:[#allocation43_spill] sm:$0xff] %v15253_v9 }
 0x353   :  { %v15212_v18 = vpop.f32.mrf.mxu1 }
 0x354   :  { %17923 = vst [vmem:[#allocation39_spill] sm:$0xff] %v15212_v18  ;;  %v4153_v38 = vmul.f32 %v15212_v18, %v15212_v18  ;;  %v4078_v52 = vsel %vm3379_vm1, %v15212_v18, 0.0  ;;  %v7465_v18 = vld [vmem:[#allocation3 + $0x30] sm:$0xff] }
 0x355   :  { %v15219_v29 = vpop.f32.mrf.mxu1  ;;  %v7711_v15 = vmul.f32 0.046875, %v7465_v18 }
 0x356   :  { %17924 = vst [vmem:[#allocation40_spill] sm:$0xff] %v15219_v29  ;;  %v4152_v42 = vmul.f32 %v15219_v29, %v15219_v29  ;;  %v4076_v49 = vsel %vm3379_vm1, %v15219_v29, 0.0  ;;  %v4275_v44 = vsel %vm3379_vm1, %v4153_v38, 0.0  ;;  %v5788_v38 = vld [vmem:[#allocation3 + $0x3d] sm:$0x1] }
 0x357   :  { %v4077_v25 = vadd.f32 %v4076_v49, %v4075_v26  ;;  %v5711_v26 = vld [vmem:[#allocation3 + $0x26] sm:$0x1]  ;;  %v5786_v49 = vld [vmem:[#allocation3 + $0xd] sm:$0x1]  ;;  %5826 = vst.msk [vmem:[#allocation3 + $0x41] sm:$0x1] %vm5253_vm5, %v5788_v38 }
 0x358   :  { %v4273_v45 = vsel %vm3379_vm1, %v4152_v42, 0.0  ;;  %5749 = vst.msk [vmem:[#allocation3 + $0x28] sm:$0x1] %vm5253_vm5, %v5711_v26  ;;  %5824 = vst.msk [vmem:[#allocation3 + $0x11] sm:$0x1] %vm5253_vm5, %v5786_v49 }
 0x359   :  { %v4274_v23 = vadd.f32 %v4273_v45, %v4272_v57  ;;  %v4079_v35 = vadd.f32 %v4078_v52, %v4077_v25  ;;  %v5712_v45 = vld [vmem:[#allocation3 + $0x3e] sm:$0x1]  ;;  %v5713_v57 = vld [vmem:[#allocation3 + $0x56] sm:$0x1]  ;;  %v5641_v25 = vld [vmem:[#allocation3 + $0xaa] sm:$0x1] }
 0x35a   :  { %5750 = vst.msk [vmem:[#allocation3 + $0x40] sm:$0x1] %vm5253_vm5, %v5712_v45  ;;  %5751 = vst.msk [vmem:[#allocation3 + $0x58] sm:$0x1] %vm5253_vm5, %v5713_v57  ;;  %v5714_v52 = vld [vmem:[#allocation3 + $0x6e] sm:$0x1] }
 0x35b   :  { %v4276_v42 = vadd.f32 %v4275_v44, %v4274_v23  ;;  %v5790_v44 = vld [vmem:[#allocation3 + $0x6d] sm:$0x1]  ;;  %5679 = vst.msk [vmem:[#allocation3 + $0xa8] sm:$0x1] %vm5253_vm5, %v5641_v25  ;;  %v7459_v57 = vld [vmem:[#allocation3] sm:$0xff]  ;;  %v7466_v25 = vld [vmem:[#allocation3 + $0x38] sm:$0xff] }
 0x35c   :  { %5752 = vst.msk [vmem:[#allocation3 + $0x70] sm:$0x1] %vm5253_vm5, %v5714_v52  ;;  %5828 = vst.msk [vmem:[#allocation3 + $0x71] sm:$0x1] %vm5253_vm5, %v5790_v44  ;;  %v7567_v1 = vmul.f32 0.015625, %v7459_v57  ;;  %v7571_v54 = vmul.f32 0.015625, %v7466_v25  ;;  %v7664_v57 = vadd.f32 %v7616_v10, %v7568_v2 }
 0x35d   :  { %v5715_v44 = vld [vmem:[#allocation3 + $0x86] sm:$0x1]  ;;  %v7712_v16 = vmul.f32 0.046875, %v7466_v25 }
 0x35e   :  { %5753 = vst.msk [vmem:[#allocation3 + $0x88] sm:$0x1] %vm5253_vm5, %v5715_v44 }
 0x35f   :  { %v7461_v51 = vld [vmem:[#allocation3 + $0x10] sm:$0x7]  ;;  %v7464_v40 = vld [vmem:[#allocation3 + $0x28] sm:$0x7]  ;;  %v7760_v25 = vadd.f32 %v7712_v16, %v7664_v57 }
 0x360   :  { %v7569_v14 = vmul.f32 0.015625, %v7461_v51 }
 0x363   :  { %v15271_v6 = vld [vmem:[#allocation3 + $0x70] sm:$0x7] }
 0x367   :  { %v15226_v50 = vpop.f32.mrf.mxu1 }
 0x368   :  { %17925 = vst [vmem:[#allocation41_spill] sm:$0xff] %v15226_v50  ;;  %v4155_v26 = vmul.f32 %v15226_v50, %v15226_v50  ;;  %v4082_v63 = vsel %vm3379_vm1, %v15226_v50, 0.0 }
 0x369   :  { %v15233_v11 = vpop.f32.mrf.mxu1 }
 0x36a   :  { %17926 = vst [vmem:[#allocation42_spill] sm:$0xff] %v15233_v11  ;;  %v4154_v29 = vmul.f32 %v15233_v11, %v15233_v11  ;;  %v4080_v23 = vsel %vm3379_vm1, %v15233_v11, 0.0  ;;  %v7462_v11 = vld [vmem:[#allocation3 + $0x18] sm:$0xff] }
 0x36b   :  { %v4081_v49 = vadd.f32 %v4080_v23, %v4079_v35  ;;  %v7615_v43 = vmul.f32 0.046875, %v7462_v11  ;;  %v7468_v35 = vld [vmem:[#allocation3 + $0x48] sm:$0xff]  ;;  %v7469_v23 = vld [vmem:[#allocation3 + $0x50] sm:$0xff]  ;;  %v5791_v11 = vld [vmem:[#allocation3 + $0x85] sm:$0x1] }
 0x36c   :  { %v4277_v45 = vsel %vm3379_vm1, %v4154_v29, 0.0  ;;  %v7570_v29 = vmul.f32 0.015625, %v7465_v18  ;;  %v7618_v58 = vmul.f32 0.046875, %v7468_v35  ;;  %v7619_v60 = vmul.f32 0.046875, %v7469_v23  ;;  %5829 = vst.msk [vmem:[#allocation3 + $0x89] sm:$0x1] %vm5253_vm5, %v5791_v11 }
 0x36d   :  { %v4278_v38 = vadd.f32 %v4277_v45, %v4276_v42  ;;  %v7663_v52 = vadd.f32 %v7615_v43, %v7567_v1  ;;  %v4279_v42 = vsel %vm3379_vm1, %v4155_v26, 0.0  ;;  %v4083_v45 = vadd.f32 %v4082_v63, %v4081_v49  ;;  %v15267_v1 = vld [vmem:[#allocation3 + $0x60] sm:$0xff]  ;;  %v15269_v18 = vld [vmem:[#allocation3 + $0x68] sm:$0xff]  ;;  %v7470_v63 = vld [vmem:[#allocation3 + $0x58] sm:$0x7] }
 0x36e   :  { %v7666_v4 = vadd.f32 %v7618_v58, %v7570_v29  ;;  %v7467_v26 = vld [vmem:[#allocation3 + $0x40] sm:$0x7]  ;;  %v7617_v49 = vmul.f32 0.046875, %v7464_v40  ;;  %v7667_v10 = vadd.f32 %v7619_v60, %v7571_v54  ;;  %v7807_v2 = vmul.f32 0.015625, %v7468_v35  ;;  %v5717_v11 = vld [vmem:[#allocation3 + $0xb6] sm:$0x1] }
 0x36f   :  { %v15264_v50 = vadd.f32 %v4279_v42, %v4278_v38  ;;  %v7759_v30 = vadd.f32 %v7711_v15, %v7663_v52  ;;  %v7572_v43 = vmul.f32 0.015625, %v7467_v26  ;;  %v7620_v44 = vmul.f32 0.046875, %v7470_v63  ;;  %v5716_v52 = vld [vmem:[#allocation3 + $0x9e] sm:$0x1]  ;;  %5755 = vst.msk [vmem:[#allocation3 + $0xb8] sm:$0x1] %vm5253_vm5, %v5717_v11 }
 0x370   :  { %v7713_v38 = vmul.f32 0.046875, %v7467_v26  ;;  %v7808_v42 = vmul.f32 0.015625, %v7469_v23  ;;  %v7665_v51 = vadd.f32 %v7617_v49, %v7569_v14  ;;  %v7714_v58 = vmul.f32 0.046875, %v15267_v1  ;;  %5754 = vst.msk [vmem:[#allocation3 + $0xa0] sm:$0x1] %vm5253_vm5, %v5716_v52 }
 0x371   :  { %v15273_v15 = vadd.f32 %v7807_v2, %v7759_v30  ;;  %v7715_v29 = vmul.f32 0.046875, %v15269_v18  ;;  %v7668_v40 = vadd.f32 %v7620_v44, %v7572_v43  ;;  %v7809_v60 = vmul.f32 0.015625, %v7470_v63  ;;  %v5792_v14 = vld [vmem:[#allocation3 + $0x9d] sm:$0x1]  ;;  %v5793_v23 = vld [vmem:[#allocation3 + $0xb5] sm:$0x1] }
 0x372   :  { %v15279_v54 = vadd.f32 %v7808_v42, %v7760_v25  ;;  %v7716_v35 = vmul.f32 0.046875, %v15271_v6  ;;  %v7761_v30 = vadd.f32 %v7713_v38, %v7665_v51  ;;  %5830 = vst.msk [vmem:[#allocation3 + $0xa1] sm:$0x1] %vm5253_vm5, %v5792_v14  ;;  %5831 = vst.msk [vmem:[#allocation3 + $0xb9] sm:$0x1] %vm5253_vm5, %v5793_v23  ;;  %v15294_v25 = vld [vmem:[#allocation3 + $0x78] sm:$0xff]  ;;  %v7762_v2 = vadd.f32 %v7714_v58, %v7666_v4 }
 0x373   :  { %v7903_v26 = vmul.f32 3.0, %v15273_v15  ;;  %v7763_v43 = vadd.f32 %v7715_v29, %v7667_v10  ;;  %v5643_v42 = vld [vmem:[#allocation3 + $0xda] sm:$0x1]  ;;  %v15302_v21 = vld [vmem:[#allocation3 + $0x88] sm:$0x7]  ;;  %v7810_v29 = vmul.f32 0.015625, %v15294_v25 }
 0x374   :  { %v7904_v49 = vmul.f32 3.0, %v15279_v54  ;;  %v7764_v44 = vadd.f32 %v7716_v35, %v7668_v40  ;;  %v7857_v11 = vadd.f32 %v7809_v60, %v7761_v30  ;;  %5681 = vst.msk [vmem:[#allocation3 + $0xd8] sm:$0x1] %vm5253_vm5, %v5643_v42  ;;  %v5718_v40 = vld [vmem:[#allocation3 + $0xce] sm:$0x1]  ;;  %v8335_v30 = vrot.slane %v15273_v15, 3 }
 0x375   :  { %v7999_v23 = vrot.slane %v7903_v26, 1  ;;  %v8143_v39 = vrot.slane %v7903_v26, 2  ;;  %v5719_v42 = vld [vmem:[#allocation3 + $0xe6] sm:$0x1]  ;;  %5756 = vst.msk [vmem:[#allocation3 + $0xd0] sm:$0x1] %vm5253_vm5, %v5718_v40 }
 0x376   :  { %v7905_v10 = vmul.f32 3.0, %v7857_v11  ;;  %v8144_v58 = vrot.slane %v7904_v49, 2  ;;  %v5794_v26 = vld [vmem:[#allocation3 + $0xcd] sm:$0x1]  ;;  %5757 = vst.msk [vmem:[#allocation3 + $0xe8] sm:$0x1] %vm5253_vm5, %v5719_v42 }
 0x377   :  { %5832 = vst.msk [vmem:[#allocation3 + $0xd1] sm:$0x1] %vm5253_vm5, %v5794_v26 }
 0x37b   :  { %v15277_v56 = vpop.f32.mrf.mxu1 }
 0x37c   :  { %17928 = vst [vmem:[#allocation44_spill] sm:$0xff] %v15277_v56  ;;  %v4086_v57 = vsel %vm3379_vm1, %v15277_v56, 0.0  ;;  %v4157_v16 = vmul.f32 %v15277_v56, %v15277_v56  ;;  %v8000_v56 = vrot.slane %v7904_v49, 1 }
 0x37d   :  { %v15291_v63 = vpop.f32.mrf.mxu1 }
 0x37e   :  { %v4283_v52 = vsel %vm3379_vm1, %v4157_v16, 0.0  ;;  %v4084_v38 = vsel %vm3379_vm1, %v15291_v63, 0.0  ;;  %v4156_v51 = vmul.f32 %v15291_v63, %v15291_v63  ;;  %v8001_v60 = vsel %vm404_vm2, %v7999_v23, %v8000_v56 }
 0x37f   :  { %v4085_v14 = vadd.f32 %v4084_v38, %v4083_v45  ;;  %v15309_v45 = vld [vmem:[#allocation3 + $0x80] sm:$0xff]  ;;  %v8002_v38 = vrot.slane %v7905_v10, 1  ;;  %v8111_v49 = vadd.f32 %v8001_v60, %v15273_v15  ;;  %v8146_v23 = vrot.slane %v7905_v10, 2 }
 0x380   :  { %v4281_v4 = vsel %vm3379_vm1, %v4156_v51, 0.0  ;;  %v8145_v51 = vsel %vm889_vm3, %v8143_v39, %v8144_v58  ;;  %v7811_v0 = vmul.f32 0.015625, %v15309_v45  ;;  %v7812_v15 = vmul.f32 0.015625, %v15302_v21 }
 0x381   :  { %v4087_v35 = vadd.f32 %v4086_v57, %v4085_v14  ;;  %v4282_v16 = vadd.f32 %v4281_v4, %v15264_v50  ;;  %v5795_v57 = vld [vmem:[#allocation3 + $0xe5] sm:$0x1]  ;;  %v8336_v4 = vrot.slane %v15279_v54, 3  ;;  %v8003_v40 = vsel %vm404_vm2, %v8000_v56, %v8002_v38 }
 0x382   :  { %5833 = vst.msk [vmem:[#allocation3 + $0xe9] sm:$0x1] %vm5253_vm5, %v5795_v57  ;;  %v8255_v33 = vadd.f32 %v8145_v51, %v8111_v49  ;;  %v8112_v42 = vadd.f32 %v8003_v40, %v15279_v54  ;;  %v8147_v26 = vsel %vm889_vm3, %v8144_v58, %v8146_v23  ;;  %v8338_v10 = vrot.slane %v7857_v11, 3 }
 0x383   :  { %v4088_v50 = vrot.slane %v4087_v35, 4  ;;  %v4284_v14 = vadd.f32 %v4283_v52, %v4282_v16  ;;  %v8337_v52 = vsel %vm6738_vm7, %v8335_v30, %v8336_v4  ;;  %v15324_v16 = vadd.f32 %v7810_v29, %v7762_v2 }
 0x384   :  { %v15326_v28 = vadd.f32 %v7811_v0, %v7763_v43  ;;  %v8256_v38 = vadd.f32 %v8147_v26, %v8112_v42  ;;  %v8447_v49 = vadd.f32 %v8337_v52, %v8255_v33  ;;  %v8339_v51 = vsel %vm6738_vm7, %v8336_v4, %v8338_v10 }
 0x385   :  { %v4089_v39 = vadd.f32 %v4088_v50, %v4087_v35  ;;  %v4285_v60 = vrot.slane %v4284_v14, 4  ;;  %v15329_v47 = vadd.f32 %v7812_v15, %v7764_v44  ;;  %v15332_v35 = vmul.f32 3.0, %v15324_v16 }
 0x386   :  { %v15335_v54 = vmul.f32 3.0, %v15326_v28  ;;  %v8448_v2 = vadd.f32 %v8339_v51, %v8256_v38  ;;  %v8511_v29 = vcombine.high %v8447_v49, %v8447_v49  ;;  %v8518_v0 = vrot.slane %v8447_v49, %v15253_v9 }
 0x387   :  { %v4090_v57 = vrot.slane %v4089_v39, 2  ;;  %v4286_v56 = vadd.f32 %v4285_v60, %v4284_v14  ;;  %v15339_v43 = vmul.f32 3.0, %v15329_v47  ;;  %v8004_v33 = vrot.slane %v15332_v35, 1 }
 0x388   :  { %v8005_v44 = vrot.slane %v15335_v54, 1  ;;  %v8525_v14 = vrot.slane %v8511_v29, %v15253_v9  ;;  %v8528_v23 = vcombine.high %v8448_v2, %v8448_v2  ;;  %v8526_v4 = vcombine.high %v8518_v0, %v8518_v0 }
 0x389   :  { %v4091_v58 = vadd.f32 %v4090_v57, %v4089_v39  ;;  %v4287_v11 = vrot.slane %v4286_v56, 2  ;;  %v8535_v40 = vrot.slane %v8448_v2, %v15253_v9  ;;  %v9060_v15 = vrot.slane %v8518_v0, %v11453_v8  ;;  %v5645_v39 = vld [vmem:[#allocation3 + $0x10a] sm:$0x1] }
 0x38a   :  { %v8527_v26 = vcombine.high %v8525_v14, %v8525_v14  ;;  %v8542_v52 = vrot.slane %v8528_v23, %v15253_v9  ;;  %5683 = vst.msk [vmem:[#allocation3 + $0x108] sm:$0x1] %vm5253_vm5, %v5645_v39  ;;  %v9064_v57 = vrot.slane %v8526_v4, %v11453_v8 }
 0x38b   :  { %v4092_v30 = vrot.slane %v4091_v58, 1  ;;  %v4288_v50 = vadd.f32 %v4287_v11, %v4286_v56  ;;  %v8543_v10 = vcombine.high %v8535_v40, %v8535_v40  ;;  %v9068_v56 = vrot.slane %v8525_v14, %v11453_v8  ;;  %v5720_v14 = vld [vmem:[#allocation3 + $0xfe] sm:$0x1] }
 0x38c   :  { %v9076_v38 = vrot.slane %v8535_v40, %v11453_v8  ;;  %v8544_v11 = vcombine.high %v8542_v52, %v8542_v52  ;;  %v9072_v2 = vrot.slane %v8527_v26, %v11453_v8  ;;  %v9084_v0 = vrot.slane %v8542_v52, %v11453_v8  ;;  %5758 = vst.msk [vmem:[#allocation3 + $0x100] sm:$0x1] %vm5253_vm5, %v5720_v14 }
 0x38d   :  { %v4093_v60 = vadd.f32 %v4092_v30, %v4091_v58  ;;  %v4289_v42 = vrot.slane %v4288_v50, 1  ;;  %v9056_v58 = vld [vmem:[%s17812_s6] sm:$0xf]  ;;  %v9080_v29 = vrot.slane %v8543_v10, %v11453_v8  ;;  %v9570_v30 = vsel %vm9569_vm8, %v9064_v57, %v9060_v15  ;;  %v5796_v15 = vld [vmem:[#allocation3 + $0xfd] sm:$0x1] }
 0x38e   :  { %11013 = vmatprep.subr.msk.mxu1 %vm3572_vm0, %v9056_v58  ;;  %v9088_v40 = vrot.slane %v8544_v11, %v11453_v8  ;;  %v9572_v39 = vsel %vm9571_vm9, %v9068_v56, %v9570_v30  ;;  %5834 = vst.msk [vmem:[#allocation3 + $0x101] sm:$0x1] %vm5253_vm5, %v5796_v15  ;;  %v8006_v10 = vsel %vm404_vm2, %v8004_v33, %v8005_v44  ;;  %v8007_v56 = vrot.slane %v15339_v43, 1 }
 0x38f   :  { %v4290_v49 = vadd.f32 %v4289_v42, %v4288_v50  ;;  %v15351_v51 = vmul.f32 0.001953125, %v4093_v60  ;;  %v15364_v50 = vld [vmem:[%s17813_s5] sm:$0xf]  ;;  %11014 = vmatpush3.msk.msra.mxu1 %vm3572_vm0, %v9056_v58  ;;  %v5721_v60 = vld [vmem:[#allocation3 + $0x116] sm:$0x1]  ;;  %v9574_v52 = vsel %vm9573_vm10, %v9072_v2, %v9572_v39  ;;  %v8148_v58 = vrot.slane %v15332_v35, 2 }
 0x390   :  { %11039 = vmatprep.subr.msk.mxu1 %vm3572_vm0, %v15364_v50  ;;  %5759 = vst.msk [vmem:[#allocation3 + $0x118] sm:$0x1] %vm5253_vm5, %v5721_v60  ;;  %v5797_v42 = vld [vmem:[#allocation3 + $0x115] sm:$0x1]  ;;  %v9576_v57 = vsel %vm9575_vm11, %v9076_v38, %v9574_v52  ;;  %v8149_v2 = vrot.slane %v15335_v54, 2  ;;  %v8151_v14 = vrot.slane %v15339_v43, 2  ;;  %v8008_v33 = vsel %vm404_vm2, %v8005_v44, %v8007_v56 }
 0x391   :  { %v4293_v23 = vmul.f32 0.001953125, %v4290_v49  ;;  %v4294_v4 = vmul.f32 %v15351_v51, %v15351_v51  ;;  %5835 = vst.msk [vmem:[#allocation3 + $0x119] sm:$0x1] %vm5253_vm5, %v5797_v42  ;;  %v8113_v49 = vadd.f32 %v8006_v10, %v15324_v16  ;;  %v9578_v30 = vsel %vm9577_vm12, %v9080_v29, %v9576_v57  ;;  %v7480_v60 = vld [vmem:[#allocation3 + $0xa8] sm:$0xff]  ;;  %v7482_v42 = vld [vmem:[#allocation3 + $0xb8] sm:$0x7] }
 0x392   :  { %v8340_v38 = vrot.slane %v15324_v16, 3  ;;  %v8114_v39 = vadd.f32 %v8008_v33, %v15326_v28  ;;  %v8150_v29 = vsel %vm889_vm3, %v8148_v58, %v8149_v2  ;;  %v8152_v43 = vsel %vm889_vm3, %v8149_v2, %v8151_v14  ;;  %v7481_v16 = vld [vmem:[#allocation3 + $0xb0] sm:$0xff]  ;;  %v7478_v2 = vld [vmem:[#allocation3 + $0x98] sm:$0xff]  ;;  %v7479_v33 = vld [vmem:[#allocation3 + $0xa0] sm:$0x7] }
 0x393   :  { %v4295_v26 = vsub.f32 %v4293_v23, %v4294_v4  ;;  %v9580_v23 = vsel %vm9579_vm13, %v9084_v0, %v9578_v30  ;;  %v8341_v4 = vrot.slane %v15326_v28, 3  ;;  %v8257_v0 = vadd.f32 %v8150_v29, %v8113_v49  ;;  %v7477_v58 = vld [vmem:[#allocation3 + $0x90] sm:$0xff] }
 0x394   :  { %v9582_v35 = vsel %vm9581_vm14, %v9088_v40, %v9580_v23  ;;  %v8343_v44 = vrot.slane %v15329_v47, 3  ;;  %v8258_v15 = vadd.f32 %v8152_v43, %v8114_v39  ;;  %v7574_v40 = vmul.f32 0.015625, %v15269_v18 }
 0x395   :  { %v4297_v11 = vadd.f32 1e-05, %v4295_v26  ;;  %11015 = vmatprep.mubr.msk.f32.mxu1 %vm3379_vm1, %v9582_v35  ;;  %v8342_v54 = vsel %vm6738_vm7, %v8340_v38, %v8341_v4  ;;  %v7573_v26 = vmul.f32 0.015625, %v15267_v1  ;;  %v7575_v28 = vmul.f32 0.015625, %v15271_v6 }
 0x396   :  { %v8344_v52 = vsel %vm6738_vm7, %v8341_v4, %v8343_v44  ;;  %v8449_v10 = vadd.f32 %v8342_v54, %v8257_v0  ;;  %v7621_v57 = vmul.f32 0.046875, %v15294_v25  ;;  %v7622_v56 = vmul.f32 0.046875, %v15309_v45  ;;  %v5647_v44 = vld [vmem:[#allocation3 + $0x13a] sm:$0x1] }
 0x397   :  { %11069 = vrsqrt.f32 %v4297_v11  ;;  %v8450_v49 = vadd.f32 %v8344_v52, %v8258_v15  ;;  %v7623_v47 = vmul.f32 0.046875, %v15302_v21  ;;  %v15408_v11 = vmul.f32 0.046875, %v7480_v60  ;;  %5685 = vst.msk [vmem:[#allocation3 + $0x138] sm:$0x1] %vm5253_vm5, %v5647_v44 }
 0x398   :  { %v15410_v30 = vmul.f32 0.046875, %v7481_v16  ;;  %v8545_v1 = vcombine.high %v8449_v10, %v8449_v10  ;;  %v8552_v18 = vrot.slane %v8449_v10, %v15253_v9  ;;  %v15413_v6 = vmul.f32 0.046875, %v7482_v42 }
 0x399   :  { %17929 = vst [vmem:[#allocation45_spill] sm:$0xff] %v15408_v11  ;;  %v7669_v14 = vadd.f32 %v7621_v57, %v7573_v26  ;;  %v8562_v23 = vcombine.high %v8450_v49, %v8450_v49  ;;  %v8569_v25 = vrot.slane %v8450_v49, %v15253_v9  ;;  %v7670_v45 = vadd.f32 %v7622_v56, %v7574_v40  ;;  %v5723_v11 = vld [vmem:[#allocation3 + $0x146] sm:$0x1] }
 0x39a   :  { %17930 = vst [vmem:[#allocation46_spill] sm:$0xff] %v15410_v30  ;;  %17931 = vst [vmem:[#allocation47_spill] sm:$0xff] %v15413_v6  ;;  %v7671_v38 = vadd.f32 %v7623_v47, %v7575_v28  ;;  %v8559_v4 = vrot.slane %v8545_v1, %v15253_v9  ;;  %v8560_v21 = vcombine.high %v8552_v18, %v8552_v18  ;;  %v7717_v39 = vmul.f32 0.046875, %v7477_v58  ;;  %v4296_v28 = vld [vmem:[%s17814_s3] sm:$0x1] }
 0x39b   :  { %v9092_v35 = vrot.slane %v8552_v18, %v11453_v8  ;;  %v8576_v29 = vrot.slane %v8562_v23, %v15253_v9  ;;  %v8577_v43 = vcombine.high %v8569_v25, %v8569_v25  ;;  %v9108_v0 = vrot.slane %v8569_v25, %v11453_v8  ;;  %v7486_v25 = vld [vmem:[#allocation3 + $0xd8] sm:$0xff]  ;;  %5761 = vst.msk [vmem:[#allocation3 + $0x148] sm:$0x1] %vm5253_vm5, %v5723_v11 }
 0x39c   :  { %v7718_v54 = vmul.f32 0.046875, %v7478_v2  ;;  %v8561_v15 = vcombine.high %v8559_v4, %v8559_v4  ;;  %v9096_v26 = vrot.slane %v8560_v21, %v11453_v8  ;;  %v9100_v52 = vrot.slane %v8559_v4, %v11453_v8  ;;  %v5722_v4 = vld [vmem:[#allocation3 + $0x12e] sm:$0x1]  ;;  %v5798_v21 = vld [vmem:[#allocation3 + $0x12d] sm:$0x1] }
 0x39d   :  { %v7719_v40 = vmul.f32 0.046875, %v7479_v33  ;;  %v8578_v10 = vcombine.high %v8576_v29, %v8576_v29  ;;  %v9112_v57 = vrot.slane %v8577_v43, %v11453_v8  ;;  %v9116_v56 = vrot.slane %v8576_v29, %v11453_v8  ;;  %5760 = vst.msk [vmem:[#allocation3 + $0x130] sm:$0x1] %vm5253_vm5, %v5722_v4  ;;  %v5799_v29 = vld [vmem:[#allocation3 + $0x145] sm:$0x1] }
 0x39e   :  { %v7765_v49 = vadd.f32 %v7717_v39, %v7669_v14  ;;  %v9104_v47 = vrot.slane %v8561_v15, %v11453_v8  ;;  %v9583_v1 = vsel %vm9569_vm8, %v9096_v26, %v9092_v35  ;;  %v7766_v18 = vadd.f32 %v7718_v54, %v7670_v45  ;;  %5836 = vst.msk [vmem:[#allocation3 + $0x131] sm:$0x1] %vm5253_vm5, %v5798_v21 }
 0x39f   :  { %v7767_v23 = vadd.f32 %v7719_v40, %v7671_v38  ;;  %v9120_v44 = vrot.slane %v8578_v10, %v11453_v8  ;;  %v9584_v9 = vsel %vm9571_vm9, %v9100_v52, %v9583_v1  ;;  %v7813_v6 = vmul.f32 0.015625, %v7480_v60  ;;  %5837 = vst.msk [vmem:[#allocation3 + $0x149] sm:$0x1] %vm5253_vm5, %v5799_v29  ;;  %v17947_v29 = vld [vmem:[#allocation9_spill] sm:$0xff] }
 0x3a0   :  { %v7814_v30 = vmul.f32 0.015625, %v7481_v16  ;;  %v9585_v35 = vsel %vm9573_vm10, %v9104_v47, %v9584_v9  ;;  %v7815_v45 = vmul.f32 0.015625, %v7482_v42  ;;  %v15435_v38 = vmul.f32 0.015625, %v7477_v58  ;;  %v4300_v9 = vld [vmem:[%s17815_s4] sm:$0x1] }
 0x3a1   :  { %v15437_v39 = vmul.f32 0.015625, %v7478_v2  ;;  %v9586_v16 = vsel %vm9575_vm11, %v9108_v0, %v9585_v35  ;;  %v15442_v43 = vadd.f32 %v7813_v6, %v7765_v49  ;;  %v15452_v2 = vmul.f32 0.015625, %v7479_v33  ;;  %v17948_v35 = vld [vmem:[#allocation12_spill] sm:$0xff] }
 0x3a2   :  { %17932 = vst [vmem:[#allocation48_spill] sm:$0xff] %v15435_v38  ;;  %v15444_v54 = vadd.f32 %v7814_v30, %v7766_v18  ;;  %v9587_v42 = vsel %vm9577_vm12, %v9112_v57, %v9586_v16  ;;  %v15450_v58 = vadd.f32 %v7815_v45, %v7767_v23  ;;  %v15454_v11 = vmul.f32 0.046875, %v7486_v25  ;;  %v17942_v18 = vld [vmem:[#allocation6_spill] sm:$0xff]  ;;  %v17943_v23 = vld [vmem:[#allocation5_spill] sm:$0xff]  ;;  %v17944_v25 = vld [vmem:[#allocation8_spill] sm:$0xff] }
 0x3a3   :  { %17933 = vst [vmem:[#allocation49_spill] sm:$0xff] %v15437_v39  ;;  %17934 = vst [vmem:[#allocation50_spill] sm:$0xff] %v15442_v43  ;;  %v9588_v30 = vsel %vm9579_vm13, %v9116_v56, %v9587_v42  ;;  %v15462_v6 = vmul.f32 3.0, %v15442_v43  ;;  %v17973_v39 = vld [vmem:[#allocation33_spill] sm:$0xff]  ;;  %v17979_v38 = vld [vmem:[#allocation38_spill] sm:$0xff] }
 0x3a4   :  { %v11070_v14 = vpop.eup %11069  ;;  %17935 = vst [vmem:[#allocation51_spill] sm:$0xff] %v15444_v54  ;;  %17936 = vst [vmem:[#allocation52_spill] sm:$0xff] %v15450_v58  ;;  %v9589_v26 = vsel %vm9581_vm14, %v9120_v44, %v9588_v30  ;;  %v15466_v52 = vmul.f32 3.0, %v15444_v54  ;;  %v15469_v33 = vmul.f32 3.0, %v15450_v58  ;;  %v17946_v44 = vld [vmem:[#allocation10_spill] sm:$0xff] }
 0x3a5   :  { %v4299_v60 = vmul.f32 %v11070_v14, %v4296_v28  ;;  %17937 = vst [vmem:[#allocation53_spill] sm:$0xff] %v15452_v2  ;;  %17938 = vst [vmem:[#allocation54_spill] sm:$0xff] %v15454_v11  ;;  %11016 = vmatmul.mubr.msk.f32.vlgmr.msra.gmra.mxu1 %vm3379_vm1, %v9589_v26  ;;  %v17952_v26 = vld [vmem:[#allocation16_spill] sm:$0xff]  ;;  %v17971_v2 = vld [vmem:[#allocation34_spill] sm:$0xff] }
 0x3a6   :  { %17939 = vst [vmem:[#allocation55_spill] sm:$0xff] %v15462_v6  ;;  %17940 = vst [vmem:[#allocation56_spill] sm:$0xff] %v15466_v52  ;;  %11040 = vmatpush3.msk.msra.mxu1 %vm3572_vm0, %v15364_v50  ;;  %v17975_v52 = vld [vmem:[#allocation36_spill] sm:$0xff]  ;;  %v17977_v6 = vld [vmem:[#allocation35_spill] sm:$0xff] }
 0x3a7   :  { %v4301_v15 = vmul.f32 %v4299_v60, %v15351_v51  ;;  %v15458_v0 = vrot.slane %v4299_v60, %v11453_v8  ;;  %17941 = vst [vmem:[#allocation57_spill] sm:$0xff] %v15469_v33  ;;  %v17949_v60 = vld [vmem:[#allocation11_spill] sm:$0xff] }
 0x3a9   :  { %v4302_v28 = vsub.f32 %v4300_v9, %v4301_v15  ;;  %v4371_v51 = vmul.f32 %v15458_v0, %v15291_v63  ;;  %v15476_v10 = vmul.f32 %v15458_v0, %v14377_v59  ;;  %v15480_v57 = vmul.f32 %v14346_v32, %v15458_v0  ;;  %v17950_v9 = vld [vmem:[#allocation14_spill] sm:$0xff]  ;;  %v17951_v15 = vld [vmem:[#allocation13_spill] sm:$0xff] }
 0x3aa   :  { %v15485_v56 = vmul.f32 %v15458_v0, %v14415_v12  ;;  %v15489_v49 = vmul.f32 %v14391_v61, %v15458_v0  ;;  %v15493_v63 = vmul.f32 %v15458_v0, %v14451_v46  ;;  %v15497_v59 = vmul.f32 %v14431_v7, %v15458_v0 }
 0x3ab   :  { %v15502_v32 = vrot.slane %v4302_v28, %v11453_v8  ;;  %v15506_v12 = vmul.f32 %v15458_v0, %v14508_v19  ;;  %v15510_v61 = vmul.f32 %v14489_v36, %v15458_v0  ;;  %v15514_v46 = vmul.f32 %v15458_v0, %v14557_v62 }
 0x3ac   :  { %v15518_v7 = vmul.f32 %v14539_v13, %v15458_v0  ;;  %v15522_v50 = vmul.f32 %v15458_v0, %v14608_v5  ;;  %v15526_v19 = vmul.f32 %v14579_v37, %v15458_v0  ;;  %v15530_v36 = vmul.f32 %v15458_v0, %v14643_v48 }
 0x3ad   :  { %v4441_v47 = vadd.f32 %v15502_v32, %v4371_v51  ;;  %v15535_v62 = vmul.f32 %v14622_v41, %v15458_v0  ;;  %v15539_v13 = vmul.f32 %v15458_v0, %v14851_v53  ;;  %v15543_v5 = vmul.f32 %v14673_v27, %v15458_v0  ;;  %v17953_v51 = vld [vmem:[#allocation15_spill] sm:$0xff] }
 0x3ae   :  { %v15547_v37 = vmul.f32 %v15458_v0, %v14886_v20  ;;  %v15551_v48 = vmul.f32 %v14871_v22, %v15458_v0  ;;  %v15555_v41 = vmul.f32 %v15458_v0, %v14911_v31  ;;  %v15559_v53 = vmul.f32 %v14899_v3, %v15458_v0 }
 0x3af   :  { %v4505_v1 = vmax.f32 %v4441_v47, 0.0  ;;  %v15563_v27 = vmul.f32 %v15458_v0, %v14935_v24  ;;  %v15567_v20 = vmul.f32 %v14923_v55, %v15458_v0  ;;  %v15571_v22 = vmul.f32 %v15458_v0, %v14959_v17  ;;  %v17945_v17 = vld [vmem:[#allocation7_spill] sm:$0xff] }
 0x3b0   :  { %v15575_v31 = vmul.f32 %v14947_v34, %v15458_v0  ;;  %v15579_v3 = vmul.f32 %v15458_v0, %v17942_v18  ;;  %v15583_v24 = vmul.f32 %v17943_v23, %v15458_v0  ;;  %v15587_v55 = vmul.f32 %v15458_v0, %v17944_v25  ;;  %v17955_v23 = vld [vmem:[#allocation17_spill] sm:$0xff] }
 0x3b1   :  { %v4569_v4 = vmin.f32 %v4505_v1, 6.0  ;;  %v15591_v21 = vmul.f32 %v17945_v17, %v15458_v0  ;;  %v15595_v34 = vmul.f32 %v15458_v0, %v17946_v44  ;;  %v15599_v14 = vmul.f32 %v17947_v29, %v15458_v0  ;;  %v17954_v1 = vld [vmem:[#allocation18_spill] sm:$0xff]  ;;  %v5724_v17 = vld [vmem:[#allocation3 + $0x15e] sm:$0x1]  ;;  %v5725_v44 = vld [vmem:[#allocation3 + $0x176] sm:$0x1] }
 0x3b2   :  { %v15603_v45 = vmul.f32 %v15458_v0, %v17948_v35  ;;  %v15607_v16 = vmul.f32 %v17949_v60, %v15458_v0  ;;  %v15611_v42 = vmul.f32 %v15458_v0, %v17950_v9  ;;  %v15615_v30 = vmul.f32 %v17951_v15, %v15458_v0  ;;  %v5800_v29 = vld [vmem:[#allocation3 + $0x15d] sm:$0x1]  ;;  %v17957_v60 = vld [vmem:[#allocation19_spill] sm:$0xff]  ;;  %v17958_v15 = vld [vmem:[#allocation22_spill] sm:$0xff]  ;;  %5762 = vst.msk [vmem:[#allocation3 + $0x160] sm:$0x1] %vm5253_vm5, %v5724_v17 }
 0x3b3   :  { %5199 = vst.msk [vmem:[#allocation2 + $0x349] sm:$0xff] %vm3379_vm1, %v4569_v4  ;;  %v15620_v28 = vmul.f32 %v15458_v0, %v17952_v26  ;;  %v15624_v47 = vmul.f32 %v17953_v51, %v15458_v0  ;;  %v15628_v18 = vmul.f32 %v15458_v0, %v17954_v1  ;;  %v15632_v25 = vmul.f32 %v17955_v23, %v15458_v0  ;;  %v17956_v4 = vld [vmem:[#allocation20_spill] sm:$0xff]  ;;  %v17959_v51 = vld [vmem:[#allocation21_spill] sm:$0xff] }
 0x3b4   :  { %v15636_v35 = vmul.f32 %v15458_v0, %v17956_v4  ;;  %v15640_v9 = vmul.f32 %v17957_v60, %v15458_v0  ;;  %v15644_v26 = vmul.f32 %v15458_v0, %v17958_v15  ;;  %v15648_v1 = vmul.f32 %v17959_v51, %v15458_v0  ;;  %5763 = vst.msk [vmem:[#allocation3 + $0x178] sm:$0x1] %vm5253_vm5, %v5725_v44  ;;  %v5801_v23 = vld [vmem:[#allocation3 + $0x175] sm:$0x1]  ;;  %v17961_v60 = vld [vmem:[#allocation23_spill] sm:$0xff]  ;;  %v17962_v15 = vld [vmem:[#allocation26_spill] sm:$0xff] }
 0x3b5   :  { %5838 = vst.msk [vmem:[#allocation3 + $0x161] sm:$0x1] %vm5253_vm5, %v5800_v29  ;;  %v17960_v4 = vld [vmem:[#allocation24_spill] sm:$0xff]  ;;  %v15659_v11 = vmul.f32 %v17961_v60, %v15458_v0  ;;  %v15663_v8 = vmul.f32 %v15458_v0, %v17962_v15  ;;  %v17963_v51 = vld [vmem:[#allocation25_spill] sm:$0xff]  ;;  %5839 = vst.msk [vmem:[#allocation3 + $0x179] sm:$0x1] %vm5253_vm5, %v5801_v23 }
 0x3b6   :  { %v15655_v40 = vmul.f32 %v15458_v0, %v17960_v4  ;;  %v15667_v17 = vmul.f32 %v17963_v51, %v15458_v0  ;;  %v17964_v44 = vld [vmem:[#allocation28_spill] sm:$0xff]  ;;  %v17965_v4 = vld [vmem:[#allocation27_spill] sm:$0xff]  ;;  %v17966_v60 = vld [vmem:[#allocation30_spill] sm:$0xff] }
 0x3b7   :  { %v15672_v29 = vmul.f32 %v15458_v0, %v17964_v44  ;;  %v15676_v43 = vmul.f32 %v17965_v4, %v15458_v0  ;;  %v15680_v58 = vmul.f32 %v15458_v0, %v17966_v60  ;;  %v17967_v15 = vld [vmem:[#allocation29_spill] sm:$0xff]  ;;  %v17968_v51 = vld [vmem:[#allocation32_spill] sm:$0xff]  ;;  %v17969_v23 = vld [vmem:[#allocation31_spill] sm:$0xff]  ;;  %v15696_v4 = vmul.f32 %v15458_v0, %v17971_v2 }
 0x3b8   :  { %v15684_v54 = vmul.f32 %v17967_v15, %v15458_v0  ;;  %v15688_v33 = vmul.f32 %v15458_v0, %v17968_v51  ;;  %v15692_v44 = vmul.f32 %v17969_v23, %v15458_v0  ;;  %v15700_v60 = vmul.f32 %v17973_v39, %v15458_v0 }
 0x3b9   :  { %17972 = vst [vmem:[#allocation5_spill] sm:$0xff] %v15696_v4  ;;  %v15704_v15 = vmul.f32 %v15458_v0, %v17975_v52  ;;  %v15708_v51 = vmul.f32 %v17977_v6, %v15458_v0  ;;  %v15712_v23 = vmul.f32 %v15458_v0, %v17979_v38  ;;  %v17983_v4 = vld [vmem:[#allocation40_spill] sm:$0xff] }
 0x3ba   :  { %17970 = vst [vmem:[#allocation6_spill] sm:$0xff] %v15692_v44  ;;  %17974 = vst [vmem:[#allocation8_spill] sm:$0xff] %v15700_v60  ;;  %v17981_v44 = vld [vmem:[#allocation37_spill] sm:$0xff]  ;;  %v15720_v39 = vmul.f32 %v15458_v0, %v17983_v4  ;;  %v17984_v60 = vld [vmem:[#allocation39_spill] sm:$0xff]  ;;  %v15740_v4 = vadd.f32 %v15502_v32, %v15476_v10  ;;  %v15761_v10 = vadd.f32 %v15502_v32, %v15497_v59 }
 0x3bb   :  { %17976 = vst [vmem:[#allocation7_spill] sm:$0xff] %v15704_v15  ;;  %17978 = vst [vmem:[#allocation10_spill] sm:$0xff] %v15708_v51  ;;  %v15716_v2 = vmul.f32 %v17981_v44, %v15458_v0  ;;  %v15724_v52 = vmul.f32 %v17984_v60, %v15458_v0  ;;  %v17985_v15 = vld [vmem:[#allocation42_spill] sm:$0xff]  ;;  %v17986_v51 = vld [vmem:[#allocation41_spill] sm:$0xff]  ;;  %v15744_v60 = vadd.f32 %v15502_v32, %v15480_v57 }
 0x3bc   :  { %17980 = vst [vmem:[#allocation9_spill] sm:$0xff] %v15712_v23  ;;  %v15728_v6 = vmul.f32 %v15458_v0, %v17985_v15  ;;  %v15732_v38 = vmul.f32 %v17986_v51, %v15458_v0  ;;  %v5250_v23 = vld [vmem:[#allocation2 + $0x34a] sm:$0x1]  ;;  %v17987_v44 = vld [vmem:[#allocation44_spill] sm:$0xff]  ;;  %v15748_v15 = vadd.f32 %v15502_v32, %v15485_v56  ;;  %v15753_v51 = vadd.f32 %v15502_v32, %v15489_v49 }
 0x3bd   :  { %17982 = vst [vmem:[#allocation12_spill] sm:$0xff] %v15716_v2  ;;  %v15736_v2 = vmul.f32 %v17987_v44, %v15458_v0  ;;  %5289 = vst.msk [vmem:[#allocation2 + $0x348] sm:$0x1] %vm5253_vm5, %v5250_v23  ;;  %v15757_v0 = vadd.f32 %v15502_v32, %v15493_v63  ;;  %v15765_v57 = vadd.f32 %v15502_v32, %v15506_v12  ;;  %v5651_v23 = vld [vmem:[#allocation3 + $0x19a] sm:$0x1] }
 0x3be   :  { %v15769_v56 = vadd.f32 %v15502_v32, %v15510_v61  ;;  %v15773_v49 = vadd.f32 %v15502_v32, %v15514_v46  ;;  %v15777_v63 = vadd.f32 %v15502_v32, %v15518_v7  ;;  %v15781_v59 = vadd.f32 %v15502_v32, %v15522_v50  ;;  %5689 = vst.msk [vmem:[#allocation3 + $0x198] sm:$0x1] %vm5253_vm5, %v5651_v23  ;;  %v5802_v44 = vld [vmem:[#allocation3 + $0x18d] sm:$0x1] }
 0x3bf   :  { %v15785_v12 = vadd.f32 %v15502_v32, %v15526_v19  ;;  %v15789_v61 = vadd.f32 %v15502_v32, %v15530_v36  ;;  %v15793_v46 = vadd.f32 %v15502_v32, %v15535_v62  ;;  %v15797_v7 = vadd.f32 %v15502_v32, %v15539_v13  ;;  %5840 = vst.msk [vmem:[#allocation3 + $0x191] sm:$0x1] %vm5253_vm5, %v5802_v44 }
 0x3c0   :  { %v15801_v50 = vadd.f32 %v15502_v32, %v15543_v5  ;;  %v15805_v19 = vadd.f32 %v15502_v32, %v15547_v37  ;;  %v15809_v36 = vadd.f32 %v15502_v32, %v15551_v48  ;;  %v15813_v62 = vadd.f32 %v15502_v32, %v15555_v41 }
 0x3c1   :  { %v15817_v13 = vadd.f32 %v15502_v32, %v15559_v53  ;;  %v15821_v5 = vadd.f32 %v15502_v32, %v15563_v27  ;;  %v15825_v37 = vadd.f32 %v15502_v32, %v15567_v20  ;;  %v15829_v48 = vadd.f32 %v15502_v32, %v15571_v22 }
 0x3c2   :  { %v15833_v41 = vadd.f32 %v15502_v32, %v15575_v31  ;;  %v15837_v53 = vadd.f32 %v15502_v32, %v15579_v3  ;;  %v15841_v27 = vadd.f32 %v15502_v32, %v15583_v24  ;;  %v15845_v20 = vadd.f32 %v15502_v32, %v15587_v55 }
 0x3c3   :  { %v15849_v22 = vadd.f32 %v15502_v32, %v15591_v21  ;;  %v15853_v31 = vadd.f32 %v15502_v32, %v15595_v34  ;;  %v15857_v3 = vadd.f32 %v15502_v32, %v15599_v14  ;;  %v15861_v24 = vadd.f32 %v15502_v32, %v15603_v45 }
 0x3c4   :  { %v15865_v55 = vadd.f32 %v15502_v32, %v15607_v16  ;;  %v15869_v21 = vadd.f32 %v15502_v32, %v15611_v42  ;;  %v15873_v34 = vadd.f32 %v15502_v32, %v15615_v30  ;;  %v15877_v14 = vadd.f32 %v15502_v32, %v15620_v28 }
 0x3c5   :  { %v15881_v45 = vadd.f32 %v15502_v32, %v15624_v47  ;;  %v15885_v16 = vadd.f32 %v15502_v32, %v15628_v18  ;;  %v15889_v42 = vadd.f32 %v15502_v32, %v15632_v25  ;;  %v15893_v30 = vadd.f32 %v15502_v32, %v15636_v35 }
 0x3c6   :  { %v15897_v28 = vadd.f32 %v15502_v32, %v15640_v9  ;;  %v15901_v47 = vadd.f32 %v15502_v32, %v15644_v26  ;;  %v15905_v18 = vadd.f32 %v15502_v32, %v15648_v1  ;;  %v15909_v25 = vadd.f32 %v15502_v32, %v15655_v40  ;;  %v5726_v40 = vld [vmem:[#allocation3 + $0x18e] sm:$0x1] }
 0x3c7   :  { %17988 = vst [vmem:[#allocation11_spill] sm:$0xff] %v15885_v16  ;;  %17989 = vst [vmem:[#allocation14_spill] sm:$0xff] %v15889_v42  ;;  %v15914_v35 = vadd.f32 %v15502_v32, %v15659_v11  ;;  %v15918_v9 = vadd.f32 %v15502_v32, %v15663_v8  ;;  %v15922_v26 = vadd.f32 %v15502_v32, %v15667_v17  ;;  %v18028_v16 = vmax.f32 %v15757_v0, 0.0 }
 0x3c8   :  { %17990 = vst [vmem:[#allocation13_spill] sm:$0xff] %v15901_v47  ;;  %17991 = vst [vmem:[#allocation16_spill] sm:$0xff] %v15905_v18  ;;  %v15926_v1 = vadd.f32 %v15502_v32, %v15672_v29  ;;  %v15930_v23 = vadd.f32 %v15502_v32, %v15676_v43  ;;  %v15934_v11 = vadd.f32 %v15502_v32, %v15680_v58  ;;  %v17999_v29 = vld [vmem:[#allocation6_spill] sm:$0xff]  ;;  %v18033_v0 = vmax.f32 %v15777_v63, 0.0 }
 0x3c9   :  { %17992 = vst [vmem:[#allocation15_spill] sm:$0xff] %v15909_v25  ;;  %17993 = vst [vmem:[#allocation18_spill] sm:$0xff] %v15914_v35  ;;  %v15938_v8 = vadd.f32 %v15502_v32, %v15684_v54  ;;  %v15942_v17 = vadd.f32 %v15502_v32, %v15688_v33  ;;  %v15948_v43 = vadd.f32 %v15502_v32, %v17999_v29  ;;  %v18009_v29 = vld [vmem:[#allocation9_spill] sm:$0xff]  ;;  %v5731_v35 = vld [vmem:[#allocation3 + $0x206] sm:$0x1]  ;;  %v18026_v25 = vmax.f32 %v15748_v15, 0.0 }
 0x3ca   :  { %17994 = vst [vmem:[#allocation17_spill] sm:$0xff] %v15926_v1  ;;  %17995 = vst [vmem:[#allocation20_spill] sm:$0xff] %v15930_v23  ;;  %v18001_v23 = vld [vmem:[#allocation5_spill] sm:$0xff]  ;;  %v18007_v1 = vld [vmem:[#allocation10_spill] sm:$0xff]  ;;  %v4511_v42 = vmin.f32 %v18028_v16, 6.0  ;;  %v18032_v15 = vmax.f32 %v15773_v49, 0.0 }
 0x3cb   :  { %17996 = vst [vmem:[#allocation19_spill] sm:$0xff] %v15934_v11  ;;  %17997 = vst [vmem:[#allocation22_spill] sm:$0xff] %v15938_v8  ;;  %v15952_v58 = vadd.f32 %v15502_v32, %v18001_v23  ;;  %v18003_v11 = vld [vmem:[#allocation8_spill] sm:$0xff]  ;;  %v18005_v8 = vld [vmem:[#allocation7_spill] sm:$0xff]  ;;  %v15964_v44 = vadd.f32 %v15502_v32, %v18007_v1  ;;  %v15982_v1 = vadd.f32 %v15502_v32, %v15724_v52  ;;  %v18025_v52 = vmax.f32 %v15744_v60, 0.0 }
 0x3cc   :  { %17998 = vst [vmem:[#allocation21_spill] sm:$0xff] %v15942_v17  ;;  %5764 = vst.msk [vmem:[#allocation3 + $0x190] sm:$0x1] %vm5253_vm5, %v5726_v40  ;;  %v15956_v54 = vadd.f32 %v15502_v32, %v18003_v11  ;;  %v15960_v33 = vadd.f32 %v15502_v32, %v18005_v8  ;;  %v5727_v17 = vld [vmem:[#allocation3 + $0x1a6] sm:$0x1]  ;;  %v18010_v23 = vld [vmem:[#allocation12_spill] sm:$0xff]  ;;  %v15976_v11 = vadd.f32 %v15502_v32, %v15720_v39 }
 0x3cd   :  { %18000 = vst [vmem:[#allocation24_spill] sm:$0xff] %v15948_v43  ;;  %18002 = vst [vmem:[#allocation23_spill] sm:$0xff] %v15952_v58  ;;  %v5803_v40 = vld [vmem:[#allocation3 + $0x1a5] sm:$0x1]  ;;  %v15968_v43 = vadd.f32 %v15502_v32, %v18009_v29  ;;  %v15972_v58 = vadd.f32 %v15502_v32, %v18010_v23  ;;  %v15986_v8 = vadd.f32 %v15502_v32, %v15728_v6  ;;  %v4509_v23 = vmin.f32 %v18026_v25, 6.0 }
 0x3ce   :  { %18004 = vst [vmem:[#allocation26_spill] sm:$0xff] %v15956_v54  ;;  %18006 = vst [vmem:[#allocation25_spill] sm:$0xff] %v15960_v33  ;;  %v15990_v29 = vadd.f32 %v15502_v32, %v15732_v38  ;;  %v15994_v39 = vadd.f32 %v15502_v32, %v15736_v2  ;;  %v5730_v32 = vld [vmem:[#allocation3 + $0x1ee] sm:$0x1]  ;;  %v5806_v33 = vld [vmem:[#allocation3 + $0x1ed] sm:$0x1] }
 0x3cf   :  { %18008 = vst [vmem:[#allocation28_spill] sm:$0xff] %v15964_v44  ;;  %5765 = vst.msk [vmem:[#allocation3 + $0x1a8] sm:$0x1] %vm5253_vm5, %v5727_v17  ;;  %v5656_v17 = vld [vmem:[#allocation3 + $0x212] sm:$0x1]  ;;  %v18024_v44 = vmax.f32 %v15740_v4, 0.0 }
 0x3d0   :  { %5841 = vst.msk [vmem:[#allocation3 + $0x1a9] sm:$0x1] %vm5253_vm5, %v5803_v40  ;;  %18011 = vst [vmem:[#allocation27_spill] sm:$0xff] %v15982_v1  ;;  %v4508_v1 = vmin.f32 %v18025_v52, 6.0  ;;  %v5807_v54 = vld [vmem:[#allocation3 + $0x205] sm:$0x1] }
 0x3d1   :  { %18012 = vst [vmem:[#allocation30_spill] sm:$0xff] %v15986_v8  ;;  %18013 = vst [vmem:[#allocation29_spill] sm:$0xff] %v15990_v29  ;;  %v5729_v8 = vld [vmem:[#allocation3 + $0x1d6] sm:$0x1]  ;;  %v18014_v38 = vld [vmem:[#allocation17_spill] sm:$0xff]  ;;  %v18029_v4 = vmax.f32 %v15761_v10, 0.0 }
 0x3d2   :  { %5694 = vst.msk [vmem:[#allocation3 + $0x210] sm:$0x1] %vm5253_vm5, %v5656_v17  ;;  %5767 = vst.msk [vmem:[#allocation3 + $0x1d8] sm:$0x1] %vm5253_vm5, %v5729_v8  ;;  %v18016_v2 = vld [vmem:[#allocation19_spill] sm:$0xff]  ;;  %v18017_v47 = vld [vmem:[#allocation22_spill] sm:$0xff] }
 0x3d3   :  { %v18018_v18 = vld [vmem:[#allocation21_spill] sm:$0xff]  ;;  %5768 = vst.msk [vmem:[#allocation3 + $0x1f0] sm:$0x1] %vm5253_vm5, %v5730_v32  ;;  %5769 = vst.msk [vmem:[#allocation3 + $0x208] sm:$0x1] %vm5253_vm5, %v5731_v35  ;;  %v4507_v35 = vmin.f32 %v18024_v44, 6.0 }
 0x3d4   :  { %v18020_v6 = vld [vmem:[#allocation23_spill] sm:$0xff]  ;;  %v5732_v8 = vld [vmem:[#allocation3 + $0x21e] sm:$0x1]  ;;  %v5805_v32 = vld [vmem:[#allocation3 + $0x1d5] sm:$0x1]  ;;  %v4512_v44 = vmin.f32 %v18029_v4, 6.0 }
 0x3d5   :  { %5770 = vst.msk [vmem:[#allocation3 + $0x220] sm:$0x1] %vm5253_vm5, %v5732_v8  ;;  %5843 = vst.msk [vmem:[#allocation3 + $0x1d9] sm:$0x1] %vm5253_vm5, %v5805_v32  ;;  %v18027_v8 = vmax.f32 %v15753_v51, 0.0  ;;  %v18030_v32 = vmax.f32 %v15765_v57, 0.0 }
 0x3d6   :  { %5844 = vst.msk [vmem:[#allocation3 + $0x1f1] sm:$0x1] %vm5253_vm5, %v5806_v33  ;;  %v18031_v60 = vmax.f32 %v15769_v56, 0.0  ;;  %v4515_v25 = vmin.f32 %v18032_v15, 6.0  ;;  %v5808_v51 = vld [vmem:[#allocation3 + $0x21d] sm:$0x1] }
 0x3d7   :  { %v4510_v40 = vmin.f32 %v18027_v8, 6.0  ;;  %v4513_v29 = vmin.f32 %v18030_v32, 6.0  ;;  %5137 = vst.msk [vmem:[#allocation2 + $0x19] sm:$0xff] %vm3379_vm1, %v4507_v35  ;;  %v4516_v16 = vmin.f32 %v18033_v0, 6.0  ;;  %v18034_v10 = vmax.f32 %v15781_v59, 0.0  ;;  %5138 = vst.msk [vmem:[#allocation2 + $0x21] sm:$0xff] %vm3379_vm1, %v4508_v1 }
 0x3d8   :  { %v18022_v17 = vld [vmem:[#allocation30_spill] sm:$0xff]  ;;  %v4514_v52 = vmin.f32 %v18031_v60, 6.0  ;;  %5845 = vst.msk [vmem:[#allocation3 + $0x209] sm:$0x1] %vm5253_vm5, %v5807_v54  ;;  %v18035_v57 = vmax.f32 %v15785_v12, 0.0  ;;  %v18036_v56 = vmax.f32 %v15789_v61, 0.0 }
 0x3d9   :  { %v4517_v33 = vmin.f32 %v18034_v10, 6.0  ;;  %5139 = vst.msk [vmem:[#allocation2 + $0x31] sm:$0xff] %vm3379_vm1, %v4509_v23  ;;  %5140 = vst.msk [vmem:[#allocation2 + $0x39] sm:$0xff] %vm3379_vm1, %v4510_v40  ;;  %v18037_v49 = vmax.f32 %v15793_v46, 0.0  ;;  %v18038_v59 = vmax.f32 %v15797_v7, 0.0  ;;  %v18039_v61 = vmax.f32 %v15801_v50, 0.0 }
 0x3da   :  { %v4518_v8 = vmin.f32 %v18035_v57, 6.0  ;;  %v4519_v4 = vmin.f32 %v18036_v56, 6.0  ;;  %5141 = vst.msk [vmem:[#allocation2 + $0x49] sm:$0xff] %vm3379_vm1, %v4511_v42  ;;  %5201 = vst.msk [vmem:[#allocation2 + $0x1] sm:$0xff] %vm3379_vm1, %v4509_v23  ;;  %v18040_v1 = vmax.f32 %v15805_v19, 0.0  ;;  %v18041_v46 = vmax.f32 %v15809_v36, 0.0 }
 0x3db   :  { %5202 = vst.msk [vmem:[#allocation2 + $0x9] sm:$0xff] %vm3379_vm1, %v4510_v40  ;;  %v4520_v63 = vmin.f32 %v18037_v49, 6.0  ;;  %v4521_v12 = vmin.f32 %v18038_v59, 6.0  ;;  %v4522_v54 = vmin.f32 %v18039_v61, 6.0  ;;  %5142 = vst.msk [vmem:[#allocation2 + $0x51] sm:$0xff] %vm3379_vm1, %v4512_v44  ;;  %v18042_v7 = vmax.f32 %v15813_v62, 0.0 }
 0x3dc   :  { %5846 = vst.msk [vmem:[#allocation3 + $0x221] sm:$0x1] %vm5253_vm5, %v5808_v51  ;;  %v4523_v35 = vmin.f32 %v18040_v1, 6.0  ;;  %v4524_v42 = vmin.f32 %v18041_v46, 6.0  ;;  %v18043_v50 = vmax.f32 %v15817_v13, 0.0  ;;  %v18044_v19 = vmax.f32 %v15821_v5, 0.0 }
 0x3dd   :  { %5143 = vst.msk [vmem:[#allocation2 + $0x61] sm:$0xff] %vm3379_vm1, %v4513_v29  ;;  %5144 = vst.msk [vmem:[#allocation2 + $0x69] sm:$0xff] %vm3379_vm1, %v4514_v52  ;;  %v4525_v40 = vmin.f32 %v18042_v7, 6.0  ;;  %v18045_v36 = vmax.f32 %v15825_v37, 0.0  ;;  %v18046_v62 = vmax.f32 %v15829_v48, 0.0  ;;  %v18047_v13 = vmax.f32 %v15833_v41, 0.0 }
 0x3de   :  { %5145 = vst.msk [vmem:[#allocation2 + $0x79] sm:$0xff] %vm3379_vm1, %v4515_v25  ;;  %v4526_v23 = vmin.f32 %v18043_v50, 6.0  ;;  %v4527_v32 = vmin.f32 %v18044_v19, 6.0  ;;  %5146 = vst.msk [vmem:[#allocation2 + $0x81] sm:$0xff] %vm3379_vm1, %v4516_v16  ;;  %v18048_v5 = vmax.f32 %v15837_v53, 0.0  ;;  %v18049_v37 = vmax.f32 %v15841_v27, 0.0 }
 0x3df   :  { %5147 = vst.msk [vmem:[#allocation2 + $0x91] sm:$0xff] %vm3379_vm1, %v4517_v33  ;;  %5148 = vst.msk [vmem:[#allocation2 + $0x99] sm:$0xff] %vm3379_vm1, %v4518_v8  ;;  %v4528_v29 = vmin.f32 %v18045_v36, 6.0  ;;  %v4529_v44 = vmin.f32 %v18046_v62, 6.0  ;;  %v4530_v60 = vmin.f32 %v18047_v13, 6.0  ;;  %v18050_v48 = vmax.f32 %v15845_v20, 0.0 }
 0x3e0   :  { %5149 = vst.msk [vmem:[#allocation2 + $0xa9] sm:$0xff] %vm3379_vm1, %v4519_v4  ;;  %v4531_v52 = vmin.f32 %v18048_v5, 6.0  ;;  %5150 = vst.msk [vmem:[#allocation2 + $0xb1] sm:$0xff] %vm3379_vm1, %v4520_v63  ;;  %v4532_v15 = vmin.f32 %v18049_v37, 6.0  ;;  %v18051_v41 = vmax.f32 %v15849_v22, 0.0  ;;  %v18052_v53 = vmax.f32 %v15853_v31, 0.0 }
 0x3e1   :  { %5151 = vst.msk [vmem:[#allocation2 + $0xc1] sm:$0xff] %vm3379_vm1, %v4521_v12  ;;  %5152 = vst.msk [vmem:[#allocation2 + $0xc9] sm:$0xff] %vm3379_vm1, %v4522_v54  ;;  %v4533_v25 = vmin.f32 %v18050_v48, 6.0  ;;  %v18053_v27 = vmax.f32 %v15857_v3, 0.0  ;;  %v18054_v20 = vmax.f32 %v15861_v24, 0.0  ;;  %v18055_v22 = vmax.f32 %v15865_v55, 0.0 }
 0x3e2   :  { %5153 = vst.msk [vmem:[#allocation2 + $0xd9] sm:$0xff] %vm3379_vm1, %v4523_v35  ;;  %v4534_v51 = vmin.f32 %v18051_v41, 6.0  ;;  %v4535_v0 = vmin.f32 %v18052_v53, 6.0  ;;  %5154 = vst.msk [vmem:[#allocation2 + $0xe1] sm:$0xff] %vm3379_vm1, %v4524_v42  ;;  %v18056_v31 = vmax.f32 %v15869_v21, 0.0  ;;  %v18057_v3 = vmax.f32 %v15873_v34, 0.0 }
 0x3e3   :  { %5155 = vst.msk [vmem:[#allocation2 + $0xf1] sm:$0xff] %vm3379_vm1, %v4525_v40  ;;  %5156 = vst.msk [vmem:[#allocation2 + $0xf9] sm:$0xff] %vm3379_vm1, %v4526_v23  ;;  %v4536_v16 = vmin.f32 %v18053_v27, 6.0  ;;  %v4537_v10 = vmin.f32 %v18054_v20, 6.0  ;;  %v4538_v33 = vmin.f32 %v18055_v22, 6.0  ;;  %v18058_v24 = vmax.f32 %v15877_v14, 0.0 }
 0x3e4   :  { %5157 = vst.msk [vmem:[#allocation2 + $0x109] sm:$0xff] %vm3379_vm1, %v4527_v32  ;;  %v4539_v57 = vmin.f32 %v18056_v31, 6.0  ;;  %5158 = vst.msk [vmem:[#allocation2 + $0x111] sm:$0xff] %vm3379_vm1, %v4528_v29  ;;  %v4540_v8 = vmin.f32 %v18057_v3, 6.0  ;;  %v18059_v55 = vmax.f32 %v15881_v45, 0.0  ;;  %v18060_v49 = vld [vmem:[#allocation11_spill] sm:$0xff] }
 0x3e5   :  { %5159 = vst.msk [vmem:[#allocation2 + $0x121] sm:$0xff] %vm3379_vm1, %v4529_v44  ;;  %5160 = vst.msk [vmem:[#allocation2 + $0x129] sm:$0xff] %vm3379_vm1, %v4530_v60  ;;  %v4541_v56 = vmin.f32 %v18058_v24, 6.0  ;;  %v18061_v21 = vmax.f32 %v18060_v49, 0.0  ;;  %v5216_v34 = vld [vmem:[#allocation2 + $0x1a] sm:$0x1] }
 0x3e6   :  { %5161 = vst.msk [vmem:[#allocation2 + $0x139] sm:$0xff] %vm3379_vm1, %v4531_v52  ;;  %v4542_v4 = vmin.f32 %v18059_v55, 6.0  ;;  %5162 = vst.msk [vmem:[#allocation2 + $0x141] sm:$0xff] %vm3379_vm1, %v4532_v15  ;;  %v18062_v14 = vld [vmem:[#allocation14_spill] sm:$0xff]  ;;  %v18064_v12 = vmax.f32 %v15893_v30, 0.0  ;;  %v18065_v54 = vmax.f32 %v15897_v28, 0.0 }
 0x3e7   :  { %v4543_v63 = vmin.f32 %v18061_v21, 6.0  ;;  %5163 = vst.msk [vmem:[#allocation2 + $0x151] sm:$0xff] %vm3379_vm1, %v4533_v25  ;;  %5164 = vst.msk [vmem:[#allocation2 + $0x159] sm:$0xff] %vm3379_vm1, %v4534_v51  ;;  %v18063_v45 = vmax.f32 %v18062_v14, 0.0  ;;  %v18066_v35 = vld [vmem:[#allocation13_spill] sm:$0xff]  ;;  %v18068_v30 = vld [vmem:[#allocation16_spill] sm:$0xff] }
 0x3e8   :  { %5165 = vst.msk [vmem:[#allocation2 + $0x169] sm:$0xff] %vm3379_vm1, %v4535_v0  ;;  %5206 = vst.msk [vmem:[#allocation2 + $0x199] sm:$0xff] %vm3379_vm1, %v4535_v0  ;;  %v4545_v61 = vmin.f32 %v18064_v12, 6.0  ;;  %v4546_v1 = vmin.f32 %v18065_v54, 6.0  ;;  %v18067_v46 = vmax.f32 %v18066_v35, 0.0  ;;  %v18069_v40 = vmax.f32 %v18068_v30, 0.0 }
 0x3e9   :  { %5211 = vst.msk [vmem:[#allocation2 + $0x1b1] sm:$0xff] %vm3379_vm1, %v4533_v25  ;;  %5212 = vst.msk [vmem:[#allocation2 + $0x1b9] sm:$0xff] %vm3379_vm1, %v4534_v51  ;;  %v4544_v59 = vmin.f32 %v18063_v45, 6.0  ;;  %v5215_v7 = vld [vmem:[#allocation2 + $0x2] sm:$0x1]  ;;  %v18070_v50 = vld [vmem:[#allocation15_spill] sm:$0xff] }
 0x3ea   :  { %v4547_v42 = vmin.f32 %v18067_v46, 6.0  ;;  %5166 = vst.msk [vmem:[#allocation2 + $0x171] sm:$0xff] %vm3379_vm1, %v4536_v16  ;;  %5167 = vst.msk [vmem:[#allocation2 + $0x181] sm:$0xff] %vm3379_vm1, %v4537_v10  ;;  %v4548_v28 = vmin.f32 %v18069_v40, 6.0  ;;  %v18071_v23 = vmax.f32 %v18070_v50, 0.0  ;;  %v18072_v32 = vld [vmem:[#allocation18_spill] sm:$0xff] }
 0x3eb   :  { %5168 = vst.msk [vmem:[#allocation2 + $0x189] sm:$0xff] %vm3379_vm1, %v4538_v33  ;;  %5169 = vst.msk [vmem:[#allocation2 + $0x1e1] sm:$0xff] %vm3379_vm1, %v4539_v57  ;;  %v18073_v36 = vmax.f32 %v18072_v32, 0.0  ;;  %v18074_v62 = vmax.f32 %v15918_v9, 0.0  ;;  %v5217_v13 = vld [vmem:[#allocation2 + $0x32] sm:$0x1] }
 0x3ec   :  { %5207 = vst.msk [vmem:[#allocation2 + $0x1a1] sm:$0xff] %vm3379_vm1, %v4536_v16  ;;  %v4549_v19 = vmin.f32 %v18071_v23, 6.0  ;;  %5170 = vst.msk [vmem:[#allocation2 + $0x1e9] sm:$0xff] %vm3379_vm1, %v4540_v8  ;;  %v18075_v60 = vmax.f32 %v15922_v26, 0.0  ;;  %v18076_v9 = vmax.f32 %v18014_v38, 0.0  ;;  %v18077_v37 = vld [vmem:[#allocation20_spill] sm:$0xff] }
 0x3ed   :  { %5255 = vst.msk [vmem:[#allocation2 + $0x18] sm:$0x1] %vm5253_vm5, %v5216_v34  ;;  %v4550_v29 = vmin.f32 %v18073_v36, 6.0  ;;  %v4551_v44 = vmin.f32 %v18074_v62, 6.0  ;;  %5254 = vst.msk [vmem:[#allocation2] sm:$0x1] %vm5253_vm5, %v5215_v7 }
 0x3ee   :  { %5171 = vst.msk [vmem:[#allocation2 + $0x1f9] sm:$0xff] %vm3379_vm1, %v4541_v56  ;;  %5172 = vst.msk [vmem:[#allocation2 + $0x201] sm:$0xff] %vm3379_vm1, %v4542_v4  ;;  %v4552_v5 = vmin.f32 %v18075_v60, 6.0  ;;  %v4553_v52 = vmin.f32 %v18076_v9, 6.0  ;;  %v18078_v15 = vmax.f32 %v18077_v37, 0.0  ;;  %v18079_v25 = vmax.f32 %v18016_v2, 0.0 }
 0x3ef   :  { %5173 = vst.msk [vmem:[#allocation2 + $0x211] sm:$0xff] %vm3379_vm1, %v4543_v63  ;;  %5203 = vst.msk [vmem:[#allocation2 + $0x1c9] sm:$0xff] %vm3379_vm1, %v4541_v56  ;;  %v5218_v51 = vld [vmem:[#allocation2 + $0x4a] sm:$0x1]  ;;  %v18080_v26 = vmax.f32 %v18017_v47, 0.0  ;;  %v18081_v53 = vmax.f32 %v18018_v18, 0.0 }
 0x3f0   :  { %5204 = vst.msk [vmem:[#allocation2 + $0x1d1] sm:$0xff] %vm3379_vm1, %v4542_v4  ;;  %v4554_v48 = vmin.f32 %v18078_v15, 6.0  ;;  %v4555_v41 = vmin.f32 %v18079_v25, 6.0  ;;  %5174 = vst.msk [vmem:[#allocation2 + $0x219] sm:$0xff] %vm3379_vm1, %v4544_v59  ;;  %v18082_v27 = vld [vmem:[#allocation24_spill] sm:$0xff]  ;;  %v18084_v20 = vmax.f32 %v18020_v6, 0.0 }
 0x3f1   :  { %5175 = vst.msk [vmem:[#allocation2 + $0x229] sm:$0xff] %vm3379_vm1, %v4545_v61  ;;  %5176 = vst.msk [vmem:[#allocation2 + $0x231] sm:$0xff] %vm3379_vm1, %v4546_v1  ;;  %v4556_v38 = vmin.f32 %v18080_v26, 6.0  ;;  %v4557_v0 = vmin.f32 %v18081_v53, 6.0  ;;  %v18083_v2 = vmax.f32 %v18082_v27, 0.0  ;;  %v18085_v47 = vld [vmem:[#allocation26_spill] sm:$0xff] }
 0x3f2   :  { %5177 = vst.msk [vmem:[#allocation2 + $0x241] sm:$0xff] %vm3379_vm1, %v4547_v42  ;;  %v4559_v10 = vmin.f32 %v18084_v20, 6.0  ;;  %5178 = vst.msk [vmem:[#allocation2 + $0x249] sm:$0xff] %vm3379_vm1, %v4548_v28  ;;  %v5219_v22 = vld [vmem:[#allocation2 + $0x62] sm:$0x1]  ;;  %v18086_v18 = vmax.f32 %v18085_v47, 0.0 }
 0x3f3   :  { %5256 = vst.msk [vmem:[#allocation2 + $0x30] sm:$0x1] %vm5253_vm5, %v5217_v13  ;;  %v4558_v16 = vmin.f32 %v18083_v2, 6.0  ;;  %5257 = vst.msk [vmem:[#allocation2 + $0x48] sm:$0x1] %vm5253_vm5, %v5218_v51  ;;  %v18087_v31 = vld [vmem:[#allocation25_spill] sm:$0xff] }
 0x3f4   :  { %5179 = vst.msk [vmem:[#allocation2 + $0x259] sm:$0xff] %vm3379_vm1, %v4549_v19  ;;  %5180 = vst.msk [vmem:[#allocation2 + $0x261] sm:$0xff] %vm3379_vm1, %v4550_v29  ;;  %v4560_v33 = vmin.f32 %v18086_v18, 6.0  ;;  %v18088_v57 = vmax.f32 %v18087_v31, 0.0  ;;  %v18089_v8 = vld [vmem:[#allocation28_spill] sm:$0xff]  ;;  %v18091_v56 = vmax.f32 %v15968_v43, 0.0 }
 0x3f5   :  { %5181 = vst.msk [vmem:[#allocation2 + $0x271] sm:$0xff] %vm3379_vm1, %v4551_v44  ;;  %v18090_v6 = vmax.f32 %v18089_v8, 0.0  ;;  %5182 = vst.msk [vmem:[#allocation2 + $0x279] sm:$0xff] %vm3379_vm1, %v4552_v5  ;;  %v5220_v4 = vld [vmem:[#allocation2 + $0x7a] sm:$0x1]  ;;  %v18092_v49 = vmax.f32 %v15972_v58, 0.0 }
 0x3f6   :  { %v4561_v3 = vmin.f32 %v18088_v57, 6.0  ;;  %v4563_v55 = vmin.f32 %v18091_v56, 6.0  ;;  %5183 = vst.msk [vmem:[#allocation2 + $0x289] sm:$0xff] %vm3379_vm1, %v4553_v52  ;;  %5184 = vst.msk [vmem:[#allocation2 + $0x291] sm:$0xff] %vm3379_vm1, %v4554_v48  ;;  %v18093_v63 = vmax.f32 %v15976_v11, 0.0  ;;  %v18094_v14 = vld [vmem:[#allocation27_spill] sm:$0xff] }
 0x3f7   :  { %v4562_v24 = vmin.f32 %v18090_v6, 6.0  ;;  %5185 = vst.msk [vmem:[#allocation2 + $0x2a1] sm:$0xff] %vm3379_vm1, %v4555_v41  ;;  %v4564_v21 = vmin.f32 %v18092_v49, 6.0  ;;  %v18095_v43 = vmax.f32 %v18094_v14, 0.0  ;;  %v18096_v59 = vmax.f32 %v18022_v17, 0.0  ;;  %5186 = vst.msk [vmem:[#allocation2 + $0x2a9] sm:$0xff] %vm3379_vm1, %v4556_v38 }
 0x3f8   :  { %5258 = vst.msk [vmem:[#allocation2 + $0x60] sm:$0x1] %vm5253_vm5, %v5219_v22  ;;  %v4565_v34 = vmin.f32 %v18093_v63, 6.0  ;;  %v5221_v61 = vld [vmem:[#allocation2 + $0x92] sm:$0x1]  ;;  %v18097_v58 = vld [vmem:[#allocation29_spill] sm:$0xff] }
 0x3f9   :  { %v4566_v45 = vmin.f32 %v18095_v43, 6.0  ;;  %v4567_v12 = vmin.f32 %v18096_v59, 6.0  ;;  %5187 = vst.msk [vmem:[#allocation2 + $0x2b9] sm:$0xff] %vm3379_vm1, %v4557_v0  ;;  %5188 = vst.msk [vmem:[#allocation2 + $0x2c1] sm:$0xff] %vm3379_vm1, %v4558_v16  ;;  %v18098_v11 = vmax.f32 %v18097_v58, 0.0  ;;  %v18099_v1 = vmax.f32 %v15994_v39, 0.0 }
 0x3fa   :  { %5189 = vst.msk [vmem:[#allocation2 + $0x2d1] sm:$0xff] %vm3379_vm1, %v4559_v10  ;;  %5190 = vst.msk [vmem:[#allocation2 + $0x2d9] sm:$0xff] %vm3379_vm1, %v4560_v33  ;;  %v5222_v17 = vld [vmem:[#allocation2 + $0xaa] sm:$0x1]  ;;  %v5223_v46 = vld [vmem:[#allocation2 + $0xc2] sm:$0x1] }
 0x3fb   :  { %5259 = vst.msk [vmem:[#allocation2 + $0x78] sm:$0x1] %vm5253_vm5, %v5220_v4  ;;  %v4568_v54 = vmin.f32 %v18098_v11, 6.0  ;;  %v4570_v35 = vmin.f32 %v18099_v1, 6.0  ;;  %5260 = vst.msk [vmem:[#allocation2 + $0x90] sm:$0x1] %vm5253_vm5, %v5221_v61 }
 0x3fc   :  { %5191 = vst.msk [vmem:[#allocation2 + $0x2e9] sm:$0xff] %vm3379_vm1, %v4561_v3  ;;  %5192 = vst.msk [vmem:[#allocation2 + $0x2f1] sm:$0xff] %vm3379_vm1, %v4562_v24  ;;  %v5224_v39 = vld [vmem:[#allocation2 + $0xda] sm:$0x1]  ;;  %v5225_v42 = vld [vmem:[#allocation2 + $0xf2] sm:$0x1] }
 0x3fd   :  { %5193 = vst.msk [vmem:[#allocation2 + $0x301] sm:$0xff] %vm3379_vm1, %v4563_v55  ;;  %5194 = vst.msk [vmem:[#allocation2 + $0x309] sm:$0xff] %vm3379_vm1, %v4564_v21  ;;  %v5226_v7 = vld [vmem:[#allocation2 + $0x10a] sm:$0x1]  ;;  %v5227_v30 = vld [vmem:[#allocation2 + $0x122] sm:$0x1] }
 0x3fe   :  { %5195 = vst.msk [vmem:[#allocation2 + $0x319] sm:$0xff] %vm3379_vm1, %v4565_v34  ;;  %5196 = vst.msk [vmem:[#allocation2 + $0x321] sm:$0xff] %vm3379_vm1, %v4566_v45  ;;  %v5228_v40 = vld [vmem:[#allocation2 + $0x13a] sm:$0x1]  ;;  %v5229_v28 = vld [vmem:[#allocation2 + $0x152] sm:$0x1] }
 0x3ff   :  { %5197 = vst.msk [vmem:[#allocation2 + $0x331] sm:$0xff] %vm3379_vm1, %v4567_v12  ;;  %5208 = vst.msk [vmem:[#allocation2 + $0x361] sm:$0xff] %vm3379_vm1, %v4567_v12  ;;  %v5230_v50 = vld [vmem:[#allocation2 + $0x16a] sm:$0x1]  ;;  %v5231_v23 = vld [vmem:[#allocation2 + $0x182] sm:$0x1] }
 0x400   :  { %5213 = vst.msk [vmem:[#allocation2 + $0x379] sm:$0xff] %vm3379_vm1, %v4565_v34  ;;  %5214 = vst.msk [vmem:[#allocation2 + $0x381] sm:$0xff] %vm3379_vm1, %v4566_v45  ;;  %v5232_v19 = vld [vmem:[#allocation2 + $0x19a] sm:$0x1]  ;;  %v5234_v32 = vld [vmem:[#allocation2 + $0x1ca] sm:$0x1] }
 0x401   :  { %5261 = vst.msk [vmem:[#allocation2 + $0xa8] sm:$0x1] %vm5253_vm5, %v5222_v17  ;;  %5262 = vst.msk [vmem:[#allocation2 + $0xc0] sm:$0x1] %vm5253_vm5, %v5223_v46  ;;  %v5235_v36 = vld [vmem:[#allocation2 + $0x1e2] sm:$0x1] }
 0x402   :  { %5198 = vst.msk [vmem:[#allocation2 + $0x339] sm:$0xff] %vm3379_vm1, %v4568_v54  ;;  %5200 = vst.msk [vmem:[#allocation2 + $0x351] sm:$0xff] %vm3379_vm1, %v4570_v35  ;;  %v5236_v29 = vld [vmem:[#allocation2 + $0x1fa] sm:$0x1]  ;;  %v5237_v62 = vld [vmem:[#allocation2 + $0x212] sm:$0x1] }
 0x403   :  { %5209 = vst.msk [vmem:[#allocation2 + $0x369] sm:$0xff] %vm3379_vm1, %v4568_v54  ;;  %v5238_v44 = vld [vmem:[#allocation2 + $0x22a] sm:$0x1]  ;;  %v5239_v13 = vld [vmem:[#allocation2 + $0x242] sm:$0x1] }
 0x404   :  { %5263 = vst.msk [vmem:[#allocation2 + $0xd8] sm:$0x1] %vm5253_vm5, %v5224_v39  ;;  %5264 = vst.msk [vmem:[#allocation2 + $0xf0] sm:$0x1] %vm5253_vm5, %v5225_v42  ;;  %v5240_v60 = vld [vmem:[#allocation2 + $0x25a] sm:$0x1] }
 0x405   :  { %5265 = vst.msk [vmem:[#allocation2 + $0x108] sm:$0x1] %vm5253_vm5, %v5226_v7  ;;  %5266 = vst.msk [vmem:[#allocation2 + $0x120] sm:$0x1] %vm5253_vm5, %v5227_v30  ;;  %v5241_v5 = vld [vmem:[#allocation2 + $0x272] sm:$0x1] }
 0x406   :  { %5267 = vst.msk [vmem:[#allocation2 + $0x138] sm:$0x1] %vm5253_vm5, %v5228_v40  ;;  %5268 = vst.msk [vmem:[#allocation2 + $0x150] sm:$0x1] %vm5253_vm5, %v5229_v28  ;;  %v5242_v9 = vld [vmem:[#allocation2 + $0x28a] sm:$0x1] }
 0x407   :  { %5269 = vst.msk [vmem:[#allocation2 + $0x168] sm:$0x1] %vm5253_vm5, %v5230_v50  ;;  %5270 = vst.msk [vmem:[#allocation2 + $0x180] sm:$0x1] %vm5253_vm5, %v5231_v23  ;;  %v5243_v52 = vld [vmem:[#allocation2 + $0x2a2] sm:$0x1] }
 0x408   :  { %5271 = vst.msk [vmem:[#allocation2 + $0x198] sm:$0x1] %vm5253_vm5, %v5232_v19  ;;  %5273 = vst.msk [vmem:[#allocation2 + $0x1c8] sm:$0x1] %vm5253_vm5, %v5234_v32  ;;  %v5244_v37 = vld [vmem:[#allocation2 + $0x2ba] sm:$0x1] }
 0x409   :  { %5274 = vst.msk [vmem:[#allocation2 + $0x1e0] sm:$0x1] %vm5253_vm5, %v5235_v36  ;;  %5275 = vst.msk [vmem:[#allocation2 + $0x1f8] sm:$0x1] %vm5253_vm5, %v5236_v29  ;;  %v5245_v15 = vld [vmem:[#allocation2 + $0x2d2] sm:$0x1] }
 0x40a   :  { %5276 = vst.msk [vmem:[#allocation2 + $0x210] sm:$0x1] %vm5253_vm5, %v5237_v62  ;;  %5277 = vst.msk [vmem:[#allocation2 + $0x228] sm:$0x1] %vm5253_vm5, %v5238_v44  ;;  %v5246_v48 = vld [vmem:[#allocation2 + $0x2ea] sm:$0x1] }
 0x40b   :  { %5278 = vst.msk [vmem:[#allocation2 + $0x240] sm:$0x1] %vm5253_vm5, %v5239_v13  ;;  %5279 = vst.msk [vmem:[#allocation2 + $0x258] sm:$0x1] %vm5253_vm5, %v5240_v60  ;;  %v5247_v25 = vld [vmem:[#allocation2 + $0x302] sm:$0x1] }
 0x40c   :  { %5280 = vst.msk [vmem:[#allocation2 + $0x270] sm:$0x1] %vm5253_vm5, %v5241_v5  ;;  %5281 = vst.msk [vmem:[#allocation2 + $0x288] sm:$0x1] %vm5253_vm5, %v5242_v9  ;;  %v5248_v41 = vld [vmem:[#allocation2 + $0x31a] sm:$0x1] }
 0x40d   :  { %5282 = vst.msk [vmem:[#allocation2 + $0x2a0] sm:$0x1] %vm5253_vm5, %v5243_v52  ;;  %5283 = vst.msk [vmem:[#allocation2 + $0x2b8] sm:$0x1] %vm5253_vm5, %v5244_v37  ;;  %v5249_v51 = vld [vmem:[#allocation2 + $0x332] sm:$0x1] }
 0x40e   :  { %v5251_v26 = vld [vmem:[#allocation2 + $0x362] sm:$0x1]  ;;  %5284 = vst.msk [vmem:[#allocation2 + $0x2d0] sm:$0x1] %vm5253_vm5, %v5245_v15  ;;  %5285 = vst.msk [vmem:[#allocation2 + $0x2e8] sm:$0x1] %vm5253_vm5, %v5246_v48 }
 0x40f   :  { %5286 = vst.msk [vmem:[#allocation2 + $0x300] sm:$0x1] %vm5253_vm5, %v5247_v25  ;;  %5287 = vst.msk [vmem:[#allocation2 + $0x318] sm:$0x1] %vm5253_vm5, %v5248_v41  ;;  %v5292_v38 = vld [vmem:[#allocation2 + $0xf] sm:$0x1] }
 0x410   :  { %5288 = vst.msk [vmem:[#allocation2 + $0x330] sm:$0x1] %vm5253_vm5, %v5249_v51  ;;  %5290 = vst.msk [vmem:[#allocation2 + $0x360] sm:$0x1] %vm5253_vm5, %v5251_v26  ;;  %v5293_v53 = vld [vmem:[#allocation2 + $0x27] sm:$0x1] }
 0x411   :  { %v5294_v0 = vld [vmem:[#allocation2 + $0x3f] sm:$0x1]  ;;  %v5295_v27 = vld [vmem:[#allocation2 + $0x57] sm:$0x1]  ;;  %v5296_v2 = vld [vmem:[#allocation2 + $0x6f] sm:$0x1] }
 0x412   :  { %5330 = vst.msk [vmem:[#allocation2 + $0x11] sm:$0x1] %vm5253_vm5, %v5292_v38  ;;  %5331 = vst.msk [vmem:[#allocation2 + $0x29] sm:$0x1] %vm5253_vm5, %v5293_v53  ;;  %v5297_v16 = vld [vmem:[#allocation2 + $0x87] sm:$0x1] }
 0x413   :  { %v5298_v20 = vld [vmem:[#allocation2 + $0x9f] sm:$0x1]  ;;  %v5299_v10 = vld [vmem:[#allocation2 + $0xb7] sm:$0x1]  ;;  %5332 = vst.msk [vmem:[#allocation2 + $0x41] sm:$0x1] %vm5253_vm5, %v5294_v0 }
 0x414   :  { %5333 = vst.msk [vmem:[#allocation2 + $0x59] sm:$0x1] %vm5253_vm5, %v5295_v27  ;;  %5334 = vst.msk [vmem:[#allocation2 + $0x71] sm:$0x1] %vm5253_vm5, %v5296_v2  ;;  %v5300_v22 = vld [vmem:[#allocation2 + $0xcf] sm:$0x1] }
 0x415   :  { %v5301_v47 = vld [vmem:[#allocation2 + $0xe7] sm:$0x1]  ;;  %v5302_v18 = vld [vmem:[#allocation2 + $0xff] sm:$0x1]  ;;  %5335 = vst.msk [vmem:[#allocation2 + $0x89] sm:$0x1] %vm5253_vm5, %v5297_v16 }
 0x416   :  { %5336 = vst.msk [vmem:[#allocation2 + $0xa1] sm:$0x1] %vm5253_vm5, %v5298_v20  ;;  %5337 = vst.msk [vmem:[#allocation2 + $0xb9] sm:$0x1] %vm5253_vm5, %v5299_v10  ;;  %v5303_v33 = vld [vmem:[#allocation2 + $0x117] sm:$0x1] }
 0x417   :  { %v5304_v31 = vld [vmem:[#allocation2 + $0x12f] sm:$0x1]  ;;  %v5305_v57 = vld [vmem:[#allocation2 + $0x147] sm:$0x1]  ;;  %5338 = vst.msk [vmem:[#allocation2 + $0xd1] sm:$0x1] %vm5253_vm5, %v5300_v22 }
 0x418   :  { %5339 = vst.msk [vmem:[#allocation2 + $0xe9] sm:$0x1] %vm5253_vm5, %v5301_v47  ;;  %5340 = vst.msk [vmem:[#allocation2 + $0x101] sm:$0x1] %vm5253_vm5, %v5302_v18  ;;  %v5306_v3 = vld [vmem:[#allocation2 + $0x15f] sm:$0x1] }
 0x419   :  { %v5307_v8 = vld [vmem:[#allocation2 + $0x177] sm:$0x1]  ;;  %v5308_v6 = vld [vmem:[#allocation2 + $0x18f] sm:$0x1]  ;;  %5341 = vst.msk [vmem:[#allocation2 + $0x119] sm:$0x1] %vm5253_vm5, %v5303_v33 }
 0x41a   :  { %5342 = vst.msk [vmem:[#allocation2 + $0x131] sm:$0x1] %vm5253_vm5, %v5304_v31  ;;  %5343 = vst.msk [vmem:[#allocation2 + $0x149] sm:$0x1] %vm5253_vm5, %v5305_v57  ;;  %v5309_v24 = vld [vmem:[#allocation2 + $0x1a7] sm:$0x1] }
 0x41b   :  { %v5311_v56 = vld [vmem:[#allocation2 + $0x1d7] sm:$0x1]  ;;  %5344 = vst.msk [vmem:[#allocation2 + $0x161] sm:$0x1] %vm5253_vm5, %v5306_v3  ;;  %5345 = vst.msk [vmem:[#allocation2 + $0x179] sm:$0x1] %vm5253_vm5, %v5307_v8 }
 0x41c   :  { %5346 = vst.msk [vmem:[#allocation2 + $0x191] sm:$0x1] %vm5253_vm5, %v5308_v6  ;;  %v5312_v55 = vld [vmem:[#allocation2 + $0x1ef] sm:$0x1]  ;;  %v5313_v4 = vld [vmem:[#allocation2 + $0x207] sm:$0x1] }
 0x41d   :  { %v5314_v49 = vld [vmem:[#allocation2 + $0x21f] sm:$0x1]  ;;  %5347 = vst.msk [vmem:[#allocation2 + $0x1a9] sm:$0x1] %vm5253_vm5, %v5309_v24  ;;  %5349 = vst.msk [vmem:[#allocation2 + $0x1d9] sm:$0x1] %vm5253_vm5, %v5311_v56 }
 0x41e   :  { %v5315_v21 = vld [vmem:[#allocation2 + $0x237] sm:$0x1]  ;;  %v5316_v63 = vld [vmem:[#allocation2 + $0x24f] sm:$0x1]  ;;  %v5317_v34 = vld [vmem:[#allocation2 + $0x267] sm:$0x1] }
 0x41f   :  { %5350 = vst.msk [vmem:[#allocation2 + $0x1f1] sm:$0x1] %vm5253_vm5, %v5312_v55  ;;  %5351 = vst.msk [vmem:[#allocation2 + $0x209] sm:$0x1] %vm5253_vm5, %v5313_v4  ;;  %v5318_v14 = vld [vmem:[#allocation2 + $0x27f] sm:$0x1] }
 0x420   :  { %5352 = vst.msk [vmem:[#allocation2 + $0x221] sm:$0x1] %vm5253_vm5, %v5314_v49  ;;  %v5319_v43 = vld [vmem:[#allocation2 + $0x297] sm:$0x1]  ;;  %v5320_v45 = vld [vmem:[#allocation2 + $0x2af] sm:$0x1] }
 0x421   :  { %5353 = vst.msk [vmem:[#allocation2 + $0x239] sm:$0x1] %vm5253_vm5, %v5315_v21  ;;  %5354 = vst.msk [vmem:[#allocation2 + $0x251] sm:$0x1] %vm5253_vm5, %v5316_v63  ;;  %v5321_v59 = vld [vmem:[#allocation2 + $0x2c7] sm:$0x1] }
 0x422   :  { %5355 = vst.msk [vmem:[#allocation2 + $0x269] sm:$0x1] %vm5253_vm5, %v5317_v34  ;;  %v5322_v12 = vld [vmem:[#allocation2 + $0x2df] sm:$0x1]  ;;  %v5323_v61 = vld [vmem:[#allocation2 + $0x2f7] sm:$0x1] }
 0x423   :  { %5356 = vst.msk [vmem:[#allocation2 + $0x281] sm:$0x1] %vm5253_vm5, %v5318_v14  ;;  %5357 = vst.msk [vmem:[#allocation2 + $0x299] sm:$0x1] %vm5253_vm5, %v5319_v43  ;;  %v5324_v58 = vld [vmem:[#allocation2 + $0x30f] sm:$0x1] }
 0x424   :  { %5358 = vst.msk [vmem:[#allocation2 + $0x2b1] sm:$0x1] %vm5253_vm5, %v5320_v45  ;;  %v5325_v11 = vld [vmem:[#allocation2 + $0x327] sm:$0x1]  ;;  %v5326_v54 = vld [vmem:[#allocation2 + $0x33f] sm:$0x1] }
 0x425   :  { %5359 = vst.msk [vmem:[#allocation2 + $0x2c9] sm:$0x1] %vm5253_vm5, %v5321_v59  ;;  %5360 = vst.msk [vmem:[#allocation2 + $0x2e1] sm:$0x1] %vm5253_vm5, %v5322_v12  ;;  %v5327_v1 = vld [vmem:[#allocation2 + $0x357] sm:$0x1] }
 0x426   :  { %5361 = vst.msk [vmem:[#allocation2 + $0x2f9] sm:$0x1] %vm5253_vm5, %v5323_v61  ;;  %v5328_v35 = vld [vmem:[#allocation2 + $0x36f] sm:$0x1]  ;;  %5362 = vst.msk [vmem:[#allocation2 + $0x311] sm:$0x1] %vm5253_vm5, %v5324_v58 }
 0x427   :  { %5363 = vst.msk [vmem:[#allocation2 + $0x329] sm:$0x1] %vm5253_vm5, %v5325_v11  ;;  %5364 = vst.msk [vmem:[#allocation2 + $0x341] sm:$0x1] %vm5253_vm5, %v5326_v54  ;;  %v5368_v17 = vld [vmem:[#allocation2 + $0xe] sm:$0x1] }
 0x428   :  { %5365 = vst.msk [vmem:[#allocation2 + $0x359] sm:$0x1] %vm5253_vm5, %v5327_v1  ;;  %5366 = vst.msk [vmem:[#allocation2 + $0x371] sm:$0x1] %vm5253_vm5, %v5328_v35  ;;  %v5369_v46 = vld [vmem:[#allocation2 + $0x26] sm:$0x1] }
 0x429   :  { %v5370_v39 = vld [vmem:[#allocation2 + $0x3e] sm:$0x1]  ;;  %v5371_v42 = vld [vmem:[#allocation2 + $0x56] sm:$0x1]  ;;  %v5372_v7 = vld [vmem:[#allocation2 + $0x6e] sm:$0x1] }
 0x42a   :  { %v5373_v30 = vld [vmem:[#allocation2 + $0x86] sm:$0x1]  ;;  %5406 = vst.msk [vmem:[#allocation2 + $0x12] sm:$0x1] %vm5253_vm5, %v5368_v17  ;;  %5407 = vst.msk [vmem:[#allocation2 + $0x2a] sm:$0x1] %vm5253_vm5, %v5369_v46 }
 0x42b   :  { %5408 = vst.msk [vmem:[#allocation2 + $0x42] sm:$0x1] %vm5253_vm5, %v5370_v39  ;;  %v5374_v40 = vld [vmem:[#allocation2 + $0x9e] sm:$0x1]  ;;  %v5375_v28 = vld [vmem:[#allocation2 + $0xb6] sm:$0x1] }
 0x42c   :  { %v5376_v50 = vld [vmem:[#allocation2 + $0xce] sm:$0x1]  ;;  %5409 = vst.msk [vmem:[#allocation2 + $0x5a] sm:$0x1] %vm5253_vm5, %v5371_v42  ;;  %5410 = vst.msk [vmem:[#allocation2 + $0x72] sm:$0x1] %vm5253_vm5, %v5372_v7 }
 0x42d   :  { %5411 = vst.msk [vmem:[#allocation2 + $0x8a] sm:$0x1] %vm5253_vm5, %v5373_v30  ;;  %v5377_v23 = vld [vmem:[#allocation2 + $0xe6] sm:$0x1]  ;;  %v5378_v19 = vld [vmem:[#allocation2 + $0xfe] sm:$0x1] }
 0x42e   :  { %v5379_v32 = vld [vmem:[#allocation2 + $0x116] sm:$0x1]  ;;  %5412 = vst.msk [vmem:[#allocation2 + $0xa2] sm:$0x1] %vm5253_vm5, %v5374_v40  ;;  %5413 = vst.msk [vmem:[#allocation2 + $0xba] sm:$0x1] %vm5253_vm5, %v5375_v28 }
 0x42f   :  { %5414 = vst.msk [vmem:[#allocation2 + $0xd2] sm:$0x1] %vm5253_vm5, %v5376_v50  ;;  %v5380_v36 = vld [vmem:[#allocation2 + $0x12e] sm:$0x1]  ;;  %v5381_v29 = vld [vmem:[#allocation2 + $0x146] sm:$0x1] }
 0x430   :  { %v5382_v62 = vld [vmem:[#allocation2 + $0x15e] sm:$0x1]  ;;  %5415 = vst.msk [vmem:[#allocation2 + $0xea] sm:$0x1] %vm5253_vm5, %v5377_v23  ;;  %5416 = vst.msk [vmem:[#allocation2 + $0x102] sm:$0x1] %vm5253_vm5, %v5378_v19 }
 0x431   :  { %5417 = vst.msk [vmem:[#allocation2 + $0x11a] sm:$0x1] %vm5253_vm5, %v5379_v32  ;;  %v5383_v44 = vld [vmem:[#allocation2 + $0x176] sm:$0x1]  ;;  %v5384_v13 = vld [vmem:[#allocation2 + $0x18e] sm:$0x1] }
 0x432   :  { %v5385_v60 = vld [vmem:[#allocation2 + $0x1a6] sm:$0x1]  ;;  %5418 = vst.msk [vmem:[#allocation2 + $0x132] sm:$0x1] %vm5253_vm5, %v5380_v36  ;;  %5419 = vst.msk [vmem:[#allocation2 + $0x14a] sm:$0x1] %vm5253_vm5, %v5381_v29 }
 0x433   :  { %5420 = vst.msk [vmem:[#allocation2 + $0x162] sm:$0x1] %vm5253_vm5, %v5382_v62  ;;  %v5387_v5 = vld [vmem:[#allocation2 + $0x1d6] sm:$0x1]  ;;  %v5388_v9 = vld [vmem:[#allocation2 + $0x1ee] sm:$0x1] }
 0x434   :  { %5421 = vst.msk [vmem:[#allocation2 + $0x17a] sm:$0x1] %vm5253_vm5, %v5383_v44  ;;  %5422 = vst.msk [vmem:[#allocation2 + $0x192] sm:$0x1] %vm5253_vm5, %v5384_v13  ;;  %v5389_v52 = vld [vmem:[#allocation2 + $0x206] sm:$0x1] }
 0x435   :  { %5423 = vst.msk [vmem:[#allocation2 + $0x1aa] sm:$0x1] %vm5253_vm5, %v5385_v60  ;;  %v5390_v37 = vld [vmem:[#allocation2 + $0x21e] sm:$0x1]  ;;  %v5391_v15 = vld [vmem:[#allocation2 + $0x236] sm:$0x1] }
 0x436   :  { %5425 = vst.msk [vmem:[#allocation2 + $0x1da] sm:$0x1] %vm5253_vm5, %v5387_v5  ;;  %5426 = vst.msk [vmem:[#allocation2 + $0x1f2] sm:$0x1] %vm5253_vm5, %v5388_v9  ;;  %v5392_v48 = vld [vmem:[#allocation2 + $0x24e] sm:$0x1] }
 0x437   :  { %v5393_v25 = vld [vmem:[#allocation2 + $0x266] sm:$0x1]  ;;  %v5394_v41 = vld [vmem:[#allocation2 + $0x27e] sm:$0x1]  ;;  %5427 = vst.msk [vmem:[#allocation2 + $0x20a] sm:$0x1] %vm5253_vm5, %v5389_v52 }
 0x438   :  { %5428 = vst.msk [vmem:[#allocation2 + $0x222] sm:$0x1] %vm5253_vm5, %v5390_v37  ;;  %5429 = vst.msk [vmem:[#allocation2 + $0x23a] sm:$0x1] %vm5253_vm5, %v5391_v15  ;;  %v5395_v51 = vld [vmem:[#allocation2 + $0x296] sm:$0x1] }
 0x439   :  { %v5396_v26 = vld [vmem:[#allocation2 + $0x2ae] sm:$0x1]  ;;  %v5397_v38 = vld [vmem:[#allocation2 + $0x2c6] sm:$0x1]  ;;  %5430 = vst.msk [vmem:[#allocation2 + $0x252] sm:$0x1] %vm5253_vm5, %v5392_v48 }
 0x43a   :  { %5431 = vst.msk [vmem:[#allocation2 + $0x26a] sm:$0x1] %vm5253_vm5, %v5393_v25  ;;  %5432 = vst.msk [vmem:[#allocation2 + $0x282] sm:$0x1] %vm5253_vm5, %v5394_v41  ;;  %v7487_v53 = vld [vmem:[#allocation3 + $0xe0] sm:$0xff]  ;;  %v18100_v22 = vld [vmem:[#allocation48_spill] sm:$0xff] }
 0x43b   :  { %v5398_v0 = vld [vmem:[#allocation2 + $0x2de] sm:$0x1]  ;;  %v5399_v27 = vld [vmem:[#allocation2 + $0x2f6] sm:$0x1]  ;;  %v5400_v2 = vld [vmem:[#allocation2 + $0x30e] sm:$0x1] }
 0x43c   :  { %5433 = vst.msk [vmem:[#allocation2 + $0x29a] sm:$0x1] %vm5253_vm5, %v5395_v51  ;;  %5434 = vst.msk [vmem:[#allocation2 + $0x2b2] sm:$0x1] %vm5253_vm5, %v5396_v26  ;;  %v5401_v16 = vld [vmem:[#allocation2 + $0x326] sm:$0x1] }
 0x43d   :  { %5435 = vst.msk [vmem:[#allocation2 + $0x2ca] sm:$0x1] %vm5253_vm5, %v5397_v38  ;;  %v5402_v20 = vld [vmem:[#allocation2 + $0x33e] sm:$0x1]  ;;  %v5403_v10 = vld [vmem:[#allocation2 + $0x356] sm:$0x1] }
 0x43e   :  { %5436 = vst.msk [vmem:[#allocation2 + $0x2e2] sm:$0x1] %vm5253_vm5, %v5398_v0  ;;  %5437 = vst.msk [vmem:[#allocation2 + $0x2fa] sm:$0x1] %vm5253_vm5, %v5399_v27  ;;  %v18101_v47 = vld [vmem:[#allocation45_spill] sm:$0xff]  ;;  %v18102_v31 = vld [vmem:[#allocation55_spill] sm:$0xff] }
 0x43f   :  { %5438 = vst.msk [vmem:[#allocation2 + $0x312] sm:$0x1] %vm5253_vm5, %v5400_v2  ;;  %v7672_v18 = vadd.f32 %v18101_v47, %v18100_v22  ;;  %v5404_v33 = vld [vmem:[#allocation2 + $0x36e] sm:$0x1]  ;;  %5439 = vst.msk [vmem:[#allocation2 + $0x32a] sm:$0x1] %vm5253_vm5, %v5401_v16 }
 0x440   :  { %5440 = vst.msk [vmem:[#allocation2 + $0x342] sm:$0x1] %vm5253_vm5, %v5402_v20  ;;  %5441 = vst.msk [vmem:[#allocation2 + $0x35a] sm:$0x1] %vm5253_vm5, %v5403_v10  ;;  %v8009_v57 = vrot.slane %v18102_v31, 1  ;;  %v18103_v3 = vld [vmem:[#allocation56_spill] sm:$0xff] }
 0x441   :  { %v8010_v8 = vrot.slane %v18103_v3, 1  ;;  %v7483_v6 = vld [vmem:[#allocation3 + $0xc0] sm:$0xff]  ;;  %v18104_v24 = vld [vmem:[#allocation49_spill] sm:$0xff]  ;;  %v18107_v49 = vld [vmem:[#allocation47_spill] sm:$0xff]  ;;  %5442 = vst.msk [vmem:[#allocation2 + $0x372] sm:$0x1] %vm5253_vm5, %v5404_v33 }
 0x442   :  { %v18105_v56 = vld [vmem:[#allocation46_spill] sm:$0xff]  ;;  %v18106_v4 = vld [vmem:[#allocation53_spill] sm:$0xff]  ;;  %v8153_v14 = vrot.slane %v18102_v31, 2  ;;  %v8154_v43 = vrot.slane %v18103_v3, 2  ;;  %v7488_v59 = vld [vmem:[#allocation3 + $0xe8] sm:$0x7] }
 0x443   :  { %v7673_v55 = vadd.f32 %v18105_v56, %v18104_v24  ;;  %v7674_v21 = vadd.f32 %v18107_v49, %v18106_v4  ;;  %v18108_v63 = vld [vmem:[#allocation57_spill] sm:$0xff]  ;;  %v8011_v12 = vsel %vm404_vm2, %v8009_v57, %v8010_v8  ;;  %v18109_v61 = vld [vmem:[#allocation51_spill] sm:$0xff]  ;;  %v18110_v11 = vld [vmem:[#allocation52_spill] sm:$0xff]  ;;  %v16391_v17 = vmul.f32 0.046875, %v7487_v53 }
 0x444   :  { %v8012_v34 = vrot.slane %v18108_v63, 1  ;;  %v8156_v45 = vrot.slane %v18108_v63, 2  ;;  %v8346_v58 = vrot.slane %v18109_v61, 3  ;;  %v8348_v54 = vrot.slane %v18110_v11, 3  ;;  %v7484_v1 = vld [vmem:[#allocation3 + $0xc8] sm:$0xff]  ;;  %v18111_v39 = vld [vmem:[#allocation50_spill] sm:$0xff] }
 0x445   :  { %v7485_v35 = vld [vmem:[#allocation3 + $0xd0] sm:$0x7]  ;;  %v8115_v42 = vadd.f32 %v8011_v12, %v18111_v39  ;;  %v8155_v7 = vsel %vm889_vm3, %v8153_v14, %v8154_v43  ;;  %v5658_v40 = vld [vmem:[#allocation3 + $0x242] sm:$0x1]  ;;  %v5733_v28 = vld [vmem:[#allocation3 + $0x236] sm:$0x1] }
 0x446   :  { %v8013_v46 = vsel %vm404_vm2, %v8010_v8, %v8012_v34  ;;  %v8157_v30 = vsel %vm889_vm3, %v8154_v43, %v8156_v45  ;;  %v5734_v50 = vld [vmem:[#allocation3 + $0x24e] sm:$0x1]  ;;  %v18112_v19 = vrot.slane %v18111_v39, 3  ;;  %v8349_v36 = vsel %vm6738_vm7, %v8346_v58, %v8348_v54  ;;  %5696 = vst.msk [vmem:[#allocation3 + $0x240] sm:$0x1] %vm5253_vm5, %v5658_v40  ;;  %v11071_v15 = vld [vmem:[#allocation3 + $0xd8] sm:$0xff] }
 0x447   :  { %v8116_v23 = vadd.f32 %v8013_v46, %v18109_v61  ;;  %v16402_v29 = vmul.f32 0.046875, %v7488_v59  ;;  %5771 = vst.msk [vmem:[#allocation3 + $0x238] sm:$0x1] %vm5253_vm5, %v5733_v28  ;;  %5772 = vst.msk [vmem:[#allocation3 + $0x250] sm:$0x1] %vm5253_vm5, %v5734_v50  ;;  %v8259_v13 = vadd.f32 %v8155_v7, %v8115_v42  ;;  %v7720_v60 = vmul.f32 0.046875, %v7483_v6 }
 0x448   :  { %v8347_v32 = vsel %vm6738_vm7, %v18112_v19, %v8346_v58  ;;  %v5809_v62 = vld [vmem:[#allocation3 + $0x235] sm:$0x1]  ;;  %v5810_v44 = vld [vmem:[#allocation3 + $0x24d] sm:$0x1]  ;;  %v7721_v5 = vmul.f32 0.046875, %v7484_v1  ;;  %v7722_v9 = vmul.f32 0.046875, %v7485_v35 }
 0x449   :  { %5847 = vst.msk [vmem:[#allocation3 + $0x239] sm:$0x1] %vm5253_vm5, %v5809_v62  ;;  %5848 = vst.msk [vmem:[#allocation3 + $0x251] sm:$0x1] %vm5253_vm5, %v5810_v44  ;;  %v5660_v52 = vld [vmem:[#allocation3 + $0x272] sm:$0x1]  ;;  %v8260_v37 = vadd.f32 %v8157_v30, %v8116_v23  ;;  %v8451_v38 = vadd.f32 %v8347_v32, %v8259_v13  ;;  %v7768_v0 = vadd.f32 %v7720_v60, %v7672_v18 }
 0x44a   :  { %v7816_v48 = vmul.f32 0.015625, %v11071_v15  ;;  %v7817_v25 = vmul.f32 0.015625, %v7487_v53  ;;  %v7818_v41 = vmul.f32 0.015625, %v7488_v59  ;;  %v16409_v51 = vld [vmem:[#allocation3 + $0x108] sm:$0xff]  ;;  %5698 = vst.msk [vmem:[#allocation3 + $0x270] sm:$0x1] %vm5253_vm5, %v5660_v52  ;;  %v7769_v27 = vadd.f32 %v7721_v5, %v7673_v55 }
 0x44b   :  { %v5735_v26 = vld [vmem:[#allocation3 + $0x266] sm:$0x1]  ;;  %v7770_v2 = vadd.f32 %v7722_v9, %v7674_v21  ;;  %v5736_v16 = vld [vmem:[#allocation3 + $0x27e] sm:$0x1]  ;;  %v5811_v20 = vld [vmem:[#allocation3 + $0x265] sm:$0x1]  ;;  %v8452_v22 = vadd.f32 %v8349_v36, %v8260_v37  ;;  %v8579_v18 = vcombine.high %v8451_v38, %v8451_v38 }
 0x44c   :  { %5773 = vst.msk [vmem:[#allocation3 + $0x268] sm:$0x1] %vm5253_vm5, %v5735_v26  ;;  %v5812_v10 = vld [vmem:[#allocation3 + $0x27d] sm:$0x1]  ;;  %v16413_v47 = vmul.f32 0.015625, %v7483_v6  ;;  %v16415_v33 = vmul.f32 0.015625, %v7484_v1  ;;  %v16423_v3 = vadd.f32 %v7816_v48, %v7768_v0  ;;  %v16425_v8 = vadd.f32 %v7817_v25, %v7769_v27 }
 0x44d   :  { %v16417_v53 = vmul.f32 0.015625, %v7485_v35  ;;  %5774 = vst.msk [vmem:[#allocation3 + $0x280] sm:$0x1] %vm5253_vm5, %v5736_v16  ;;  %5849 = vst.msk [vmem:[#allocation3 + $0x269] sm:$0x1] %vm5253_vm5, %v5811_v20  ;;  %v18113_v31 = vld [vmem:[#allocation43_spill] sm:$0xff]  ;;  %v8596_v55 = vcombine.high %v8452_v22, %v8452_v22  ;;  %v16428_v49 = vadd.f32 %v7818_v41, %v7770_v2 }
 0x44e   :  { %5850 = vst.msk [vmem:[#allocation3 + $0x281] sm:$0x1] %vm5253_vm5, %v5812_v10  ;;  %v8586_v57 = vrot.slane %v8451_v38, %v18113_v31  ;;  %v5662_v24 = vld [vmem:[#allocation3 + $0x2a2] sm:$0x1]  ;;  %v5737_v6 = vld [vmem:[#allocation3 + $0x296] sm:$0x1]  ;;  %v8603_v4 = vrot.slane %v8452_v22, %v18113_v31  ;;  %v8593_v14 = vrot.slane %v8579_v18, %v18113_v31 }
 0x44f   :  { %v5738_v56 = vld [vmem:[#allocation3 + $0x2ae] sm:$0x1]  ;;  %v16431_v21 = vmul.f32 0.046875, %v16409_v51  ;;  %5700 = vst.msk [vmem:[#allocation3 + $0x2a0] sm:$0x1] %vm5253_vm5, %v5662_v24  ;;  %v18114_v45 = vld [vmem:[#allocation4_spill] sm:$0xff]  ;;  %v8610_v61 = vrot.slane %v8596_v55, %v18113_v31 }
 0x450   :  { %5775 = vst.msk [vmem:[#allocation3 + $0x298] sm:$0x1] %vm5253_vm5, %v5737_v6  ;;  %5776 = vst.msk [vmem:[#allocation3 + $0x2b0] sm:$0x1] %vm5253_vm5, %v5738_v56  ;;  %v5813_v63 = vld [vmem:[#allocation3 + $0x295] sm:$0x1]  ;;  %v8594_v43 = vcombine.high %v8586_v57, %v8586_v57  ;;  %v9124_v59 = vrot.slane %v8586_v57, %v18114_v45  ;;  %v8611_v58 = vcombine.high %v8603_v4, %v8603_v4 }
 0x451   :  { %v5814_v34 = vld [vmem:[#allocation3 + $0x2ad] sm:$0x1]  ;;  %v7912_v12 = vmul.f32 3.0, %v16423_v3  ;;  %5851 = vst.msk [vmem:[#allocation3 + $0x299] sm:$0x1] %vm5253_vm5, %v5813_v63  ;;  %v9140_v11 = vrot.slane %v8603_v4, %v18114_v45  ;;  %v7913_v54 = vmul.f32 3.0, %v16425_v8  ;;  %v8595_v1 = vcombine.high %v8593_v14, %v8593_v14 }
 0x452   :  { %5852 = vst.msk [vmem:[#allocation3 + $0x2b1] sm:$0x1] %vm5253_vm5, %v5814_v34  ;;  %v9128_v35 = vrot.slane %v8594_v43, %v18114_v45  ;;  %v9132_v46 = vrot.slane %v8593_v14, %v18114_v45  ;;  %v7914_v39 = vmul.f32 3.0, %v16428_v49  ;;  %v5664_v42 = vld [vmem:[#allocation3 + $0x2d2] sm:$0x1]  ;;  %v8612_v7 = vcombine.high %v8610_v61, %v8610_v61  ;;  %v16473_v55 = vld [vmem:[#allocation3 + $0xf8] sm:$0xff] }
 0x453   :  { %v9144_v30 = vrot.slane %v8611_v58, %v18114_v45  ;;  %v9148_v40 = vrot.slane %v8610_v61, %v18114_v45  ;;  %v8014_v28 = vrot.slane %v7912_v12, 1  ;;  %5702 = vst.msk [vmem:[#allocation3 + $0x2d0] sm:$0x1] %vm5253_vm5, %v5664_v42  ;;  %v9136_v50 = vrot.slane %v8595_v1, %v18114_v45  ;;  %v5739_v60 = vld [vmem:[#allocation3 + $0x2c6] sm:$0x1]  ;;  %v7493_v27 = vld [vmem:[#allocation3 + $0x110] sm:$0xff] }
 0x454   :  { %v9590_v23 = vsel %vm9569_vm8, %v9128_v35, %v9124_v59  ;;  %v8015_v19 = vrot.slane %v7913_v54, 1  ;;  %v8017_v32 = vrot.slane %v7914_v39, 1  ;;  %v9152_v36 = vrot.slane %v8612_v7, %v18114_v45  ;;  %v5740_v5 = vld [vmem:[#allocation3 + $0x2de] sm:$0x1]  ;;  %5777 = vst.msk [vmem:[#allocation3 + $0x2c8] sm:$0x1] %vm5253_vm5, %v5739_v60 }
 0x455   :  { %v9591_v62 = vsel %vm9571_vm9, %v9132_v46, %v9590_v23  ;;  %v8158_v44 = vrot.slane %v7912_v12, 2  ;;  %v8159_v13 = vrot.slane %v7913_v54, 2  ;;  %v8161_v15 = vrot.slane %v7914_v39, 2  ;;  %5778 = vst.msk [vmem:[#allocation3 + $0x2e0] sm:$0x1] %vm5253_vm5, %v5740_v5  ;;  %v16471_v56 = vld [vmem:[#allocation3 + $0xf0] sm:$0xff] }
 0x456   :  { %v9592_v9 = vsel %vm9573_vm10, %v9136_v50, %v9591_v62  ;;  %v8016_v52 = vsel %vm404_vm2, %v8014_v28, %v8015_v19  ;;  %v8018_v37 = vsel %vm404_vm2, %v8015_v19, %v8017_v32  ;;  %v5815_v48 = vld [vmem:[#allocation3 + $0x2c5] sm:$0x1]  ;;  %v5816_v25 = vld [vmem:[#allocation3 + $0x2dd] sm:$0x1]  ;;  %v7494_v2 = vld [vmem:[#allocation3 + $0x118] sm:$0x7]  ;;  %v7676_v12 = vadd.f32 %v16391_v17, %v16415_v33 }
 0x457   :  { %v9593_v41 = vsel %vm9575_vm11, %v9140_v11, %v9592_v9  ;;  %v8117_v26 = vadd.f32 %v8016_v52, %v16423_v3  ;;  %v8118_v38 = vadd.f32 %v8018_v37, %v16425_v8  ;;  %v8160_v0 = vsel %vm889_vm3, %v8158_v44, %v8159_v13  ;;  %5853 = vst.msk [vmem:[#allocation3 + $0x2c9] sm:$0x1] %vm5253_vm5, %v5815_v48  ;;  %v16477_v34 = vld [vmem:[#allocation3 + $0x100] sm:$0x7] }
 0x458   :  { %5854 = vst.msk [vmem:[#allocation3 + $0x2e1] sm:$0x1] %vm5253_vm5, %v5816_v25  ;;  %v9594_v16 = vsel %vm9577_vm12, %v9144_v30, %v9593_v41  ;;  %v8162_v20 = vsel %vm889_vm3, %v8159_v13, %v8161_v15  ;;  %v8350_v10 = vrot.slane %v16423_v3, 3  ;;  %v8351_v22 = vrot.slane %v16425_v8, 3 }
 0x459   :  { %v9595_v18 = vsel %vm9579_vm13, %v9148_v40, %v9594_v16  ;;  %v8261_v57 = vadd.f32 %v8160_v0, %v8117_v26  ;;  %v8262_v24 = vadd.f32 %v8162_v20, %v8118_v38  ;;  %v8353_v6 = vrot.slane %v16428_v49, 3  ;;  %v18115_v49 = vld [vmem:[#allocation54_spill] sm:$0xff] }
 0x45a   :  { %v9596_v4 = vsel %vm9581_vm14, %v9152_v36, %v9595_v18  ;;  %v8352_v63 = vsel %vm6738_vm7, %v8350_v10, %v8351_v22  ;;  %v16479_v14 = vmul.f32 0.046875, %v7493_v27  ;;  %v16481_v3 = vmul.f32 0.046875, %v7494_v2  ;;  %v5666_v26 = vld [vmem:[#allocation3 + $0x302] sm:$0x1] }
 0x45b   :  { %11018 = vmatprep.mubr.msk.f32.mxu1 %vm3379_vm1, %v9596_v4  ;;  %v8354_v8 = vsel %vm6738_vm7, %v8351_v22, %v8353_v6  ;;  %v8453_v43 = vadd.f32 %v8352_v63, %v8261_v57  ;;  %v7675_v59 = vadd.f32 %v18115_v49, %v16413_v47  ;;  %v7677_v58 = vadd.f32 %v16402_v29, %v16417_v53  ;;  %v7498_v4 = vld [vmem:[#allocation3 + $0x138] sm:$0xff]  ;;  %v5741_v63 = vld [vmem:[#allocation3 + $0x2f6] sm:$0x1] }
 0x45c   :  { %v8454_v61 = vadd.f32 %v8354_v8, %v8262_v24  ;;  %v7723_v11 = vmul.f32 0.046875, %v16471_v56  ;;  %v7724_v54 = vmul.f32 0.046875, %v16473_v55  ;;  %v7725_v46 = vmul.f32 0.046875, %v16477_v34  ;;  %5704 = vst.msk [vmem:[#allocation3 + $0x300] sm:$0x1] %vm5253_vm5, %v5666_v26 }
 0x45d   :  { %v8613_v1 = vcombine.high %v8453_v43, %v8453_v43  ;;  %v8620_v35 = vrot.slane %v8453_v43, %v18113_v31  ;;  %v7819_v39 = vmul.f32 0.015625, %v16409_v51  ;;  %v7820_v23 = vmul.f32 0.015625, %v7493_v27  ;;  %5779 = vst.msk [vmem:[#allocation3 + $0x2f8] sm:$0x1] %vm5253_vm5, %v5741_v63 }
 0x45e   :  { %v8630_v42 = vcombine.high %v8454_v61, %v8454_v61  ;;  %v8637_v47 = vrot.slane %v8454_v61, %v18113_v31  ;;  %v7771_v7 = vadd.f32 %v7723_v11, %v7675_v59  ;;  %v7772_v17 = vadd.f32 %v7724_v54, %v7676_v12  ;;  %v7499_v12 = vld [vmem:[#allocation3 + $0x140] sm:$0xff]  ;;  %v5742_v61 = vld [vmem:[#allocation3 + $0x30e] sm:$0x1] }
 0x45f   :  { %v8627_v33 = vrot.slane %v8613_v1, %v18113_v31  ;;  %v8628_v30 = vcombine.high %v8620_v35, %v8620_v35  ;;  %v9156_v29 = vrot.slane %v8620_v35, %v18114_v45  ;;  %v7773_v53 = vadd.f32 %v7725_v46, %v7677_v58  ;;  %v5817_v58 = vld [vmem:[#allocation3 + $0x2f5] sm:$0x1]  ;;  %v7500_v46 = vld [vmem:[#allocation3 + $0x148] sm:$0x7]  ;;  %5780 = vst.msk [vmem:[#allocation3 + $0x310] sm:$0x1] %vm5253_vm5, %v5742_v61 }
 0x460   :  { %v8644_v40 = vrot.slane %v8630_v42, %v18113_v31  ;;  %v8645_v28 = vcombine.high %v8637_v47, %v8637_v47  ;;  %v9172_v50 = vrot.slane %v8637_v47, %v18114_v45  ;;  %v7821_v36 = vmul.f32 0.015625, %v7494_v2  ;;  %5855 = vst.msk [vmem:[#allocation3 + $0x2f9] sm:$0x1] %vm5253_vm5, %v5817_v58 }
 0x461   :  { %v8629_v19 = vcombine.high %v8627_v33, %v8627_v33  ;;  %v9160_v51 = vrot.slane %v8628_v30, %v18114_v45  ;;  %v9164_v32 = vrot.slane %v8627_v33, %v18114_v45  ;;  %v7867_v60 = vadd.f32 %v7819_v39, %v7771_v7  ;;  %v5818_v39 = vld [vmem:[#allocation3 + $0x30d] sm:$0x1] }
 0x462   :  { %v8646_v62 = vcombine.high %v8644_v40, %v8644_v40  ;;  %v9176_v44 = vrot.slane %v8645_v28, %v18114_v45  ;;  %v9180_v13 = vrot.slane %v8644_v40, %v18114_v45  ;;  %v7868_v52 = vadd.f32 %v7820_v23, %v7772_v17  ;;  %v7495_v17 = vld [vmem:[#allocation3 + $0x120] sm:$0xff]  ;;  %v16525_v33 = vld [vmem:[#allocation3 + $0x128] sm:$0xff]  ;;  %5856 = vst.msk [vmem:[#allocation3 + $0x311] sm:$0x1] %vm5253_vm5, %v5818_v39 }
 0x463   :  { %v9168_v5 = vrot.slane %v8629_v19, %v18114_v45  ;;  %v9597_v9 = vsel %vm9569_vm8, %v9160_v51, %v9156_v29  ;;  %v7869_v37 = vadd.f32 %v7821_v36, %v7773_v53  ;;  %v7915_v25 = vmul.f32 3.0, %v7867_v60  ;;  %v16529_v29 = vld [vmem:[#allocation3 + $0x130] sm:$0x7] }
 0x464   :  { %v9184_v15 = vrot.slane %v8646_v62, %v18114_v45  ;;  %v9598_v48 = vsel %vm9571_vm9, %v9164_v32, %v9597_v9  ;;  %v8355_v41 = vrot.slane %v7867_v60, 3  ;;  %v7916_v0 = vmul.f32 3.0, %v7868_v52 }
 0x465   :  { %v9599_v38 = vsel %vm9573_vm10, %v9168_v5, %v9598_v48  ;;  %v7917_v27 = vmul.f32 3.0, %v7869_v37  ;;  %v8356_v2 = vrot.slane %v7868_v52, 3  ;;  %v8019_v20 = vrot.slane %v7915_v25, 1 }
 0x466   :  { %v9600_v16 = vsel %vm9575_vm11, %v9172_v50, %v9599_v38  ;;  %v8163_v10 = vrot.slane %v7915_v25, 2  ;;  %v8358_v22 = vrot.slane %v7869_v37, 3  ;;  %v8020_v57 = vrot.slane %v7916_v0, 1 }
 0x467   :  { %v9601_v18 = vsel %vm9577_vm12, %v9176_v44, %v9600_v16  ;;  %v8022_v24 = vrot.slane %v7917_v27, 1  ;;  %v8164_v6 = vrot.slane %v7916_v0, 2  ;;  %v8166_v43 = vrot.slane %v7917_v27, 2 }
 0x468   :  { %v9602_v8 = vsel %vm9579_vm13, %v9180_v13, %v9601_v18  ;;  %v8357_v49 = vsel %vm6738_vm7, %v8355_v41, %v8356_v2  ;;  %v8359_v59 = vsel %vm6738_vm7, %v8356_v2, %v8358_v22  ;;  %v8021_v54 = vsel %vm404_vm2, %v8019_v20, %v8020_v57 }
 0x469   :  { %v9603_v11 = vsel %vm9581_vm14, %v9184_v15, %v9602_v8  ;;  %v8023_v1 = vsel %vm404_vm2, %v8020_v57, %v8022_v24  ;;  %v8165_v35 = vsel %vm889_vm3, %v8163_v10, %v8164_v6  ;;  %v8119_v42 = vadd.f32 %v8021_v54, %v7867_v60 }
 0x46a   :  { %11019 = vmatmul.mubr.msk.f32.gmra.mxu1 %vm3379_vm1, %v9603_v11  ;;  %v8120_v47 = vadd.f32 %v8023_v1, %v7868_v52  ;;  %v8167_v7 = vsel %vm889_vm3, %v8164_v6, %v8166_v43  ;;  %v7582_v30 = vmul.f32 0.015625, %v16471_v56  ;;  %v7583_v53 = vmul.f32 0.015625, %v16473_v55 }
 0x46b   :  { %v7584_v40 = vmul.f32 0.015625, %v16477_v34  ;;  %v16533_v28 = vmul.f32 0.046875, %v7498_v4  ;;  %v16535_v50 = vmul.f32 0.046875, %v7499_v12  ;;  %v8263_v23 = vadd.f32 %v8165_v35, %v8119_v42 }
 0x46c   :  { %v8264_v19 = vadd.f32 %v8167_v7, %v8120_v47  ;;  %v16537_v51 = vmul.f32 0.046875, %v7500_v46  ;;  %v7678_v32 = vadd.f32 %v16431_v21, %v7582_v30  ;;  %v7679_v56 = vadd.f32 %v16479_v14, %v7583_v53  ;;  %v5743_v47 = vld [vmem:[#allocation3 + $0x326] sm:$0x1] }
 0x46d   :  { %v7680_v36 = vadd.f32 %v16481_v3, %v7584_v40  ;;  %v7726_v62 = vmul.f32 0.046875, %v7495_v17  ;;  %v7727_v44 = vmul.f32 0.046875, %v16525_v33  ;;  %v8455_v55 = vadd.f32 %v8357_v49, %v8263_v23  ;;  %v5744_v40 = vld [vmem:[#allocation3 + $0x33e] sm:$0x1]  ;;  %5781 = vst.msk [vmem:[#allocation3 + $0x328] sm:$0x1] %vm5253_vm5, %v5743_v47 }
 0x46e   :  { %v8456_v13 = vadd.f32 %v8359_v59, %v8264_v19  ;;  %v7728_v34 = vmul.f32 0.046875, %v16529_v29  ;;  %v7822_v60 = vmul.f32 0.015625, %v7498_v4  ;;  %v7823_v52 = vmul.f32 0.015625, %v7499_v12  ;;  %v5819_v23 = vld [vmem:[#allocation3 + $0x325] sm:$0x1] }
 0x46f   :  { %v7774_v5 = vadd.f32 %v7726_v62, %v7678_v32  ;;  %v7775_v9 = vadd.f32 %v7727_v44, %v7679_v56  ;;  %v7824_v37 = vmul.f32 0.015625, %v7500_v46  ;;  %v8647_v15 = vcombine.high %v8455_v55, %v8455_v55  ;;  %v7504_v62 = vld [vmem:[#allocation3 + $0x168] sm:$0xff]  ;;  %v7505_v44 = vld [vmem:[#allocation3 + $0x170] sm:$0xff]  ;;  %5782 = vst.msk [vmem:[#allocation3 + $0x340] sm:$0x1] %vm5253_vm5, %v5744_v40 }
 0x470   :  { %v8654_v48 = vrot.slane %v8455_v55, %v18113_v31  ;;  %v8664_v21 = vcombine.high %v8456_v13, %v8456_v13  ;;  %v8671_v14 = vrot.slane %v8456_v13, %v18113_v31  ;;  %v7776_v25 = vadd.f32 %v7728_v34, %v7680_v36  ;;  %v5820_v55 = vld [vmem:[#allocation3 + $0x33d] sm:$0x1]  ;;  %5857 = vst.msk [vmem:[#allocation3 + $0x329] sm:$0x1] %vm5253_vm5, %v5819_v23 }
 0x471   :  { %v7870_v3 = vadd.f32 %v7822_v60, %v7774_v5  ;;  %v7871_v41 = vadd.f32 %v7823_v52, %v7775_v9  ;;  %v16546_v26 = vmul.f32 0.015625, %v7495_v17  ;;  %v8661_v38 = vrot.slane %v8647_v15, %v18113_v31  ;;  %v7506_v9 = vld [vmem:[#allocation3 + $0x178] sm:$0x7]  ;;  %5858 = vst.msk [vmem:[#allocation3 + $0x341] sm:$0x1] %vm5253_vm5, %v5820_v55 }
 0x472   :  { %v8662_v0 = vcombine.high %v8654_v48, %v8654_v48  ;;  %v8678_v27 = vrot.slane %v8664_v21, %v18113_v31  ;;  %v8679_v2 = vcombine.high %v8671_v14, %v8671_v14  ;;  %v9188_v16 = vrot.slane %v8654_v48, %v18114_v45  ;;  %v7501_v48 = vld [vmem:[#allocation3 + $0x150] sm:$0xff]  ;;  %v16574_v21 = vld [vmem:[#allocation3 + $0x158] sm:$0xff] }
 0x473   :  { %v9204_v20 = vrot.slane %v8671_v14, %v18114_v45  ;;  %v7872_v10 = vadd.f32 %v7824_v37, %v7776_v25  ;;  %v7918_v22 = vmul.f32 3.0, %v7870_v3  ;;  %v8663_v18 = vcombine.high %v8661_v38, %v8661_v38 }
 0x474   :  { %v8680_v57 = vcombine.high %v8678_v27, %v8678_v27  ;;  %v9192_v24 = vrot.slane %v8662_v0, %v18114_v45  ;;  %v9196_v6 = vrot.slane %v8661_v38, %v18114_v45  ;;  %v9208_v4 = vrot.slane %v8679_v2, %v18114_v45  ;;  %v16584_v2 = vld [vmem:[#allocation3 + $0x160] sm:$0x7] }
 0x475   :  { %v9212_v63 = vrot.slane %v8678_v27, %v18114_v45  ;;  %v7919_v8 = vmul.f32 3.0, %v7871_v41  ;;  %v7920_v43 = vmul.f32 3.0, %v7872_v10  ;;  %v9200_v49 = vrot.slane %v8663_v18, %v18114_v45 }
 0x476   :  { %v9216_v59 = vrot.slane %v8680_v57, %v18114_v45  ;;  %v9604_v12 = vsel %vm9569_vm8, %v9192_v24, %v9188_v16  ;;  %v8024_v61 = vrot.slane %v7918_v22, 1  ;;  %v8168_v1 = vrot.slane %v7918_v22, 2 }
 0x477   :  { %v9605_v58 = vsel %vm9571_vm9, %v9196_v6, %v9604_v12  ;;  %v8025_v11 = vrot.slane %v7919_v8, 1  ;;  %v8027_v54 = vrot.slane %v7920_v43, 1  ;;  %v8169_v46 = vrot.slane %v7919_v8, 2 }
 0x478   :  { %v9606_v35 = vsel %vm9573_vm10, %v9200_v49, %v9605_v58  ;;  %v8171_v39 = vrot.slane %v7920_v43, 2  ;;  %v8360_v42 = vrot.slane %v7870_v3, 3  ;;  %v8361_v53 = vrot.slane %v7871_v41, 3 }
 0x479   :  { %v9607_v7 = vsel %vm9575_vm11, %v9204_v20, %v9606_v35  ;;  %v8026_v17 = vsel %vm404_vm2, %v8024_v61, %v8025_v11  ;;  %v8028_v30 = vsel %vm404_vm2, %v8025_v11, %v8027_v54  ;;  %v8170_v36 = vsel %vm889_vm3, %v8168_v1, %v8169_v46 }
 0x47a   :  { %v9608_v19 = vsel %vm9577_vm12, %v9208_v4, %v9607_v7  ;;  %v8121_v32 = vadd.f32 %v8026_v17, %v7870_v3  ;;  %v8122_v56 = vadd.f32 %v8028_v30, %v7871_v41  ;;  %v8172_v34 = vsel %vm889_vm3, %v8169_v46, %v8171_v39 }
 0x47b   :  { %v9609_v13 = vsel %vm9579_vm13, %v9212_v63, %v9608_v19  ;;  %v8362_v60 = vsel %vm6738_vm7, %v8360_v42, %v8361_v53  ;;  %v8363_v5 = vrot.slane %v7872_v10, 3  ;;  %v7586_v14 = vmul.f32 0.015625, %v16525_v33 }
 0x47c   :  { %v9610_v52 = vsel %vm9581_vm14, %v9216_v59, %v9609_v13  ;;  %v8265_v37 = vadd.f32 %v8170_v36, %v8121_v32  ;;  %v8266_v15 = vadd.f32 %v8172_v34, %v8122_v56  ;;  %v7587_v3 = vmul.f32 0.015625, %v16529_v29 }
 0x47d   :  { %11021 = vmatprep.mubr.msk.f32.mxu1 %vm3379_vm1, %v9610_v52  ;;  %v8364_v25 = vsel %vm6738_vm7, %v8361_v53, %v8363_v5  ;;  %v16580_v41 = vmul.f32 0.046875, %v7504_v62  ;;  %v16582_v38 = vmul.f32 0.046875, %v7505_v44  ;;  %v16586_v16 = vmul.f32 0.046875, %v7506_v9 }
 0x47e   :  { %v8457_v0 = vadd.f32 %v8362_v60, %v8265_v37  ;;  %v8458_v27 = vadd.f32 %v8364_v25, %v8266_v15  ;;  %v7681_v20 = vadd.f32 %v16533_v28, %v16546_v26  ;;  %v7682_v33 = vadd.f32 %v16535_v50, %v7586_v14  ;;  %v5745_v15 = vld [vmem:[#allocation3 + $0x356] sm:$0x1]  ;;  %v5821_v14 = vld [vmem:[#allocation3 + $0x355] sm:$0x1] }
 0x47f   :  { %v7683_v10 = vadd.f32 %v16537_v51, %v7587_v3  ;;  %v7729_v22 = vmul.f32 0.046875, %v7501_v48  ;;  %v7730_v29 = vmul.f32 0.046875, %v16574_v21  ;;  %v7731_v4 = vmul.f32 0.046875, %v16584_v2  ;;  %5783 = vst.msk [vmem:[#allocation3 + $0x358] sm:$0x1] %vm5253_vm5, %v5745_v15 }
 0x480   :  { %v8681_v18 = vcombine.high %v8457_v0, %v8457_v0  ;;  %v8688_v57 = vrot.slane %v8457_v0, %v18113_v31  ;;  %v8698_v24 = vcombine.high %v8458_v27, %v8458_v27  ;;  %v8705_v6 = vrot.slane %v8458_v27, %v18113_v31  ;;  %v7507_v27 = vld [vmem:[#allocation3 + $0x180] sm:$0xff]  ;;  %5859 = vst.msk [vmem:[#allocation3 + $0x359] sm:$0x1] %vm5253_vm5, %v5821_v14 }
 0x481   :  { %v7777_v63 = vadd.f32 %v7729_v22, %v7681_v20  ;;  %v7778_v8 = vadd.f32 %v7730_v29, %v7682_v33  ;;  %v7825_v43 = vmul.f32 0.015625, %v7504_v62  ;;  %v7779_v12 = vadd.f32 %v7731_v4, %v7683_v10  ;;  %v7509_v20 = vld [vmem:[#allocation3 + $0x190] sm:$0x7]  ;;  %v7508_v29 = vld [vmem:[#allocation3 + $0x188] sm:$0xff] }
 0x482   :  { %v8695_v28 = vrot.slane %v8681_v18, %v18113_v31  ;;  %v8696_v26 = vcombine.high %v8688_v57, %v8688_v57  ;;  %v8712_v50 = vrot.slane %v8698_v24, %v18113_v31  ;;  %v8713_v51 = vcombine.high %v8705_v6, %v8705_v6  ;;  %v5822_v24 = vld [vmem:[#allocation3 + $0x36d] sm:$0x1] }
 0x483   :  { %v9220_v49 = vrot.slane %v8688_v57, %v18114_v45  ;;  %v9236_v59 = vrot.slane %v8705_v6, %v18114_v45  ;;  %v7826_v61 = vmul.f32 0.015625, %v7505_v44  ;;  %v7827_v39 = vmul.f32 0.015625, %v7506_v9  ;;  %v5670_v44 = vld [vmem:[#allocation3 + $0x362] sm:$0x1]  ;;  %v5746_v57 = vld [vmem:[#allocation3 + $0x36e] sm:$0x1] }
 0x484   :  { %v8697_v58 = vcombine.high %v8695_v28, %v8695_v28  ;;  %v8714_v11 = vcombine.high %v8712_v50, %v8712_v50  ;;  %v9224_v54 = vrot.slane %v8696_v26, %v18114_v45  ;;  %v9228_v1 = vrot.slane %v8695_v28, %v18114_v45  ;;  %5708 = vst.msk [vmem:[#allocation3 + $0x360] sm:$0x1] %vm5253_vm5, %v5670_v44  ;;  %v7511_v28 = vld [vmem:[#allocation3 + $0x1a0] sm:$0xff] }
 0x485   :  { %v9240_v35 = vrot.slane %v8713_v51, %v18114_v45  ;;  %v9244_v46 = vrot.slane %v8712_v50, %v18114_v45  ;;  %v7873_v42 = vadd.f32 %v7825_v43, %v7777_v63  ;;  %v7874_v30 = vadd.f32 %v7826_v61, %v7778_v8  ;;  %v7510_v43 = vld [vmem:[#allocation3 + $0x198] sm:$0xff]  ;;  %5784 = vst.msk [vmem:[#allocation3 + $0x370] sm:$0x1] %vm5253_vm5, %v5746_v57  ;;  %v7512_v50 = vld [vmem:[#allocation3 + $0x1a8] sm:$0x7] }
 0x486   :  { %v9232_v47 = vrot.slane %v8697_v58, %v18114_v45  ;;  %v9248_v7 = vrot.slane %v8714_v11, %v18114_v45  ;;  %v9611_v17 = vsel %vm9569_vm8, %v9224_v54, %v9220_v49  ;;  %v7875_v40 = vadd.f32 %v7827_v39, %v7779_v12  ;;  %5860 = vst.msk [vmem:[#allocation3 + $0x371] sm:$0x1] %vm5253_vm5, %v5822_v24  ;;  %v7513_v11 = vld [vmem:[#allocation3 + $0x1c8] sm:$0xff]  ;;  %v7514_v54 = vld [vmem:[#allocation3 + $0x1d0] sm:$0xff] }
 0x487   :  { %v9612_v53 = vsel %vm9571_vm9, %v9228_v1, %v9611_v17  ;;  %v7921_v23 = vmul.f32 3.0, %v7873_v42  ;;  %v8365_v19 = vrot.slane %v7873_v42, 3  ;;  %v7922_v56 = vmul.f32 3.0, %v7874_v30 }
 0x488   :  { %v9613_v32 = vsel %vm9573_vm10, %v9232_v47, %v9612_v53  ;;  %v8366_v36 = vrot.slane %v7874_v30, 3  ;;  %v7588_v62 = vmul.f32 0.015625, %v7501_v48  ;;  %v7923_v13 = vmul.f32 3.0, %v7875_v40 }
 0x489   :  { %v9614_v55 = vsel %vm9575_vm11, %v9236_v59, %v9613_v32  ;;  %v8029_v34 = vrot.slane %v7921_v23, 1  ;;  %v8173_v60 = vrot.slane %v7921_v23, 2  ;;  %v8030_v9 = vrot.slane %v7922_v56, 1 }
 0x48a   :  { %v9615_v5 = vsel %vm9577_vm12, %v9240_v35, %v9614_v55  ;;  %v8174_v52 = vrot.slane %v7922_v56, 2  ;;  %v8367_v37 = vsel %vm6738_vm7, %v8365_v19, %v8366_v36  ;;  %v8032_v3 = vrot.slane %v7923_v13, 1 }
 0x48b   :  { %v9616_v25 = vsel %vm9579_vm13, %v9244_v46, %v9615_v5  ;;  %v8176_v48 = vrot.slane %v7923_v13, 2  ;;  %v8368_v0 = vrot.slane %v7875_v40, 3  ;;  %v8031_v10 = vsel %vm404_vm2, %v8029_v34, %v8030_v9 }
 0x48c   :  { %v9617_v33 = vsel %vm9581_vm14, %v9248_v7, %v9616_v25  ;;  %v8175_v22 = vsel %vm889_vm3, %v8173_v60, %v8174_v52  ;;  %v7589_v18 = vmul.f32 0.015625, %v16574_v21  ;;  %v8033_v6 = vsel %vm404_vm2, %v8030_v9, %v8032_v3 }
 0x48d   :  { %11022 = vmatmul.mubr.msk.f32.gmra.mxu1 %vm3379_vm1, %v9617_v33  ;;  %v8123_v4 = vadd.f32 %v8031_v10, %v7873_v42  ;;  %v8177_v63 = vsel %vm889_vm3, %v8174_v52, %v8176_v48  ;;  %v8369_v8 = vsel %vm6738_vm7, %v8366_v36, %v8368_v0  ;;  %v8124_v26 = vadd.f32 %v8033_v6, %v7874_v30 }
 0x48e   :  { %v7590_v21 = vmul.f32 0.015625, %v16584_v2  ;;  %v7684_v51 = vadd.f32 %v16580_v41, %v7588_v62  ;;  %v7685_v49 = vadd.f32 %v16582_v38, %v7589_v18  ;;  %v7732_v12 = vmul.f32 0.046875, %v7507_v27  ;;  %v7515_v2 = vld [vmem:[#allocation3 + $0x1d8] sm:$0x7] }
 0x48f   :  { %v8267_v59 = vadd.f32 %v8175_v22, %v8123_v4  ;;  %v7733_v61 = vmul.f32 0.046875, %v7508_v29  ;;  %v7734_v58 = vmul.f32 0.046875, %v7509_v20  ;;  %v8268_v1 = vadd.f32 %v8177_v63, %v8124_v26 }
 0x490   :  { %v7686_v35 = vadd.f32 %v16586_v16, %v7590_v21  ;;  %v7828_v46 = vmul.f32 0.015625, %v7510_v43  ;;  %v7829_v39 = vmul.f32 0.015625, %v7511_v28  ;;  %v7780_v47 = vadd.f32 %v7732_v12, %v7684_v51  ;;  %v7516_v21 = vld [vmem:[#allocation3 + $0x1e0] sm:$0xff]  ;;  %v7517_v51 = vld [vmem:[#allocation3 + $0x1e8] sm:$0xff] }
 0x491   :  { %v8459_v42 = vadd.f32 %v8367_v37, %v8267_v59  ;;  %v7781_v7 = vadd.f32 %v7733_v61, %v7685_v49  ;;  %v7830_v17 = vmul.f32 0.015625, %v7512_v50  ;;  %v8460_v30 = vadd.f32 %v8369_v8, %v8268_v1 }
 0x492   :  { %v7782_v41 = vadd.f32 %v7734_v58, %v7686_v35  ;;  %v16630_v53 = vmul.f32 0.015625, %v7513_v11  ;;  %v16632_v38 = vmul.f32 0.015625, %v7514_v54  ;;  %v7876_v19 = vadd.f32 %v7828_v46, %v7780_v47  ;;  %v7518_v58 = vld [vmem:[#allocation3 + $0x1f0] sm:$0x7] }
 0x493   :  { %v8715_v40 = vcombine.high %v8459_v42, %v8459_v42  ;;  %v8722_v23 = vrot.slane %v8459_v42, %v18113_v31  ;;  %v7877_v32 = vadd.f32 %v7829_v39, %v7781_v7  ;;  %v8732_v56 = vcombine.high %v8460_v30, %v8460_v30  ;;  %v7522_v11 = vld [vmem:[#allocation3 + $0x210] sm:$0xff]  ;;  %v7523_v39 = vld [vmem:[#allocation3 + $0x218] sm:$0xff]  ;;  %v7524_v42 = vld [vmem:[#allocation3 + $0x220] sm:$0x7] }
 0x494   :  { %v8739_v16 = vrot.slane %v8460_v30, %v18113_v31  ;;  %v7878_v36 = vadd.f32 %v7830_v17, %v7782_v41  ;;  %v16636_v62 = vmul.f32 0.015625, %v7515_v2  ;;  %v7924_v34 = vmul.f32 3.0, %v7876_v19 }
 0x495   :  { %v8729_v44 = vrot.slane %v8715_v40, %v18113_v31  ;;  %v8730_v55 = vcombine.high %v8722_v23, %v8722_v23  ;;  %v9252_v13 = vrot.slane %v8722_v23, %v18114_v45  ;;  %v8746_v60 = vrot.slane %v8732_v56, %v18113_v31  ;;  %v7519_v40 = vld [vmem:[#allocation3 + $0x1f8] sm:$0xff]  ;;  %v7520_v23 = vld [vmem:[#allocation3 + $0x200] sm:$0xff] }
 0x496   :  { %v8747_v5 = vcombine.high %v8739_v16, %v8739_v16  ;;  %v9268_v9 = vrot.slane %v8739_v16, %v18114_v45  ;;  %v7925_v52 = vmul.f32 3.0, %v7877_v32  ;;  %v7926_v25 = vmul.f32 3.0, %v7878_v36  ;;  %v7521_v16 = vld [vmem:[#allocation3 + $0x208] sm:$0x7] }
 0x497   :  { %v8731_v37 = vcombine.high %v8729_v44, %v8729_v44  ;;  %v9256_v15 = vrot.slane %v8730_v55, %v18114_v45  ;;  %v9260_v14 = vrot.slane %v8729_v44, %v18114_v45  ;;  %v8748_v3 = vcombine.high %v8746_v60, %v8746_v60 }
 0x498   :  { %v9272_v48 = vrot.slane %v8747_v5, %v18114_v45  ;;  %v9276_v0 = vrot.slane %v8746_v60, %v18114_v45  ;;  %v8034_v27 = vrot.slane %v7924_v34, 1  ;;  %v8035_v10 = vrot.slane %v7925_v52, 1 }
 0x499   :  { %v9264_v20 = vrot.slane %v8731_v37, %v18114_v45  ;;  %v9618_v33 = vsel %vm9569_vm8, %v9256_v15, %v9252_v13  ;;  %v8037_v22 = vrot.slane %v7926_v25, 1  ;;  %v9280_v29 = vrot.slane %v8748_v3, %v18114_v45 }
 0x49a   :  { %v9619_v18 = vsel %vm9571_vm9, %v9260_v14, %v9618_v33  ;;  %v8178_v57 = vrot.slane %v7924_v34, 2  ;;  %v8179_v24 = vrot.slane %v7925_v52, 2  ;;  %v8036_v4 = vsel %vm404_vm2, %v8034_v27, %v8035_v10 }
 0x49b   :  { %v9620_v6 = vsel %vm9573_vm10, %v9264_v20, %v9619_v18  ;;  %v8038_v63 = vsel %vm404_vm2, %v8035_v10, %v8037_v22  ;;  %v8181_v8 = vrot.slane %v7926_v25, 2  ;;  %v8125_v28 = vadd.f32 %v8036_v4, %v7876_v19 }
 0x49c   :  { %v9621_v43 = vsel %vm9575_vm11, %v9268_v9, %v9620_v6  ;;  %v8126_v26 = vadd.f32 %v8038_v63, %v7877_v32  ;;  %v8180_v50 = vsel %vm889_vm3, %v8178_v57, %v8179_v24  ;;  %v8370_v12 = vrot.slane %v7876_v19, 3 }
 0x49d   :  { %v9622_v49 = vsel %vm9577_vm12, %v9272_v48, %v9621_v43  ;;  %v8182_v59 = vsel %vm889_vm3, %v8179_v24, %v8181_v8  ;;  %v8371_v61 = vrot.slane %v7877_v32, 3  ;;  %v8269_v1 = vadd.f32 %v8180_v50, %v8125_v28  ;;  %v7528_v8 = vld [vmem:[#allocation3 + $0x240] sm:$0xff] }
 0x49e   :  { %v9623_v54 = vsel %vm9579_vm13, %v9276_v0, %v9622_v49  ;;  %v8270_v35 = vadd.f32 %v8182_v59, %v8126_v26  ;;  %v8373_v46 = vrot.slane %v7878_v36, 3  ;;  %v7639_v17 = vmul.f32 0.046875, %v7516_v21 }
 0x49f   :  { %v9624_v47 = vsel %vm9581_vm14, %v9280_v29, %v9623_v54  ;;  %v8372_v7 = vsel %vm6738_vm7, %v8370_v12, %v8371_v61  ;;  %v7640_v2 = vmul.f32 0.046875, %v7517_v51  ;;  %v7641_v19 = vmul.f32 0.046875, %v7518_v58 }
 0x4a0   :  { %11024 = vmatprep.mubr.msk.f32.mxu1 %vm3379_vm1, %v9624_v47  ;;  %v8374_v30 = vsel %vm6738_vm7, %v8371_v61, %v8373_v46  ;;  %v8461_v41 = vadd.f32 %v8372_v7, %v8269_v1  ;;  %v16662_v32 = vmul.f32 0.046875, %v7522_v11  ;;  %v16664_v36 = vmul.f32 0.046875, %v7523_v39 }
 0x4a1   :  { %v8462_v56 = vadd.f32 %v8374_v30, %v8270_v35  ;;  %v16666_v44 = vmul.f32 0.046875, %v7524_v42  ;;  %v7687_v55 = vadd.f32 %v7639_v17, %v16630_v53  ;;  %v7688_v60 = vadd.f32 %v7640_v2, %v16632_v38  ;;  %v7529_v17 = vld [vmem:[#allocation3 + $0x248] sm:$0xff]  ;;  %v7530_v2 = vld [vmem:[#allocation3 + $0x250] sm:$0x7] }
 0x4a2   :  { %v8749_v13 = vcombine.high %v8461_v41, %v8461_v41  ;;  %v8756_v34 = vrot.slane %v8461_v41, %v18113_v31  ;;  %v7689_v5 = vadd.f32 %v7641_v19, %v16636_v62  ;;  %v7735_v37 = vmul.f32 0.046875, %v7519_v40 }
 0x4a3   :  { %v8766_v9 = vcombine.high %v8462_v56, %v8462_v56  ;;  %v8773_v52 = vrot.slane %v8462_v56, %v18113_v31  ;;  %v7736_v15 = vmul.f32 0.046875, %v7520_v23  ;;  %v7737_v48 = vmul.f32 0.046875, %v7521_v16 }
 0x4a4   :  { %v8763_v14 = vrot.slane %v8749_v13, %v18113_v31  ;;  %v8764_v25 = vcombine.high %v8756_v34, %v8756_v34  ;;  %v9284_v3 = vrot.slane %v8756_v34, %v18114_v45  ;;  %v7783_v20 = vadd.f32 %v7735_v37, %v7687_v55 }
 0x4a5   :  { %v8780_v53 = vrot.slane %v8766_v9, %v18113_v31  ;;  %v8781_v0 = vcombine.high %v8773_v52, %v8773_v52  ;;  %v9300_v27 = vrot.slane %v8773_v52, %v18114_v45  ;;  %v7784_v10 = vadd.f32 %v7736_v15, %v7688_v60  ;;  %v7525_v60 = vld [vmem:[#allocation3 + $0x228] sm:$0xff]  ;;  %v7527_v9 = vld [vmem:[#allocation3 + $0x238] sm:$0x7] }
 0x4a6   :  { %v8765_v38 = vcombine.high %v8763_v14, %v8763_v14  ;;  %v9288_v62 = vrot.slane %v8764_v25, %v18114_v45  ;;  %v9292_v33 = vrot.slane %v8763_v14, %v18114_v45  ;;  %v7785_v57 = vadd.f32 %v7737_v48, %v7689_v5  ;;  %v7526_v5 = vld [vmem:[#allocation3 + $0x230] sm:$0xff] }
 0x4a7   :  { %v8782_v22 = vcombine.high %v8780_v53, %v8780_v53  ;;  %v9304_v29 = vrot.slane %v8781_v0, %v18114_v45  ;;  %v9308_v18 = vrot.slane %v8780_v53, %v18114_v45  ;;  %v7831_v4 = vmul.f32 0.015625, %v7522_v11 }
 0x4a8   :  { %v9296_v24 = vrot.slane %v8765_v38, %v18114_v45  ;;  %v9625_v6 = vsel %vm9569_vm8, %v9288_v62, %v9284_v3  ;;  %v7832_v63 = vmul.f32 0.015625, %v7523_v39  ;;  %v7833_v26 = vmul.f32 0.015625, %v7524_v42 }
 0x4a9   :  { %v9312_v43 = vrot.slane %v8782_v22, %v18114_v45  ;;  %v9626_v28 = vsel %vm9571_vm9, %v9292_v33, %v9625_v6  ;;  %v7594_v50 = vmul.f32 0.015625, %v7519_v40  ;;  %v7879_v51 = vadd.f32 %v7831_v4, %v7783_v20 }
 0x4aa   :  { %v9627_v21 = vsel %vm9573_vm10, %v9296_v24, %v9626_v28  ;;  %v7880_v49 = vadd.f32 %v7832_v63, %v7784_v10  ;;  %v7595_v59 = vmul.f32 0.015625, %v7520_v23  ;;  %v7881_v61 = vadd.f32 %v7833_v26, %v7785_v57  ;;  %v16706_v63 = vld [vmem:[#allocation3 + $0x270] sm:$0xff] }
 0x4ab   :  { %v9628_v12 = vsel %vm9575_vm11, %v9300_v27, %v9627_v21  ;;  %v7596_v58 = vmul.f32 0.015625, %v7521_v16  ;;  %v16687_v54 = vmul.f32 0.046875, %v7528_v8  ;;  %v7927_v1 = vmul.f32 3.0, %v7879_v51 }
 0x4ac   :  { %v9629_v11 = vsel %vm9577_vm12, %v9304_v29, %v9628_v12  ;;  %v7928_v35 = vmul.f32 3.0, %v7880_v49  ;;  %v8375_v46 = vrot.slane %v7879_v51, 3  ;;  %v7929_v42 = vmul.f32 3.0, %v7881_v61 }
 0x4ad   :  { %v9630_v39 = vsel %vm9579_vm13, %v9308_v18, %v9629_v11  ;;  %v8376_v47 = vrot.slane %v7880_v49, 3  ;;  %v8378_v7 = vrot.slane %v7881_v61, 3  ;;  %v8039_v41 = vrot.slane %v7927_v1, 1 }
 0x4ae   :  { %v9631_v30 = vsel %vm9581_vm14, %v9312_v43, %v9630_v39  ;;  %v8040_v40 = vrot.slane %v7928_v35, 1  ;;  %v8183_v23 = vrot.slane %v7927_v1, 2  ;;  %v8042_v19 = vrot.slane %v7929_v42, 1 }
 0x4af   :  { %11025 = vmatmul.mubr.msk.f32.gmra.mxu1 %vm3379_vm1, %v9631_v30  ;;  %v8184_v56 = vrot.slane %v7928_v35, 2  ;;  %v8186_v16 = vrot.slane %v7929_v42, 2  ;;  %v8377_v55 = vsel %vm6738_vm7, %v8375_v46, %v8376_v47  ;;  %v8379_v34 = vsel %vm6738_vm7, %v8376_v47, %v8378_v7 }
 0x4b0   :  { %v8041_v13 = vsel %vm404_vm2, %v8039_v41, %v8040_v40  ;;  %v16696_v52 = vmul.f32 0.046875, %v7529_v17  ;;  %v16698_v37 = vmul.f32 0.046875, %v7530_v2  ;;  %v8043_v15 = vsel %vm404_vm2, %v8040_v40, %v8042_v19 }
 0x4b1   :  { %v8127_v14 = vadd.f32 %v8041_v13, %v7879_v51  ;;  %v8185_v25 = vsel %vm889_vm3, %v8183_v23, %v8184_v56  ;;  %v8187_v3 = vsel %vm889_vm3, %v8184_v56, %v8186_v16  ;;  %v8128_v48 = vadd.f32 %v8043_v15, %v7880_v49 }
 0x4b2   :  { %v7690_v53 = vadd.f32 %v16662_v32, %v7594_v50  ;;  %v7691_v0 = vadd.f32 %v16664_v36, %v7595_v59  ;;  %v7692_v27 = vadd.f32 %v16666_v44, %v7596_v58  ;;  %v7738_v38 = vmul.f32 0.046875, %v7525_v60 }
 0x4b3   :  { %v8271_v20 = vadd.f32 %v8185_v25, %v8127_v14  ;;  %v7739_v62 = vmul.f32 0.046875, %v7526_v5  ;;  %v7740_v33 = vmul.f32 0.046875, %v7527_v9  ;;  %v8272_v10 = vadd.f32 %v8187_v3, %v8128_v48 }
 0x4b4   :  { %v7834_v22 = vmul.f32 0.015625, %v7528_v8  ;;  %v7835_v29 = vmul.f32 0.015625, %v7529_v17  ;;  %v7836_v18 = vmul.f32 0.015625, %v7530_v2  ;;  %v7786_v24 = vadd.f32 %v7738_v38, %v7690_v53 }
 0x4b5   :  { %v8463_v57 = vadd.f32 %v8377_v55, %v8271_v20  ;;  %v7787_v6 = vadd.f32 %v7739_v62, %v7691_v0  ;;  %v7788_v4 = vadd.f32 %v7740_v33, %v7692_v27  ;;  %v8464_v43 = vadd.f32 %v8379_v34, %v8272_v10  ;;  %v7535_v0 = vld [vmem:[#allocation3 + $0x278] sm:$0xff]  ;;  %v7536_v27 = vld [vmem:[#allocation3 + $0x280] sm:$0x7] }
 0x4b6   :  { %v16708_v32 = vmul.f32 0.015625, %v7525_v60  ;;  %v16710_v36 = vmul.f32 0.015625, %v7526_v5  ;;  %v16712_v44 = vmul.f32 0.015625, %v7527_v9  ;;  %v7882_v50 = vadd.f32 %v7834_v22, %v7786_v24  ;;  %v16741_v24 = vld [vmem:[#allocation3 + $0x260] sm:$0xff] }
 0x4b7   :  { %v8783_v28 = vcombine.high %v8463_v57, %v8463_v57  ;;  %v8790_v26 = vrot.slane %v8463_v57, %v18113_v31  ;;  %v7883_v8 = vadd.f32 %v7835_v29, %v7787_v6  ;;  %v8800_v21 = vcombine.high %v8464_v43, %v8464_v43  ;;  %v16739_v57 = vld [vmem:[#allocation3 + $0x258] sm:$0xff] }
 0x4b8   :  { %v8807_v51 = vrot.slane %v8464_v43, %v18113_v31  ;;  %v7884_v49 = vadd.f32 %v7836_v18, %v7788_v4  ;;  %v16717_v59 = vmul.f32 0.046875, %v16706_v63  ;;  %v7930_v11 = vmul.f32 3.0, %v7882_v50  ;;  %v16745_v43 = vld [vmem:[#allocation3 + $0x268] sm:$0x7] }
 0x4b9   :  { %v8797_v12 = vrot.slane %v8783_v28, %v18113_v31  ;;  %v8798_v61 = vcombine.high %v8790_v26, %v8790_v26  ;;  %v9316_v58 = vrot.slane %v8790_v26, %v18114_v45  ;;  %v8814_v1 = vrot.slane %v8800_v21, %v18113_v31 }
 0x4ba   :  { %v8815_v35 = vcombine.high %v8807_v51, %v8807_v51  ;;  %v9332_v46 = vrot.slane %v8807_v51, %v18114_v45  ;;  %v7931_v39 = vmul.f32 3.0, %v7883_v8  ;;  %v7932_v17 = vmul.f32 3.0, %v7884_v49 }
 0x4bb   :  { %v8799_v42 = vcombine.high %v8797_v12, %v8797_v12  ;;  %v9320_v47 = vrot.slane %v8798_v61, %v18114_v45  ;;  %v9324_v7 = vrot.slane %v8797_v12, %v18114_v45  ;;  %v8816_v2 = vcombine.high %v8814_v1, %v8814_v1 }
 0x4bc   :  { %v9336_v30 = vrot.slane %v8815_v35, %v18114_v45  ;;  %v9340_v41 = vrot.slane %v8814_v1, %v18114_v45  ;;  %v8044_v40 = vrot.slane %v7930_v11, 1  ;;  %v8045_v56 = vrot.slane %v7931_v39, 1 }
 0x4bd   :  { %v9328_v23 = vrot.slane %v8799_v42, %v18114_v45  ;;  %v9632_v19 = vsel %vm9569_vm8, %v9320_v47, %v9316_v58  ;;  %v8047_v16 = vrot.slane %v7932_v17, 1  ;;  %v9344_v55 = vrot.slane %v8816_v2, %v18114_v45 }
 0x4be   :  { %v9633_v13 = vsel %vm9571_vm9, %v9324_v7, %v9632_v19  ;;  %v8188_v34 = vrot.slane %v7930_v11, 2  ;;  %v8189_v60 = vrot.slane %v7931_v39, 2  ;;  %v8046_v9 = vsel %vm404_vm2, %v8044_v40, %v8045_v56 }
 0x4bf   :  { %v9634_v5 = vsel %vm9573_vm10, %v9328_v23, %v9633_v13  ;;  %v8048_v15 = vsel %vm404_vm2, %v8045_v56, %v8047_v16  ;;  %v8191_v14 = vrot.slane %v7932_v17, 2  ;;  %v8129_v3 = vadd.f32 %v8046_v9, %v7882_v50 }
 0x4c0   :  { %v9635_v25 = vsel %vm9575_vm11, %v9332_v46, %v9634_v5  ;;  %v8130_v48 = vadd.f32 %v8048_v15, %v7883_v8  ;;  %v8190_v53 = vsel %vm889_vm3, %v8188_v34, %v8189_v60  ;;  %v8380_v62 = vrot.slane %v7882_v50, 3 }
 0x4c1   :  { %v9636_v20 = vsel %vm9577_vm12, %v9336_v30, %v9635_v25  ;;  %v8192_v38 = vsel %vm889_vm3, %v8189_v60, %v8191_v14  ;;  %v8381_v33 = vrot.slane %v7883_v8, 3  ;;  %v8273_v22 = vadd.f32 %v8190_v53, %v8129_v3 }
 0x4c2   :  { %v9637_v10 = vsel %vm9579_vm13, %v9340_v41, %v9636_v20  ;;  %v8274_v29 = vadd.f32 %v8192_v38, %v8130_v48  ;;  %v8383_v18 = vrot.slane %v7884_v49, 3  ;;  %v16747_v28 = vmul.f32 0.046875, %v7535_v0 }
 0x4c3   :  { %v9638_v6 = vsel %vm9581_vm14, %v9344_v55, %v9637_v10  ;;  %v8382_v4 = vsel %vm6738_vm7, %v8380_v62, %v8381_v33  ;;  %v16749_v26 = vmul.f32 0.046875, %v7536_v27  ;;  %v7693_v21 = vadd.f32 %v16687_v54, %v16708_v32 }
 0x4c4   :  { %11027 = vmatprep.mubr.msk.f32.mxu1 %vm3379_vm1, %v9638_v6  ;;  %v8384_v50 = vsel %vm6738_vm7, %v8381_v33, %v8383_v18  ;;  %v8465_v8 = vadd.f32 %v8382_v4, %v8273_v22  ;;  %v7694_v51 = vadd.f32 %v16696_v52, %v16710_v36  ;;  %v7695_v12 = vadd.f32 %v16698_v37, %v16712_v44 }
 0x4c5   :  { %v8466_v49 = vadd.f32 %v8384_v50, %v8274_v29  ;;  %v7741_v61 = vmul.f32 0.046875, %v16739_v57  ;;  %v7742_v58 = vmul.f32 0.046875, %v16741_v24  ;;  %v7743_v35 = vmul.f32 0.046875, %v16745_v43  ;;  %v7540_v50 = vld [vmem:[#allocation3 + $0x2a0] sm:$0xff] }
 0x4c6   :  { %v8817_v11 = vcombine.high %v8465_v8, %v8465_v8  ;;  %v8824_v1 = vrot.slane %v8465_v8, %v18113_v31  ;;  %v7837_v46 = vmul.f32 0.015625, %v16706_v63  ;;  %v7838_v2 = vmul.f32 0.015625, %v7535_v0  ;;  %v7541_v8 = vld [vmem:[#allocation3 + $0x2a8] sm:$0xff] }
 0x4c7   :  { %v8834_v39 = vcombine.high %v8466_v49, %v8466_v49  ;;  %v8841_v54 = vrot.slane %v8466_v49, %v18113_v31  ;;  %v7789_v32 = vadd.f32 %v7741_v61, %v7693_v21  ;;  %v7790_v52 = vadd.f32 %v7742_v58, %v7694_v51  ;;  %v7542_v61 = vld [vmem:[#allocation3 + $0x2b0] sm:$0x7] }
 0x4c8   :  { %v8831_v36 = vrot.slane %v8817_v11, %v18113_v31  ;;  %v8832_v42 = vcombine.high %v8824_v1, %v8824_v1  ;;  %v9348_v37 = vrot.slane %v8824_v1, %v18114_v45  ;;  %v7791_v44 = vadd.f32 %v7743_v35, %v7695_v12  ;;  %v7537_v35 = vld [vmem:[#allocation3 + $0x288] sm:$0xff] }
 0x4c9   :  { %v8848_v47 = vrot.slane %v8834_v39, %v18113_v31  ;;  %v8849_v7 = vcombine.high %v8841_v54, %v8841_v54  ;;  %v9364_v17 = vrot.slane %v8841_v54, %v18114_v45  ;;  %v7839_v40 = vmul.f32 0.015625, %v7536_v27  ;;  %v16792_v54 = vld [vmem:[#allocation3 + $0x298] sm:$0x7] }
 0x4ca   :  { %v8833_v30 = vcombine.high %v8831_v36, %v8831_v36  ;;  %v9352_v63 = vrot.slane %v8832_v42, %v18114_v45  ;;  %v9356_v41 = vrot.slane %v8831_v36, %v18114_v45  ;;  %v7885_v16 = vadd.f32 %v7837_v46, %v7789_v32  ;;  %v16789_v46 = vld [vmem:[#allocation3 + $0x290] sm:$0xff] }
 0x4cb   :  { %v8850_v23 = vcombine.high %v8848_v47, %v8848_v47  ;;  %v9368_v19 = vrot.slane %v8849_v7, %v18114_v45  ;;  %v9372_v56 = vrot.slane %v8848_v47, %v18114_v45  ;;  %v7886_v34 = vadd.f32 %v7838_v2, %v7790_v52 }
 0x4cc   :  { %v9360_v55 = vrot.slane %v8833_v30, %v18114_v45  ;;  %v9639_v13 = vsel %vm9569_vm8, %v9352_v63, %v9348_v37  ;;  %v7887_v60 = vadd.f32 %v7839_v40, %v7791_v44  ;;  %v7933_v15 = vmul.f32 3.0, %v7885_v16 }
 0x4cd   :  { %v9376_v5 = vrot.slane %v8850_v23, %v18114_v45  ;;  %v9640_v9 = vsel %vm9571_vm9, %v9356_v41, %v9639_v13  ;;  %v8385_v14 = vrot.slane %v7885_v16, 3  ;;  %v7934_v3 = vmul.f32 3.0, %v7886_v34 }
 0x4ce   :  { %v9641_v25 = vsel %vm9573_vm10, %v9360_v55, %v9640_v9  ;;  %v7935_v48 = vmul.f32 3.0, %v7887_v60  ;;  %v8386_v53 = vrot.slane %v7886_v34, 3  ;;  %v8049_v27 = vrot.slane %v7933_v15, 1 }
 0x4cf   :  { %v9642_v0 = vsel %vm9575_vm11, %v9364_v17, %v9641_v25  ;;  %v8193_v20 = vrot.slane %v7933_v15, 2  ;;  %v8388_v38 = vrot.slane %v7887_v60, 3  ;;  %v8050_v33 = vrot.slane %v7934_v3, 1 }
 0x4d0   :  { %v9643_v62 = vsel %vm9577_vm12, %v9368_v19, %v9642_v0  ;;  %v8052_v10 = vrot.slane %v7935_v48, 1  ;;  %v8194_v22 = vrot.slane %v7934_v3, 2  ;;  %v8196_v18 = vrot.slane %v7935_v48, 2 }
 0x4d1   :  { %v9644_v29 = vsel %vm9579_vm13, %v9372_v56, %v9643_v62  ;;  %v8387_v6 = vsel %vm6738_vm7, %v8385_v14, %v8386_v53  ;;  %v8389_v4 = vsel %vm6738_vm7, %v8386_v53, %v8388_v38  ;;  %v8051_v51 = vsel %vm404_vm2, %v8049_v27, %v8050_v33 }
 0x4d2   :  { %v9645_v21 = vsel %vm9581_vm14, %v9376_v5, %v9644_v29  ;;  %v8053_v49 = vsel %vm404_vm2, %v8050_v33, %v8052_v10  ;;  %v8195_v12 = vsel %vm889_vm3, %v8193_v20, %v8194_v22  ;;  %v8131_v58 = vadd.f32 %v8051_v51, %v7885_v16 }
 0x4d3   :  { %11028 = vmatmul.mubr.msk.f32.gmra.mxu1 %vm3379_vm1, %v9645_v21  ;;  %v8132_v11 = vadd.f32 %v8053_v49, %v7886_v34  ;;  %v8197_v1 = vsel %vm889_vm3, %v8194_v22, %v8196_v18  ;;  %v7600_v39 = vmul.f32 0.015625, %v16739_v57  ;;  %v7601_v32 = vmul.f32 0.015625, %v16741_v24 }
 0x4d4   :  { %v7602_v52 = vmul.f32 0.015625, %v16745_v43  ;;  %v16796_v36 = vmul.f32 0.046875, %v7540_v50  ;;  %v16798_v42 = vmul.f32 0.046875, %v7541_v8  ;;  %v8275_v37 = vadd.f32 %v8195_v12, %v8131_v58 }
 0x4d5   :  { %v8276_v44 = vadd.f32 %v8197_v1, %v8132_v11  ;;  %v16800_v47 = vmul.f32 0.046875, %v7542_v61  ;;  %v7696_v7 = vadd.f32 %v16717_v59, %v7600_v39  ;;  %v7697_v17 = vadd.f32 %v16747_v28, %v7601_v32 }
 0x4d6   :  { %v7698_v57 = vadd.f32 %v16749_v26, %v7602_v52  ;;  %v7744_v2 = vmul.f32 0.046875, %v7537_v35  ;;  %v7745_v30 = vmul.f32 0.046875, %v16789_v46  ;;  %v8467_v24 = vadd.f32 %v8387_v6, %v8275_v37 }
 0x4d7   :  { %v8468_v63 = vadd.f32 %v8389_v4, %v8276_v44  ;;  %v7746_v43 = vmul.f32 0.046875, %v16792_v54  ;;  %v7840_v41 = vmul.f32 0.015625, %v7540_v50  ;;  %v7841_v19 = vmul.f32 0.015625, %v7541_v8 }
 0x4d8   :  { %v7792_v40 = vadd.f32 %v7744_v2, %v7696_v7  ;;  %v7793_v23 = vadd.f32 %v7745_v30, %v7697_v17  ;;  %v7842_v56 = vmul.f32 0.015625, %v7542_v61  ;;  %v8851_v16 = vcombine.high %v8467_v24, %v8467_v24  ;;  %v7546_v7 = vld [vmem:[#allocation3 + $0x2d0] sm:$0xff]  ;;  %v7547_v17 = vld [vmem:[#allocation3 + $0x2d8] sm:$0xff] }
 0x4d9   :  { %v8858_v55 = vrot.slane %v8467_v24, %v18113_v31  ;;  %v8868_v59 = vcombine.high %v8468_v63, %v8468_v63  ;;  %v8875_v28 = vrot.slane %v8468_v63, %v18113_v31  ;;  %v7794_v13 = vadd.f32 %v7746_v43, %v7698_v57  ;;  %v7548_v63 = vld [vmem:[#allocation3 + $0x2e0] sm:$0x7] }
 0x4da   :  { %v7888_v26 = vadd.f32 %v7840_v41, %v7792_v40  ;;  %v7889_v34 = vadd.f32 %v7841_v19, %v7793_v23  ;;  %v7603_v60 = vmul.f32 0.015625, %v7537_v35  ;;  %v8865_v5 = vrot.slane %v8851_v16, %v18113_v31  ;;  %v7543_v23 = vld [vmem:[#allocation3 + $0x2b8] sm:$0xff]  ;;  %v16831_v19 = vld [vmem:[#allocation3 + $0x2c0] sm:$0xff] }
 0x4db   :  { %v8866_v9 = vcombine.high %v8858_v55, %v8858_v55  ;;  %v8882_v15 = vrot.slane %v8868_v59, %v18113_v31  ;;  %v8883_v14 = vcombine.high %v8875_v28, %v8875_v28  ;;  %v9380_v25 = vrot.slane %v8858_v55, %v18114_v45 }
 0x4dc   :  { %v9396_v3 = vrot.slane %v8875_v28, %v18114_v45  ;;  %v7890_v48 = vadd.f32 %v7842_v56, %v7794_v13  ;;  %v7936_v53 = vmul.f32 3.0, %v7888_v26  ;;  %v8867_v0 = vcombine.high %v8865_v5, %v8865_v5 }
 0x4dd   :  { %v8884_v27 = vcombine.high %v8882_v15, %v8882_v15  ;;  %v9384_v20 = vrot.slane %v8866_v9, %v18114_v45  ;;  %v9388_v38 = vrot.slane %v8865_v5, %v18114_v45  ;;  %v9400_v62 = vrot.slane %v8883_v14, %v18114_v45 }
 0x4de   :  { %v9404_v33 = vrot.slane %v8882_v15, %v18114_v45  ;;  %v7937_v10 = vmul.f32 3.0, %v7889_v34  ;;  %v7938_v22 = vmul.f32 3.0, %v7890_v48  ;;  %v9392_v29 = vrot.slane %v8867_v0, %v18114_v45 }
 0x4df   :  { %v9408_v18 = vrot.slane %v8884_v27, %v18114_v45  ;;  %v9646_v6 = vsel %vm9569_vm8, %v9384_v20, %v9380_v25  ;;  %v8054_v4 = vrot.slane %v7936_v53, 1  ;;  %v8198_v51 = vrot.slane %v7936_v53, 2 }
 0x4e0   :  { %v9647_v50 = vsel %vm9571_vm9, %v9388_v38, %v9646_v6  ;;  %v8055_v8 = vrot.slane %v7937_v10, 1  ;;  %v8057_v21 = vrot.slane %v7938_v22, 1  ;;  %v8199_v12 = vrot.slane %v7937_v10, 2 }
 0x4e1   :  { %v9648_v49 = vsel %vm9573_vm10, %v9392_v29, %v9647_v50  ;;  %v8201_v61 = vrot.slane %v7938_v22, 2  ;;  %v8390_v58 = vrot.slane %v7888_v26, 3  ;;  %v8391_v39 = vrot.slane %v7889_v34, 3 }
 0x4e2   :  { %v9649_v11 = vsel %vm9575_vm11, %v9396_v3, %v9648_v49  ;;  %v8056_v1 = vsel %vm404_vm2, %v8054_v4, %v8055_v8  ;;  %v8058_v35 = vsel %vm404_vm2, %v8055_v8, %v8057_v21  ;;  %v8200_v44 = vsel %vm889_vm3, %v8198_v51, %v8199_v12 }
 0x4e3   :  { %v9650_v32 = vsel %vm9577_vm12, %v9400_v62, %v9649_v11  ;;  %v8133_v52 = vadd.f32 %v8056_v1, %v7888_v26  ;;  %v8134_v37 = vadd.f32 %v8058_v35, %v7889_v34  ;;  %v8202_v2 = vsel %vm889_vm3, %v8199_v12, %v8201_v61  ;;  %v16841_v34 = vld [vmem:[#allocation3 + $0x2c8] sm:$0x7] }
 0x4e4   :  { %v9651_v57 = vsel %vm9579_vm13, %v9404_v33, %v9650_v32  ;;  %v8392_v30 = vsel %vm6738_vm7, %v8390_v58, %v8391_v39  ;;  %v8393_v24 = vrot.slane %v7890_v48, 3  ;;  %v7604_v56 = vmul.f32 0.015625, %v16789_v46 }
 0x4e5   :  { %v9652_v43 = vsel %vm9581_vm14, %v9408_v18, %v9651_v57  ;;  %v8277_v41 = vadd.f32 %v8200_v44, %v8133_v52  ;;  %v8278_v40 = vadd.f32 %v8202_v2, %v8134_v37  ;;  %v7605_v55 = vmul.f32 0.015625, %v16792_v54 }
 0x4e6   :  { %11030 = vmatprep.mubr.msk.f32.mxu1 %vm3379_vm1, %v9652_v43  ;;  %v8394_v16 = vsel %vm6738_vm7, %v8391_v39, %v8393_v24  ;;  %v16837_v59 = vmul.f32 0.046875, %v7546_v7  ;;  %v16839_v28 = vmul.f32 0.046875, %v7547_v17  ;;  %v16843_v5 = vmul.f32 0.046875, %v7548_v63 }
 0x4e7   :  { %v8469_v13 = vadd.f32 %v8392_v30, %v8277_v41  ;;  %v8470_v26 = vadd.f32 %v8394_v16, %v8278_v40  ;;  %v7699_v9 = vadd.f32 %v16796_v36, %v7603_v60  ;;  %v7700_v46 = vadd.f32 %v16798_v42, %v7604_v56 }
 0x4e8   :  { %v7701_v15 = vadd.f32 %v16800_v47, %v7605_v55  ;;  %v7747_v14 = vmul.f32 0.046875, %v7543_v23  ;;  %v7748_v25 = vmul.f32 0.046875, %v16831_v19  ;;  %v7749_v0 = vmul.f32 0.046875, %v16841_v34  ;;  %v7552_v55 = vld [vmem:[#allocation3 + $0x300] sm:$0xff] }
 0x4e9   :  { %v8885_v54 = vcombine.high %v8469_v13, %v8469_v13  ;;  %v8892_v3 = vrot.slane %v8469_v13, %v18113_v31  ;;  %v8902_v48 = vcombine.high %v8470_v26, %v8470_v26  ;;  %v8909_v53 = vrot.slane %v8470_v26, %v18113_v31  ;;  %v7553_v13 = vld [vmem:[#allocation3 + $0x308] sm:$0xff] }
 0x4ea   :  { %v7795_v27 = vadd.f32 %v7747_v14, %v7699_v9  ;;  %v7796_v20 = vadd.f32 %v7748_v25, %v7700_v46  ;;  %v7843_v38 = vmul.f32 0.015625, %v7546_v7  ;;  %v7797_v10 = vadd.f32 %v7749_v0, %v7701_v15  ;;  %v7554_v46 = vld [vmem:[#allocation3 + $0x310] sm:$0x7] }
 0x4eb   :  { %v8899_v36 = vrot.slane %v8885_v54, %v18113_v31  ;;  %v8900_v60 = vcombine.high %v8892_v3, %v8892_v3  ;;  %v8916_v42 = vrot.slane %v8902_v48, %v18113_v31  ;;  %v8917_v47 = vcombine.high %v8909_v53, %v8909_v53  ;;  %v7549_v48 = vld [vmem:[#allocation3 + $0x2e8] sm:$0xff] }
 0x4ec   :  { %v9412_v62 = vrot.slane %v8892_v3, %v18114_v45  ;;  %v9428_v33 = vrot.slane %v8909_v53, %v18114_v45  ;;  %v7844_v22 = vmul.f32 0.015625, %v7547_v17  ;;  %v7845_v21 = vmul.f32 0.015625, %v7548_v63  ;;  %v16877_v53 = vld [vmem:[#allocation3 + $0x2f0] sm:$0xff] }
 0x4ed   :  { %v8901_v29 = vcombine.high %v8899_v36, %v8899_v36  ;;  %v8918_v18 = vcombine.high %v8916_v42, %v8916_v42  ;;  %v9416_v6 = vrot.slane %v8900_v60, %v18114_v45  ;;  %v9420_v4 = vrot.slane %v8899_v36, %v18114_v45 }
 0x4ee   :  { %v9432_v50 = vrot.slane %v8917_v47, %v18114_v45  ;;  %v9436_v8 = vrot.slane %v8916_v42, %v18114_v45  ;;  %v7891_v51 = vadd.f32 %v7843_v38, %v7795_v27  ;;  %v7892_v58 = vadd.f32 %v7844_v22, %v7796_v20  ;;  %v16879_v27 = vld [vmem:[#allocation3 + $0x2f8] sm:$0x7] }
 0x4ef   :  { %v9424_v49 = vrot.slane %v8901_v29, %v18114_v45  ;;  %v9440_v12 = vrot.slane %v8918_v18, %v18114_v45  ;;  %v9653_v61 = vsel %vm9569_vm8, %v9416_v6, %v9412_v62  ;;  %v7893_v1 = vadd.f32 %v7845_v21, %v7797_v10 }
 0x4f0   :  { %v9654_v11 = vsel %vm9571_vm9, %v9420_v4, %v9653_v61  ;;  %v7939_v35 = vmul.f32 3.0, %v7891_v51  ;;  %v8395_v39 = vrot.slane %v7891_v51, 3  ;;  %v7940_v52 = vmul.f32 3.0, %v7892_v58 }
 0x4f1   :  { %v9655_v32 = vsel %vm9573_vm10, %v9424_v49, %v9654_v11  ;;  %v8396_v37 = vrot.slane %v7892_v58, 3  ;;  %v7606_v44 = vmul.f32 0.015625, %v7543_v23  ;;  %v7941_v17 = vmul.f32 3.0, %v7893_v1 }
 0x4f2   :  { %v9656_v7 = vsel %vm9575_vm11, %v9428_v33, %v9655_v32  ;;  %v8059_v57 = vrot.slane %v7939_v35, 1  ;;  %v8203_v2 = vrot.slane %v7939_v35, 2  ;;  %v8060_v24 = vrot.slane %v7940_v52, 1 }
 0x4f3   :  { %v9657_v30 = vsel %vm9577_vm12, %v9432_v50, %v9656_v7  ;;  %v8204_v63 = vrot.slane %v7940_v52, 2  ;;  %v8397_v43 = vsel %vm6738_vm7, %v8395_v39, %v8396_v37  ;;  %v8062_v40 = vrot.slane %v7941_v17, 1 }
 0x4f4   :  { %v9658_v41 = vsel %vm9579_vm13, %v9436_v8, %v9657_v30  ;;  %v8206_v56 = vrot.slane %v7941_v17, 2  ;;  %v8398_v16 = vrot.slane %v7893_v1, 3  ;;  %v8061_v26 = vsel %vm404_vm2, %v8059_v57, %v8060_v24 }
 0x4f5   :  { %v9659_v23 = vsel %vm9581_vm14, %v9440_v12, %v9658_v41  ;;  %v8205_v9 = vsel %vm889_vm3, %v8203_v2, %v8204_v63  ;;  %v7607_v15 = vmul.f32 0.015625, %v16831_v19  ;;  %v8063_v14 = vsel %vm404_vm2, %v8060_v24, %v8062_v40 }
 0x4f6   :  { %11031 = vmatmul.mubr.msk.f32.gmra.mxu1 %vm3379_vm1, %v9659_v23  ;;  %v8135_v25 = vadd.f32 %v8061_v26, %v7891_v51  ;;  %v8207_v54 = vsel %vm889_vm3, %v8204_v63, %v8206_v56  ;;  %v8399_v3 = vsel %vm6738_vm7, %v8396_v37, %v8398_v16  ;;  %v8136_v0 = vadd.f32 %v8063_v14, %v7892_v58 }
 0x4f7   :  { %v7608_v20 = vmul.f32 0.015625, %v16841_v34  ;;  %v16882_v38 = vmul.f32 0.046875, %v7552_v55  ;;  %v16884_v19 = vmul.f32 0.046875, %v7553_v13  ;;  %v16886_v60 = vmul.f32 0.046875, %v7554_v46 }
 0x4f8   :  { %v8279_v36 = vadd.f32 %v8205_v9, %v8135_v25  ;;  %v7702_v42 = vadd.f32 %v16837_v59, %v7606_v44  ;;  %v7703_v47 = vadd.f32 %v16839_v28, %v7607_v15  ;;  %v8280_v62 = vadd.f32 %v8207_v54, %v8136_v0 }
 0x4f9   :  { %v7704_v33 = vadd.f32 %v16843_v5, %v7608_v20  ;;  %v7750_v10 = vmul.f32 0.046875, %v7549_v48  ;;  %v7751_v22 = vmul.f32 0.046875, %v16877_v53  ;;  %v7752_v34 = vmul.f32 0.046875, %v16879_v27 }
 0x4fa   :  { %v8471_v29 = vadd.f32 %v8397_v43, %v8279_v36  ;;  %v7846_v18 = vmul.f32 0.015625, %v7552_v55  ;;  %v7847_v6 = vmul.f32 0.015625, %v7553_v13  ;;  %v8472_v4 = vadd.f32 %v8399_v3, %v8280_v62  ;;  %v7559_v62 = vld [vmem:[#allocation3 + $0x338] sm:$0xff] }
 0x4fb   :  { %v7798_v50 = vadd.f32 %v7750_v10, %v7702_v42  ;;  %v7799_v8 = vadd.f32 %v7751_v22, %v7703_v47  ;;  %v7848_v21 = vmul.f32 0.015625, %v7554_v46  ;;  %v7800_v49 = vadd.f32 %v7752_v34, %v7704_v33  ;;  %v7558_v47 = vld [vmem:[#allocation3 + $0x330] sm:$0xff]  ;;  %v7560_v34 = vld [vmem:[#allocation3 + $0x340] sm:$0x7] }
 0x4fc   :  { %v8919_v51 = vcombine.high %v8471_v29, %v8471_v29  ;;  %v8926_v59 = vrot.slane %v8471_v29, %v18113_v31  ;;  %v16894_v28 = vmul.f32 0.015625, %v7549_v48  ;;  %v8936_v12 = vcombine.high %v8472_v4, %v8472_v4 }
 0x4fd   :  { %v8943_v5 = vrot.slane %v8472_v4, %v18113_v31  ;;  %v7894_v61 = vadd.f32 %v7846_v18, %v7798_v50  ;;  %v7895_v58 = vadd.f32 %v7847_v6, %v7799_v8  ;;  %v7896_v39 = vadd.f32 %v7848_v21, %v7800_v49  ;;  %v7555_v4 = vld [vmem:[#allocation3 + $0x318] sm:$0xff]  ;;  %v16918_v50 = vld [vmem:[#allocation3 + $0x320] sm:$0xff] }
 0x4fe   :  { %v8933_v11 = vrot.slane %v8919_v51, %v18113_v31  ;;  %v8934_v1 = vcombine.high %v8926_v59, %v8926_v59  ;;  %v9444_v35 = vrot.slane %v8926_v59, %v18114_v45  ;;  %v8950_v32 = vrot.slane %v8936_v12, %v18113_v31 }
 0x4ff   :  { %v8951_v52 = vcombine.high %v8943_v5, %v8943_v5  ;;  %v9460_v37 = vrot.slane %v8943_v5, %v18114_v45  ;;  %v7942_v44 = vmul.f32 3.0, %v7894_v61  ;;  %v7943_v2 = vmul.f32 3.0, %v7895_v58 }
 0x500   :  { %v8935_v7 = vcombine.high %v8933_v11, %v8933_v11  ;;  %v9448_v17 = vrot.slane %v8934_v1, %v18114_v45  ;;  %v9452_v57 = vrot.slane %v8933_v11, %v18114_v45  ;;  %v8952_v30 = vcombine.high %v8950_v32, %v8950_v32 }
 0x501   :  { %v9464_v24 = vrot.slane %v8951_v52, %v18114_v45  ;;  %v9468_v63 = vrot.slane %v8950_v32, %v18114_v45  ;;  %v7944_v43 = vmul.f32 3.0, %v7896_v39  ;;  %v8064_v56 = vrot.slane %v7942_v44, 1 }
 0x502   :  { %v9456_v41 = vrot.slane %v8935_v7, %v18114_v45  ;;  %v9660_v40 = vsel %vm9569_vm8, %v9448_v17, %v9444_v35  ;;  %v8065_v16 = vrot.slane %v7943_v2, 1  ;;  %v9472_v55 = vrot.slane %v8952_v30, %v18114_v45 }
 0x503   :  { %v9661_v13 = vsel %vm9571_vm9, %v9452_v57, %v9660_v40  ;;  %v8067_v23 = vrot.slane %v7944_v43, 1  ;;  %v8208_v26 = vrot.slane %v7942_v44, 2  ;;  %v8209_v15 = vrot.slane %v7943_v2, 2 }
 0x504   :  { %v9662_v9 = vsel %vm9573_vm10, %v9456_v41, %v9661_v13  ;;  %v8066_v46 = vsel %vm404_vm2, %v8064_v56, %v8065_v16  ;;  %v8211_v14 = vrot.slane %v7944_v43, 2  ;;  %v8400_v48 = vrot.slane %v7894_v61, 3 }
 0x505   :  { %v9663_v25 = vsel %vm9575_vm11, %v9460_v37, %v9662_v9  ;;  %v8068_v54 = vsel %vm404_vm2, %v8065_v16, %v8067_v23  ;;  %v8137_v3 = vadd.f32 %v8066_v46, %v7894_v61  ;;  %v8210_v36 = vsel %vm889_vm3, %v8208_v26, %v8209_v15 }
 0x506   :  { %v9664_v0 = vsel %vm9577_vm12, %v9464_v24, %v9663_v25  ;;  %v8138_v20 = vadd.f32 %v8068_v54, %v7895_v58  ;;  %v8212_v42 = vsel %vm889_vm3, %v8209_v15, %v8211_v14  ;;  %v8401_v22 = vrot.slane %v7895_v58, 3  ;;  %v16929_v58 = vld [vmem:[#allocation3 + $0x328] sm:$0x7] }
 0x507   :  { %v9665_v33 = vsel %vm9579_vm13, %v9468_v63, %v9664_v0  ;;  %v8281_v10 = vadd.f32 %v8210_v36, %v8137_v3  ;;  %v8403_v29 = vrot.slane %v7896_v39, 3  ;;  %v7610_v8 = vmul.f32 0.015625, %v16877_v53 }
 0x508   :  { %v9666_v18 = vsel %vm9581_vm14, %v9472_v55, %v9665_v33  ;;  %v8282_v6 = vadd.f32 %v8212_v42, %v8138_v20  ;;  %v7611_v21 = vmul.f32 0.015625, %v16879_v27  ;;  %v8402_v51 = vsel %vm6738_vm7, %v8400_v48, %v8401_v22 }
 0x509   :  { %11033 = vmatprep.mubr.msk.f32.mxu1 %vm3379_vm1, %v9666_v18  ;;  %v8404_v59 = vsel %vm6738_vm7, %v8401_v22, %v8403_v29  ;;  %v16925_v49 = vmul.f32 0.046875, %v7558_v47  ;;  %v16927_v12 = vmul.f32 0.046875, %v7559_v62  ;;  %v8473_v5 = vadd.f32 %v8402_v51, %v8281_v10 }
 0x50a   :  { %v8474_v61 = vadd.f32 %v8404_v59, %v8282_v6  ;;  %v16931_v11 = vmul.f32 0.046875, %v7560_v34  ;;  %v7705_v53 = vadd.f32 %v16882_v38, %v16894_v28  ;;  %v7706_v27 = vadd.f32 %v16884_v19, %v7610_v8 }
 0x50b   :  { %v7707_v1 = vadd.f32 %v16886_v60, %v7611_v21  ;;  %v7753_v35 = vmul.f32 0.046875, %v7555_v4  ;;  %v7754_v39 = vmul.f32 0.046875, %v16918_v50  ;;  %v8953_v32 = vcombine.high %v8473_v5, %v8473_v5 }
 0x50c   :  { %v8960_v52 = vrot.slane %v8473_v5, %v18113_v31  ;;  %v8970_v37 = vcombine.high %v8474_v61, %v8474_v61  ;;  %v8977_v44 = vrot.slane %v8474_v61, %v18113_v31  ;;  %v7755_v7 = vmul.f32 0.046875, %v16929_v58  ;;  %v7561_v61 = vld [vmem:[#allocation3 + $0x348] sm:$0xff] }
 0x50d   :  { %v7801_v17 = vadd.f32 %v7753_v35, %v7705_v53  ;;  %v7802_v57 = vadd.f32 %v7754_v39, %v7706_v27  ;;  %v7849_v2 = vmul.f32 0.015625, %v7558_v47  ;;  %v8967_v38 = vrot.slane %v8953_v32, %v18113_v31  ;;  %v7562_v53 = vld [vmem:[#allocation3 + $0x350] sm:$0xff]  ;;  %v7563_v27 = vld [vmem:[#allocation3 + $0x358] sm:$0x7] }
 0x50e   :  { %v8968_v28 = vcombine.high %v8960_v52, %v8960_v52  ;;  %v8984_v19 = vrot.slane %v8970_v37, %v18113_v31  ;;  %v8985_v60 = vcombine.high %v8977_v44, %v8977_v44  ;;  %v9476_v30 = vrot.slane %v8960_v52, %v18114_v45  ;;  %v7564_v37 = vld [vmem:[#allocation3 + $0x360] sm:$0xff] }
 0x50f   :  { %v9492_v24 = vrot.slane %v8977_v44, %v18114_v45  ;;  %v7803_v63 = vadd.f32 %v7755_v7, %v7707_v1  ;;  %v7850_v43 = vmul.f32 0.015625, %v7559_v62  ;;  %v8969_v41 = vcombine.high %v8967_v38, %v8967_v38  ;;  %v7565_v44 = vld [vmem:[#allocation3 + $0x368] sm:$0xff] }
 0x510   :  { %v8986_v40 = vcombine.high %v8984_v19, %v8984_v19  ;;  %v9480_v56 = vrot.slane %v8968_v28, %v18114_v45  ;;  %v9484_v16 = vrot.slane %v8967_v38, %v18114_v45  ;;  %v9496_v55 = vrot.slane %v8985_v60, %v18114_v45 }
 0x511   :  { %v9500_v13 = vrot.slane %v8984_v19, %v18114_v45  ;;  %v7851_v23 = vmul.f32 0.015625, %v7560_v34  ;;  %v7897_v26 = vadd.f32 %v7849_v2, %v7801_v17  ;;  %v9488_v9 = vrot.slane %v8969_v41, %v18114_v45  ;;  %v7566_v17 = vld [vmem:[#allocation3 + $0x370] sm:$0x7] }
 0x512   :  { %v9504_v46 = vrot.slane %v8986_v40, %v18114_v45  ;;  %v9667_v15 = vsel %vm9569_vm8, %v9480_v56, %v9476_v30  ;;  %v7898_v14 = vadd.f32 %v7850_v43, %v7802_v57  ;;  %v7612_v42 = vmul.f32 0.015625, %v7555_v4  ;;  %v5862_v30 = vld [vmem:[#allocation2] sm:$0xff] }
 0x513   :  { %v9668_v25 = vsel %vm9571_vm9, %v9484_v16, %v9667_v15  ;;  %v7899_v54 = vadd.f32 %v7851_v23, %v7803_v63  ;;  %v7945_v3 = vmul.f32 3.0, %v7897_v26  ;;  %v8405_v48 = vrot.slane %v7897_v26, 3 }
 0x514   :  { %v9669_v0 = vsel %vm9573_vm10, %v9488_v9, %v9668_v25  ;;  %v7946_v20 = vmul.f32 3.0, %v7898_v14  ;;  %v8406_v36 = vrot.slane %v7898_v14, 3  ;;  %v7613_v1 = vmul.f32 0.015625, %v16918_v50 }
 0x515   :  { %v9670_v47 = vsel %vm9575_vm11, %v9492_v24, %v9669_v0  ;;  %v7947_v62 = vmul.f32 3.0, %v7899_v54  ;;  %v8069_v33 = vrot.slane %v7945_v3, 1  ;;  %v8213_v10 = vrot.slane %v7945_v3, 2  ;;  %v5863_v24 = vld [vmem:[#allocation2 + $0x8] sm:$0xff] }
 0x516   :  { %v9671_v22 = vsel %vm9577_vm12, %v9496_v55, %v9670_v47  ;;  %v8070_v29 = vrot.slane %v7946_v20, 1  ;;  %v8214_v34 = vrot.slane %v7946_v20, 2  ;;  %v8407_v18 = vsel %vm6738_vm7, %v8405_v48, %v8406_v36 }
 0x517   :  { %v9672_v6 = vsel %vm9579_vm13, %v9500_v13, %v9671_v22  ;;  %v8072_v8 = vrot.slane %v7947_v62, 1  ;;  %v8216_v21 = vrot.slane %v7947_v62, 2  ;;  %v8408_v51 = vrot.slane %v7899_v54, 3 }
 0x518   :  { %v9673_v59 = vsel %vm9581_vm14, %v9504_v46, %v9672_v6  ;;  %v8071_v4 = vsel %vm404_vm2, %v8069_v33, %v8070_v29  ;;  %v8215_v5 = vsel %vm889_vm3, %v8213_v10, %v8214_v34  ;;  %v7614_v57 = vmul.f32 0.015625, %v16929_v58  ;;  %v5864_v58 = vld [vmem:[#allocation2 + $0x10] sm:$0x7] }
 0x519   :  { %11034 = vmatmul.mubr.msk.f32.gmra.mxu1 %vm3379_vm1, %v9673_v59  ;;  %v8073_v35 = vsel %vm404_vm2, %v8070_v29, %v8072_v8  ;;  %v8139_v39 = vadd.f32 %v8071_v4, %v7897_v26  ;;  %v8217_v32 = vsel %vm889_vm3, %v8214_v34, %v8216_v21  ;;  %v8409_v52 = vsel %vm6738_vm7, %v8406_v36, %v8408_v51 }
 0x51a   :  { %v8140_v7 = vadd.f32 %v8073_v35, %v7898_v14  ;;  %v7708_v2 = vadd.f32 %v16925_v49, %v7612_v42  ;;  %v7709_v38 = vadd.f32 %v16927_v12, %v7613_v1  ;;  %v7756_v28 = vmul.f32 0.046875, %v7561_v61 }
 0x51b   :  { %v8283_v50 = vadd.f32 %v8215_v5, %v8139_v39  ;;  %v7757_v19 = vmul.f32 0.046875, %v7562_v53  ;;  %v7758_v60 = vmul.f32 0.046875, %v7563_v27  ;;  %v7710_v43 = vadd.f32 %v16931_v11, %v7614_v57  ;;  %v5868_v57 = vld [vmem:[#allocation2 + $0x30] sm:$0xff] }
 0x51c   :  { %v8284_v63 = vadd.f32 %v8217_v32, %v8140_v7  ;;  %v7852_v41 = vmul.f32 0.015625, %v7564_v37  ;;  %v7853_v40 = vmul.f32 0.015625, %v7565_v44  ;;  %v7804_v16 = vadd.f32 %v7756_v28, %v7708_v2  ;;  %v5869_v2 = vld [vmem:[#allocation2 + $0x38] sm:$0xff] }
 0x51d   :  { %v8475_v56 = vadd.f32 %v8407_v18, %v8283_v50  ;;  %v7805_v55 = vadd.f32 %v7757_v19, %v7709_v38  ;;  %v7854_v13 = vmul.f32 0.015625, %v7566_v17  ;;  %v7806_v49 = vadd.f32 %v7758_v60, %v7710_v43  ;;  %v5865_v60 = vld [vmem:[#allocation2 + $0x18] sm:$0xff] }
 0x51e   :  { %v8476_v23 = vadd.f32 %v8409_v52, %v8284_v63  ;;  %v16970_v26 = vmul.f32 0.015625, %v5862_v30  ;;  %v16972_v12 = vmul.f32 0.015625, %v5863_v24  ;;  %v7900_v15 = vadd.f32 %v7852_v41, %v7804_v16  ;;  %v5870_v30 = vld [vmem:[#allocation2 + $0x40] sm:$0x7]  ;;  %v5871_v16 = vld [vmem:[#allocation2 + $0x48] sm:$0xff] }
 0x51f   :  { %v8987_v9 = vcombine.high %v8475_v56, %v8475_v56  ;;  %v8994_v46 = vrot.slane %v8475_v56, %v18113_v31  ;;  %v7901_v14 = vadd.f32 %v7853_v40, %v7805_v55  ;;  %v7902_v54 = vadd.f32 %v7854_v13, %v7806_v49  ;;  %v5866_v40 = vld [vmem:[#allocation2 + $0x20] sm:$0xff]  ;;  %v5867_v56 = vld [vmem:[#allocation2 + $0x28] sm:$0x7] }
 0x520   :  { %v9004_v25 = vcombine.high %v8476_v23, %v8476_v23  ;;  %v9011_v11 = vrot.slane %v8476_v23, %v18113_v31  ;;  %v16976_v3 = vmul.f32 0.015625, %v5864_v58  ;;  %v7948_v36 = vmul.f32 3.0, %v7900_v15  ;;  %v5872_v58 = vld [vmem:[#allocation2 + $0x50] sm:$0xff]  ;;  %v5873_v23 = vld [vmem:[#allocation2 + $0x58] sm:$0x7] }
 0x521   :  { %v9001_v48 = vrot.slane %v8987_v9, %v18113_v31  ;;  %v9002_v0 = vcombine.high %v8994_v46, %v8994_v46  ;;  %v9508_v20 = vrot.slane %v8994_v46, %v18114_v45  ;;  %v7949_v33 = vmul.f32 3.0, %v7901_v14 }
 0x522   :  { %v9018_v42 = vrot.slane %v9004_v25, %v18113_v31  ;;  %v9019_v47 = vcombine.high %v9011_v11, %v9011_v11  ;;  %v9524_v62 = vrot.slane %v9011_v11, %v18114_v45  ;;  %v7950_v34 = vmul.f32 3.0, %v7902_v54 }
 0x523   :  { %v9003_v10 = vcombine.high %v9001_v48, %v9001_v48  ;;  %v9512_v22 = vrot.slane %v9002_v0, %v18114_v45  ;;  %v9516_v29 = vrot.slane %v9001_v48, %v18114_v45  ;;  %v8074_v21 = vrot.slane %v7948_v36, 1 }
 0x524   :  { %v9020_v18 = vcombine.high %v9018_v42, %v9018_v42  ;;  %v9528_v6 = vrot.slane %v9019_v47, %v18114_v45  ;;  %v9532_v8 = vrot.slane %v9018_v42, %v18114_v45  ;;  %v8075_v4 = vrot.slane %v7949_v33, 1 }
 0x525   :  { %v9520_v51 = vrot.slane %v9003_v10, %v18114_v45  ;;  %v9674_v59 = vsel %vm9569_vm8, %v9512_v22, %v9508_v20  ;;  %v8077_v5 = vrot.slane %v7950_v34, 1  ;;  %v8218_v27 = vrot.slane %v7948_v36, 2 }
 0x526   :  { %v9536_v61 = vrot.slane %v9020_v18, %v18114_v45  ;;  %v9675_v53 = vsel %vm9571_vm9, %v9516_v29, %v9674_v59  ;;  %v8219_v1 = vrot.slane %v7949_v33, 2  ;;  %v8076_v39 = vsel %vm404_vm2, %v8074_v21, %v8075_v4 }
 0x527   :  { %v9676_v35 = vsel %vm9573_vm10, %v9520_v51, %v9675_v53  ;;  %v8078_v32 = vsel %vm404_vm2, %v8075_v4, %v8077_v5  ;;  %v8221_v52 = vrot.slane %v7950_v34, 2  ;;  %v8141_v44 = vadd.f32 %v8076_v39, %v7900_v15 }
 0x528   :  { %v9677_v37 = vsel %vm9575_vm11, %v9524_v62, %v9676_v35  ;;  %v8142_v7 = vadd.f32 %v8078_v32, %v7901_v14  ;;  %v8220_v17 = vsel %vm889_vm3, %v8218_v27, %v8219_v1  ;;  %v8410_v28 = vrot.slane %v7900_v15, 3 }
 0x529   :  { %v9678_v38 = vsel %vm9577_vm12, %v9528_v6, %v9677_v37  ;;  %v8222_v50 = vsel %vm889_vm3, %v8219_v1, %v8221_v52  ;;  %v8411_v19 = vrot.slane %v7901_v14, 3  ;;  %v8285_v63 = vadd.f32 %v8220_v17, %v8141_v44  ;;  %v5874_v52 = vld [vmem:[#allocation2 + $0x60] sm:$0xff] }
 0x52a   :  { %v9679_v24 = vsel %vm9579_vm13, %v9532_v8, %v9678_v38  ;;  %v8286_v43 = vadd.f32 %v8222_v50, %v8142_v7  ;;  %v8413_v41 = vrot.slane %v7902_v54, 3  ;;  %v5973_v49 = vmul.f32 0.015625, %v5868_v57  ;;  %v5875_v38 = vld [vmem:[#allocation2 + $0x68] sm:$0xff] }
 0x52b   :  { %v9680_v55 = vsel %vm9581_vm14, %v9536_v61, %v9679_v24  ;;  %v8412_v13 = vsel %vm6738_vm7, %v8410_v28, %v8411_v19  ;;  %v5974_v9 = vmul.f32 0.015625, %v5869_v2  ;;  %v5975_v14 = vmul.f32 0.015625, %v5870_v30  ;;  %v5876_v24 = vld [vmem:[#allocation2 + $0x70] sm:$0x7] }
 0x52c   :  { %11036 = vmatprep.mubr.msk.f32.mxu1 %vm3379_vm1, %v9680_v55  ;;  %v8414_v46 = vsel %vm6738_vm7, %v8411_v19, %v8413_v41  ;;  %v8477_v15 = vadd.f32 %v8412_v13, %v8285_v63  ;;  %v6018_v25 = vmul.f32 0.046875, %v5865_v60  ;;  %v6019_v54 = vmul.f32 0.046875, %v5866_v40 }
 0x52d   :  { %v8478_v11 = vadd.f32 %v8414_v46, %v8286_v43  ;;  %v6020_v48 = vmul.f32 0.046875, %v5867_v56  ;;  %v6021_v0 = vmul.f32 0.046875, %v5871_v16  ;;  %v6022_v42 = vmul.f32 0.046875, %v5872_v58 }
 0x52e   :  { %v9021_v20 = vcombine.high %v8477_v15, %v8477_v15  ;;  %v9028_v36 = vrot.slane %v8477_v15, %v18113_v31  ;;  %v6023_v47 = vmul.f32 0.046875, %v5873_v23  ;;  %v6066_v10 = vadd.f32 %v6018_v25, %v16970_v26 }
 0x52f   :  { %v9038_v62 = vcombine.high %v8478_v11, %v8478_v11  ;;  %v9045_v33 = vrot.slane %v8478_v11, %v18113_v31  ;;  %v6067_v22 = vadd.f32 %v6019_v54, %v16972_v12  ;;  %v6068_v6 = vadd.f32 %v6020_v48, %v16976_v3  ;;  %v5877_v11 = vld [vmem:[#allocation2 + $0x78] sm:$0xff] }
 0x530   :  { %v9035_v29 = vrot.slane %v9021_v20, %v18113_v31  ;;  %v9036_v34 = vcombine.high %v9028_v36, %v9028_v36  ;;  %v9540_v18 = vrot.slane %v9028_v36, %v18114_v45  ;;  %v6069_v59 = vadd.f32 %v6021_v0, %v5973_v49 }
 0x531   :  { %v9052_v8 = vrot.slane %v9038_v62, %v18113_v31  ;;  %v9053_v21 = vcombine.high %v9045_v33, %v9045_v33  ;;  %v9556_v51 = vrot.slane %v9045_v33, %v18114_v45  ;;  %v6070_v61 = vadd.f32 %v6022_v42, %v5974_v9  ;;  %v17025_v42 = vld [vmem:[#allocation2 + $0x80] sm:$0xff] }
 0x532   :  { %v9037_v4 = vcombine.high %v9035_v29, %v9035_v29  ;;  %v9544_v5 = vrot.slane %v9036_v34, %v18114_v45  ;;  %v9548_v26 = vrot.slane %v9035_v29, %v18114_v45  ;;  %v6071_v1 = vadd.f32 %v6023_v47, %v5975_v14 }
 0x533   :  { %v9054_v12 = vcombine.high %v9052_v8, %v9052_v8  ;;  %v9560_v53 = vrot.slane %v9053_v21, %v18114_v45  ;;  %v9564_v27 = vrot.slane %v9052_v8, %v18114_v45  ;;  %v6114_v39 = vmul.f32 0.046875, %v5868_v57 }
 0x534   :  { %v9552_v3 = vrot.slane %v9037_v4, %v18114_v45  ;;  %v9681_v35 = vsel %vm9569_vm8, %v9544_v5, %v9540_v18  ;;  %v6115_v32 = vmul.f32 0.046875, %v5869_v2  ;;  %v6116_v7 = vmul.f32 0.046875, %v5870_v30 }
 0x535   :  { %v9568_v37 = vrot.slane %v9054_v12, %v18114_v45  ;;  %v9682_v44 = vsel %vm9571_vm9, %v9548_v26, %v9681_v35  ;;  %v6210_v17 = vmul.f32 0.015625, %v5871_v16  ;;  %v6162_v28 = vadd.f32 %v6114_v39, %v6066_v10 }
 0x536   :  { %v9683_v50 = vsel %vm9573_vm10, %v9552_v3, %v9682_v44  ;;  %v6163_v19 = vadd.f32 %v6115_v32, %v6067_v22  ;;  %v6211_v60 = vmul.f32 0.015625, %v5872_v58  ;;  %v6164_v43 = vadd.f32 %v6116_v7, %v6068_v6  ;;  %v17029_v22 = vld [vmem:[#allocation2 + $0x88] sm:$0x7] }
 0x537   :  { %v9684_v63 = vsel %vm9575_vm11, %v9556_v51, %v9683_v50  ;;  %v6212_v41 = vmul.f32 0.015625, %v5873_v23  ;;  %v6117_v57 = vmul.f32 0.046875, %v5874_v52  ;;  %v6258_v40 = vadd.f32 %v6210_v17, %v6162_v28 }
 0x538   :  { %v9685_v2 = vsel %vm9577_vm12, %v9560_v53, %v9684_v63  ;;  %v6259_v56 = vadd.f32 %v6211_v60, %v6163_v19  ;;  %v6118_v55 = vmul.f32 0.046875, %v5875_v38  ;;  %v6119_v13 = vmul.f32 0.046875, %v5876_v24 }
 0x539   :  { %v9686_v30 = vsel %vm9579_vm13, %v9564_v27, %v9685_v2  ;;  %v6260_v16 = vadd.f32 %v6212_v41, %v6164_v43  ;;  %v6165_v49 = vadd.f32 %v6117_v57, %v6069_v59  ;;  %v6306_v46 = vmul.f32 3.0, %v6258_v40 }
 0x53a   :  { %v9687_v9 = vsel %vm9581_vm14, %v9568_v37, %v9686_v30  ;;  %v6307_v58 = vmul.f32 3.0, %v6259_v56  ;;  %v6739_v15 = vrot.slane %v6258_v40, 3  ;;  %v6740_v23 = vrot.slane %v6259_v56, 3 }
 0x53b   :  { %11037 = vmatmul.mubr.msk.f32.gmra.mxu1 %vm3379_vm1, %v9687_v9  ;;  %v6308_v14 = vmul.f32 3.0, %v6260_v16  ;;  %v6742_v25 = vrot.slane %v6260_v16, 3  ;;  %v6166_v54 = vadd.f32 %v6118_v55, %v6070_v61  ;;  %v6402_v48 = vrot.slane %v6306_v46, 1 }
 0x53c   :  { %v6403_v0 = vrot.slane %v6307_v58, 1  ;;  %v6546_v20 = vrot.slane %v6306_v46, 2  ;;  %v6547_v36 = vrot.slane %v6307_v58, 2  ;;  %v6741_v33 = vsel %vm6738_vm7, %v6739_v15, %v6740_v23 }
 0x53d   :  { %v6405_v47 = vrot.slane %v6308_v14, 1  ;;  %v6549_v62 = vrot.slane %v6308_v14, 2  ;;  %v6743_v10 = vsel %vm6738_vm7, %v6740_v23, %v6742_v25  ;;  %v6167_v18 = vadd.f32 %v6119_v13, %v6071_v1 }
 0x53e   :  { %v6404_v29 = vsel %vm404_vm2, %v6402_v48, %v6403_v0  ;;  %v6548_v34 = vsel %vm889_vm3, %v6546_v20, %v6547_v36  ;;  %v6213_v6 = vmul.f32 0.015625, %v5877_v11  ;;  %v6214_v59 = vmul.f32 0.015625, %v17025_v42 }
 0x53f   :  { %v6406_v8 = vsel %vm404_vm2, %v6403_v0, %v6405_v47  ;;  %v6514_v21 = vadd.f32 %v6404_v29, %v6258_v40  ;;  %v6550_v51 = vsel %vm889_vm3, %v6547_v36, %v6549_v62  ;;  %v6215_v5 = vmul.f32 0.015625, %v17029_v22  ;;  %v5883_v47 = vld [vmem:[#allocation2 + $0xa8] sm:$0xff] }
 0x540   :  { %v6515_v4 = vadd.f32 %v6406_v8, %v6259_v56  ;;  %v6261_v26 = vadd.f32 %v6213_v6, %v6165_v49  ;;  %v17037_v61 = vmul.f32 0.015625, %v5874_v52  ;;  %v6262_v53 = vadd.f32 %v6214_v59, %v6166_v54 }
 0x541   :  { %v6658_v12 = vadd.f32 %v6548_v34, %v6514_v21  ;;  %v17039_v27 = vmul.f32 0.015625, %v5875_v38  ;;  %v17041_v3 = vmul.f32 0.015625, %v5876_v24  ;;  %v6263_v35 = vadd.f32 %v6215_v5, %v6167_v18  ;;  %v5884_v34 = vld [vmem:[#allocation2 + $0xb0] sm:$0xff]  ;;  %v5885_v18 = vld [vmem:[#allocation2 + $0xb8] sm:$0x7] }
 0x542   :  { %v6659_v1 = vadd.f32 %v6550_v51, %v6515_v4  ;;  %v6309_v39 = vmul.f32 3.0, %v6261_v26  ;;  %v6744_v32 = vrot.slane %v6261_v26, 3  ;;  %v6310_v44 = vmul.f32 3.0, %v6262_v53 }
 0x543   :  { %v6851_v37 = vadd.f32 %v6741_v33, %v6658_v12  ;;  %v6745_v7 = vrot.slane %v6262_v53, 3  ;;  %v6024_v17 = vmul.f32 0.046875, %v5877_v11  ;;  %v6311_v28 = vmul.f32 3.0, %v6263_v35 }
 0x544   :  { %v6852_v50 = vadd.f32 %v6743_v10, %v6659_v1  ;;  %v6407_v19 = vrot.slane %v6309_v39, 1  ;;  %v6551_v60 = vrot.slane %v6309_v39, 2  ;;  %v6408_v43 = vrot.slane %v6310_v44, 1 }
 0x545   :  { %v6915_v52 = vcombine.high %v6851_v37, %v6851_v37  ;;  %v6922_v63 = vrot.slane %v6851_v37, %v18113_v31  ;;  %v6552_v38 = vrot.slane %v6310_v44, 2  ;;  %v6410_v57 = vrot.slane %v6311_v28, 1  ;;  %v5880_v44 = vld [vmem:[#allocation2 + $0x90] sm:$0xff] }
 0x546   :  { %v6932_v41 = vcombine.high %v6852_v50, %v6852_v50  ;;  %v6939_v24 = vrot.slane %v6852_v50, %v18113_v31  ;;  %v6554_v2 = vrot.slane %v6311_v28, 2  ;;  %v6409_v30 = vsel %vm404_vm2, %v6407_v19, %v6408_v43  ;;  %v5881_v50 = vld [vmem:[#allocation2 + $0x98] sm:$0xff]  ;;  %v5882_v28 = vld [vmem:[#allocation2 + $0xa0] sm:$0x7] }
 0x547   :  { %v6929_v40 = vrot.slane %v6915_v52, %v18113_v31  ;;  %v6930_v56 = vcombine.high %v6922_v63, %v6922_v63  ;;  %v9871_v55 = vrot.slane %v6922_v63, %v18114_v45  ;;  %v6411_v9 = vsel %vm404_vm2, %v6408_v43, %v6410_v57 }
 0x548   :  { %v6946_v16 = vrot.slane %v6932_v41, %v18113_v31  ;;  %v6947_v13 = vcombine.high %v6939_v24, %v6939_v24  ;;  %v9887_v49 = vrot.slane %v6939_v24, %v18114_v45  ;;  %v6516_v14 = vadd.f32 %v6409_v30, %v6261_v26 }
 0x549   :  { %v6931_v46 = vcombine.high %v6929_v40, %v6929_v40  ;;  %v9875_v58 = vrot.slane %v6930_v56, %v18114_v45  ;;  %v9879_v15 = vrot.slane %v6929_v40, %v18114_v45  ;;  %v6517_v54 = vadd.f32 %v6411_v9, %v6262_v53 }
 0x54a   :  { %v6948_v23 = vcombine.high %v6946_v16, %v6946_v16  ;;  %v9891_v25 = vrot.slane %v6947_v13, %v18114_v45  ;;  %v9895_v11 = vrot.slane %v6946_v16, %v18114_v45  ;;  %v6553_v20 = vsel %vm889_vm3, %v6551_v60, %v6552_v38 }
 0x54b   :  { %v9883_v48 = vrot.slane %v6931_v46, %v18114_v45  ;;  %v10380_v0 = vsel %vm9569_vm8, %v9875_v58, %v9871_v55  ;;  %v6555_v36 = vsel %vm889_vm3, %v6552_v38, %v6554_v2  ;;  %v6660_v10 = vadd.f32 %v6553_v20, %v6516_v14 }
 0x54c   :  { %v9899_v62 = vrot.slane %v6948_v23, %v18114_v45  ;;  %v10381_v33 = vsel %vm9571_vm9, %v9879_v15, %v10380_v0  ;;  %v6661_v29 = vadd.f32 %v6555_v36, %v6517_v54  ;;  %v6746_v8 = vsel %vm6738_vm7, %v6744_v32, %v6745_v7  ;;  %v5889_v23 = vld [vmem:[#allocation2 + $0xd8] sm:$0xff] }
 0x54d   :  { %v10382_v6 = vsel %vm9573_vm10, %v9883_v48, %v10381_v33  ;;  %v6747_v21 = vrot.slane %v6263_v35, 3  ;;  %v6025_v51 = vmul.f32 0.046875, %v17025_v42  ;;  %v6853_v4 = vadd.f32 %v6746_v8, %v6660_v10 }
 0x54e   :  { %v10383_v59 = vsel %vm9575_vm11, %v9887_v49, %v10382_v6  ;;  %v6026_v5 = vmul.f32 0.046875, %v17029_v22  ;;  %v17066_v26 = vmul.f32 0.046875, %v5883_v47  ;;  %v17070_v1 = vmul.f32 0.046875, %v5884_v34 }
 0x54f   :  { %v10384_v12 = vsel %vm9577_vm12, %v9891_v25, %v10383_v59  ;;  %v6748_v53 = vsel %vm6738_vm7, %v6745_v7, %v6747_v21  ;;  %v17072_v39 = vmul.f32 0.046875, %v5885_v18  ;;  %v6949_v37 = vcombine.high %v6853_v4, %v6853_v4 }
 0x550   :  { %v10385_v32 = vsel %vm9579_vm13, %v9895_v11, %v10384_v12  ;;  %v6854_v35 = vadd.f32 %v6748_v53, %v6661_v29  ;;  %v6956_v42 = vrot.slane %v6853_v4, %v18113_v31  ;;  %v6072_v19 = vadd.f32 %v6024_v17, %v17037_v61  ;;  %v5891_v12 = vld [vmem:[#allocation2 + $0xe8] sm:$0x7] }
 0x551   :  { %v10386_v22 = vsel %vm9581_vm14, %v9899_v62, %v10385_v32  ;;  %v6073_v60 = vadd.f32 %v6025_v51, %v17039_v27  ;;  %v6074_v7 = vadd.f32 %v6026_v5, %v17041_v3  ;;  %v6963_v52 = vrot.slane %v6949_v37, %v18113_v31  ;;  %v5890_v5 = vld [vmem:[#allocation2 + $0xe0] sm:$0xff] }
 0x552   :  { %11041 = vmatprep.mubr.msk.f32.mxu1 %vm3379_vm1, %v10386_v22  ;;  %v6964_v63 = vcombine.high %v6956_v42, %v6956_v42  ;;  %v6966_v43 = vcombine.high %v6854_v35, %v6854_v35  ;;  %v6973_v38 = vrot.slane %v6854_v35, %v18113_v31  ;;  %v9903_v41 = vrot.slane %v6956_v42, %v18114_v45 }
 0x553   :  { %v6120_v24 = vmul.f32 0.046875, %v5880_v44  ;;  %v6121_v57 = vmul.f32 0.046875, %v5881_v50  ;;  %v6122_v2 = vmul.f32 0.046875, %v5882_v28  ;;  %v6965_v40 = vcombine.high %v6963_v52, %v6963_v52 }
 0x554   :  { %v6980_v61 = vrot.slane %v6966_v43, %v18113_v31  ;;  %v6981_v17 = vcombine.high %v6973_v38, %v6973_v38  ;;  %v9907_v27 = vrot.slane %v6964_v63, %v18114_v45  ;;  %v9911_v3 = vrot.slane %v6963_v52, %v18114_v45  ;;  %v5888_v52 = vld [vmem:[#allocation2 + $0xd0] sm:$0x7] }
 0x555   :  { %v9919_v56 = vrot.slane %v6973_v38, %v18114_v45  ;;  %v6168_v55 = vadd.f32 %v6120_v24, %v6072_v19  ;;  %v6169_v30 = vadd.f32 %v6121_v57, %v6073_v60  ;;  %v9915_v13 = vrot.slane %v6965_v40, %v18114_v45  ;;  %v5886_v60 = vld [vmem:[#allocation2 + $0xc0] sm:$0xff] }
 0x556   :  { %v6982_v16 = vcombine.high %v6980_v61, %v6980_v61  ;;  %v9923_v49 = vrot.slane %v6981_v17, %v18114_v45  ;;  %v9927_v9 = vrot.slane %v6980_v61, %v18114_v45  ;;  %v10387_v46 = vsel %vm9569_vm8, %v9907_v27, %v9903_v41 }
 0x557   :  { %v6170_v58 = vadd.f32 %v6122_v2, %v6074_v7  ;;  %v6216_v15 = vmul.f32 0.015625, %v5883_v47  ;;  %v6217_v14 = vmul.f32 0.015625, %v5884_v34  ;;  %v10388_v11 = vsel %vm9571_vm9, %v9911_v3, %v10387_v46  ;;  %v5887_v7 = vld [vmem:[#allocation2 + $0xc8] sm:$0xff] }
 0x558   :  { %v9931_v25 = vrot.slane %v6982_v16, %v18114_v45  ;;  %v6218_v54 = vmul.f32 0.015625, %v5885_v18  ;;  %v5979_v48 = vmul.f32 0.015625, %v5880_v44  ;;  %v10389_v0 = vsel %vm9573_vm10, %v9915_v13, %v10388_v11 }
 0x559   :  { %v6264_v20 = vadd.f32 %v6216_v15, %v6168_v55  ;;  %v6265_v36 = vadd.f32 %v6217_v14, %v6169_v30  ;;  %v5980_v62 = vmul.f32 0.015625, %v5881_v50  ;;  %v10390_v33 = vsel %vm9575_vm11, %v9919_v56, %v10389_v0  ;;  %v17115_v14 = vld [vmem:[#allocation2 + $0x108] sm:$0xff] }
 0x55a   :  { %v6266_v10 = vadd.f32 %v6218_v54, %v6170_v58  ;;  %v5981_v29 = vmul.f32 0.015625, %v5882_v28  ;;  %v17096_v6 = vmul.f32 0.046875, %v5889_v23  ;;  %v10391_v47 = vsel %vm9577_vm12, %v9923_v49, %v10390_v33 }
 0x55b   :  { %v6312_v34 = vmul.f32 3.0, %v6264_v20  ;;  %v6313_v8 = vmul.f32 3.0, %v6265_v36  ;;  %v6749_v21 = vrot.slane %v6264_v20, 3  ;;  %v10392_v51 = vsel %vm9579_vm13, %v9927_v9, %v10391_v47 }
 0x55c   :  { %v6314_v18 = vmul.f32 3.0, %v6266_v10  ;;  %v6750_v59 = vrot.slane %v6265_v36, 3  ;;  %v6752_v4 = vrot.slane %v6266_v10, 3  ;;  %v10393_v53 = vsel %vm9581_vm14, %v9931_v25, %v10392_v51 }
 0x55d   :  { %v6412_v32 = vrot.slane %v6312_v34, 1  ;;  %v6413_v35 = vrot.slane %v6313_v8, 1  ;;  %v6556_v37 = vrot.slane %v6312_v34, 2  ;;  %11042 = vmatmul.mubr.msk.f32.vlgmr.msra.gmra.mxu1 %vm3379_vm1, %v10393_v53  ;;  %v6557_v44 = vrot.slane %v6313_v8, 2 }
 0x55e   :  { %v6415_v42 = vrot.slane %v6314_v18, 1  ;;  %v6559_v50 = vrot.slane %v6314_v18, 2  ;;  %v6751_v28 = vsel %vm6738_vm7, %v6749_v21, %v6750_v59  ;;  %v6753_v19 = vsel %vm6738_vm7, %v6750_v59, %v6752_v4 }
 0x55f   :  { %v6414_v22 = vsel %vm404_vm2, %v6412_v32, %v6413_v35  ;;  %v17105_v63 = vmul.f32 0.046875, %v5890_v5  ;;  %v17107_v43 = vmul.f32 0.046875, %v5891_v12  ;;  %v6558_v24 = vsel %vm889_vm3, %v6556_v37, %v6557_v44 }
 0x560   :  { %v6416_v38 = vsel %vm404_vm2, %v6413_v35, %v6415_v42  ;;  %v6518_v41 = vadd.f32 %v6414_v22, %v6264_v20  ;;  %v6560_v57 = vsel %vm889_vm3, %v6557_v44, %v6559_v50  ;;  %v6075_v40 = vadd.f32 %v17066_v26, %v5979_v48 }
 0x561   :  { %v6519_v2 = vadd.f32 %v6416_v38, %v6265_v36  ;;  %v6076_v61 = vadd.f32 %v17070_v1, %v5980_v62  ;;  %v6077_v17 = vadd.f32 %v17072_v39, %v5981_v29  ;;  %v6123_v3 = vmul.f32 0.046875, %v5886_v60 }
 0x562   :  { %v6662_v27 = vadd.f32 %v6558_v24, %v6518_v41  ;;  %v6124_v56 = vmul.f32 0.046875, %v5887_v7  ;;  %v6125_v55 = vmul.f32 0.046875, %v5888_v52  ;;  %v6219_v16 = vmul.f32 0.015625, %v5889_v23 }
 0x563   :  { %v6663_v30 = vadd.f32 %v6560_v57, %v6519_v2  ;;  %v6220_v13 = vmul.f32 0.015625, %v5890_v5  ;;  %v6221_v49 = vmul.f32 0.015625, %v5891_v12  ;;  %v6171_v46 = vadd.f32 %v6123_v3, %v6075_v40 }
 0x564   :  { %v6855_v9 = vadd.f32 %v6751_v28, %v6662_v27  ;;  %v6172_v58 = vadd.f32 %v6124_v56, %v6076_v61  ;;  %v6173_v15 = vadd.f32 %v6125_v55, %v6077_v17  ;;  %v17117_v26 = vmul.f32 0.015625, %v5886_v60  ;;  %v5896_v61 = vld [vmem:[#allocation2 + $0x110] sm:$0xff]  ;;  %v5897_v17 = vld [vmem:[#allocation2 + $0x118] sm:$0x7] }
 0x565   :  { %v6856_v25 = vadd.f32 %v6753_v19, %v6663_v30  ;;  %v17119_v1 = vmul.f32 0.015625, %v5887_v7  ;;  %v17121_v39 = vmul.f32 0.015625, %v5888_v52  ;;  %v6267_v48 = vadd.f32 %v6219_v16, %v6171_v46  ;;  %v17150_v46 = vld [vmem:[#allocation2 + $0xf8] sm:$0xff] }
 0x566   :  { %v6983_v11 = vcombine.high %v6855_v9, %v6855_v9  ;;  %v6990_v54 = vrot.slane %v6855_v9, %v18113_v31  ;;  %v6268_v23 = vadd.f32 %v6220_v13, %v6172_v58  ;;  %v6269_v36 = vadd.f32 %v6221_v49, %v6173_v15  ;;  %v17148_v9 = vld [vmem:[#allocation2 + $0xf0] sm:$0xff] }
 0x567   :  { %v7000_v0 = vcombine.high %v6856_v25, %v6856_v25  ;;  %v7007_v20 = vrot.slane %v6856_v25, %v18113_v31  ;;  %v17126_v62 = vmul.f32 0.046875, %v17115_v14  ;;  %v6315_v47 = vmul.f32 3.0, %v6267_v48  ;;  %v17154_v25 = vld [vmem:[#allocation2 + $0x100] sm:$0x7] }
 0x568   :  { %v6997_v33 = vrot.slane %v6983_v11, %v18113_v31  ;;  %v6998_v10 = vcombine.high %v6990_v54, %v6990_v54  ;;  %v9935_v29 = vrot.slane %v6990_v54, %v18114_v45  ;;  %v6316_v51 = vmul.f32 3.0, %v6268_v23 }
 0x569   :  { %v7014_v34 = vrot.slane %v7000_v0, %v18113_v31  ;;  %v7015_v8 = vcombine.high %v7007_v20, %v7007_v20  ;;  %v9951_v21 = vrot.slane %v7007_v20, %v18114_v45  ;;  %v6317_v5 = vmul.f32 3.0, %v6269_v36 }
 0x56a   :  { %v6999_v18 = vcombine.high %v6997_v33, %v6997_v33  ;;  %v9939_v59 = vrot.slane %v6998_v10, %v18114_v45  ;;  %v9943_v4 = vrot.slane %v6997_v33, %v18114_v45  ;;  %v6417_v35 = vrot.slane %v6315_v47, 1 }
 0x56b   :  { %v7016_v12 = vcombine.high %v7014_v34, %v7014_v34  ;;  %v9955_v53 = vrot.slane %v7015_v8, %v18114_v45  ;;  %v9959_v32 = vrot.slane %v7014_v34, %v18114_v45  ;;  %v6418_v44 = vrot.slane %v6316_v51, 1 }
 0x56c   :  { %v9947_v37 = vrot.slane %v6999_v18, %v18114_v45  ;;  %v10394_v42 = vsel %vm9569_vm8, %v9939_v59, %v9935_v29  ;;  %v6420_v50 = vrot.slane %v6317_v5, 1  ;;  %v6561_v19 = vrot.slane %v6315_v47, 2 }
 0x56d   :  { %v9963_v28 = vrot.slane %v7016_v12, %v18114_v45  ;;  %v10395_v22 = vsel %vm9571_vm9, %v9943_v4, %v10394_v42  ;;  %v6562_v60 = vrot.slane %v6316_v51, 2  ;;  %v6419_v52 = vsel %vm404_vm2, %v6417_v35, %v6418_v44 }
 0x56e   :  { %v10396_v7 = vsel %vm9573_vm10, %v9947_v37, %v10395_v22  ;;  %v6421_v38 = vsel %vm404_vm2, %v6418_v44, %v6420_v50  ;;  %v6564_v41 = vrot.slane %v6317_v5, 2  ;;  %v6520_v57 = vadd.f32 %v6419_v52, %v6267_v48 }
 0x56f   :  { %v10397_v24 = vsel %vm9575_vm11, %v9951_v21, %v10396_v7  ;;  %v6521_v2 = vadd.f32 %v6421_v38, %v6268_v23  ;;  %v6563_v40 = vsel %vm889_vm3, %v6561_v19, %v6562_v60  ;;  %v6754_v56 = vrot.slane %v6267_v48, 3 }
 0x570   :  { %v10398_v27 = vsel %vm9577_vm12, %v9955_v53, %v10397_v24  ;;  %v6565_v3 = vsel %vm889_vm3, %v6562_v60, %v6564_v41  ;;  %v6755_v55 = vrot.slane %v6268_v23, 3  ;;  %v6664_v16 = vadd.f32 %v6563_v40, %v6520_v57 }
 0x571   :  { %v10399_v30 = vsel %vm9579_vm13, %v9959_v32, %v10398_v27  ;;  %v6665_v13 = vadd.f32 %v6565_v3, %v6521_v2  ;;  %v6757_v49 = vrot.slane %v6269_v36, 3  ;;  %v17156_v11 = vmul.f32 0.046875, %v5896_v61 }
 0x572   :  { %v10400_v58 = vsel %vm9581_vm14, %v9963_v28, %v10399_v30  ;;  %v6756_v15 = vsel %vm6738_vm7, %v6754_v56, %v6755_v55  ;;  %v17158_v54 = vmul.f32 0.046875, %v5897_v17  ;;  %v6078_v0 = vadd.f32 %v17096_v6, %v17117_v26 }
 0x573   :  { %11044 = vmatprep.mubr.msk.f32.mxu1 %vm3379_vm1, %v10400_v58  ;;  %v6758_v48 = vsel %vm6738_vm7, %v6755_v55, %v6757_v49  ;;  %v6857_v23 = vadd.f32 %v6756_v15, %v6664_v16  ;;  %v6079_v20 = vadd.f32 %v17105_v63, %v17119_v1  ;;  %v6080_v33 = vadd.f32 %v17107_v43, %v17121_v39 }
 0x574   :  { %v6858_v36 = vadd.f32 %v6758_v48, %v6665_v13  ;;  %v6126_v10 = vmul.f32 0.046875, %v17148_v9  ;;  %v6127_v29 = vmul.f32 0.046875, %v17150_v46  ;;  %v6128_v8 = vmul.f32 0.046875, %v17154_v25  ;;  %v5901_v48 = vld [vmem:[#allocation2 + $0x138] sm:$0xff] }
 0x575   :  { %v7017_v47 = vcombine.high %v6857_v23, %v6857_v23  ;;  %v7024_v34 = vrot.slane %v6857_v23, %v18113_v31  ;;  %v6222_v21 = vmul.f32 0.015625, %v17115_v14  ;;  %v6223_v12 = vmul.f32 0.015625, %v5896_v61  ;;  %v5902_v23 = vld [vmem:[#allocation2 + $0x140] sm:$0xff] }
 0x576   :  { %v7034_v51 = vcombine.high %v6858_v36, %v6858_v36  ;;  %v7041_v6 = vrot.slane %v6858_v36, %v18113_v31  ;;  %v6174_v26 = vadd.f32 %v6126_v10, %v6078_v0  ;;  %v6175_v63 = vadd.f32 %v6127_v29, %v6079_v20  ;;  %v5903_v10 = vld [vmem:[#allocation2 + $0x148] sm:$0x7] }
 0x577   :  { %v7031_v1 = vrot.slane %v7017_v47, %v18113_v31  ;;  %v7032_v18 = vcombine.high %v7024_v34, %v7024_v34  ;;  %v9967_v43 = vrot.slane %v7024_v34, %v18114_v45  ;;  %v6176_v39 = vadd.f32 %v6128_v8, %v6080_v33  ;;  %v5898_v8 = vld [vmem:[#allocation2 + $0x120] sm:$0xff] }
 0x578   :  { %v7048_v59 = vrot.slane %v7034_v51, %v18113_v31  ;;  %v7049_v4 = vcombine.high %v7041_v6, %v7041_v6  ;;  %v9983_v5 = vrot.slane %v7041_v6, %v18114_v45  ;;  %v6224_v35 = vmul.f32 0.015625, %v5897_v17  ;;  %v17201_v6 = vld [vmem:[#allocation2 + $0x130] sm:$0x7] }
 0x579   :  { %v7033_v53 = vcombine.high %v7031_v1, %v7031_v1  ;;  %v9971_v14 = vrot.slane %v7032_v18, %v18114_v45  ;;  %v9975_v32 = vrot.slane %v7031_v1, %v18114_v45  ;;  %v6270_v50 = vadd.f32 %v6222_v21, %v6174_v26  ;;  %v17198_v21 = vld [vmem:[#allocation2 + $0x128] sm:$0xff] }
 0x57a   :  { %v7050_v37 = vcombine.high %v7048_v59, %v7048_v59  ;;  %v9987_v42 = vrot.slane %v7049_v4, %v18114_v45  ;;  %v9991_v44 = vrot.slane %v7048_v59, %v18114_v45  ;;  %v6271_v19 = vadd.f32 %v6223_v12, %v6175_v63 }
 0x57b   :  { %v9979_v28 = vrot.slane %v7033_v53, %v18114_v45  ;;  %v10401_v22 = vsel %vm9569_vm8, %v9971_v14, %v9967_v43  ;;  %v6272_v60 = vadd.f32 %v6224_v35, %v6176_v39  ;;  %v6318_v38 = vmul.f32 3.0, %v6270_v50 }
 0x57c   :  { %v9995_v7 = vrot.slane %v7050_v37, %v18114_v45  ;;  %v10402_v52 = vsel %vm9571_vm9, %v9975_v32, %v10401_v22  ;;  %v6759_v41 = vrot.slane %v6270_v50, 3  ;;  %v6319_v57 = vmul.f32 3.0, %v6271_v19 }
 0x57d   :  { %v10403_v24 = vsel %vm9573_vm10, %v9979_v28, %v10402_v52  ;;  %v6320_v2 = vmul.f32 3.0, %v6272_v60  ;;  %v6760_v40 = vrot.slane %v6271_v19, 3  ;;  %v6422_v17 = vrot.slane %v6318_v38, 1 }
 0x57e   :  { %v10404_v61 = vsel %vm9575_vm11, %v9983_v5, %v10403_v24  ;;  %v6566_v27 = vrot.slane %v6318_v38, 2  ;;  %v6762_v3 = vrot.slane %v6272_v60, 3  ;;  %v6423_v55 = vrot.slane %v6319_v57, 1 }
 0x57f   :  { %v10405_v56 = vsel %vm9577_vm12, %v9987_v42, %v10404_v61  ;;  %v6425_v30 = vrot.slane %v6320_v2, 1  ;;  %v6567_v16 = vrot.slane %v6319_v57, 2  ;;  %v6569_v49 = vrot.slane %v6320_v2, 2 }
 0x580   :  { %v10406_v13 = vsel %vm9579_vm13, %v9991_v44, %v10405_v56  ;;  %v6761_v58 = vsel %vm6738_vm7, %v6759_v41, %v6760_v40  ;;  %v6763_v15 = vsel %vm6738_vm7, %v6760_v40, %v6762_v3  ;;  %v6424_v20 = vsel %vm404_vm2, %v6422_v17, %v6423_v55 }
 0x581   :  { %v10407_v0 = vsel %vm9581_vm14, %v9995_v7, %v10406_v13  ;;  %v6426_v36 = vsel %vm404_vm2, %v6423_v55, %v6425_v30  ;;  %v6568_v33 = vsel %vm889_vm3, %v6566_v27, %v6567_v16  ;;  %v6522_v29 = vadd.f32 %v6424_v20, %v6270_v50 }
 0x582   :  { %11045 = vmatmul.mubr.msk.f32.gmra.mxu1 %vm3379_vm1, %v10407_v0  ;;  %v6523_v47 = vadd.f32 %v6426_v36, %v6271_v19  ;;  %v6570_v34 = vsel %vm889_vm3, %v6567_v16, %v6569_v49  ;;  %v5985_v51 = vmul.f32 0.015625, %v17148_v9  ;;  %v5986_v26 = vmul.f32 0.015625, %v17150_v46 }
 0x583   :  { %v5987_v63 = vmul.f32 0.015625, %v17154_v25  ;;  %v17205_v1 = vmul.f32 0.046875, %v5901_v48  ;;  %v17207_v18 = vmul.f32 0.046875, %v5902_v23  ;;  %v6666_v43 = vadd.f32 %v6568_v33, %v6522_v29 }
 0x584   :  { %v6667_v39 = vadd.f32 %v6570_v34, %v6523_v47  ;;  %v17209_v59 = vmul.f32 0.046875, %v5903_v10  ;;  %v6081_v4 = vadd.f32 %v17126_v62, %v5985_v51  ;;  %v6082_v5 = vadd.f32 %v17156_v11, %v5986_v26 }
 0x585   :  { %v6083_v9 = vadd.f32 %v17158_v54, %v5987_v63  ;;  %v6129_v12 = vmul.f32 0.046875, %v5898_v8  ;;  %v6130_v53 = vmul.f32 0.046875, %v17198_v21  ;;  %v6859_v46 = vadd.f32 %v6761_v58, %v6666_v43 }
 0x586   :  { %v6860_v14 = vadd.f32 %v6763_v15, %v6667_v39  ;;  %v6131_v25 = vmul.f32 0.046875, %v17201_v6  ;;  %v6225_v32 = vmul.f32 0.015625, %v5901_v48  ;;  %v6226_v42 = vmul.f32 0.015625, %v5902_v23 }
 0x587   :  { %v6177_v35 = vadd.f32 %v6129_v12, %v6081_v4  ;;  %v6178_v37 = vadd.f32 %v6130_v53, %v6082_v5  ;;  %v6227_v44 = vmul.f32 0.015625, %v5903_v10  ;;  %v7051_v50 = vcombine.high %v6859_v46, %v6859_v46  ;;  %v5907_v4 = vld [vmem:[#allocation2 + $0x168] sm:$0xff]  ;;  %v5908_v5 = vld [vmem:[#allocation2 + $0x170] sm:$0xff] }
 0x588   :  { %v7058_v28 = vrot.slane %v6859_v46, %v18113_v31  ;;  %v7068_v62 = vcombine.high %v6860_v14, %v6860_v14  ;;  %v7075_v11 = vrot.slane %v6860_v14, %v18113_v31  ;;  %v6179_v22 = vadd.f32 %v6131_v25, %v6083_v9  ;;  %v5909_v14 = vld [vmem:[#allocation2 + $0x178] sm:$0x7] }
 0x589   :  { %v6273_v54 = vadd.f32 %v6225_v32, %v6177_v35  ;;  %v6274_v19 = vadd.f32 %v6226_v42, %v6178_v37  ;;  %v5988_v60 = vmul.f32 0.015625, %v5898_v8  ;;  %v7065_v7 = vrot.slane %v7051_v50, %v18113_v31  ;;  %v5904_v37 = vld [vmem:[#allocation2 + $0x150] sm:$0xff]  ;;  %v17240_v42 = vld [vmem:[#allocation2 + $0x158] sm:$0xff] }
 0x58a   :  { %v7066_v52 = vcombine.high %v7058_v28, %v7058_v28  ;;  %v7082_v38 = vrot.slane %v7068_v62, %v18113_v31  ;;  %v7083_v41 = vcombine.high %v7075_v11, %v7075_v11  ;;  %v9999_v24 = vrot.slane %v7058_v28, %v18114_v45 }
 0x58b   :  { %v10015_v57 = vrot.slane %v7075_v11, %v18114_v45  ;;  %v6275_v2 = vadd.f32 %v6227_v44, %v6179_v22  ;;  %v6321_v40 = vmul.f32 3.0, %v6273_v54  ;;  %v7067_v61 = vcombine.high %v7065_v7, %v7065_v7 }
 0x58c   :  { %v7084_v17 = vcombine.high %v7082_v38, %v7082_v38  ;;  %v10003_v27 = vrot.slane %v7066_v52, %v18114_v45  ;;  %v10007_v3 = vrot.slane %v7065_v7, %v18114_v45  ;;  %v10019_v56 = vrot.slane %v7083_v41, %v18114_v45 }
 0x58d   :  { %v10023_v55 = vrot.slane %v7082_v38, %v18114_v45  ;;  %v6322_v30 = vmul.f32 3.0, %v6274_v19  ;;  %v6323_v16 = vmul.f32 3.0, %v6275_v2  ;;  %v10011_v13 = vrot.slane %v7067_v61, %v18114_v45 }
 0x58e   :  { %v10027_v49 = vrot.slane %v7084_v17, %v18114_v45  ;;  %v10408_v58 = vsel %vm9569_vm8, %v10003_v27, %v9999_v24  ;;  %v6427_v15 = vrot.slane %v6321_v40, 1  ;;  %v6571_v20 = vrot.slane %v6321_v40, 2 }
 0x58f   :  { %v10409_v48 = vsel %vm9571_vm9, %v10007_v3, %v10408_v58  ;;  %v6428_v23 = vrot.slane %v6322_v30, 1  ;;  %v6430_v0 = vrot.slane %v6323_v16, 1  ;;  %v6572_v33 = vrot.slane %v6322_v30, 2 }
 0x590   :  { %v10410_v36 = vsel %vm9573_vm10, %v10011_v13, %v10409_v48  ;;  %v6574_v10 = vrot.slane %v6323_v16, 2  ;;  %v6764_v29 = vrot.slane %v6273_v54, 3  ;;  %v6765_v51 = vrot.slane %v6274_v19, 3 }
 0x591   :  { %v10411_v47 = vsel %vm9575_vm11, %v10015_v57, %v10410_v36  ;;  %v6429_v34 = vsel %vm404_vm2, %v6427_v15, %v6428_v23  ;;  %v6431_v8 = vsel %vm404_vm2, %v6428_v23, %v6430_v0  ;;  %v6573_v39 = vsel %vm889_vm3, %v6571_v20, %v6572_v33 }
 0x592   :  { %v10412_v26 = vsel %vm9577_vm12, %v10019_v56, %v10411_v47  ;;  %v6524_v63 = vadd.f32 %v6429_v34, %v6273_v54  ;;  %v6525_v43 = vadd.f32 %v6431_v8, %v6274_v19  ;;  %v6575_v12 = vsel %vm889_vm3, %v6572_v33, %v6574_v10  ;;  %v17250_v19 = vld [vmem:[#allocation2 + $0x160] sm:$0x7] }
 0x593   :  { %v10413_v9 = vsel %vm9579_vm13, %v10023_v55, %v10412_v26  ;;  %v6766_v53 = vsel %vm6738_vm7, %v6764_v29, %v6765_v51  ;;  %v6767_v46 = vrot.slane %v6275_v2, 3  ;;  %v5989_v44 = vmul.f32 0.015625, %v17198_v21 }
 0x594   :  { %v10414_v25 = vsel %vm9581_vm14, %v10027_v49, %v10413_v9  ;;  %v6668_v32 = vadd.f32 %v6573_v39, %v6524_v63  ;;  %v6669_v35 = vadd.f32 %v6575_v12, %v6525_v43  ;;  %v5990_v28 = vmul.f32 0.015625, %v17201_v6 }
 0x595   :  { %11047 = vmatprep.mubr.msk.f32.mxu1 %vm3379_vm1, %v10414_v25  ;;  %v6768_v50 = vsel %vm6738_vm7, %v6765_v51, %v6767_v46  ;;  %v17246_v62 = vmul.f32 0.046875, %v5907_v4  ;;  %v17248_v11 = vmul.f32 0.046875, %v5908_v5  ;;  %v17252_v7 = vmul.f32 0.046875, %v5909_v14 }
 0x596   :  { %v6861_v22 = vadd.f32 %v6766_v53, %v6668_v32  ;;  %v6862_v54 = vadd.f32 %v6768_v50, %v6669_v35  ;;  %v6084_v52 = vadd.f32 %v17205_v1, %v5988_v60  ;;  %v6085_v21 = vadd.f32 %v17207_v18, %v5989_v44 }
 0x597   :  { %v6086_v38 = vadd.f32 %v17209_v59, %v5990_v28  ;;  %v6132_v41 = vmul.f32 0.046875, %v5904_v37  ;;  %v6133_v24 = vmul.f32 0.046875, %v17240_v42  ;;  %v6134_v61 = vmul.f32 0.046875, %v17250_v19 }
 0x598   :  { %v7085_v6 = vcombine.high %v6861_v22, %v6861_v22  ;;  %v7092_v57 = vrot.slane %v6861_v22, %v18113_v31  ;;  %v7102_v2 = vcombine.high %v6862_v54, %v6862_v54  ;;  %v7109_v40 = vrot.slane %v6862_v54, %v18113_v31  ;;  %v5910_v54 = vld [vmem:[#allocation2 + $0x180] sm:$0xff] }
 0x599   :  { %v6180_v17 = vadd.f32 %v6132_v41, %v6084_v52  ;;  %v6181_v27 = vadd.f32 %v6133_v24, %v6085_v21  ;;  %v6228_v3 = vmul.f32 0.015625, %v5907_v4  ;;  %v6182_v30 = vadd.f32 %v6134_v61, %v6086_v38  ;;  %v5911_v52 = vld [vmem:[#allocation2 + $0x188] sm:$0xff]  ;;  %v5912_v21 = vld [vmem:[#allocation2 + $0x190] sm:$0x7] }
 0x59a   :  { %v7099_v1 = vrot.slane %v7085_v6, %v18113_v31  ;;  %v7100_v60 = vcombine.high %v7092_v57, %v7092_v57  ;;  %v7116_v18 = vrot.slane %v7102_v2, %v18113_v31  ;;  %v7117_v59 = vcombine.high %v7109_v40, %v7109_v40  ;;  %v5913_v2 = vld [vmem:[#allocation2 + $0x198] sm:$0xff] }
 0x59b   :  { %v10031_v56 = vrot.slane %v7092_v57, %v18114_v45  ;;  %v10047_v55 = vrot.slane %v7109_v40, %v18114_v45  ;;  %v6229_v16 = vmul.f32 0.015625, %v5908_v5  ;;  %v6230_v0 = vmul.f32 0.015625, %v5909_v14  ;;  %v5914_v40 = vld [vmem:[#allocation2 + $0x1a0] sm:$0xff] }
 0x59c   :  { %v7101_v13 = vcombine.high %v7099_v1, %v7099_v1  ;;  %v7118_v49 = vcombine.high %v7116_v18, %v7116_v18  ;;  %v10035_v58 = vrot.slane %v7100_v60, %v18114_v45  ;;  %v10039_v15 = vrot.slane %v7099_v1, %v18114_v45 }
 0x59d   :  { %v10051_v48 = vrot.slane %v7117_v59, %v18114_v45  ;;  %v10055_v23 = vrot.slane %v7116_v18, %v18114_v45  ;;  %v6276_v20 = vadd.f32 %v6228_v3, %v6180_v17  ;;  %v6277_v29 = vadd.f32 %v6229_v16, %v6181_v27  ;;  %v5915_v17 = vld [vmem:[#allocation2 + $0x1a8] sm:$0x7] }
 0x59e   :  { %v10043_v36 = vrot.slane %v7101_v13, %v18114_v45  ;;  %v10059_v33 = vrot.slane %v7118_v49, %v18114_v45  ;;  %v10415_v10 = vsel %vm9569_vm8, %v10035_v58, %v10031_v56  ;;  %v6278_v34 = vadd.f32 %v6230_v0, %v6182_v30  ;;  %v5916_v56 = vld [vmem:[#allocation2 + $0x1c8] sm:$0xff] }
 0x59f   :  { %v10416_v47 = vsel %vm9571_vm9, %v10039_v15, %v10415_v10  ;;  %v6324_v8 = vmul.f32 3.0, %v6276_v20  ;;  %v6769_v51 = vrot.slane %v6276_v20, 3  ;;  %v6325_v63 = vmul.f32 3.0, %v6277_v29 }
 0x5a0   :  { %v10417_v26 = vsel %vm9573_vm10, %v10043_v36, %v10416_v47  ;;  %v6770_v43 = vrot.slane %v6277_v29, 3  ;;  %v5991_v39 = vmul.f32 0.015625, %v5904_v37  ;;  %v6326_v5 = vmul.f32 3.0, %v6278_v34 }
 0x5a1   :  { %v10418_v4 = vsel %vm9575_vm11, %v10047_v55, %v10417_v26  ;;  %v6432_v9 = vrot.slane %v6324_v8, 1  ;;  %v6576_v12 = vrot.slane %v6324_v8, 2  ;;  %v6433_v46 = vrot.slane %v6325_v63, 1  ;;  %v5917_v55 = vld [vmem:[#allocation2 + $0x1d0] sm:$0xff] }
 0x5a2   :  { %v10419_v53 = vsel %vm9577_vm12, %v10051_v48, %v10418_v4  ;;  %v6577_v14 = vrot.slane %v6325_v63, 2  ;;  %v6771_v25 = vsel %vm6738_vm7, %v6769_v51, %v6770_v43  ;;  %v6435_v35 = vrot.slane %v6326_v5, 1 }
 0x5a3   :  { %v10420_v32 = vsel %vm9579_vm13, %v10055_v23, %v10419_v53  ;;  %v6579_v44 = vrot.slane %v6326_v5, 2  ;;  %v6772_v50 = vrot.slane %v6278_v34, 3  ;;  %v6434_v37 = vsel %vm404_vm2, %v6432_v9, %v6433_v46 }
 0x5a4   :  { %v10421_v28 = vsel %vm9581_vm14, %v10059_v33, %v10420_v32  ;;  %v6578_v22 = vsel %vm889_vm3, %v6576_v12, %v6577_v14  ;;  %v5992_v38 = vmul.f32 0.015625, %v17240_v42  ;;  %v6436_v41 = vsel %vm404_vm2, %v6433_v46, %v6435_v35 }
 0x5a5   :  { %11048 = vmatmul.mubr.msk.f32.gmra.mxu1 %vm3379_vm1, %v10421_v28  ;;  %v6526_v24 = vadd.f32 %v6434_v37, %v6276_v20  ;;  %v6580_v6 = vsel %vm889_vm3, %v6577_v14, %v6579_v44  ;;  %v6773_v57 = vsel %vm6738_vm7, %v6770_v43, %v6772_v50  ;;  %v6527_v61 = vadd.f32 %v6436_v41, %v6277_v29 }
 0x5a6   :  { %v5993_v27 = vmul.f32 0.015625, %v17250_v19  ;;  %v6087_v3 = vadd.f32 %v17246_v62, %v5991_v39  ;;  %v6088_v1 = vadd.f32 %v17248_v11, %v5992_v38  ;;  %v6135_v60 = vmul.f32 0.046875, %v5910_v54  ;;  %v5918_v19 = vld [vmem:[#allocation2 + $0x1d8] sm:$0x7] }
 0x5a7   :  { %v6670_v42 = vadd.f32 %v6578_v22, %v6526_v24  ;;  %v6136_v18 = vmul.f32 0.046875, %v5911_v52  ;;  %v6137_v59 = vmul.f32 0.046875, %v5912_v21  ;;  %v6671_v30 = vadd.f32 %v6580_v6, %v6527_v61 }
 0x5a8   :  { %v6089_v16 = vadd.f32 %v17252_v7, %v5993_v27  ;;  %v6231_v13 = vmul.f32 0.015625, %v5913_v2  ;;  %v6232_v49 = vmul.f32 0.015625, %v5914_v40  ;;  %v6183_v15 = vadd.f32 %v6135_v60, %v6087_v3  ;;  %v5919_v27 = vld [vmem:[#allocation2 + $0x1e0] sm:$0xff]  ;;  %v5920_v3 = vld [vmem:[#allocation2 + $0x1e8] sm:$0xff] }
 0x5a9   :  { %v6863_v58 = vadd.f32 %v6771_v25, %v6670_v42  ;;  %v6184_v48 = vadd.f32 %v6136_v18, %v6088_v1  ;;  %v6233_v23 = vmul.f32 0.015625, %v5915_v17  ;;  %v6864_v0 = vadd.f32 %v6773_v57, %v6671_v30 }
 0x5aa   :  { %v6185_v62 = vadd.f32 %v6137_v59, %v6089_v16  ;;  %v17290_v20 = vmul.f32 0.015625, %v5916_v56  ;;  %v17292_v11 = vmul.f32 0.015625, %v5917_v55  ;;  %v6279_v10 = vadd.f32 %v6231_v13, %v6183_v15  ;;  %v5921_v59 = vld [vmem:[#allocation2 + $0x1f0] sm:$0x7] }
 0x5ab   :  { %v7119_v36 = vcombine.high %v6863_v58, %v6863_v58  ;;  %v7126_v33 = vrot.slane %v6863_v58, %v18113_v31  ;;  %v6280_v29 = vadd.f32 %v6232_v49, %v6184_v48  ;;  %v7136_v47 = vcombine.high %v6864_v0, %v6864_v0  ;;  %v5925_v56 = vld [vmem:[#allocation2 + $0x210] sm:$0xff]  ;;  %v5926_v49 = vld [vmem:[#allocation2 + $0x218] sm:$0xff]  ;;  %v5927_v58 = vld [vmem:[#allocation2 + $0x220] sm:$0x7] }
 0x5ac   :  { %v7143_v7 = vrot.slane %v6864_v0, %v18113_v31  ;;  %v6281_v34 = vadd.f32 %v6233_v23, %v6185_v62  ;;  %v17296_v8 = vmul.f32 0.015625, %v5918_v19  ;;  %v6327_v43 = vmul.f32 3.0, %v6279_v10 }
 0x5ad   :  { %v7133_v51 = vrot.slane %v7119_v36, %v18113_v31  ;;  %v7134_v26 = vcombine.high %v7126_v33, %v7126_v33  ;;  %v10063_v63 = vrot.slane %v7126_v33, %v18114_v45  ;;  %v7150_v39 = vrot.slane %v7136_v47, %v18113_v31  ;;  %v5922_v36 = vld [vmem:[#allocation2 + $0x1f8] sm:$0xff]  ;;  %v5923_v33 = vld [vmem:[#allocation2 + $0x200] sm:$0xff] }
 0x5ae   :  { %v7151_v4 = vcombine.high %v7143_v7, %v7143_v7  ;;  %v10079_v5 = vrot.slane %v7143_v7, %v18114_v45  ;;  %v6328_v9 = vmul.f32 3.0, %v6280_v29  ;;  %v6329_v14 = vmul.f32 3.0, %v6281_v34  ;;  %v5924_v7 = vld [vmem:[#allocation2 + $0x208] sm:$0x7] }
 0x5af   :  { %v7135_v12 = vcombine.high %v7133_v51, %v7133_v51  ;;  %v10067_v53 = vrot.slane %v7134_v26, %v18114_v45  ;;  %v10071_v46 = vrot.slane %v7133_v51, %v18114_v45  ;;  %v7152_v25 = vcombine.high %v7150_v39, %v7150_v39 }
 0x5b0   :  { %v10083_v32 = vrot.slane %v7151_v4, %v18114_v45  ;;  %v10087_v35 = vrot.slane %v7150_v39, %v18114_v45  ;;  %v6437_v44 = vrot.slane %v6327_v43, 1  ;;  %v6438_v37 = vrot.slane %v6328_v9, 1 }
 0x5b1   :  { %v10075_v50 = vrot.slane %v7135_v12, %v18114_v45  ;;  %v10422_v28 = vsel %vm9569_vm8, %v10067_v53, %v10063_v63  ;;  %v6440_v22 = vrot.slane %v6329_v14, 1  ;;  %v10091_v54 = vrot.slane %v7152_v25, %v18114_v45 }
 0x5b2   :  { %v10423_v52 = vsel %vm9571_vm9, %v10071_v46, %v10422_v28  ;;  %v6581_v21 = vrot.slane %v6327_v43, 2  ;;  %v6582_v38 = vrot.slane %v6328_v9, 2  ;;  %v6439_v24 = vsel %vm404_vm2, %v6437_v44, %v6438_v37 }
 0x5b3   :  { %v10424_v41 = vsel %vm9573_vm10, %v10075_v50, %v10423_v52  ;;  %v6441_v6 = vsel %vm404_vm2, %v6438_v37, %v6440_v22  ;;  %v6584_v57 = vrot.slane %v6329_v14, 2  ;;  %v6528_v40 = vadd.f32 %v6439_v24, %v6279_v10 }
 0x5b4   :  { %v10425_v2 = vsel %vm9575_vm11, %v10079_v5, %v10424_v41  ;;  %v6529_v61 = vadd.f32 %v6441_v6, %v6280_v29  ;;  %v6583_v17 = vsel %vm889_vm3, %v6581_v21, %v6582_v38  ;;  %v6774_v60 = vrot.slane %v6279_v10, 3 }
 0x5b5   :  { %v10426_v1 = vsel %vm9577_vm12, %v10083_v32, %v10425_v2  ;;  %v6585_v42 = vsel %vm889_vm3, %v6582_v38, %v6584_v57  ;;  %v6775_v18 = vrot.slane %v6280_v29, 3  ;;  %v6672_v30 = vadd.f32 %v6583_v17, %v6528_v40  ;;  %v5931_v57 = vld [vmem:[#allocation2 + $0x240] sm:$0xff] }
 0x5b6   :  { %v10427_v55 = vsel %vm9579_vm13, %v10087_v35, %v10426_v1  ;;  %v6673_v16 = vadd.f32 %v6585_v42, %v6529_v61  ;;  %v6777_v13 = vrot.slane %v6281_v34, 3  ;;  %v6042_v23 = vmul.f32 0.046875, %v5919_v27 }
 0x5b7   :  { %v10428_v15 = vsel %vm9581_vm14, %v10091_v54, %v10427_v55  ;;  %v6776_v48 = vsel %vm6738_vm7, %v6774_v60, %v6775_v18  ;;  %v6043_v19 = vmul.f32 0.046875, %v5920_v3  ;;  %v6044_v10 = vmul.f32 0.046875, %v5921_v59 }
 0x5b8   :  { %11050 = vmatprep.mubr.msk.f32.mxu1 %vm3379_vm1, %v10428_v15  ;;  %v6778_v0 = vsel %vm6738_vm7, %v6775_v18, %v6777_v13  ;;  %v6865_v62 = vadd.f32 %v6776_v48, %v6672_v30  ;;  %v17322_v29 = vmul.f32 0.046875, %v5925_v56  ;;  %v17324_v34 = vmul.f32 0.046875, %v5926_v49 }
 0x5b9   :  { %v6866_v47 = vadd.f32 %v6778_v0, %v6673_v16  ;;  %v17326_v51 = vmul.f32 0.046875, %v5927_v58  ;;  %v6090_v26 = vadd.f32 %v6042_v23, %v17290_v20  ;;  %v6091_v39 = vadd.f32 %v6043_v19, %v17292_v11  ;;  %v5932_v23 = vld [vmem:[#allocation2 + $0x248] sm:$0xff]  ;;  %v5933_v19 = vld [vmem:[#allocation2 + $0x250] sm:$0x7] }
 0x5ba   :  { %v7153_v63 = vcombine.high %v6865_v62, %v6865_v62  ;;  %v7160_v43 = vrot.slane %v6865_v62, %v18113_v31  ;;  %v6092_v4 = vadd.f32 %v6044_v10, %v17296_v8  ;;  %v6138_v12 = vmul.f32 0.046875, %v5922_v36 }
 0x5bb   :  { %v7170_v5 = vcombine.high %v6866_v47, %v6866_v47  ;;  %v7177_v9 = vrot.slane %v6866_v47, %v18113_v31  ;;  %v6139_v53 = vmul.f32 0.046875, %v5923_v33  ;;  %v6140_v32 = vmul.f32 0.046875, %v5924_v7 }
 0x5bc   :  { %v7167_v46 = vrot.slane %v7153_v63, %v18113_v31  ;;  %v7168_v14 = vcombine.high %v7160_v43, %v7160_v43  ;;  %v10095_v25 = vrot.slane %v7160_v43, %v18114_v45  ;;  %v6186_v50 = vadd.f32 %v6138_v12, %v6090_v26 }
 0x5bd   :  { %v7184_v20 = vrot.slane %v7170_v5, %v18113_v31  ;;  %v7185_v35 = vcombine.high %v7177_v9, %v7177_v9  ;;  %v10111_v44 = vrot.slane %v7177_v9, %v18114_v45  ;;  %v6187_v37 = vadd.f32 %v6139_v53, %v6091_v39  ;;  %v5928_v39 = vld [vmem:[#allocation2 + $0x228] sm:$0xff]  ;;  %v5930_v5 = vld [vmem:[#allocation2 + $0x238] sm:$0x7] }
 0x5be   :  { %v7169_v11 = vcombine.high %v7167_v46, %v7167_v46  ;;  %v10099_v8 = vrot.slane %v7168_v14, %v18114_v45  ;;  %v10103_v28 = vrot.slane %v7167_v46, %v18114_v45  ;;  %v6188_v21 = vadd.f32 %v6140_v32, %v6092_v4  ;;  %v5929_v4 = vld [vmem:[#allocation2 + $0x230] sm:$0xff] }
 0x5bf   :  { %v7186_v22 = vcombine.high %v7184_v20, %v7184_v20  ;;  %v10115_v54 = vrot.slane %v7185_v35, %v18114_v45  ;;  %v10119_v52 = vrot.slane %v7184_v20, %v18114_v45  ;;  %v6234_v24 = vmul.f32 0.015625, %v5925_v56 }
 0x5c0   :  { %v10107_v38 = vrot.slane %v7169_v11, %v18114_v45  ;;  %v10429_v41 = vsel %vm9569_vm8, %v10099_v8, %v10095_v25  ;;  %v6235_v6 = vmul.f32 0.015625, %v5926_v49  ;;  %v6236_v61 = vmul.f32 0.015625, %v5927_v58 }
 0x5c1   :  { %v10123_v2 = vrot.slane %v7186_v22, %v18114_v45  ;;  %v10430_v40 = vsel %vm9571_vm9, %v10103_v28, %v10429_v41  ;;  %v5997_v17 = vmul.f32 0.015625, %v5922_v36  ;;  %v6282_v3 = vadd.f32 %v6234_v24, %v6186_v50 }
 0x5c2   :  { %v10431_v27 = vsel %vm9573_vm10, %v10107_v38, %v10430_v40  ;;  %v6283_v1 = vadd.f32 %v6235_v6, %v6187_v37  ;;  %v5998_v42 = vmul.f32 0.015625, %v5923_v33  ;;  %v6284_v18 = vadd.f32 %v6236_v61, %v6188_v21  ;;  %v17366_v6 = vld [vmem:[#allocation2 + $0x270] sm:$0xff] }
 0x5c3   :  { %v10432_v60 = vsel %vm9575_vm11, %v10111_v44, %v10431_v27  ;;  %v5999_v59 = vmul.f32 0.015625, %v5924_v7  ;;  %v17347_v55 = vmul.f32 0.046875, %v5931_v57  ;;  %v6330_v30 = vmul.f32 3.0, %v6282_v3 }
 0x5c4   :  { %v10433_v56 = vsel %vm9577_vm12, %v10115_v54, %v10432_v60  ;;  %v6331_v16 = vmul.f32 3.0, %v6283_v1  ;;  %v6779_v13 = vrot.slane %v6282_v3, 3  ;;  %v6332_v58 = vmul.f32 3.0, %v6284_v18 }
 0x5c5   :  { %v10434_v49 = vsel %vm9579_vm13, %v10119_v52, %v10433_v56  ;;  %v6780_v15 = vrot.slane %v6283_v1, 3  ;;  %v6782_v48 = vrot.slane %v6284_v18, 3  ;;  %v6442_v62 = vrot.slane %v6330_v30, 1 }
 0x5c6   :  { %v10435_v0 = vsel %vm9581_vm14, %v10123_v2, %v10434_v49  ;;  %v6443_v36 = vrot.slane %v6331_v16, 1  ;;  %v6586_v33 = vrot.slane %v6330_v30, 2  ;;  %v6445_v10 = vrot.slane %v6332_v58, 1 }
 0x5c7   :  { %11051 = vmatmul.mubr.msk.f32.gmra.mxu1 %vm3379_vm1, %v10435_v0  ;;  %v6587_v47 = vrot.slane %v6331_v16, 2  ;;  %v6589_v7 = vrot.slane %v6332_v58, 2  ;;  %v6781_v26 = vsel %vm6738_vm7, %v6779_v13, %v6780_v15  ;;  %v6783_v43 = vsel %vm6738_vm7, %v6780_v15, %v6782_v48 }
 0x5c8   :  { %v6444_v63 = vsel %vm404_vm2, %v6442_v62, %v6443_v36  ;;  %v17356_v9 = vmul.f32 0.046875, %v5932_v23  ;;  %v17358_v12 = vmul.f32 0.046875, %v5933_v19  ;;  %v6446_v53 = vsel %vm404_vm2, %v6443_v36, %v6445_v10 }
 0x5c9   :  { %v6530_v46 = vadd.f32 %v6444_v63, %v6282_v3  ;;  %v6588_v14 = vsel %vm889_vm3, %v6586_v33, %v6587_v47  ;;  %v6590_v25 = vsel %vm889_vm3, %v6587_v47, %v6589_v7  ;;  %v6531_v32 = vadd.f32 %v6446_v53, %v6283_v1 }
 0x5ca   :  { %v6093_v20 = vadd.f32 %v17322_v29, %v5997_v17  ;;  %v6094_v35 = vadd.f32 %v17324_v34, %v5998_v42  ;;  %v6095_v44 = vadd.f32 %v17326_v51, %v5999_v59  ;;  %v6141_v11 = vmul.f32 0.046875, %v5928_v39 }
 0x5cb   :  { %v6674_v50 = vadd.f32 %v6588_v14, %v6530_v46  ;;  %v6142_v8 = vmul.f32 0.046875, %v5929_v4  ;;  %v6143_v28 = vmul.f32 0.046875, %v5930_v5  ;;  %v6675_v37 = vadd.f32 %v6590_v25, %v6531_v32 }
 0x5cc   :  { %v6237_v22 = vmul.f32 0.015625, %v5931_v57  ;;  %v6238_v54 = vmul.f32 0.015625, %v5932_v23  ;;  %v6239_v52 = vmul.f32 0.015625, %v5933_v19  ;;  %v6189_v38 = vadd.f32 %v6141_v11, %v6093_v20 }
 0x5cd   :  { %v6867_v21 = vadd.f32 %v6781_v26, %v6674_v50  ;;  %v6190_v41 = vadd.f32 %v6142_v8, %v6094_v35  ;;  %v6191_v24 = vadd.f32 %v6143_v28, %v6095_v44  ;;  %v6868_v2 = vadd.f32 %v6783_v43, %v6675_v37  ;;  %v5938_v35 = vld [vmem:[#allocation2 + $0x278] sm:$0xff]  ;;  %v5939_v44 = vld [vmem:[#allocation2 + $0x280] sm:$0x7] }
 0x5ce   :  { %v17368_v29 = vmul.f32 0.015625, %v5928_v39  ;;  %v17370_v34 = vmul.f32 0.015625, %v5929_v4  ;;  %v17372_v51 = vmul.f32 0.015625, %v5930_v5  ;;  %v6285_v17 = vadd.f32 %v6237_v22, %v6189_v38  ;;  %v17401_v38 = vld [vmem:[#allocation2 + $0x260] sm:$0xff] }
 0x5cf   :  { %v7187_v40 = vcombine.high %v6867_v21, %v6867_v21  ;;  %v7194_v61 = vrot.slane %v6867_v21, %v18113_v31  ;;  %v6286_v57 = vadd.f32 %v6238_v54, %v6190_v41  ;;  %v7204_v27 = vcombine.high %v6868_v2, %v6868_v2  ;;  %v17399_v21 = vld [vmem:[#allocation2 + $0x258] sm:$0xff] }
 0x5d0   :  { %v7211_v3 = vrot.slane %v6868_v2, %v18113_v31  ;;  %v6287_v1 = vadd.f32 %v6239_v52, %v6191_v24  ;;  %v17377_v42 = vmul.f32 0.046875, %v17366_v6  ;;  %v6333_v56 = vmul.f32 3.0, %v6285_v17  ;;  %v17405_v2 = vld [vmem:[#allocation2 + $0x268] sm:$0x7] }
 0x5d1   :  { %v7201_v60 = vrot.slane %v7187_v40, %v18113_v31  ;;  %v7202_v18 = vcombine.high %v7194_v61, %v7194_v61  ;;  %v10127_v59 = vrot.slane %v7194_v61, %v18114_v45  ;;  %v7218_v30 = vrot.slane %v7204_v27, %v18113_v31 }
 0x5d2   :  { %v7219_v16 = vcombine.high %v7211_v3, %v7211_v3  ;;  %v10143_v13 = vrot.slane %v7211_v3, %v18114_v45  ;;  %v6334_v49 = vmul.f32 3.0, %v6286_v57  ;;  %v6335_v23 = vmul.f32 3.0, %v6287_v1 }
 0x5d3   :  { %v7203_v58 = vcombine.high %v7201_v60, %v7201_v60  ;;  %v10131_v15 = vrot.slane %v7202_v18, %v18114_v45  ;;  %v10135_v48 = vrot.slane %v7201_v60, %v18114_v45  ;;  %v7220_v19 = vcombine.high %v7218_v30, %v7218_v30 }
 0x5d4   :  { %v10147_v0 = vrot.slane %v7219_v16, %v18114_v45  ;;  %v10151_v62 = vrot.slane %v7218_v30, %v18114_v45  ;;  %v6447_v36 = vrot.slane %v6333_v56, 1  ;;  %v6448_v47 = vrot.slane %v6334_v49, 1 }
 0x5d5   :  { %v10139_v33 = vrot.slane %v7203_v58, %v18114_v45  ;;  %v10436_v10 = vsel %vm9569_vm8, %v10131_v15, %v10127_v59  ;;  %v6450_v7 = vrot.slane %v6335_v23, 1  ;;  %v10155_v26 = vrot.slane %v7220_v19, %v18114_v45 }
 0x5d6   :  { %v10437_v63 = vsel %vm9571_vm9, %v10135_v48, %v10436_v10  ;;  %v6591_v43 = vrot.slane %v6333_v56, 2  ;;  %v6592_v39 = vrot.slane %v6334_v49, 2  ;;  %v6449_v5 = vsel %vm404_vm2, %v6447_v36, %v6448_v47 }
 0x5d7   :  { %v10438_v4 = vsel %vm9573_vm10, %v10139_v33, %v10437_v63  ;;  %v6451_v53 = vsel %vm404_vm2, %v6448_v47, %v6450_v7  ;;  %v6594_v46 = vrot.slane %v6335_v23, 2  ;;  %v6532_v25 = vadd.f32 %v6449_v5, %v6285_v17 }
 0x5d8   :  { %v10439_v14 = vsel %vm9575_vm11, %v10143_v13, %v10438_v4  ;;  %v6533_v32 = vadd.f32 %v6451_v53, %v6286_v57  ;;  %v6593_v20 = vsel %vm889_vm3, %v6591_v43, %v6592_v39  ;;  %v6784_v8 = vrot.slane %v6285_v17, 3 }
 0x5d9   :  { %v10440_v50 = vsel %vm9577_vm12, %v10147_v0, %v10439_v14  ;;  %v6595_v11 = vsel %vm889_vm3, %v6592_v39, %v6594_v46  ;;  %v6785_v28 = vrot.slane %v6286_v57, 3  ;;  %v6676_v22 = vadd.f32 %v6593_v20, %v6532_v25 }
 0x5da   :  { %v10441_v37 = vsel %vm9579_vm13, %v10151_v62, %v10440_v50  ;;  %v6677_v54 = vadd.f32 %v6595_v11, %v6533_v32  ;;  %v6787_v52 = vrot.slane %v6287_v1, 3  ;;  %v17407_v40 = vmul.f32 0.046875, %v5938_v35 }
 0x5db   :  { %v10442_v41 = vsel %vm9581_vm14, %v10155_v26, %v10441_v37  ;;  %v6786_v24 = vsel %vm6738_vm7, %v6784_v8, %v6785_v28  ;;  %v17409_v61 = vmul.f32 0.046875, %v5939_v44  ;;  %v6096_v27 = vadd.f32 %v17347_v55, %v17368_v29 }
 0x5dc   :  { %11053 = vmatprep.mubr.msk.f32.mxu1 %vm3379_vm1, %v10442_v41  ;;  %v6788_v17 = vsel %vm6738_vm7, %v6785_v28, %v6787_v52  ;;  %v6869_v57 = vadd.f32 %v6786_v24, %v6676_v22  ;;  %v6097_v3 = vadd.f32 %v17356_v9, %v17370_v34  ;;  %v6098_v60 = vadd.f32 %v17358_v12, %v17372_v51 }
 0x5dd   :  { %v6870_v1 = vadd.f32 %v6788_v17, %v6677_v54  ;;  %v6144_v18 = vmul.f32 0.046875, %v17399_v21  ;;  %v6145_v59 = vmul.f32 0.046875, %v17401_v38  ;;  %v6146_v16 = vmul.f32 0.046875, %v17405_v2  ;;  %v5943_v17 = vld [vmem:[#allocation2 + $0x2a0] sm:$0xff] }
 0x5de   :  { %v7221_v56 = vcombine.high %v6869_v57, %v6869_v57  ;;  %v7228_v30 = vrot.slane %v6869_v57, %v18113_v31  ;;  %v6240_v13 = vmul.f32 0.015625, %v17366_v6  ;;  %v6241_v19 = vmul.f32 0.015625, %v5938_v35  ;;  %v5944_v57 = vld [vmem:[#allocation2 + $0x2a8] sm:$0xff] }
 0x5df   :  { %v7238_v49 = vcombine.high %v6870_v1, %v6870_v1  ;;  %v7245_v55 = vrot.slane %v6870_v1, %v18113_v31  ;;  %v6192_v29 = vadd.f32 %v6144_v18, %v6096_v27  ;;  %v6193_v9 = vadd.f32 %v6145_v59, %v6097_v3  ;;  %v5945_v18 = vld [vmem:[#allocation2 + $0x2b0] sm:$0x7] }
 0x5e0   :  { %v7235_v34 = vrot.slane %v7221_v56, %v18113_v31  ;;  %v7236_v58 = vcombine.high %v7228_v30, %v7228_v30  ;;  %v10159_v12 = vrot.slane %v7228_v30, %v18114_v45  ;;  %v6194_v51 = vadd.f32 %v6146_v16, %v6098_v60  ;;  %v5940_v16 = vld [vmem:[#allocation2 + $0x288] sm:$0xff] }
 0x5e1   :  { %v7252_v15 = vrot.slane %v7238_v49, %v18113_v31  ;;  %v7253_v48 = vcombine.high %v7245_v55, %v7245_v55  ;;  %v10175_v23 = vrot.slane %v7245_v55, %v18114_v45  ;;  %v6242_v36 = vmul.f32 0.015625, %v5939_v44  ;;  %v17452_v55 = vld [vmem:[#allocation2 + $0x298] sm:$0x7] }
 0x5e2   :  { %v7237_v0 = vcombine.high %v7235_v34, %v7235_v34  ;;  %v10163_v6 = vrot.slane %v7236_v58, %v18114_v45  ;;  %v10167_v62 = vrot.slane %v7235_v34, %v18114_v45  ;;  %v6288_v7 = vadd.f32 %v6240_v13, %v6192_v29  ;;  %v17449_v13 = vld [vmem:[#allocation2 + $0x290] sm:$0xff] }
 0x5e3   :  { %v7254_v33 = vcombine.high %v7252_v15, %v7252_v15  ;;  %v10179_v10 = vrot.slane %v7253_v48, %v18114_v45  ;;  %v10183_v47 = vrot.slane %v7252_v15, %v18114_v45  ;;  %v6289_v43 = vadd.f32 %v6241_v19, %v6193_v9 }
 0x5e4   :  { %v10171_v26 = vrot.slane %v7237_v0, %v18114_v45  ;;  %v10443_v63 = vsel %vm9569_vm8, %v10163_v6, %v10159_v12  ;;  %v6290_v39 = vadd.f32 %v6242_v36, %v6194_v51  ;;  %v6336_v53 = vmul.f32 3.0, %v6288_v7 }
 0x5e5   :  { %v10187_v4 = vrot.slane %v7254_v33, %v18114_v45  ;;  %v10444_v5 = vsel %vm9571_vm9, %v10167_v62, %v10443_v63  ;;  %v6789_v46 = vrot.slane %v6288_v7, 3  ;;  %v6337_v25 = vmul.f32 3.0, %v6289_v43 }
 0x5e6   :  { %v10445_v14 = vsel %vm9573_vm10, %v10171_v26, %v10444_v5  ;;  %v6338_v32 = vmul.f32 3.0, %v6290_v39  ;;  %v6790_v20 = vrot.slane %v6289_v43, 3  ;;  %v6452_v44 = vrot.slane %v6336_v53, 1 }
 0x5e7   :  { %v10446_v35 = vsel %vm9575_vm11, %v10175_v23, %v10445_v14  ;;  %v6596_v50 = vrot.slane %v6336_v53, 2  ;;  %v6792_v11 = vrot.slane %v6290_v39, 3  ;;  %v6453_v28 = vrot.slane %v6337_v25, 1 }
 0x5e8   :  { %v10447_v8 = vsel %vm9577_vm12, %v10179_v10, %v10446_v35  ;;  %v6455_v37 = vrot.slane %v6338_v32, 1  ;;  %v6597_v22 = vrot.slane %v6337_v25, 2  ;;  %v6599_v52 = vrot.slane %v6338_v32, 2 }
 0x5e9   :  { %v10448_v54 = vsel %vm9579_vm13, %v10183_v47, %v10447_v8  ;;  %v6791_v41 = vsel %vm6738_vm7, %v6789_v46, %v6790_v20  ;;  %v6793_v24 = vsel %vm6738_vm7, %v6790_v20, %v6792_v11  ;;  %v6454_v3 = vsel %vm404_vm2, %v6452_v44, %v6453_v28  ;;  %v17475_v8 = vpop.f32.mrf.mxu1 }
 0x5ea   :  { %v10449_v27 = vsel %vm9581_vm14, %v10187_v4, %v10448_v54  ;;  %v6456_v1 = vsel %vm404_vm2, %v6453_v28, %v6455_v37  ;;  %v6598_v60 = vsel %vm889_vm3, %v6596_v50, %v6597_v22  ;;  %v6534_v59 = vadd.f32 %v6454_v3, %v6288_v7 }
 0x5eb   :  { %11054 = vmatmul.mubr.msk.f32.gmra.mxu1 %vm3379_vm1, %v10449_v27  ;;  %v6535_v56 = vadd.f32 %v6456_v1, %v6289_v43  ;;  %v6600_v30 = vsel %vm889_vm3, %v6597_v22, %v6599_v52  ;;  %v6003_v49 = vmul.f32 0.015625, %v17399_v21  ;;  %v6004_v29 = vmul.f32 0.015625, %v17401_v38 }
 0x5ec   :  { %v6005_v9 = vmul.f32 0.015625, %v17405_v2  ;;  %v17456_v34 = vmul.f32 0.046875, %v5943_v17  ;;  %v17458_v58 = vmul.f32 0.046875, %v5944_v57  ;;  %v6678_v12 = vadd.f32 %v6598_v60, %v6534_v59 }
 0x5ed   :  { %v6679_v51 = vadd.f32 %v6600_v30, %v6535_v56  ;;  %v17460_v15 = vmul.f32 0.046875, %v5945_v18  ;;  %v6099_v48 = vadd.f32 %v17377_v42, %v6003_v49  ;;  %v6100_v23 = vadd.f32 %v17407_v40, %v6004_v29  ;;  %v17484_v30 = vpop.f32.mrf.mxu1 }
 0x5ee   :  { %v6101_v21 = vadd.f32 %v17409_v61, %v6005_v9  ;;  %v6147_v19 = vmul.f32 0.046875, %v5940_v16  ;;  %v6148_v0 = vmul.f32 0.046875, %v17449_v13  ;;  %v6871_v38 = vadd.f32 %v6791_v41, %v6678_v12 }
 0x5ef   :  { %v6872_v6 = vadd.f32 %v6793_v24, %v6679_v51  ;;  %v6149_v2 = vmul.f32 0.046875, %v17452_v55  ;;  %v6243_v62 = vmul.f32 0.015625, %v5943_v17  ;;  %v6244_v10 = vmul.f32 0.015625, %v5944_v57 }
 0x5f0   :  { %v6195_v36 = vadd.f32 %v6147_v19, %v6099_v48  ;;  %v6196_v33 = vadd.f32 %v6148_v0, %v6100_v23  ;;  %v6245_v47 = vmul.f32 0.015625, %v5945_v18  ;;  %v7255_v7 = vcombine.high %v6871_v38, %v6871_v38  ;;  %v5950_v19 = vld [vmem:[#allocation2 + $0x2d8] sm:$0xff] }
 0x5f1   :  { %v7262_v26 = vrot.slane %v6871_v38, %v18113_v31  ;;  %v7272_v42 = vcombine.high %v6872_v6, %v6872_v6  ;;  %v7279_v40 = vrot.slane %v6872_v6, %v18113_v31  ;;  %v6197_v63 = vadd.f32 %v6149_v2, %v6101_v21  ;;  %v5949_v21 = vld [vmem:[#allocation2 + $0x2d0] sm:$0xff] }
 0x5f2   :  { %v6291_v61 = vadd.f32 %v6243_v62, %v6195_v36  ;;  %v6292_v43 = vadd.f32 %v6244_v10, %v6196_v33  ;;  %v6006_v39 = vmul.f32 0.015625, %v5940_v16  ;;  %v7269_v4 = vrot.slane %v7255_v7, %v18113_v31  ;;  %v5951_v62 = vld [vmem:[#allocation2 + $0x2e0] sm:$0x7] }
 0x5f3   :  { %v7270_v5 = vcombine.high %v7262_v26, %v7262_v26  ;;  %v7286_v53 = vrot.slane %v7272_v42, %v18113_v31  ;;  %v7287_v46 = vcombine.high %v7279_v40, %v7279_v40  ;;  %v10191_v14 = vrot.slane %v7262_v26, %v18114_v45  ;;  %v17495_v7 = vld [vmem:[#allocation2 + $0x2c0] sm:$0xff]  ;;  %v17498_v42 = vpop.f32.mrf.mxu1 }
 0x5f4   :  { %v10207_v25 = vrot.slane %v7279_v40, %v18114_v45  ;;  %v6293_v32 = vadd.f32 %v6245_v47, %v6197_v63  ;;  %v6339_v20 = vmul.f32 3.0, %v6291_v61  ;;  %v7271_v35 = vcombine.high %v7269_v4, %v7269_v4  ;;  %v5946_v47 = vld [vmem:[#allocation2 + $0x2b8] sm:$0xff] }
 0x5f5   :  { %v7288_v44 = vcombine.high %v7286_v53, %v7286_v53  ;;  %v10195_v50 = vrot.slane %v7270_v5, %v18114_v45  ;;  %v10199_v11 = vrot.slane %v7269_v4, %v18114_v45  ;;  %v10211_v28 = vrot.slane %v7287_v46, %v18114_v45 }
 0x5f6   :  { %v10215_v37 = vrot.slane %v7286_v53, %v18114_v45  ;;  %v6340_v22 = vmul.f32 3.0, %v6292_v43  ;;  %v6341_v54 = vmul.f32 3.0, %v6293_v32  ;;  %v10203_v52 = vrot.slane %v7271_v35, %v18114_v45  ;;  %v17507_v53 = vld [vmem:[#allocation2 + $0x2c8] sm:$0x7] }
 0x5f7   :  { %v10219_v41 = vrot.slane %v7288_v44, %v18114_v45  ;;  %v10450_v24 = vsel %vm9569_vm8, %v10195_v50, %v10191_v14  ;;  %v6457_v17 = vrot.slane %v6339_v20, 1  ;;  %v6601_v1 = vrot.slane %v6339_v20, 2 }
 0x5f8   :  { %v10451_v57 = vsel %vm9571_vm9, %v10199_v11, %v10450_v24  ;;  %v6458_v27 = vrot.slane %v6340_v22, 1  ;;  %v6460_v3 = vrot.slane %v6341_v54, 1  ;;  %v6602_v18 = vrot.slane %v6340_v22, 2  ;;  %v17517_v11 = vpop.f32.mrf.mxu1 }
 0x5f9   :  { %v10452_v60 = vsel %vm9573_vm10, %v10203_v52, %v10451_v57  ;;  %v6604_v59 = vrot.slane %v6341_v54, 2  ;;  %v6794_v56 = vrot.slane %v6291_v61, 3  ;;  %v6795_v9 = vrot.slane %v6292_v43, 3 }
 0x5fa   :  { %v10453_v16 = vsel %vm9575_vm11, %v10207_v25, %v10452_v60  ;;  %v6459_v49 = vsel %vm404_vm2, %v6457_v17, %v6458_v27  ;;  %v6461_v29 = vsel %vm404_vm2, %v6458_v27, %v6460_v3  ;;  %v6603_v23 = vsel %vm889_vm3, %v6601_v1, %v6602_v18  ;;  %v17526_v60 = vpop.f32.mrf.mxu1 }
 0x5fb   :  { %v10454_v12 = vsel %vm9577_vm12, %v10211_v28, %v10453_v16  ;;  %v6536_v51 = vadd.f32 %v6459_v49, %v6291_v61  ;;  %v6537_v48 = vadd.f32 %v6461_v29, %v6292_v43  ;;  %v6605_v38 = vsel %vm889_vm3, %v6602_v18, %v6604_v59 }
 0x5fc   :  { %v10455_v0 = vsel %vm9579_vm13, %v10215_v37, %v10454_v12  ;;  %v6796_v6 = vsel %vm6738_vm7, %v6794_v56, %v6795_v9  ;;  %v6797_v2 = vrot.slane %v6293_v32, 3  ;;  %v6007_v26 = vmul.f32 0.015625, %v17449_v13 }
 0x5fd   :  { %v10456_v36 = vsel %vm9581_vm14, %v10219_v41, %v10455_v0  ;;  %v6680_v33 = vadd.f32 %v6603_v23, %v6536_v51  ;;  %v6681_v10 = vadd.f32 %v6605_v38, %v6537_v48  ;;  %v6008_v63 = vmul.f32 0.015625, %v17452_v55 }
 0x5fe   :  { %11056 = vmatprep.mubr.msk.f32.mxu1 %vm3379_vm1, %v10456_v36  ;;  %v6798_v40 = vsel %vm6738_vm7, %v6795_v9, %v6797_v2  ;;  %v17503_v61 = vmul.f32 0.046875, %v5949_v21  ;;  %v17505_v43 = vmul.f32 0.046875, %v5950_v19  ;;  %v17509_v46 = vmul.f32 0.046875, %v5951_v62  ;;  %v17535_v2 = vpop.f32.mrf.mxu1 }
 0x5ff   :  { %v6873_v4 = vadd.f32 %v6796_v6, %v6680_v33  ;;  %v6874_v5 = vadd.f32 %v6798_v40, %v6681_v10  ;;  %v6102_v13 = vadd.f32 %v17456_v34, %v6006_v39  ;;  %v6103_v14 = vadd.f32 %v17458_v58, %v6007_v26 }
 0x600   :  { %v6104_v25 = vadd.f32 %v17460_v15, %v6008_v63  ;;  %v6150_v32 = vmul.f32 0.046875, %v5946_v47  ;;  %v6151_v20 = vmul.f32 0.046875, %v17495_v7  ;;  %v6152_v28 = vmul.f32 0.046875, %v17507_v53 }
 0x601   :  { %v7289_v55 = vcombine.high %v6873_v4, %v6873_v4  ;;  %v7296_v35 = vrot.slane %v6873_v4, %v18113_v31  ;;  %v7306_v44 = vcombine.high %v6874_v5, %v6874_v5  ;;  %v7313_v50 = vrot.slane %v6874_v5, %v18113_v31 }
 0x602   :  { %v6198_v37 = vadd.f32 %v6150_v32, %v6102_v13  ;;  %v6199_v22 = vadd.f32 %v6151_v20, %v6103_v14  ;;  %v6246_v34 = vmul.f32 0.015625, %v5949_v21  ;;  %v6200_v24 = vadd.f32 %v6152_v28, %v6104_v25  ;;  %v5955_v32 = vld [vmem:[#allocation2 + $0x300] sm:$0xff]  ;;  %v17545_v28 = vpop.f32.mrf.mxu1 }
 0x603   :  { %v7303_v58 = vrot.slane %v7289_v55, %v18113_v31  ;;  %v7304_v39 = vcombine.high %v7296_v35, %v7296_v35  ;;  %v7320_v15 = vrot.slane %v7306_v44, %v18113_v31  ;;  %v7321_v54 = vcombine.high %v7313_v50, %v7313_v50  ;;  %v5957_v44 = vld [vmem:[#allocation2 + $0x310] sm:$0x7] }
 0x604   :  { %v10223_v52 = vrot.slane %v7296_v35, %v18114_v45  ;;  %v10239_v41 = vrot.slane %v7313_v50, %v18114_v45  ;;  %v6247_v17 = vmul.f32 0.015625, %v5950_v19  ;;  %v6248_v56 = vmul.f32 0.015625, %v5951_v62 }
 0x605   :  { %v7305_v57 = vcombine.high %v7303_v58, %v7303_v58  ;;  %v7322_v27 = vcombine.high %v7320_v15, %v7320_v15  ;;  %v10227_v3 = vrot.slane %v7304_v39, %v18114_v45  ;;  %v10231_v1 = vrot.slane %v7303_v58, %v18114_v45  ;;  %v5952_v39 = vld [vmem:[#allocation2 + $0x2e8] sm:$0xff] }
 0x606   :  { %v10243_v18 = vrot.slane %v7321_v54, %v18114_v45  ;;  %v10247_v59 = vrot.slane %v7320_v15, %v18114_v45  ;;  %v6294_v16 = vadd.f32 %v6246_v34, %v6198_v37  ;;  %v6295_v12 = vadd.f32 %v6247_v17, %v6199_v22  ;;  %v17551_v15 = vld [vmem:[#allocation2 + $0x2f0] sm:$0xff] }
 0x607   :  { %v10235_v49 = vrot.slane %v7305_v57, %v18114_v45  ;;  %v10251_v29 = vrot.slane %v7322_v27, %v18114_v45  ;;  %v10457_v9 = vsel %vm9569_vm8, %v10227_v3, %v10223_v52  ;;  %v6296_v48 = vadd.f32 %v6248_v56, %v6200_v24  ;;  %v17553_v52 = vld [vmem:[#allocation2 + $0x2f8] sm:$0x7] }
 0x608   :  { %v10458_v51 = vsel %vm9571_vm9, %v10231_v1, %v10457_v9  ;;  %v6342_v23 = vmul.f32 3.0, %v6294_v16  ;;  %v6799_v21 = vrot.slane %v6294_v16, 3  ;;  %v6343_v0 = vmul.f32 3.0, %v6295_v12 }
 0x609   :  { %v10459_v19 = vsel %vm9573_vm10, %v10235_v49, %v10458_v51  ;;  %v6800_v38 = vrot.slane %v6295_v12, 3  ;;  %v6009_v6 = vmul.f32 0.015625, %v5946_v47  ;;  %v6344_v36 = vmul.f32 3.0, %v6296_v48  ;;  %v5956_v47 = vld [vmem:[#allocation2 + $0x308] sm:$0xff] }
 0x60a   :  { %v10460_v62 = vsel %vm9575_vm11, %v10239_v41, %v10459_v19  ;;  %v6462_v33 = vrot.slane %v6342_v23, 1  ;;  %v6606_v10 = vrot.slane %v6342_v23, 2  ;;  %v6463_v40 = vrot.slane %v6343_v0, 1 }
 0x60b   :  { %v10461_v26 = vsel %vm9577_vm12, %v10243_v18, %v10460_v62  ;;  %v6607_v63 = vrot.slane %v6343_v0, 2  ;;  %v6801_v4 = vsel %vm6738_vm7, %v6799_v21, %v6800_v38  ;;  %v6465_v13 = vrot.slane %v6344_v36, 1 }
 0x60c   :  { %v10462_v5 = vsel %vm9579_vm13, %v10247_v59, %v10461_v26  ;;  %v6609_v14 = vrot.slane %v6344_v36, 2  ;;  %v6802_v25 = vrot.slane %v6296_v48, 3  ;;  %v6464_v55 = vsel %vm404_vm2, %v6462_v33, %v6463_v40 }
 0x60d   :  { %v10463_v20 = vsel %vm9581_vm14, %v10251_v29, %v10462_v5  ;;  %v6608_v35 = vsel %vm889_vm3, %v6606_v10, %v6607_v63  ;;  %v6010_v50 = vmul.f32 0.015625, %v17495_v7  ;;  %v6466_v37 = vsel %vm404_vm2, %v6463_v40, %v6465_v13 }
 0x60e   :  { %11057 = vmatmul.mubr.msk.f32.gmra.mxu1 %vm3379_vm1, %v10463_v20  ;;  %v6538_v22 = vadd.f32 %v6464_v55, %v6294_v16  ;;  %v6610_v34 = vsel %vm889_vm3, %v6607_v63, %v6609_v14  ;;  %v6803_v58 = vsel %vm6738_vm7, %v6800_v38, %v6802_v25  ;;  %v6539_v54 = vadd.f32 %v6466_v37, %v6295_v12  ;;  %v17566_v16 = vpop.f32.mrf.mxu1 }
 0x60f   :  { %v6011_v41 = vmul.f32 0.015625, %v17507_v53  ;;  %v17556_v7 = vmul.f32 0.046875, %v5955_v32  ;;  %v17558_v24 = vmul.f32 0.046875, %v5956_v47  ;;  %v17560_v57 = vmul.f32 0.046875, %v5957_v44 }
 0x610   :  { %v6682_v17 = vadd.f32 %v6608_v35, %v6538_v22  ;;  %v6105_v27 = vadd.f32 %v17503_v61, %v6009_v6  ;;  %v6106_v3 = vadd.f32 %v17505_v43, %v6010_v50  ;;  %v6683_v1 = vadd.f32 %v6610_v34, %v6539_v54  ;;  %v17573_v62 = vpop.f32.mrf.mxu1 }
 0x611   :  { %v6107_v18 = vadd.f32 %v17509_v46, %v6011_v41  ;;  %v6153_v59 = vmul.f32 0.046875, %v5952_v39  ;;  %v6154_v56 = vmul.f32 0.046875, %v17551_v15  ;;  %v6155_v49 = vmul.f32 0.046875, %v17553_v52 }
 0x612   :  { %v6875_v53 = vadd.f32 %v6801_v4, %v6682_v17  ;;  %v6249_v29 = vmul.f32 0.015625, %v5955_v32  ;;  %v6250_v9 = vmul.f32 0.015625, %v5956_v47  ;;  %v6876_v12 = vadd.f32 %v6803_v58, %v6683_v1 }
 0x613   :  { %v6201_v51 = vadd.f32 %v6153_v59, %v6105_v27  ;;  %v6202_v48 = vadd.f32 %v6154_v56, %v6106_v3  ;;  %v6251_v23 = vmul.f32 0.015625, %v5957_v44  ;;  %v6203_v21 = vadd.f32 %v6155_v49, %v6107_v18  ;;  %v17583_v44 = vpop.f32.mrf.mxu1 }
 0x614   :  { %v7323_v61 = vcombine.high %v6875_v53, %v6875_v53  ;;  %v7330_v43 = vrot.slane %v6875_v53, %v18113_v31  ;;  %v17570_v19 = vmul.f32 0.015625, %v5952_v39  ;;  %v7340_v46 = vcombine.high %v6876_v12, %v6876_v12 }
 0x615   :  { %v7347_v0 = vrot.slane %v6876_v12, %v18113_v31  ;;  %v6297_v38 = vadd.f32 %v6249_v29, %v6201_v51  ;;  %v6298_v6 = vadd.f32 %v6250_v9, %v6202_v48  ;;  %v6299_v26 = vadd.f32 %v6251_v23, %v6203_v21  ;;  %v17593_v49 = vpop.f32.mrf.mxu1  ;;  %v5961_v48 = vld [vmem:[#allocation2 + $0x330] sm:$0xff]  ;;  %v5962_v23 = vld [vmem:[#allocation2 + $0x338] sm:$0xff] }
 0x616   :  { %v7337_v36 = vrot.slane %v7323_v61, %v18113_v31  ;;  %v7338_v33 = vcombine.high %v7330_v43, %v7330_v43  ;;  %v10255_v10 = vrot.slane %v7330_v43, %v18114_v45  ;;  %v7354_v40 = vrot.slane %v7340_v46, %v18113_v31 }
 0x617   :  { %v7355_v63 = vcombine.high %v7347_v0, %v7347_v0  ;;  %v10271_v4 = vrot.slane %v7347_v0, %v18114_v45  ;;  %v6345_v5 = vmul.f32 3.0, %v6297_v38  ;;  %v6346_v32 = vmul.f32 3.0, %v6298_v6  ;;  %v5963_v0 = vld [vmem:[#allocation2 + $0x340] sm:$0x7] }
 0x618   :  { %v7339_v13 = vcombine.high %v7337_v36, %v7337_v36  ;;  %v10259_v14 = vrot.slane %v7338_v33, %v18114_v45  ;;  %v10263_v25 = vrot.slane %v7337_v36, %v18114_v45  ;;  %v7356_v47 = vcombine.high %v7354_v40, %v7354_v40  ;;  %v5958_v33 = vld [vmem:[#allocation2 + $0x318] sm:$0xff] }
 0x619   :  { %v10275_v20 = vrot.slane %v7355_v63, %v18114_v45  ;;  %v10279_v55 = vrot.slane %v7354_v40, %v18114_v45  ;;  %v6347_v35 = vmul.f32 3.0, %v6299_v26  ;;  %v6467_v22 = vrot.slane %v6345_v5, 1 }
 0x61a   :  { %v10267_v50 = vrot.slane %v7339_v13, %v18114_v45  ;;  %v10464_v37 = vsel %vm9569_vm8, %v10259_v14, %v10255_v10  ;;  %v6468_v34 = vrot.slane %v6346_v32, 1  ;;  %v10283_v58 = vrot.slane %v7356_v47, %v18114_v45  ;;  %v17600_v10 = vld [vmem:[#allocation2 + $0x320] sm:$0xff] }
 0x61b   :  { %v10465_v39 = vsel %vm9571_vm9, %v10263_v25, %v10464_v37  ;;  %v6470_v54 = vrot.slane %v6347_v35, 1  ;;  %v6611_v41 = vrot.slane %v6345_v5, 2  ;;  %v6612_v3 = vrot.slane %v6346_v32, 2  ;;  %v17613_v32 = vld [vmem:[#allocation2 + $0x328] sm:$0x7] }
 0x61c   :  { %v10466_v17 = vsel %vm9573_vm10, %v10267_v50, %v10465_v39  ;;  %v6469_v27 = vsel %vm404_vm2, %v6467_v22, %v6468_v34  ;;  %v6614_v1 = vrot.slane %v6347_v35, 2  ;;  %v6804_v53 = vrot.slane %v6297_v38, 3 }
 0x61d   :  { %v10467_v18 = vsel %vm9575_vm11, %v10271_v4, %v10466_v17  ;;  %v6471_v59 = vsel %vm404_vm2, %v6468_v34, %v6470_v54  ;;  %v6540_v56 = vadd.f32 %v6469_v27, %v6297_v38  ;;  %v6613_v12 = vsel %vm889_vm3, %v6611_v41, %v6612_v3 }
 0x61e   :  { %v10468_v29 = vsel %vm9577_vm12, %v10275_v20, %v10467_v18  ;;  %v6541_v9 = vadd.f32 %v6471_v59, %v6298_v6  ;;  %v6615_v51 = vsel %vm889_vm3, %v6612_v3, %v6614_v1  ;;  %v6805_v21 = vrot.slane %v6298_v6, 3 }
 0x61f   :  { %v10469_v61 = vsel %vm9579_vm13, %v10279_v55, %v10468_v29  ;;  %v6684_v43 = vadd.f32 %v6613_v12, %v6540_v56  ;;  %v6807_v46 = vrot.slane %v6299_v26, 3  ;;  %v6013_v40 = vmul.f32 0.015625, %v17551_v15  ;;  %v17611_v26 = vpop.f32.mrf.mxu1 }
 0x620   :  { %v10470_v36 = vsel %vm9581_vm14, %v10283_v58, %v10469_v61  ;;  %v6685_v38 = vadd.f32 %v6615_v51, %v6541_v9  ;;  %v6014_v63 = vmul.f32 0.015625, %v17553_v52  ;;  %v6806_v4 = vsel %vm6738_vm7, %v6804_v53, %v6805_v21 }
 0x621   :  { %11059 = vmatprep.mubr.msk.f32.mxu1 %vm3379_vm1, %v10470_v36  ;;  %v6808_v5 = vsel %vm6738_vm7, %v6805_v21, %v6807_v46  ;;  %v17607_v13 = vmul.f32 0.046875, %v5961_v48  ;;  %v17609_v6 = vmul.f32 0.046875, %v5962_v23  ;;  %v6877_v14 = vadd.f32 %v6806_v4, %v6684_v43  ;;  %v17625_v17 = vpop.f32.mrf.mxu1 }
 0x622   :  { %v6878_v25 = vadd.f32 %v6808_v5, %v6685_v38  ;;  %v17615_v47 = vmul.f32 0.046875, %v5963_v0  ;;  %v6108_v15 = vadd.f32 %v17556_v7, %v17570_v19  ;;  %v6109_v52 = vadd.f32 %v17558_v24, %v6013_v40 }
 0x623   :  { %v6110_v20 = vadd.f32 %v17560_v57, %v6014_v63  ;;  %v6156_v55 = vmul.f32 0.046875, %v5958_v33  ;;  %v6157_v35 = vmul.f32 0.046875, %v17600_v10  ;;  %v7357_v50 = vcombine.high %v6877_v14, %v6877_v14  ;;  %v17635_v61 = vpop.f32.mrf.mxu1 }
 0x624   :  { %v7364_v37 = vrot.slane %v6877_v14, %v18113_v31  ;;  %v7374_v22 = vcombine.high %v6878_v25, %v6878_v25  ;;  %v7381_v34 = vrot.slane %v6878_v25, %v18113_v31  ;;  %v6158_v58 = vmul.f32 0.046875, %v17613_v32 }
 0x625   :  { %v6204_v39 = vadd.f32 %v6156_v55, %v6108_v15  ;;  %v6205_v54 = vadd.f32 %v6157_v35, %v6109_v52  ;;  %v6252_v41 = vmul.f32 0.015625, %v5961_v48  ;;  %v7371_v7 = vrot.slane %v7357_v50, %v18113_v31  ;;  %v17643_v55 = vpop.f32.mrf.mxu1 }
 0x626   :  { %v7372_v24 = vcombine.high %v7364_v37, %v7364_v37  ;;  %v7388_v57 = vrot.slane %v7374_v22, %v18113_v31  ;;  %v7389_v19 = vcombine.high %v7381_v34, %v7381_v34  ;;  %v10287_v27 = vrot.slane %v7364_v37, %v18114_v45 }
 0x627   :  { %v10303_v3 = vrot.slane %v7381_v34, %v18114_v45  ;;  %v6206_v1 = vadd.f32 %v6158_v58, %v6110_v20  ;;  %v6253_v18 = vmul.f32 0.015625, %v5962_v23  ;;  %v7373_v59 = vcombine.high %v7371_v7, %v7371_v7 }
 0x628   :  { %v7390_v56 = vcombine.high %v7388_v57, %v7388_v57  ;;  %v10291_v53 = vrot.slane %v7372_v24, %v18114_v45  ;;  %v10295_v29 = vrot.slane %v7371_v7, %v18114_v45  ;;  %v10307_v9 = vrot.slane %v7389_v19, %v18114_v45  ;;  %v5964_v24 = vld [vmem:[#allocation2 + $0x348] sm:$0xff]  ;;  %v5966_v19 = vld [vmem:[#allocation2 + $0x358] sm:$0x7] }
 0x629   :  { %v10311_v12 = vrot.slane %v7388_v57, %v18114_v45  ;;  %v6254_v51 = vmul.f32 0.015625, %v5963_v0  ;;  %v6300_v48 = vadd.f32 %v6252_v41, %v6204_v39  ;;  %v10299_v43 = vrot.slane %v7373_v59, %v18114_v45  ;;  %v5965_v57 = vld [vmem:[#allocation2 + $0x350] sm:$0xff] }
 0x62a   :  { %v10315_v21 = vrot.slane %v7390_v56, %v18114_v45  ;;  %v10471_v23 = vsel %vm9569_vm8, %v10291_v53, %v10287_v27  ;;  %v6301_v46 = vadd.f32 %v6253_v18, %v6205_v54  ;;  %v6015_v0 = vmul.f32 0.015625, %v5958_v33  ;;  %v5967_v56 = vld [vmem:[#allocation2 + $0x360] sm:$0xff]  ;;  %v5968_v53 = vld [vmem:[#allocation2 + $0x368] sm:$0xff] }
 0x62b   :  { %v10472_v36 = vsel %vm9571_vm9, %v10295_v29, %v10471_v23  ;;  %v6302_v38 = vadd.f32 %v6254_v51, %v6206_v1  ;;  %v6348_v40 = vmul.f32 3.0, %v6300_v48  ;;  %v6809_v63 = vrot.slane %v6300_v48, 3  ;;  %v17656_v29 = vpop.f32.mrf.mxu1 }
 0x62c   :  { %v10473_v4 = vsel %vm9573_vm10, %v10299_v43, %v10472_v36  ;;  %v6349_v5 = vmul.f32 3.0, %v6301_v46  ;;  %v6810_v14 = vrot.slane %v6301_v46, 3  ;;  %v6016_v27 = vmul.f32 0.015625, %v17600_v10 }
 0x62d   :  { %v10474_v25 = vsel %vm9575_vm11, %v10303_v3, %v10473_v4  ;;  %v6350_v15 = vmul.f32 3.0, %v6302_v38  ;;  %v6472_v52 = vrot.slane %v6348_v40, 1  ;;  %v6616_v20 = vrot.slane %v6348_v40, 2 }
 0x62e   :  { %v10475_v35 = vsel %vm9577_vm12, %v10307_v9, %v10474_v25  ;;  %v6473_v50 = vrot.slane %v6349_v5, 1  ;;  %v6617_v37 = vrot.slane %v6349_v5, 2  ;;  %v6811_v22 = vsel %vm6738_vm7, %v6809_v63, %v6810_v14 }
 0x62f   :  { %v10476_v34 = vsel %vm9579_vm13, %v10311_v12, %v10475_v35  ;;  %v6475_v58 = vrot.slane %v6350_v15, 1  ;;  %v6619_v39 = vrot.slane %v6350_v15, 2  ;;  %v6812_v54 = vrot.slane %v6302_v38, 3  ;;  %v5969_v12 = vld [vmem:[#allocation2 + $0x370] sm:$0x7]  ;;  %v11043_v38 = vpop.f32.mrf.mxu1 }
 0x630   :  { %v10477_v33 = vsel %vm9581_vm14, %v10315_v21, %v10476_v34  ;;  %v6474_v41 = vsel %vm404_vm2, %v6472_v52, %v6473_v50  ;;  %v6618_v7 = vsel %vm889_vm3, %v6616_v20, %v6617_v37  ;;  %v6017_v51 = vmul.f32 0.015625, %v17613_v32 }
 0x631   :  { %11060 = vmatmul.mubr.msk.f32.gmra.mxu1 %vm3379_vm1, %v10477_v33  ;;  %v6476_v3 = vsel %vm404_vm2, %v6473_v50, %v6475_v58  ;;  %v6542_v1 = vadd.f32 %v6474_v41, %v6300_v48  ;;  %v6620_v18 = vsel %vm889_vm3, %v6617_v37, %v6619_v39  ;;  %v6813_v59 = vsel %vm6738_vm7, %v6810_v14, %v6812_v54 }
 0x632   :  { %v6543_v9 = vadd.f32 %v6476_v3, %v6301_v46  ;;  %v6111_v43 = vadd.f32 %v17607_v13, %v6015_v0  ;;  %v6112_v10 = vadd.f32 %v17609_v6, %v6016_v27  ;;  %v6159_v23 = vmul.f32 0.046875, %v5964_v24  ;;  %v17665_v13 = vld [vmem:[%s17816_s7] ss:$0 sm:$0xff] }
 0x633   :  { %v6686_v21 = vadd.f32 %v6618_v7, %v6542_v1  ;;  %v6160_v36 = vmul.f32 0.046875, %v5965_v57  ;;  %v6161_v48 = vmul.f32 0.046875, %v5966_v19  ;;  %v6113_v63 = vadd.f32 %v17615_v47, %v6017_v51 }
 0x634   :  { %v6687_v40 = vadd.f32 %v6620_v18, %v6543_v9  ;;  %v6255_v4 = vmul.f32 0.015625, %v5967_v56  ;;  %v6256_v5 = vmul.f32 0.015625, %v5968_v53  ;;  %v6207_v25 = vadd.f32 %v6159_v23, %v6111_v43 }
 0x635   :  { %v6879_v14 = vadd.f32 %v6811_v22, %v6686_v21  ;;  %v6208_v46 = vadd.f32 %v6160_v36, %v6112_v10  ;;  %v6257_v15 = vmul.f32 0.015625, %v5969_v12  ;;  %v6209_v32 = vadd.f32 %v6161_v48, %v6113_v63  ;;  %v10593_v36 = vpop.f32.mrf.mxu1 }
 0x636   :  { %v6880_v6 = vadd.f32 %v6813_v59, %v6687_v40  ;;  %v10599_v0 = vadd.f32 %v11043_v38, %v17475_v8  ;;  %v6303_v47 = vadd.f32 %v6255_v4, %v6207_v25 }
 0x637   :  { %v7391_v52 = vcombine.high %v6879_v14, %v6879_v14  ;;  %v7398_v20 = vrot.slane %v6879_v14, %v18113_v31  ;;  %v6304_v35 = vadd.f32 %v6256_v5, %v6208_v46  ;;  %v6305_v22 = vadd.f32 %v6257_v15, %v6209_v32 }
 0x638   :  { %v7408_v50 = vcombine.high %v6880_v6, %v6880_v6  ;;  %v7415_v37 = vrot.slane %v6880_v6, %v18113_v31  ;;  %v10680_v34 = vadd.f32 %v17665_v13, %v10599_v0  ;;  %v6351_v33 = vmul.f32 3.0, %v6303_v47 }
 0x639   :  { %v7405_v58 = vrot.slane %v7391_v52, %v18113_v31  ;;  %v7406_v39 = vcombine.high %v7398_v20, %v7398_v20  ;;  %v10319_v54 = vrot.slane %v7398_v20, %v18114_v45  ;;  %v6352_v24 = vmul.f32 3.0, %v6304_v35 }
 0x63a   :  { %v7422_v8 = vrot.slane %v7408_v50, %v18113_v31  ;;  %v7423_v41 = vcombine.high %v7415_v37, %v7415_v37  ;;  %v10335_v7 = vrot.slane %v7415_v37, %v18114_v45  ;;  %10697 = vst.msk [vmem:[%s17817_s8 + $0x8] sm:$0xff] %vm10695_vm15, %v10680_v34  ;;  %v6353_v3 = vmul.f32 3.0, %v6305_v22 }
 0x63b   :  { %v7407_v57 = vcombine.high %v7405_v58, %v7405_v58  ;;  %v10323_v19 = vrot.slane %v7406_v39, %v18114_v45  ;;  %v10327_v27 = vrot.slane %v7405_v58, %v18114_v45  ;;  %v6477_v56 = vrot.slane %v6351_v33, 1 }
 0x63c   :  { %v7424_v1 = vcombine.high %v7422_v8, %v7422_v8  ;;  %v10339_v18 = vrot.slane %v7423_v41, %v18114_v45  ;;  %v10343_v59 = vrot.slane %v7422_v8, %v18114_v45  ;;  %v6478_v12 = vrot.slane %v6352_v24, 1 }
 0x63d   :  { %v10331_v53 = vrot.slane %v7407_v57, %v18114_v45  ;;  %v10478_v9 = vsel %vm9569_vm8, %v10323_v19, %v10319_v54  ;;  %v6480_v51 = vrot.slane %v6353_v3, 1  ;;  %v6621_v21 = vrot.slane %v6351_v33, 2 }
 0x63e   :  { %v10347_v43 = vrot.slane %v7424_v1, %v18114_v45  ;;  %v10479_v10 = vsel %vm9571_vm9, %v10327_v27, %v10478_v9  ;;  %v6622_v23 = vrot.slane %v6352_v24, 2  ;;  %v6479_v38 = vsel %vm404_vm2, %v6477_v56, %v6478_v12 }
 0x63f   :  { %v10480_v48 = vsel %vm9573_vm10, %v10331_v53, %v10479_v10  ;;  %v6481_v40 = vsel %vm404_vm2, %v6478_v12, %v6480_v51  ;;  %v6624_v63 = vrot.slane %v6353_v3, 2  ;;  %v6544_v5 = vadd.f32 %v6479_v38, %v6303_v47 }
 0x640   :  { %v10481_v4 = vsel %vm9575_vm11, %v10335_v7, %v10480_v48  ;;  %v6545_v14 = vadd.f32 %v6481_v40, %v6304_v35  ;;  %v6623_v25 = vsel %vm889_vm3, %v6621_v21, %v6622_v23  ;;  %v6814_v6 = vrot.slane %v6303_v47, 3 }
 0x641   :  { %v10482_v46 = vsel %vm9577_vm12, %v10339_v18, %v10481_v4  ;;  %v6625_v15 = vsel %vm889_vm3, %v6622_v23, %v6624_v63  ;;  %v6815_v32 = vrot.slane %v6304_v35, 3  ;;  %v6688_v52 = vadd.f32 %v6623_v25, %v6544_v5 }
 0x642   :  { %v10483_v0 = vsel %vm9579_vm13, %v10343_v59, %v10482_v46  ;;  %v6689_v20 = vadd.f32 %v6625_v15, %v6545_v14  ;;  %v6817_v50 = vrot.slane %v6305_v22, 3  ;;  %v11046_v37 = vpop.f32.mrf.mxu1  ;;  %v10594_v39 = vadd.f32 %v10593_v36, %v17484_v30 }
 0x643   :  { %v10484_v34 = vsel %vm9581_vm14, %v10347_v43, %v10483_v0  ;;  %v6816_v58 = vsel %vm6738_vm7, %v6814_v6, %v6815_v32  ;;  %v10609_v54 = vadd.f32 %v11046_v37, %v17498_v42 }
 0x644   :  { %11062 = vmatprep.mubr.msk.f32.mxu1 %vm3379_vm1, %v10484_v34  ;;  %v6818_v33 = vsel %vm6738_vm7, %v6815_v32, %v6817_v50  ;;  %v6881_v47 = vadd.f32 %v6816_v58, %v6688_v52  ;;  %v10603_v35 = vpop.f32.mrf.mxu1  ;;  %v10679_v41 = vadd.f32 %v17665_v13, %v10594_v39 }
 0x645   :  { %v6882_v8 = vadd.f32 %v6818_v33, %v6689_v20  ;;  %v10682_v22 = vadd.f32 %v17665_v13, %v10609_v54  ;;  %v10604_v7 = vadd.f32 %v10603_v35, %v17517_v11 }
 0x646   :  { %v7425_v24 = vcombine.high %v6881_v47, %v6881_v47  ;;  %v7432_v57 = vrot.slane %v6881_v47, %v18113_v31  ;;  %10696 = vst.msk [vmem:[%s17817_s8] sm:$0xff] %vm10695_vm15, %v10679_v41 }
 0x647   :  { %v7442_v19 = vcombine.high %v6882_v8, %v6882_v8  ;;  %v7449_v30 = vrot.slane %v6882_v8, %v18113_v31  ;;  %10699 = vst.msk [vmem:[%s17817_s8 + $0x18] sm:$0xff] %vm10695_vm15, %v10682_v22  ;;  %v10681_v42 = vadd.f32 %v17665_v13, %v10604_v7 }
 0x648   :  { %v7439_v11 = vrot.slane %v7425_v24, %v18113_v31  ;;  %v7440_v27 = vcombine.high %v7432_v57, %v7432_v57  ;;  %v10351_v1 = vrot.slane %v7432_v57, %v18114_v45 }
 0x649   :  { %v7456_v3 = vrot.slane %v7442_v19, %v18113_v31  ;;  %10698 = vst.msk [vmem:[%s17817_s8 + $0x10] sm:$0xff] %vm10695_vm15, %v10681_v42  ;;  %v7457_v59 = vcombine.high %v7449_v30, %v7449_v30  ;;  %v10367_v31 = vrot.slane %v7449_v30, %v18114_v45 }
 0x64a   :  { %v7441_v18 = vcombine.high %v7439_v11, %v7439_v11  ;;  %v10355_v56 = vrot.slane %v7440_v27, %v18114_v45  ;;  %v10359_v53 = vrot.slane %v7439_v11, %v18114_v45 }
 0x64b   :  { %v7458_v9 = vcombine.high %v7456_v3, %v7456_v3  ;;  %v10371_v10 = vrot.slane %v7457_v59, %v18114_v45  ;;  %v10375_v23 = vrot.slane %v7456_v3, %v18114_v45 }
 0x64c   :  { %v10363_v12 = vrot.slane %v7441_v18, %v18114_v45  ;;  %v10485_v51 = vsel %vm9569_vm8, %v10355_v56, %v10351_v1 }
 0x64d   :  { %v10486_v43 = vsel %vm9571_vm9, %v10359_v53, %v10485_v51  ;;  %v10379_v48 = vrot.slane %v7458_v9, %v18114_v45 }
 0x64e   :  { %v10487_v21 = vsel %vm9573_vm10, %v10363_v12, %v10486_v43 }
 0x64f   :  { %v10488_v36 = vsel %vm9575_vm11, %v10367_v31, %v10487_v21 }
 0x650   :  { %v10489_v38 = vsel %vm9577_vm12, %v10371_v10, %v10488_v36 }
 0x651   :  { %v10490_v40 = vsel %vm9579_vm13, %v10375_v23, %v10489_v38 }
 0x652   :  { %v10491_v63 = vsel %vm9581_vm14, %v10379_v48, %v10490_v40 }
 0x653   :  { %11063 = vmatmul.mubr.msk.f32.gmra.mxu1 %vm3379_vm1, %v10491_v63 }
 0x665   :  { %v11049_v4 = vpop.f32.mrf.mxu1 }
 0x666   :  { %v10619_v5 = vadd.f32 %v11049_v4, %v17526_v60 }
 0x667   :  { %v10613_v14 = vpop.f32.mrf.mxu1 }
 0x668   :  { %v10684_v25 = vadd.f32 %v17665_v13, %v10619_v5  ;;  %v10614_v46 = vadd.f32 %v10613_v14, %v17535_v2 }
 0x66a   :  { %10701 = vst.msk [vmem:[%s17817_s8 + $0x28] sm:$0xff] %vm10695_vm15, %v10684_v25  ;;  %v10683_v45 = vadd.f32 %v17665_v13, %v10614_v46 }
 0x66c   :  { %10700 = vst.msk [vmem:[%s17817_s8 + $0x20] sm:$0xff] %vm10695_vm15, %v10683_v45 }
 0x687   :  { %v11052_v15 = vpop.f32.mrf.mxu1 }
 0x688   :  { %v10629_v60 = vadd.f32 %v11052_v15, %v17545_v28 }
 0x689   :  { %v10623_v6 = vpop.f32.mrf.mxu1 }
 0x68a   :  { %v10686_v32 = vadd.f32 %v17665_v13, %v10629_v60  ;;  %v10624_v2 = vadd.f32 %v10623_v6, %v17566_v16 }
 0x68c   :  { %10703 = vst.msk [vmem:[%s17817_s8 + $0x38] sm:$0xff] %vm10695_vm15, %v10686_v32  ;;  %v10685_v0 = vadd.f32 %v17665_v13, %v10624_v2 }
 0x68e   :  { %10702 = vst.msk [vmem:[%s17817_s8 + $0x30] sm:$0xff] %vm10695_vm15, %v10685_v0 }
 0x6ab   :  { %v11055_v52 = vpop.f32.mrf.mxu1 }
 0x6ac   :  { %v10639_v28 = vadd.f32 %v11055_v52, %v17573_v62 }
 0x6ad   :  { %v10633_v20 = vpop.f32.mrf.mxu1 }
 0x6ae   :  { %v10688_v50 = vadd.f32 %v17665_v13, %v10639_v28  ;;  %v10634_v16 = vadd.f32 %v10633_v20, %v17583_v44 }
 0x6b0   :  { %10705 = vst.msk [vmem:[%s17817_s8 + $0x48] sm:$0xff] %vm10695_vm15, %v10688_v50  ;;  %v10687_v37 = vadd.f32 %v17665_v13, %v10634_v16 }
 0x6b2   :  { %10704 = vst.msk [vmem:[%s17817_s8 + $0x40] sm:$0xff] %vm10695_vm15, %v10687_v37 }
 0x6ce   :  { %v11058_v34 = vpop.f32.mrf.mxu1 }
 0x6cf   :  { %v10649_v62 = vadd.f32 %v11058_v34, %v17593_v49 }
 0x6d0   :  { %v10643_v58 = vpop.f32.mrf.mxu1 }
 0x6d1   :  { %v10690_v39 = vadd.f32 %v17665_v13, %v10649_v62  ;;  %v10644_v44 = vadd.f32 %v10643_v58, %v17611_v26 }
 0x6d3   :  { %10707 = vst.msk [vmem:[%s17817_s8 + $0x58] sm:$0xff] %vm10695_vm15, %v10690_v39  ;;  %v10689_v54 = vadd.f32 %v17665_v13, %v10644_v44 }
 0x6d5   :  { %10706 = vst.msk [vmem:[%s17817_s8 + $0x50] sm:$0xff] %vm10695_vm15, %v10689_v54 }
 0x6f1   :  { %v11061_v33 = vpop.f32.mrf.mxu1 }
 0x6f2   :  { %v10659_v49 = vadd.f32 %v11061_v33, %v17625_v17 }
 0x6f3   :  { %v10653_v47 = vpop.f32.mrf.mxu1 }
 0x6f4   :  { %v10692_v35 = vadd.f32 %v17665_v13, %v10659_v49  ;;  %v10654_v26 = vadd.f32 %v10653_v47, %v17635_v61 }
 0x6f6   :  { %10709 = vst.msk [vmem:[%s17817_s8 + $0x68] sm:$0xff] %vm10695_vm15, %v10692_v35  ;;  %v10691_v8 = vadd.f32 %v17665_v13, %v10654_v26 }
 0x6f8   :  { %10708 = vst.msk [vmem:[%s17817_s8 + $0x60] sm:$0xff] %vm10695_vm15, %v10691_v8 }
 0x713   :  { %v11064_v41 = vpop.f32.mrf.mxu1 }
 0x714   :  { %v10669_v17 = vadd.f32 %v11064_v41, %v17643_v55 }
 0x715   :  { %v10663_v22 = vpop.f32.mrf.mxu1 }
 0x716   :  { %v10694_v7 = vadd.f32 %v17665_v13, %v10669_v17  ;;  %v10664_v61 = vadd.f32 %v10663_v22, %v17656_v29 }
 0x718   :  { %10711 = vst.msk [vmem:[%s17817_s8 + $0x78] sm:$0xff] %vm10695_vm15, %v10694_v7  ;;  %v10693_v24 = vadd.f32 %v17665_v13, %v10664_v61 }
 0x71a   :  { %10710 = vst.msk [vmem:[%s17817_s8 + $0x70] sm:$0xff] %vm10695_vm15, %v10693_v24 }

</bundles_post_ra>
